<compile_context>
chip_gen: v6e
topology: v6e:2x2x1
jax: 0.10.0
libtpu: 0.0.40
codegen_flags: <defaults>
</compile_context>

<pallas_src>
import functools

import jax
import jax.numpy as jnp
from jax import lax
from jax.experimental import pallas as pl
from jax.experimental.pallas import tpu as pltpu

HIDDEN = 32
NUM_LAYERS = 2
_SUBLANE = 8


# ----------------------------------------------------------------------------
# Fused kernel: full 2-layer bidirectional GRU, final hidden states only.
# ----------------------------------------------------------------------------
def gru_block_kernel(
    x_ref,       # (T*BP, 1)       time-major input, batch rows padded to BP
    wih0_ref,    # (2, 1, 3H)      layer-0 input weights per direction, lanes [r|z|n]
    wih1_ref,    # (2, 2H, 3H)     layer-1 input weights per direction
    whh_ref,     # (2, 2, H, 3H)   recurrent weights [layer, dir]
    bfold_ref,   # (2, 2, 1, 3H)   b_ih + [b_hr, b_hz, 0]  folded into input proj
    bhn_ref,     # (2, 2, 1, H)    b_hn (must stay inside r*(.))
    out_ref,     # (B, 2H)         [ last-layer bwd | last-layer fwd ]
    gif_ref,     # (T*BP, 3H)      scratch: fwd gate-input projections (reused per layer)
    gib_ref,     # (T*BP, 3H)      scratch: bwd gate-input projections
    y0_ref,      # (T*BP, 2H)      scratch: layer-0 outputs, lanes [fwd | bwd]
    *, T, B, BP,
):
    H = HIDDEN
    H2 = 2 * H
    f32 = jnp.float32

    def cell(gi, gh, bhn, h):
        # gi already contains b_ih (+ b_hr / b_hz for the r/z gates).
        r = jax.nn.sigmoid(gi[:, :H] + gh[:, :H])
        z = jax.nn.sigmoid(gi[:, H:H2] + gh[:, H:H2])
        n = jnp.tanh(gi[:, H2:] + r * (gh[:, H2:] + bhn))
        return (1.0 - z) * n + z * h

    # ---- layer 0 input projection: one broadcast multiply, all timesteps ----
    # D_in == 1  ->  pure VPU, no MXU.
    x = x_ref[...]                                          # (T*BP, 1)
    gif_ref[...] = x * wih0_ref[0] + bfold_ref[0, 0]
    gib_ref[...] = x * wih0_ref[1] + bfold_ref[0, 1]
    y0_ref[...] = jnp.zeros_like(y0_ref)                    # deterministic pad rows

    h0 = jnp.zeros((B, H), f32)

    # ---- layer 0 recurrence: fwd + bwd fused, fully static-unrolled ---------
    whh_f = whh_ref[0, 0]
    whh_b = whh_ref[0, 1]
    bhn_f = bhn_ref[0, 0]
    bhn_b = bhn_ref[0, 1]
    h_f, h_b = h0, h0
    for s in range(T):
        rf = s * BP
        rb = (T - 1 - s) * BP
        gh_f = jnp.dot(h_f, whh_f, preferred_element_type=f32)   # (B, 3H)
        gh_b = jnp.dot(h_b, whh_b, preferred_element_type=f32)
        h_f = cell(gif_ref[rf:rf + B, :], gh_f, bhn_f, h_f)
        h_b = cell(gib_ref[rb:rb + B, :], gh_b, bhn_b, h_b)
        y0_ref[rf:rf + B, :H] = h_f                 # fwd output at time s
        y0_ref[rb:rb + B, H:] = h_b                 # bwd output at time T-1-s

    # ---- layer 1 input projection: one wide MXU matmul per direction --------
    y_all = y0_ref[...]                                      # (T*BP, 2H)
    gif_ref[...] = (jnp.dot(y_all, wih1_ref[0], preferred_element_type=f32)
                    + bfold_ref[1, 0])
    gib_ref[...] = (jnp.dot(y_all, wih1_ref[1], preferred_element_type=f32)
                    + bfold_ref[1, 1])

    # ---- layer 1 recurrence: only final hidden states are needed ------------
    whh_f = whh_ref[1, 0]
    whh_b = whh_ref[1, 1]
    bhn_f = bhn_ref[1, 0]
    bhn_b = bhn_ref[1, 1]
    h_f, h_b = h0, h0
    for s in range(T):
        rf = s * BP
        rb = (T - 1 - s) * BP
        gh_f = jnp.dot(h_f, whh_f, preferred_element_type=f32)
        gh_b = jnp.dot(h_b, whh_b, preferred_element_type=f32)
        h_f = cell(gif_ref[rf:rf + B, :], gh_f, bhn_f, h_f)
        h_b = cell(gib_ref[rb:rb + B, :], gh_b, bhn_b, h_b)

    # PyTorch: out = cat(hidden[-1], hidden[-2]) = [last-layer bwd | last-layer fwd]
    out_ref[:, :H] = h_b
    out_ref[:, H:] = h_f


# ----------------------------------------------------------------------------
# One-time parameter packing: PyTorch layout -> 5 kernel-layout arrays.
# ----------------------------------------------------------------------------
def prepare_params(params):
    H = HIDDEN
    f32 = jnp.float32
    wih0, wih1, whh, bfold, bhn = [], [], [], [], []
    for layer in range(NUM_LAYERS):
        for (w_ih, w_hh, b_ih, b_hh) in params[layer]:
            w_ih = jnp.asarray(w_ih, f32)            # (3H, D_in)
            w_hh = jnp.asarray(w_hh, f32)            # (3H, H)
            b_ih = jnp.asarray(b_ih, f32)            # (3H,)
            b_hh = jnp.asarray(b_hh, f32)            # (3H,)
            whh.append(w_hh.T)                                        # (H, 3H)
            bfold.append((b_ih.at[:2 * H].add(b_hh[:2 * H])).reshape(1, 3 * H))
            bhn.append(b_hh[2 * H:].reshape(1, H))
            if layer == 0:
                wih0.append(w_ih.reshape(1, 3 * H))                   # D_in == 1
            else:
                wih1.append(w_ih.T)                                   # (2H, 3H)
    return (jnp.stack(wih0),                          # (2, 1, 3H)
            jnp.stack(wih1),                          # (2, 2H, 3H)
            jnp.stack(whh).reshape(2, 2, H, 3 * H),   # (2, 2, H, 3H)
            jnp.stack(bfold).reshape(2, 2, 1, 3 * H), # (2, 2, 1, 3H)
            jnp.stack(bhn).reshape(2, 2, 1, H))       # (2, 2, 1, H)


# ----------------------------------------------------------------------------
# GRU_Block forward: one fused pallas_call.
# ----------------------------------------------------------------------------
def gru_block_forward(x, kparams):
    wih0, wih1, whh, bfold, bhn = kparams
    H = HIDDEN
    B = x.shape[0]
    x_seq = x.reshape(B, -1, 1).astype(jnp.float32)        # (B, T, 1)  batch_first
    T = x_seq.shape[1]
    BP = -(-B // _SUBLANE) * _SUBLANE                      # batch rows -> sublane tile
    x_tm = jnp.transpose(x_seq, (1, 0, 2))                 # (T, B, 1)  time-major
    x2d = jnp.pad(x_tm, ((0, 0), (0, BP - B), (0, 0))).reshape(T * BP, 1)

    vmem = pl.BlockSpec(memory_space=pltpu.MemorySpace.VMEM)
    kernel = functools.partial(gru_block_kernel, T=T, B=B, BP=BP)
    return pl.pallas_call(
        kernel,
        out_shape=jax.ShapeDtypeStruct((B, 2 * H), jnp.float32),
        in_specs=[vmem] * 6,
        out_specs=vmem,
        scratch_shapes=[
            pltpu.VMEM((T * BP, 3 * H), jnp.float32),   # gi fwd (reused by both layers)
            pltpu.VMEM((T * BP, 3 * H), jnp.float32),   # gi bwd
            pltpu.VMEM((T * BP, 2 * H), jnp.float32),   # layer-0 outputs [fwd | bwd]
        ],
    )(x2d, wih0, wih1, whh, bfold, bhn)


# ----------------------------------------------------------------------------
# Pure-JAX reference (same math, lax.scan) for validation.
# ----------------------------------------------------------------------------
def _ref_layer(x_seq, w_ih, w_hh, b_ih, b_hh):
    H = w_hh.shape[1]

    def step(h, x_t):
        gi = x_t @ w_ih.T + b_ih
        gh = h @ w_hh.T + b_hh
        r = jax.nn.sigmoid(gi[:, :H] + gh[:, :H])
        z = jax.nn.sigmoid(gi[:, H:2 * H] + gh[:, H:2 * H])
        n = jnp.tanh(gi[:, 2 * H:] + r * gh[:, 2 * H:])
        h_new = (1.0 - z) * n + z * h
        return h_new, h_new

    h0 = jnp.zeros((x_seq.shape[1], H), jnp.float32)
    h_fin, ys = lax.scan(step, h0, x_seq)
    return ys, h_fin


def gru_block_reference(x, params):
    B = x.shape[0]
    x_seq = jnp.transpose(x.reshape(B, -1, 1).astype(jnp.float32), (1, 0, 2))
    layer_in = x_seq
    h_f = h_b = None
    for layer in range(NUM_LAYERS):
        (wih_f, whh_f, bih_f, bhh_f), (wih_b, whh_b, bih_b, bhh_b) = params[layer]
        y_f, h_f = _ref_layer(layer_in, wih_f, whh_f, bih_f, bhh_f)
        y_b_rev, h_b = _ref_layer(layer_in[::-1], wih_b, whh_b, bih_b, bhh_b)
        layer_in = jnp.concatenate([y_f, y_b_rev[::-1]], axis=-1)
    return jnp.concatenate([h_b, h_f], axis=1)


# ----------------------------------------------------------------------------
# Deterministic parameter init (PyTorch uniform(-1/sqrt(H), 1/sqrt(H)) style).
# ----------------------------------------------------------------------------
def init_params(key):
    bound = 1.0 / (HIDDEN ** 0.5)
    in_sizes = [1, 2 * HIDDEN]
    params = []
    for layer in range(NUM_LAYERS):
        dirs = []
        for _direction in range(2):
            key, k1, k2, k3, k4 = jax.random.split(key, 5)
            w_ih = jax.random.uniform(k1, (3 * HIDDEN, in_sizes[layer]), jnp.float32, -bound, bound)
            w_hh = jax.random.uniform(k2, (3 * HIDDEN, HIDDEN), jnp.float32, -bound, bound)
            b_ih = jax.random.uniform(k3, (3 * HIDDEN,), jnp.float32, -bound, bound)
            b_hh = jax.random.uniform(k4, (3 * HIDDEN,), jnp.float32, -bound, bound)
            dirs.append((w_ih, w_hh, b_ih, b_hh))
        params.append(dirs)
    return params


if __name__ == "__main__":
    key = jax.random.PRNGKey(0)
    x = jax.random.normal(key, (2, 16), jnp.float32)   # view -> (2, 16, 1): batch=2, seq=16
    params = init_params(jax.random.PRNGKey(42))

    # Weight packing happens ONCE here — outside the per-call jit graph.
    kparams = prepare_params(params)

    fwd = jax.jit(gru_block_forward)
    out = jax.block_until_ready(fwd(x, kparams))
    assert out.shape == (2, 2 * HIDDEN), out.shape

    ref = jax.block_until_ready(gru_block_reference(x, params))
    assert jnp.allclose(out, ref, atol=1e-4, rtol=1e-4), (
        f"max abs diff {jnp.max(jnp.abs(out - ref))}"
    )

    print("KERNEL_OK")
</pallas_src>

<mosaic_0001>
module attributes {stable_mosaic.version = 11 : i64} {
  func.func @gru_block_kernel(%arg0: memref<128x1xf32, #tpu.memory_space<vmem>>, %arg1: memref<2x1x96xf32, #tpu.memory_space<vmem>>, %arg2: memref<2x64x96xf32, #tpu.memory_space<vmem>>, %arg3: memref<2x2x32x96xf32, #tpu.memory_space<vmem>>, %arg4: memref<2x2x1x96xf32, #tpu.memory_space<vmem>>, %arg5: memref<2x2x1x32xf32, #tpu.memory_space<vmem>>, %arg6: memref<2x64xf32, #tpu.memory_space<vmem>>, %arg7: memref<128x96xf32, #tpu.memory_space<vmem>>, %arg8: memref<128x96xf32, #tpu.memory_space<vmem>>, %arg9: memref<128x64xf32, #tpu.memory_space<vmem>>) attributes {dimension_semantics = [], scalar_prefetch = 0 : i64, scratch_operands = 3 : i64, tpu.core_type = #tpu.core_type<tc>} {
    %c0 = arith.constant 0 : index
    %c0_0 = arith.constant 0 : index
    %0 = vector.load %arg0[%c0, %c0_0] : memref<128x1xf32, #tpu.memory_space<vmem>>, vector<128x1xf32>
    %c0_1 = arith.constant 0 : index
    %c0_2 = arith.constant 0 : index
    %c0_3 = arith.constant 0 : index
    %1 = vector.load %arg1[%c0_1, %c0_2, %c0_3] : memref<2x1x96xf32, #tpu.memory_space<vmem>>, vector<1x1x96xf32>
    %2 = vector.shape_cast %1 : vector<1x1x96xf32> to vector<1x96xf32>
    %3 = vector.broadcast %0 : vector<128x1xf32> to vector<128x96xf32>
    %4 = vector.broadcast %2 : vector<1x96xf32> to vector<128x96xf32>
    %5 = arith.mulf %3, %4 : vector<128x96xf32>
    %c0_4 = arith.constant 0 : index
    %c0_5 = arith.constant 0 : index
    %c0_6 = arith.constant 0 : index
    %c0_7 = arith.constant 0 : index
    %6 = vector.load %arg4[%c0_4, %c0_5, %c0_6, %c0_7] : memref<2x2x1x96xf32, #tpu.memory_space<vmem>>, vector<1x1x1x96xf32>
    %7 = vector.shape_cast %6 : vector<1x1x1x96xf32> to vector<1x96xf32>
    %8 = vector.broadcast %7 : vector<1x96xf32> to vector<128x96xf32>
    %9 = arith.addf %5, %8 : vector<128x96xf32>
    %c0_8 = arith.constant 0 : index
    %c0_9 = arith.constant 0 : index
    %10 = vector.load %arg7[%c0_8, %c0_9] : memref<128x96xf32, #tpu.memory_space<vmem>>, vector<128x96xf32>
    tpu.vector_store %arg7[%c0_8, %c0_9], %9 {strides = array<i32>} : memref<128x96xf32, #tpu.memory_space<vmem>>, vector<128x96xf32>,
    %c1 = arith.constant 1 : index
    %c0_10 = arith.constant 0 : index
    %c0_11 = arith.constant 0 : index
    %11 = vector.load %arg1[%c1, %c0_10, %c0_11] : memref<2x1x96xf32, #tpu.memory_space<vmem>>, vector<1x1x96xf32>
    %12 = vector.shape_cast %11 : vector<1x1x96xf32> to vector<1x96xf32>
    %13 = vector.broadcast %0 : vector<128x1xf32> to vector<128x96xf32>
    %14 = vector.broadcast %12 : vector<1x96xf32> to vector<128x96xf32>
    %15 = arith.mulf %13, %14 : vector<128x96xf32>
    %c0_12 = arith.constant 0 : index
    %c1_13 = arith.constant 1 : index
    %c0_14 = arith.constant 0 : index
    %c0_15 = arith.constant 0 : index
    %16 = vector.load %arg4[%c0_12, %c1_13, %c0_14, %c0_15] : memref<2x2x1x96xf32, #tpu.memory_space<vmem>>, vector<1x1x1x96xf32>
    %17 = vector.shape_cast %16 : vector<1x1x1x96xf32> to vector<1x96xf32>
    %18 = vector.broadcast %17 : vector<1x96xf32> to vector<128x96xf32>
    %19 = arith.addf %15, %18 : vector<128x96xf32>
    %c0_16 = arith.constant 0 : index
    %c0_17 = arith.constant 0 : index
    %20 = vector.load %arg8[%c0_16, %c0_17] : memref<128x96xf32, #tpu.memory_space<vmem>>, vector<128x96xf32>
    tpu.vector_store %arg8[%c0_16, %c0_17], %19 {strides = array<i32>} : memref<128x96xf32, #tpu.memory_space<vmem>>, vector<128x96xf32>,
    %cst = arith.constant 0.000000e+00 : f32
    %21 = vector.broadcast %cst : f32 to vector<128x64xf32>
    %c0_18 = arith.constant 0 : index
    %c0_19 = arith.constant 0 : index
    %22 = vector.load %arg9[%c0_18, %c0_19] : memref<128x64xf32, #tpu.memory_space<vmem>>, vector<128x64xf32>
    tpu.vector_store %arg9[%c0_18, %c0_19], %21 {strides = array<i32>} : memref<128x64xf32, #tpu.memory_space<vmem>>, vector<128x64xf32>,
    %cst_20 = arith.constant 0.000000e+00 : f32
    %23 = vector.broadcast %cst_20 : f32 to vector<2x32xf32>
    %c0_21 = arith.constant 0 : index
    %c0_22 = arith.constant 0 : index
    %c0_23 = arith.constant 0 : index
    %c0_24 = arith.constant 0 : index
    %24 = vector.load %arg3[%c0_21, %c0_22, %c0_23, %c0_24] : memref<2x2x32x96xf32, #tpu.memory_space<vmem>>, vector<1x1x32x96xf32>
    %25 = vector.shape_cast %24 : vector<1x1x32x96xf32> to vector<32x96xf32>
    %c0_25 = arith.constant 0 : index
    %c1_26 = arith.constant 1 : index
    %c0_27 = arith.constant 0 : index
    %c0_28 = arith.constant 0 : index
    %26 = vector.load %arg3[%c0_25, %c1_26, %c0_27, %c0_28] : memref<2x2x32x96xf32, #tpu.memory_space<vmem>>, vector<1x1x32x96xf32>
    %27 = vector.shape_cast %26 : vector<1x1x32x96xf32> to vector<32x96xf32>
    %c0_29 = arith.constant 0 : index
    %c0_30 = arith.constant 0 : index
    %c0_31 = arith.constant 0 : index
    %c0_32 = arith.constant 0 : index
    %28 = vector.load %arg5[%c0_29, %c0_30, %c0_31, %c0_32] : memref<2x2x1x32xf32, #tpu.memory_space<vmem>>, vector<1x1x1x32xf32>
    %29 = vector.shape_cast %28 : vector<1x1x1x32xf32> to vector<1x32xf32>
    %c0_33 = arith.constant 0 : index
    %c1_34 = arith.constant 1 : index
    %c0_35 = arith.constant 0 : index
    %c0_36 = arith.constant 0 : index
    %30 = vector.load %arg5[%c0_33, %c1_34, %c0_35, %c0_36] : memref<2x2x1x32xf32, #tpu.memory_space<vmem>>, vector<1x1x1x32xf32>
    %31 = vector.shape_cast %30 : vector<1x1x1x32xf32> to vector<1x32xf32>
    %cst_37 = arith.constant dense<0.000000e+00> : vector<2x96xf32>
    %32 = tpu.matmul %23, %25, %cst_37 {dimension_numbers = #tpu.dot_dimension_numbers<[1], [0], [0], [1], [0, 0, 1, 1], [], []>} : vector<2x32xf32>, vector<32x96xf32>, vector<2x96xf32> -> vector<2x96xf32>
    %cst_38 = arith.constant dense<0.000000e+00> : vector<2x96xf32>
    %33 = tpu.matmul %23, %27, %cst_38 {dimension_numbers = #tpu.dot_dimension_numbers<[1], [0], [0], [1], [0, 0, 1, 1], [], []>} : vector<2x32xf32>, vector<32x96xf32>, vector<2x96xf32> -> vector<2x96xf32>
    %c0_39 = arith.constant 0 : index
    %c0_40 = arith.constant 0 : index
    %34 = vector.load %arg7[%c0_39, %c0_40] : memref<128x96xf32, #tpu.memory_space<vmem>>, vector<2x96xf32>
    %35 = vector.extract_strided_slice %34 {offsets = [0, 0], sizes = [2, 32], strides = [1, 1]} : vector<2x96xf32> to vector<2x32xf32>
    %36 = vector.extract_strided_slice %32 {offsets = [0, 0], sizes = [2, 32], strides = [1, 1]} : vector<2x96xf32> to vector<2x32xf32>
    %37 = arith.addf %35, %36 : vector<2x32xf32>
    %38 = arith.negf %37 : vector<2x32xf32>
    %39 = math.exp %38 : vector<2x32xf32>
    %cst_41 = arith.constant 1.000000e+00 : f32
    %40 = vector.broadcast %cst_41 : f32 to vector<2x32xf32>
    %41 = arith.addf %40, %39 : vector<2x32xf32>
    %42 = arith.divf %40, %41 : vector<2x32xf32>
    %43 = vector.extract_strided_slice %34 {offsets = [0, 32], sizes = [2, 32], strides = [1, 1]} : vector<2x96xf32> to vector<2x32xf32>
    %44 = vector.extract_strided_slice %32 {offsets = [0, 32], sizes = [2, 32], strides = [1, 1]} : vector<2x96xf32> to vector<2x32xf32>
    %45 = arith.addf %43, %44 : vector<2x32xf32>
    %46 = arith.negf %45 : vector<2x32xf32>
    %47 = math.exp %46 : vector<2x32xf32>
    %cst_42 = arith.constant 1.000000e+00 : f32
    %48 = vector.broadcast %cst_42 : f32 to vector<2x32xf32>
    %49 = arith.addf %48, %47 : vector<2x32xf32>
    %50 = arith.divf %48, %49 : vector<2x32xf32>
    %51 = vector.extract_strided_slice %34 {offsets = [0, 64], sizes = [2, 32], strides = [1, 1]} : vector<2x96xf32> to vector<2x32xf32>
    %52 = vector.extract_strided_slice %32 {offsets = [0, 64], sizes = [2, 32], strides = [1, 1]} : vector<2x96xf32> to vector<2x32xf32>
    %53 = vector.broadcast %29 : vector<1x32xf32> to vector<2x32xf32>
    %54 = arith.addf %52, %53 : vector<2x32xf32>
    %55 = arith.mulf %42, %54 : vector<2x32xf32>
    %56 = arith.addf %51, %55 : vector<2x32xf32>
    %57 = math.tanh %56 : vector<2x32xf32>
    %cst_43 = arith.constant 1.000000e+00 : f32
    %58 = vector.broadcast %cst_43 : f32 to vector<2x32xf32>
    %59 = arith.subf %58, %50 : vector<2x32xf32>
    %60 = arith.mulf %59, %57 : vector<2x32xf32>
    %61 = arith.mulf %50, %23 : vector<2x32xf32>
    %62 = arith.addf %60, %61 : vector<2x32xf32>
    %c120 = arith.constant 120 : index
    %c0_44 = arith.constant 0 : index
    %63 = vector.load %arg8[%c120, %c0_44] : memref<128x96xf32, #tpu.memory_space<vmem>>, vector<2x96xf32>
    %64 = vector.extract_strided_slice %63 {offsets = [0, 0], sizes = [2, 32], strides = [1, 1]} : vector<2x96xf32> to vector<2x32xf32>
    %65 = vector.extract_strided_slice %33 {offsets = [0, 0], sizes = [2, 32], strides = [1, 1]} : vector<2x96xf32> to vector<2x32xf32>
    %66 = arith.addf %64, %65 : vector<2x32xf32>
    %67 = arith.negf %66 : vector<2x32xf32>
    %68 = math.exp %67 : vector<2x32xf32>
    %cst_45 = arith.constant 1.000000e+00 : f32
    %69 = vector.broadcast %cst_45 : f32 to vector<2x32xf32>
    %70 = arith.addf %69, %68 : vector<2x32xf32>
    %71 = arith.divf %69, %70 : vector<2x32xf32>
    %72 = vector.extract_strided_slice %63 {offsets = [0, 32], sizes = [2, 32], strides = [1, 1]} : vector<2x96xf32> to vector<2x32xf32>
    %73 = vector.extract_strided_slice %33 {offsets = [0, 32], sizes = [2, 32], strides = [1, 1]} : vector<2x96xf32> to vector<2x32xf32>
    %74 = arith.addf %72, %73 : vector<2x32xf32>
    %75 = arith.negf %74 : vector<2x32xf32>
    %76 = math.exp %75 : vector<2x32xf32>
    %cst_46 = arith.constant 1.000000e+00 : f32
    %77 = vector.broadcast %cst_46 : f32 to vector<2x32xf32>
    %78 = arith.addf %77, %76 : vector<2x32xf32>
    %79 = arith.divf %77, %78 : vector<2x32xf32>
    %80 = vector.extract_strided_slice %63 {offsets = [0, 64], sizes = [2, 32], strides = [1, 1]} : vector<2x96xf32> to vector<2x32xf32>
    %81 = vector.extract_strided_slice %33 {offsets = [0, 64], sizes = [2, 32], strides = [1, 1]} : vector<2x96xf32> to vector<2x32xf32>
    %82 = vector.broadcast %31 : vector<1x32xf32> to vector<2x32xf32>
    %83 = arith.addf %81, %82 : vector<2x32xf32>
    %84 = arith.mulf %71, %83 : vector<2x32xf32>
    %85 = arith.addf %80, %84 : vector<2x32xf32>
    %86 = math.tanh %85 : vector<2x32xf32>
    %cst_47 = arith.constant 1.000000e+00 : f32
    %87 = vector.broadcast %cst_47 : f32 to vector<2x32xf32>
    %88 = arith.subf %87, %79 : vector<2x32xf32>
    %89 = arith.mulf %88, %86 : vector<2x32xf32>
    %90 = arith.mulf %79, %23 : vector<2x32xf32>
    %91 = arith.addf %89, %90 : vector<2x32xf32>
    %c0_48 = arith.constant 0 : index
    %c0_49 = arith.constant 0 : index
    %92 = vector.load %arg9[%c0_48, %c0_49] : memref<128x64xf32, #tpu.memory_space<vmem>>, vector<2x32xf32>
    tpu.vector_store %arg9[%c0_48, %c0_49], %62 {strides = array<i32>} : memref<128x64xf32, #tpu.memory_space<vmem>>, vector<2x32xf32>,
    %c120_50 = arith.constant 120 : index
    %c32 = arith.constant 32 : index
    %93 = vector.load %arg9[%c120_50, %c32] : memref<128x64xf32, #tpu.memory_space<vmem>>, vector<2x32xf32>
    tpu.vector_store %arg9[%c120_50, %c32], %91 {strides = array<i32>} : memref<128x64xf32, #tpu.memory_space<vmem>>, vector<2x32xf32>,
    %cst_51 = arith.constant dense<0.000000e+00> : vector<2x96xf32>
    %94 = tpu.matmul %62, %25, %cst_51 {dimension_numbers = #tpu.dot_dimension_numbers<[1], [0], [0], [1], [0, 0, 1, 1], [], []>} : vector<2x32xf32>, vector<32x96xf32>, vector<2x96xf32> -> vector<2x96xf32>
    %cst_52 = arith.constant dense<0.000000e+00> : vector<2x96xf32>
    %95 = tpu.matmul %91, %27, %cst_52 {dimension_numbers = #tpu.dot_dimension_numbers<[1], [0], [0], [1], [0, 0, 1, 1], [], []>} : vector<2x32xf32>, vector<32x96xf32>, vector<2x96xf32> -> vector<2x96xf32>
    %c8 = arith.constant 8 : index
    %c0_53 = arith.constant 0 : index
    %96 = vector.load %arg7[%c8, %c0_53] : memref<128x96xf32, #tpu.memory_space<vmem>>, vector<2x96xf32>
    %97 = vector.extract_strided_slice %96 {offsets = [0, 0], sizes = [2, 32], strides = [1, 1]} : vector<2x96xf32> to vector<2x32xf32>
    %98 = vector.extract_strided_slice %94 {offsets = [0, 0], sizes = [2, 32], strides = [1, 1]} : vector<2x96xf32> to vector<2x32xf32>
    %99 = arith.addf %97, %98 : vector<2x32xf32>
    %100 = arith.negf %99 : vector<2x32xf32>
    %101 = math.exp %100 : vector<2x32xf32>
    %cst_54 = arith.constant 1.000000e+00 : f32
    %102 = vector.broadcast %cst_54 : f32 to vector<2x32xf32>
    %103 = arith.addf %102, %101 : vector<2x32xf32>
    %104 = arith.divf %102, %103 : vector<2x32xf32>
    %105 = vector.extract_strided_slice %96 {offsets = [0, 32], sizes = [2, 32], strides = [1, 1]} : vector<2x96xf32> to vector<2x32xf32>
    %106 = vector.extract_strided_slice %94 {offsets = [0, 32], sizes = [2, 32], strides = [1, 1]} : vector<2x96xf32> to vector<2x32xf32>
    %107 = arith.addf %105, %106 : vector<2x32xf32>
    %108 = arith.negf %107 : vector<2x32xf32>
    %109 = math.exp %108 : vector<2x32xf32>
    %cst_55 = arith.constant 1.000000e+00 : f32
    %110 = vector.broadcast %cst_55 : f32 to vector<2x32xf32>
    %111 = arith.addf %110, %109 : vector<2x32xf32>
    %112 = arith.divf %110, %111 : vector<2x32xf32>
    %113 = vector.extract_strided_slice %96 {offsets = [0, 64], sizes = [2, 32], strides = [1, 1]} : vector<2x96xf32> to vector<2x32xf32>
    %114 = vector.extract_strided_slice %94 {offsets = [0, 64], sizes = [2, 32], strides = [1, 1]} : vector<2x96xf32> to vector<2x32xf32>
    %115 = vector.broadcast %29 : vector<1x32xf32> to vector<2x32xf32>
    %116 = arith.addf %114, %115 : vector<2x32xf32>
    %117 = arith.mulf %104, %116 : vector<2x32xf32>
    %118 = arith.addf %113, %117 : vector<2x32xf32>
    %119 = math.tanh %118 : vector<2x32xf32>
    %cst_56 = arith.constant 1.000000e+00 : f32
    %120 = vector.broadcast %cst_56 : f32 to vector<2x32xf32>
    %121 = arith.subf %120, %112 : vector<2x32xf32>
    %122 = arith.mulf %121, %119 : vector<2x32xf32>
    %123 = arith.mulf %112, %62 : vector<2x32xf32>
    %124 = arith.addf %122, %123 : vector<2x32xf32>
    %c112 = arith.constant 112 : index
    %c0_57 = arith.constant 0 : index
    %125 = vector.load %arg8[%c112, %c0_57] : memref<128x96xf32, #tpu.memory_space<vmem>>, vector<2x96xf32>
    %126 = vector.extract_strided_slice %125 {offsets = [0, 0], sizes = [2, 32], strides = [1, 1]} : vector<2x96xf32> to vector<2x32xf32>
    %127 = vector.extract_strided_slice %95 {offsets = [0, 0], sizes = [2, 32], strides = [1, 1]} : vector<2x96xf32> to vector<2x32xf32>
    %128 = arith.addf %126, %127 : vector<2x32xf32>
    %129 = arith.negf %128 : vector<2x32xf32>
    %130 = math.exp %129 : vector<2x32xf32>
    %cst_58 = arith.constant 1.000000e+00 : f32
    %131 = vector.broadcast %cst_58 : f32 to vector<2x32xf32>
    %132 = arith.addf %131, %130 : vector<2x32xf32>
    %133 = arith.divf %131, %132 : vector<2x32xf32>
    %134 = vector.extract_strided_slice %125 {offsets = [0, 32], sizes = [2, 32], strides = [1, 1]} : vector<2x96xf32> to vector<2x32xf32>
    %135 = vector.extract_strided_slice %95 {offsets = [0, 32], sizes = [2, 32], strides = [1, 1]} : vector<2x96xf32> to vector<2x32xf32>
    %136 = arith.addf %134, %135 : vector<2x32xf32>
    %137 = arith.negf %136 : vector<2x32xf32>
    %138 = math.exp %137 : vector<2x32xf32>
    %cst_59 = arith.constant 1.000000e+00 : f32
    %139 = vector.broadcast %cst_59 : f32 to vector<2x32xf32>
    %140 = arith.addf %139, %138 : vector<2x32xf32>
    %141 = arith.divf %139, %140 : vector<2x32xf32>
    %142 = vector.extract_strided_slice %125 {offsets = [0, 64], sizes = [2, 32], strides = [1, 1]} : vector<2x96xf32> to vector<2x32xf32>
    %143 = vector.extract_strided_slice %95 {offsets = [0, 64], sizes = [2, 32], strides = [1, 1]} : vector<2x96xf32> to vector<2x32xf32>
    %144 = vector.broadcast %31 : vector<1x32xf32> to vector<2x32xf32>
    %145 = arith.addf %143, %144 : vector<2x32xf32>
    %146 = arith.mulf %133, %145 : vector<2x32xf32>
    %147 = arith.addf %142, %146 : vector<2x32xf32>
    %148 = math.tanh %147 : vector<2x32xf32>
    %cst_60 = arith.constant 1.000000e+00 : f32
    %149 = vector.broadcast %cst_60 : f32 to vector<2x32xf32>
    %150 = arith.subf %149, %141 : vector<2x32xf32>
    %151 = arith.mulf %150, %148 : vector<2x32xf32>
    %152 = arith.mulf %141, %91 : vector<2x32xf32>
    %153 = arith.addf %151, %152 : vector<2x32xf32>
    %c8_61 = arith.constant 8 : index
    %c0_62 = arith.constant 0 : index
    %154 = vector.load %arg9[%c8_61, %c0_62] : memref<128x64xf32, #tpu.memory_space<vmem>>, vector<2x32xf32>
    tpu.vector_store %arg9[%c8_61, %c0_62], %124 {strides = array<i32>} : memref<128x64xf32, #tpu.memory_space<vmem>>, vector<2x32xf32>,
    %c112_63 = arith.constant 112 : index
    %c32_64 = arith.constant 32 : index
    %155 = vector.load %arg9[%c112_63, %c32_64] : memref<128x64xf32, #tpu.memory_space<vmem>>, vector<2x32xf32>
    tpu.vector_store %arg9[%c112_63, %c32_64], %153 {strides = array<i32>} : memref<128x64xf32, #tpu.memory_space<vmem>>, vector<2x32xf32>,
    %cst_65 = arith.constant dense<0.000000e+00> : vector<2x96xf32>
    %156 = tpu.matmul %124, %25, %cst_65 {dimension_numbers = #tpu.dot_dimension_numbers<[1], [0], [0], [1], [0, 0, 1, 1], [], []>} : vector<2x32xf32>, vector<32x96xf32>, vector<2x96xf32> -> vector<2x96xf32>
    %cst_66 = arith.constant dense<0.000000e+00> : vector<2x96xf32>
    %157 = tpu.matmul %153, %27, %cst_66 {dimension_numbers = #tpu.dot_dimension_numbers<[1], [0], [0], [1], [0, 0, 1, 1], [], []>} : vector<2x32xf32>, vector<32x96xf32>, vector<2x96xf32> -> vector<2x96xf32>
    %c16 = arith.constant 16 : index
    %c0_67 = arith.constant 0 : index
    %158 = vector.load %arg7[%c16, %c0_67] : memref<128x96xf32, #tpu.memory_space<vmem>>, vector<2x96xf32>
    %159 = vector.extract_strided_slice %158 {offsets = [0, 0], sizes = [2, 32], strides = [1, 1]} : vector<2x96xf32> to vector<2x32xf32>
    %160 = vector.extract_strided_slice %156 {offsets = [0, 0], sizes = [2, 32], strides = [1, 1]} : vector<2x96xf32> to vector<2x32xf32>
    %161 = arith.addf %159, %160 : vector<2x32xf32>
    %162 = arith.negf %161 : vector<2x32xf32>
    %163 = math.exp %162 : vector<2x32xf32>
    %cst_68 = arith.constant 1.000000e+00 : f32
    %164 = vector.broadcast %cst_68 : f32 to vector<2x32xf32>
    %165 = arith.addf %164, %163 : vector<2x32xf32>
    %166 = arith.divf %164, %165 : vector<2x32xf32>
    %167 = vector.extract_strided_slice %158 {offsets = [0, 32], sizes = [2, 32], strides = [1, 1]} : vector<2x96xf32> to vector<2x32xf32>
    %168 = vector.extract_strided_slice %156 {offsets = [0, 32], sizes = [2, 32], strides = [1, 1]} : vector<2x96xf32> to vector<2x32xf32>
    %169 = arith.addf %167, %168 : vector<2x32xf32>
    %170 = arith.negf %169 : vector<2x32xf32>
    %171 = math.exp %170 : vector<2x32xf32>
    %cst_69 = arith.constant 1.000000e+00 : f32
    %172 = vector.broadcast %cst_69 : f32 to vector<2x32xf32>
    %173 = arith.addf %172, %171 : vector<2x32xf32>
    %174 = arith.divf %172, %173 : vector<2x32xf32>
    %175 = vector.extract_strided_slice %158 {offsets = [0, 64], sizes = [2, 32], strides = [1, 1]} : vector<2x96xf32> to vector<2x32xf32>
    %176 = vector.extract_strided_slice %156 {offsets = [0, 64], sizes = [2, 32], strides = [1, 1]} : vector<2x96xf32> to vector<2x32xf32>
    %177 = vector.broadcast %29 : vector<1x32xf32> to vector<2x32xf32>
    %178 = arith.addf %176, %177 : vector<2x32xf32>
    %179 = arith.mulf %166, %178 : vector<2x32xf32>
    %180 = arith.addf %175, %179 : vector<2x32xf32>
    %181 = math.tanh %180 : vector<2x32xf32>
    %cst_70 = arith.constant 1.000000e+00 : f32
    %182 = vector.broadcast %cst_70 : f32 to vector<2x32xf32>
    %183 = arith.subf %182, %174 : vector<2x32xf32>
    %184 = arith.mulf %183, %181 : vector<2x32xf32>
    %185 = arith.mulf %174, %124 : vector<2x32xf32>
    %186 = arith.addf %184, %185 : vector<2x32xf32>
    %c104 = arith.constant 104 : index
    %c0_71 = arith.constant 0 : index
    %187 = vector.load %arg8[%c104, %c0_71] : memref<128x96xf32, #tpu.memory_space<vmem>>, vector<2x96xf32>
    %188 = vector.extract_strided_slice %187 {offsets = [0, 0], sizes = [2, 32], strides = [1, 1]} : vector<2x96xf32> to vector<2x32xf32>
    %189 = vector.extract_strided_slice %157 {offsets = [0, 0], sizes = [2, 32], strides = [1, 1]} : vector<2x96xf32> to vector<2x32xf32>
    %190 = arith.addf %188, %189 : vector<2x32xf32>
    %191 = arith.negf %190 : vector<2x32xf32>
    %192 = math.exp %191 : vector<2x32xf32>
    %cst_72 = arith.constant 1.000000e+00 : f32
    %193 = vector.broadcast %cst_72 : f32 to vector<2x32xf32>
    %194 = arith.addf %193, %192 : vector<2x32xf32>
    %195 = arith.divf %193, %194 : vector<2x32xf32>
    %196 = vector.extract_strided_slice %187 {offsets = [0, 32], sizes = [2, 32], strides = [1, 1]} : vector<2x96xf32> to vector<2x32xf32>
    %197 = vector.extract_strided_slice %157 {offsets = [0, 32], sizes = [2, 32], strides = [1, 1]} : vector<2x96xf32> to vector<2x32xf32>
    %198 = arith.addf %196, %197 : vector<2x32xf32>
    %199 = arith.negf %198 : vector<2x32xf32>
    %200 = math.exp %199 : vector<2x32xf32>
    %cst_73 = arith.constant 1.000000e+00 : f32
    %201 = vector.broadcast %cst_73 : f32 to vector<2x32xf32>
    %202 = arith.addf %201, %200 : vector<2x32xf32>
    %203 = arith.divf %201, %202 : vector<2x32xf32>
    %204 = vector.extract_strided_slice %187 {offsets = [0, 64], sizes = [2, 32], strides = [1, 1]} : vector<2x96xf32> to vector<2x32xf32>
    %205 = vector.extract_strided_slice %157 {offsets = [0, 64], sizes = [2, 32], strides = [1, 1]} : vector<2x96xf32> to vector<2x32xf32>
    %206 = vector.broadcast %31 : vector<1x32xf32> to vector<2x32xf32>
    %207 = arith.addf %205, %206 : vector<2x32xf32>
    %208 = arith.mulf %195, %207 : vector<2x32xf32>
    %209 = arith.addf %204, %208 : vector<2x32xf32>
    %210 = math.tanh %209 : vector<2x32xf32>
    %cst_74 = arith.constant 1.000000e+00 : f32
    %211 = vector.broadcast %cst_74 : f32 to vector<2x32xf32>
    %212 = arith.subf %211, %203 : vector<2x32xf32>
    %213 = arith.mulf %212, %210 : vector<2x32xf32>
    %214 = arith.mulf %203, %153 : vector<2x32xf32>
    %215 = arith.addf %213, %214 : vector<2x32xf32>
    %c16_75 = arith.constant 16 : index
    %c0_76 = arith.constant 0 : index
    %216 = vector.load %arg9[%c16_75, %c0_76] : memref<128x64xf32, #tpu.memory_space<vmem>>, vector<2x32xf32>
    tpu.vector_store %arg9[%c16_75, %c0_76], %186 {strides = array<i32>} : memref<128x64xf32, #tpu.memory_space<vmem>>, vector<2x32xf32>,
    %c104_77 = arith.constant 104 : index
    %c32_78 = arith.constant 32 : index
    %217 = vector.load %arg9[%c104_77, %c32_78] : memref<128x64xf32, #tpu.memory_space<vmem>>, vector<2x32xf32>
    tpu.vector_store %arg9[%c104_77, %c32_78], %215 {strides = array<i32>} : memref<128x64xf32, #tpu.memory_space<vmem>>, vector<2x32xf32>,
    %cst_79 = arith.constant dense<0.000000e+00> : vector<2x96xf32>
    %218 = tpu.matmul %186, %25, %cst_79 {dimension_numbers = #tpu.dot_dimension_numbers<[1], [0], [0], [1], [0, 0, 1, 1], [], []>} : vector<2x32xf32>, vector<32x96xf32>, vector<2x96xf32> -> vector<2x96xf32>
    %cst_80 = arith.constant dense<0.000000e+00> : vector<2x96xf32>
    %219 = tpu.matmul %215, %27, %cst_80 {dimension_numbers = #tpu.dot_dimension_numbers<[1], [0], [0], [1], [0, 0, 1, 1], [], []>} : vector<2x32xf32>, vector<32x96xf32>, vector<2x96xf32> -> vector<2x96xf32>
    %c24 = arith.constant 24 : index
    %c0_81 = arith.constant 0 : index
    %220 = vector.load %arg7[%c24, %c0_81] : memref<128x96xf32, #tpu.memory_space<vmem>>, vector<2x96xf32>
    %221 = vector.extract_strided_slice %220 {offsets = [0, 0], sizes = [2, 32], strides = [1, 1]} : vector<2x96xf32> to vector<2x32xf32>
    %222 = vector.extract_strided_slice %218 {offsets = [0, 0], sizes = [2, 32], strides = [1, 1]} : vector<2x96xf32> to vector<2x32xf32>
    %223 = arith.addf %221, %222 : vector<2x32xf32>
    %224 = arith.negf %223 : vector<2x32xf32>
    %225 = math.exp %224 : vector<2x32xf32>
    %cst_82 = arith.constant 1.000000e+00 : f32
    %226 = vector.broadcast %cst_82 : f32 to vector<2x32xf32>
    %227 = arith.addf %226, %225 : vector<2x32xf32>
    %228 = arith.divf %226, %227 : vector<2x32xf32>
    %229 = vector.extract_strided_slice %220 {offsets = [0, 32], sizes = [2, 32], strides = [1, 1]} : vector<2x96xf32> to vector<2x32xf32>
    %230 = vector.extract_strided_slice %218 {offsets = [0, 32], sizes = [2, 32], strides = [1, 1]} : vector<2x96xf32> to vector<2x32xf32>
    %231 = arith.addf %229, %230 : vector<2x32xf32>
    %232 = arith.negf %231 : vector<2x32xf32>
    %233 = math.exp %232 : vector<2x32xf32>
    %cst_83 = arith.constant 1.000000e+00 : f32
    %234 = vector.broadcast %cst_83 : f32 to vector<2x32xf32>
    %235 = arith.addf %234, %233 : vector<2x32xf32>
    %236 = arith.divf %234, %235 : vector<2x32xf32>
    %237 = vector.extract_strided_slice %220 {offsets = [0, 64], sizes = [2, 32], strides = [1, 1]} : vector<2x96xf32> to vector<2x32xf32>
    %238 = vector.extract_strided_slice %218 {offsets = [0, 64], sizes = [2, 32], strides = [1, 1]} : vector<2x96xf32> to vector<2x32xf32>
    %239 = vector.broadcast %29 : vector<1x32xf32> to vector<2x32xf32>
    %240 = arith.addf %238, %239 : vector<2x32xf32>
    %241 = arith.mulf %228, %240 : vector<2x32xf32>
    %242 = arith.addf %237, %241 : vector<2x32xf32>
    %243 = math.tanh %242 : vector<2x32xf32>
    %cst_84 = arith.constant 1.000000e+00 : f32
    %244 = vector.broadcast %cst_84 : f32 to vector<2x32xf32>
    %245 = arith.subf %244, %236 : vector<2x32xf32>
    %246 = arith.mulf %245, %243 : vector<2x32xf32>
    %247 = arith.mulf %236, %186 : vector<2x32xf32>
    %248 = arith.addf %246, %247 : vector<2x32xf32>
    %c96 = arith.constant 96 : index
    %c0_85 = arith.constant 0 : index
    %249 = vector.load %arg8[%c96, %c0_85] : memref<128x96xf32, #tpu.memory_space<vmem>>, vector<2x96xf32>
    %250 = vector.extract_strided_slice %249 {offsets = [0, 0], sizes = [2, 32], strides = [1, 1]} : vector<2x96xf32> to vector<2x32xf32>
    %251 = vector.extract_strided_slice %219 {offsets = [0, 0], sizes = [2, 32], strides = [1, 1]} : vector<2x96xf32> to vector<2x32xf32>
    %252 = arith.addf %250, %251 : vector<2x32xf32>
    %253 = arith.negf %252 : vector<2x32xf32>
    %254 = math.exp %253 : vector<2x32xf32>
    %cst_86 = arith.constant 1.000000e+00 : f32
    %255 = vector.broadcast %cst_86 : f32 to vector<2x32xf32>
    %256 = arith.addf %255, %254 : vector<2x32xf32>
    %257 = arith.divf %255, %256 : vector<2x32xf32>
    %258 = vector.extract_strided_slice %249 {offsets = [0, 32], sizes = [2, 32], strides = [1, 1]} : vector<2x96xf32> to vector<2x32xf32>
    %259 = vector.extract_strided_slice %219 {offsets = [0, 32], sizes = [2, 32], strides = [1, 1]} : vector<2x96xf32> to vector<2x32xf32>
    %260 = arith.addf %258, %259 : vector<2x32xf32>
    %261 = arith.negf %260 : vector<2x32xf32>
    %262 = math.exp %261 : vector<2x32xf32>
    %cst_87 = arith.constant 1.000000e+00 : f32
    %263 = vector.broadcast %cst_87 : f32 to vector<2x32xf32>
    %264 = arith.addf %263, %262 : vector<2x32xf32>
    %265 = arith.divf %263, %264 : vector<2x32xf32>
    %266 = vector.extract_strided_slice %249 {offsets = [0, 64], sizes = [2, 32], strides = [1, 1]} : vector<2x96xf32> to vector<2x32xf32>
    %267 = vector.extract_strided_slice %219 {offsets = [0, 64], sizes = [2, 32], strides = [1, 1]} : vector<2x96xf32> to vector<2x32xf32>
    %268 = vector.broadcast %31 : vector<1x32xf32> to vector<2x32xf32>
    %269 = arith.addf %267, %268 : vector<2x32xf32>
    %270 = arith.mulf %257, %269 : vector<2x32xf32>
    %271 = arith.addf %266, %270 : vector<2x32xf32>
    %272 = math.tanh %271 : vector<2x32xf32>
    %cst_88 = arith.constant 1.000000e+00 : f32
    %273 = vector.broadcast %cst_88 : f32 to vector<2x32xf32>
    %274 = arith.subf %273, %265 : vector<2x32xf32>
    %275 = arith.mulf %274, %272 : vector<2x32xf32>
    %276 = arith.mulf %265, %215 : vector<2x32xf32>
    %277 = arith.addf %275, %276 : vector<2x32xf32>
    %c24_89 = arith.constant 24 : index
    %c0_90 = arith.constant 0 : index
    %278 = vector.load %arg9[%c24_89, %c0_90] : memref<128x64xf32, #tpu.memory_space<vmem>>, vector<2x32xf32>
    tpu.vector_store %arg9[%c24_89, %c0_90], %248 {strides = array<i32>} : memref<128x64xf32, #tpu.memory_space<vmem>>, vector<2x32xf32>,
    %c96_91 = arith.constant 96 : index
    %c32_92 = arith.constant 32 : index
    %279 = vector.load %arg9[%c96_91, %c32_92] : memref<128x64xf32, #tpu.memory_space<vmem>>, vector<2x32xf32>
    tpu.vector_store %arg9[%c96_91, %c32_92], %277 {strides = array<i32>} : memref<128x64xf32, #tpu.memory_space<vmem>>, vector<2x32xf32>,
    %cst_93 = arith.constant dense<0.000000e+00> : vector<2x96xf32>
    %280 = tpu.matmul %248, %25, %cst_93 {dimension_numbers = #tpu.dot_dimension_numbers<[1], [0], [0], [1], [0, 0, 1, 1], [], []>} : vector<2x32xf32>, vector<32x96xf32>, vector<2x96xf32> -> vector<2x96xf32>
    %cst_94 = arith.constant dense<0.000000e+00> : vector<2x96xf32>
    %281 = tpu.matmul %277, %27, %cst_94 {dimension_numbers = #tpu.dot_dimension_numbers<[1], [0], [0], [1], [0, 0, 1, 1], [], []>} : vector<2x32xf32>, vector<32x96xf32>, vector<2x96xf32> -> vector<2x96xf32>
    %c32_95 = arith.constant 32 : index
    %c0_96 = arith.constant 0 : index
    %282 = vector.load %arg7[%c32_95, %c0_96] : memref<128x96xf32, #tpu.memory_space<vmem>>, vector<2x96xf32>
    %283 = vector.extract_strided_slice %282 {offsets = [0, 0], sizes = [2, 32], strides = [1, 1]} : vector<2x96xf32> to vector<2x32xf32>
    %284 = vector.extract_strided_slice %280 {offsets = [0, 0], sizes = [2, 32], strides = [1, 1]} : vector<2x96xf32> to vector<2x32xf32>
    %285 = arith.addf %283, %284 : vector<2x32xf32>
    %286 = arith.negf %285 : vector<2x32xf32>
    %287 = math.exp %286 : vector<2x32xf32>
    %cst_97 = arith.constant 1.000000e+00 : f32
    %288 = vector.broadcast %cst_97 : f32 to vector<2x32xf32>
    %289 = arith.addf %288, %287 : vector<2x32xf32>
    %290 = arith.divf %288, %289 : vector<2x32xf32>
    %291 = vector.extract_strided_slice %282 {offsets = [0, 32], sizes = [2, 32], strides = [1, 1]} : vector<2x96xf32> to vector<2x32xf32>
    %292 = vector.extract_strided_slice %280 {offsets = [0, 32], sizes = [2, 32], strides = [1, 1]} : vector<2x96xf32> to vector<2x32xf32>
    %293 = arith.addf %291, %292 : vector<2x32xf32>
    %294 = arith.negf %293 : vector<2x32xf32>
    %295 = math.exp %294 : vector<2x32xf32>
    %cst_98 = arith.constant 1.000000e+00 : f32
    %296 = vector.broadcast %cst_98 : f32 to vector<2x32xf32>
    %297 = arith.addf %296, %295 : vector<2x32xf32>
    %298 = arith.divf %296, %297 : vector<2x32xf32>
    %299 = vector.extract_strided_slice %282 {offsets = [0, 64], sizes = [2, 32], strides = [1, 1]} : vector<2x96xf32> to vector<2x32xf32>
    %300 = vector.extract_strided_slice %280 {offsets = [0, 64], sizes = [2, 32], strides = [1, 1]} : vector<2x96xf32> to vector<2x32xf32>
    %301 = vector.broadcast %29 : vector<1x32xf32> to vector<2x32xf32>
    %302 = arith.addf %300, %301 : vector<2x32xf32>
    %303 = arith.mulf %290, %302 : vector<2x32xf32>
    %304 = arith.addf %299, %303 : vector<2x32xf32>
    %305 = math.tanh %304 : vector<2x32xf32>
    %cst_99 = arith.constant 1.000000e+00 : f32
    %306 = vector.broadcast %cst_99 : f32 to vector<2x32xf32>
    %307 = arith.subf %306, %298 : vector<2x32xf32>
    %308 = arith.mulf %307, %305 : vector<2x32xf32>
    %309 = arith.mulf %298, %248 : vector<2x32xf32>
    %310 = arith.addf %308, %309 : vector<2x32xf32>
    %c88 = arith.constant 88 : index
    %c0_100 = arith.constant 0 : index
    %311 = vector.load %arg8[%c88, %c0_100] : memref<128x96xf32, #tpu.memory_space<vmem>>, vector<2x96xf32>
    %312 = vector.extract_strided_slice %311 {offsets = [0, 0], sizes = [2, 32], strides = [1, 1]} : vector<2x96xf32> to vector<2x32xf32>
    %313 = vector.extract_strided_slice %281 {offsets = [0, 0], sizes = [2, 32], strides = [1, 1]} : vector<2x96xf32> to vector<2x32xf32>
    %314 = arith.addf %312, %313 : vector<2x32xf32>
    %315 = arith.negf %314 : vector<2x32xf32>
    %316 = math.exp %315 : vector<2x32xf32>
    %cst_101 = arith.constant 1.000000e+00 : f32
    %317 = vector.broadcast %cst_101 : f32 to vector<2x32xf32>
    %318 = arith.addf %317, %316 : vector<2x32xf32>
    %319 = arith.divf %317, %318 : vector<2x32xf32>
    %320 = vector.extract_strided_slice %311 {offsets = [0, 32], sizes = [2, 32], strides = [1, 1]} : vector<2x96xf32> to vector<2x32xf32>
    %321 = vector.extract_strided_slice %281 {offsets = [0, 32], sizes = [2, 32], strides = [1, 1]} : vector<2x96xf32> to vector<2x32xf32>
    %322 = arith.addf %320, %321 : vector<2x32xf32>
    %323 = arith.negf %322 : vector<2x32xf32>
    %324 = math.exp %323 : vector<2x32xf32>
    %cst_102 = arith.constant 1.000000e+00 : f32
    %325 = vector.broadcast %cst_102 : f32 to vector<2x32xf32>
    %326 = arith.addf %325, %324 : vector<2x32xf32>
    %327 = arith.divf %325, %326 : vector<2x32xf32>
    %328 = vector.extract_strided_slice %311 {offsets = [0, 64], sizes = [2, 32], strides = [1, 1]} : vector<2x96xf32> to vector<2x32xf32>
    %329 = vector.extract_strided_slice %281 {offsets = [0, 64], sizes = [2, 32], strides = [1, 1]} : vector<2x96xf32> to vector<2x32xf32>
    %330 = vector.broadcast %31 : vector<1x32xf32> to vector<2x32xf32>
    %331 = arith.addf %329, %330 : vector<2x32xf32>
    %332 = arith.mulf %319, %331 : vector<2x32xf32>
    %333 = arith.addf %328, %332 : vector<2x32xf32>
    %334 = math.tanh %333 : vector<2x32xf32>
    %cst_103 = arith.constant 1.000000e+00 : f32
    %335 = vector.broadcast %cst_103 : f32 to vector<2x32xf32>
    %336 = arith.subf %335, %327 : vector<2x32xf32>
    %337 = arith.mulf %336, %334 : vector<2x32xf32>
    %338 = arith.mulf %327, %277 : vector<2x32xf32>
    %339 = arith.addf %337, %338 : vector<2x32xf32>
    %c32_104 = arith.constant 32 : index
    %c0_105 = arith.constant 0 : index
    %340 = vector.load %arg9[%c32_104, %c0_105] : memref<128x64xf32, #tpu.memory_space<vmem>>, vector<2x32xf32>
    tpu.vector_store %arg9[%c32_104, %c0_105], %310 {strides = array<i32>} : memref<128x64xf32, #tpu.memory_space<vmem>>, vector<2x32xf32>,
    %c88_106 = arith.constant 88 : index
    %c32_107 = arith.constant 32 : index
    %341 = vector.load %arg9[%c88_106, %c32_107] : memref<128x64xf32, #tpu.memory_space<vmem>>, vector<2x32xf32>
    tpu.vector_store %arg9[%c88_106, %c32_107], %339 {strides = array<i32>} : memref<128x64xf32, #tpu.memory_space<vmem>>, vector<2x32xf32>,
    %cst_108 = arith.constant dense<0.000000e+00> : vector<2x96xf32>
    %342 = tpu.matmul %310, %25, %cst_108 {dimension_numbers = #tpu.dot_dimension_numbers<[1], [0], [0], [1], [0, 0, 1, 1], [], []>} : vector<2x32xf32>, vector<32x96xf32>, vector<2x96xf32> -> vector<2x96xf32>
    %cst_109 = arith.constant dense<0.000000e+00> : vector<2x96xf32>
    %343 = tpu.matmul %339, %27, %cst_109 {dimension_numbers = #tpu.dot_dimension_numbers<[1], [0], [0], [1], [0, 0, 1, 1], [], []>} : vector<2x32xf32>, vector<32x96xf32>, vector<2x96xf32> -> vector<2x96xf32>
    %c40 = arith.constant 40 : index
    %c0_110 = arith.constant 0 : index
    %344 = vector.load %arg7[%c40, %c0_110] : memref<128x96xf32, #tpu.memory_space<vmem>>, vector<2x96xf32>
    %345 = vector.extract_strided_slice %344 {offsets = [0, 0], sizes = [2, 32], strides = [1, 1]} : vector<2x96xf32> to vector<2x32xf32>
    %346 = vector.extract_strided_slice %342 {offsets = [0, 0], sizes = [2, 32], strides = [1, 1]} : vector<2x96xf32> to vector<2x32xf32>
    %347 = arith.addf %345, %346 : vector<2x32xf32>
    %348 = arith.negf %347 : vector<2x32xf32>
    %349 = math.exp %348 : vector<2x32xf32>
    %cst_111 = arith.constant 1.000000e+00 : f32
    %350 = vector.broadcast %cst_111 : f32 to vector<2x32xf32>
    %351 = arith.addf %350, %349 : vector<2x32xf32>
    %352 = arith.divf %350, %351 : vector<2x32xf32>
    %353 = vector.extract_strided_slice %344 {offsets = [0, 32], sizes = [2, 32], strides = [1, 1]} : vector<2x96xf32> to vector<2x32xf32>
    %354 = vector.extract_strided_slice %342 {offsets = [0, 32], sizes = [2, 32], strides = [1, 1]} : vector<2x96xf32> to vector<2x32xf32>
    %355 = arith.addf %353, %354 : vector<2x32xf32>
    %356 = arith.negf %355 : vector<2x32xf32>
    %357 = math.exp %356 : vector<2x32xf32>
    %cst_112 = arith.constant 1.000000e+00 : f32
    %358 = vector.broadcast %cst_112 : f32 to vector<2x32xf32>
    %359 = arith.addf %358, %357 : vector<2x32xf32>
    %360 = arith.divf %358, %359 : vector<2x32xf32>
    %361 = vector.extract_strided_slice %344 {offsets = [0, 64], sizes = [2, 32], strides = [1, 1]} : vector<2x96xf32> to vector<2x32xf32>
    %362 = vector.extract_strided_slice %342 {offsets = [0, 64], sizes = [2, 32], strides = [1, 1]} : vector<2x96xf32> to vector<2x32xf32>
    %363 = vector.broadcast %29 : vector<1x32xf32> to vector<2x32xf32>
    %364 = arith.addf %362, %363 : vector<2x32xf32>
    %365 = arith.mulf %352, %364 : vector<2x32xf32>
    %366 = arith.addf %361, %365 : vector<2x32xf32>
    %367 = math.tanh %366 : vector<2x32xf32>
    %cst_113 = arith.constant 1.000000e+00 : f32
    %368 = vector.broadcast %cst_113 : f32 to vector<2x32xf32>
    %369 = arith.subf %368, %360 : vector<2x32xf32>
    %370 = arith.mulf %369, %367 : vector<2x32xf32>
    %371 = arith.mulf %360, %310 : vector<2x32xf32>
    %372 = arith.addf %370, %371 : vector<2x32xf32>
    %c80 = arith.constant 80 : index
    %c0_114 = arith.constant 0 : index
    %373 = vector.load %arg8[%c80, %c0_114] : memref<128x96xf32, #tpu.memory_space<vmem>>, vector<2x96xf32>
    %374 = vector.extract_strided_slice %373 {offsets = [0, 0], sizes = [2, 32], strides = [1, 1]} : vector<2x96xf32> to vector<2x32xf32>
    %375 = vector.extract_strided_slice %343 {offsets = [0, 0], sizes = [2, 32], strides = [1, 1]} : vector<2x96xf32> to vector<2x32xf32>
    %376 = arith.addf %374, %375 : vector<2x32xf32>
    %377 = arith.negf %376 : vector<2x32xf32>
    %378 = math.exp %377 : vector<2x32xf32>
    %cst_115 = arith.constant 1.000000e+00 : f32
    %379 = vector.broadcast %cst_115 : f32 to vector<2x32xf32>
    %380 = arith.addf %379, %378 : vector<2x32xf32>
    %381 = arith.divf %379, %380 : vector<2x32xf32>
    %382 = vector.extract_strided_slice %373 {offsets = [0, 32], sizes = [2, 32], strides = [1, 1]} : vector<2x96xf32> to vector<2x32xf32>
    %383 = vector.extract_strided_slice %343 {offsets = [0, 32], sizes = [2, 32], strides = [1, 1]} : vector<2x96xf32> to vector<2x32xf32>
    %384 = arith.addf %382, %383 : vector<2x32xf32>
    %385 = arith.negf %384 : vector<2x32xf32>
    %386 = math.exp %385 : vector<2x32xf32>
    %cst_116 = arith.constant 1.000000e+00 : f32
    %387 = vector.broadcast %cst_116 : f32 to vector<2x32xf32>
    %388 = arith.addf %387, %386 : vector<2x32xf32>
    %389 = arith.divf %387, %388 : vector<2x32xf32>
    %390 = vector.extract_strided_slice %373 {offsets = [0, 64], sizes = [2, 32], strides = [1, 1]} : vector<2x96xf32> to vector<2x32xf32>
    %391 = vector.extract_strided_slice %343 {offsets = [0, 64], sizes = [2, 32], strides = [1, 1]} : vector<2x96xf32> to vector<2x32xf32>
    %392 = vector.broadcast %31 : vector<1x32xf32> to vector<2x32xf32>
    %393 = arith.addf %391, %392 : vector<2x32xf32>
    %394 = arith.mulf %381, %393 : vector<2x32xf32>
    %395 = arith.addf %390, %394 : vector<2x32xf32>
    %396 = math.tanh %395 : vector<2x32xf32>
    %cst_117 = arith.constant 1.000000e+00 : f32
    %397 = vector.broadcast %cst_117 : f32 to vector<2x32xf32>
    %398 = arith.subf %397, %389 : vector<2x32xf32>
    %399 = arith.mulf %398, %396 : vector<2x32xf32>
    %400 = arith.mulf %389, %339 : vector<2x32xf32>
    %401 = arith.addf %399, %400 : vector<2x32xf32>
    %c40_118 = arith.constant 40 : index
    %c0_119 = arith.constant 0 : index
    %402 = vector.load %arg9[%c40_118, %c0_119] : memref<128x64xf32, #tpu.memory_space<vmem>>, vector<2x32xf32>
    tpu.vector_store %arg9[%c40_118, %c0_119], %372 {strides = array<i32>} : memref<128x64xf32, #tpu.memory_space<vmem>>, vector<2x32xf32>,
    %c80_120 = arith.constant 80 : index
    %c32_121 = arith.constant 32 : index
    %403 = vector.load %arg9[%c80_120, %c32_121] : memref<128x64xf32, #tpu.memory_space<vmem>>, vector<2x32xf32>
    tpu.vector_store %arg9[%c80_120, %c32_121], %401 {strides = array<i32>} : memref<128x64xf32, #tpu.memory_space<vmem>>, vector<2x32xf32>,
    %cst_122 = arith.constant dense<0.000000e+00> : vector<2x96xf32>
    %404 = tpu.matmul %372, %25, %cst_122 {dimension_numbers = #tpu.dot_dimension_numbers<[1], [0], [0], [1], [0, 0, 1, 1], [], []>} : vector<2x32xf32>, vector<32x96xf32>, vector<2x96xf32> -> vector<2x96xf32>
    %cst_123 = arith.constant dense<0.000000e+00> : vector<2x96xf32>
    %405 = tpu.matmul %401, %27, %cst_123 {dimension_numbers = #tpu.dot_dimension_numbers<[1], [0], [0], [1], [0, 0, 1, 1], [], []>} : vector<2x32xf32>, vector<32x96xf32>, vector<2x96xf32> -> vector<2x96xf32>
    %c48 = arith.constant 48 : index
    %c0_124 = arith.constant 0 : index
    %406 = vector.load %arg7[%c48, %c0_124] : memref<128x96xf32, #tpu.memory_space<vmem>>, vector<2x96xf32>
    %407 = vector.extract_strided_slice %406 {offsets = [0, 0], sizes = [2, 32], strides = [1, 1]} : vector<2x96xf32> to vector<2x32xf32>
    %408 = vector.extract_strided_slice %404 {offsets = [0, 0], sizes = [2, 32], strides = [1, 1]} : vector<2x96xf32> to vector<2x32xf32>
    %409 = arith.addf %407, %408 : vector<2x32xf32>
    %410 = arith.negf %409 : vector<2x32xf32>
    %411 = math.exp %410 : vector<2x32xf32>
    %cst_125 = arith.constant 1.000000e+00 : f32
    %412 = vector.broadcast %cst_125 : f32 to vector<2x32xf32>
    %413 = arith.addf %412, %411 : vector<2x32xf32>
    %414 = arith.divf %412, %413 : vector<2x32xf32>
    %415 = vector.extract_strided_slice %406 {offsets = [0, 32], sizes = [2, 32], strides = [1, 1]} : vector<2x96xf32> to vector<2x32xf32>
    %416 = vector.extract_strided_slice %404 {offsets = [0, 32], sizes = [2, 32], strides = [1, 1]} : vector<2x96xf32> to vector<2x32xf32>
    %417 = arith.addf %415, %416 : vector<2x32xf32>
    %418 = arith.negf %417 : vector<2x32xf32>
    %419 = math.exp %418 : vector<2x32xf32>
    %cst_126 = arith.constant 1.000000e+00 : f32
    %420 = vector.broadcast %cst_126 : f32 to vector<2x32xf32>
    %421 = arith.addf %420, %419 : vector<2x32xf32>
    %422 = arith.divf %420, %421 : vector<2x32xf32>
    %423 = vector.extract_strided_slice %406 {offsets = [0, 64], sizes = [2, 32], strides = [1, 1]} : vector<2x96xf32> to vector<2x32xf32>
    %424 = vector.extract_strided_slice %404 {offsets = [0, 64], sizes = [2, 32], strides = [1, 1]} : vector<2x96xf32> to vector<2x32xf32>
    %425 = vector.broadcast %29 : vector<1x32xf32> to vector<2x32xf32>
    %426 = arith.addf %424, %425 : vector<2x32xf32>
    %427 = arith.mulf %414, %426 : vector<2x32xf32>
    %428 = arith.addf %423, %427 : vector<2x32xf32>
    %429 = math.tanh %428 : vector<2x32xf32>
    %cst_127 = arith.constant 1.000000e+00 : f32
    %430 = vector.broadcast %cst_127 : f32 to vector<2x32xf32>
    %431 = arith.subf %430, %422 : vector<2x32xf32>
    %432 = arith.mulf %431, %429 : vector<2x32xf32>
    %433 = arith.mulf %422, %372 : vector<2x32xf32>
    %434 = arith.addf %432, %433 : vector<2x32xf32>
    %c72 = arith.constant 72 : index
    %c0_128 = arith.constant 0 : index
    %435 = vector.load %arg8[%c72, %c0_128] : memref<128x96xf32, #tpu.memory_space<vmem>>, vector<2x96xf32>
    %436 = vector.extract_strided_slice %435 {offsets = [0, 0], sizes = [2, 32], strides = [1, 1]} : vector<2x96xf32> to vector<2x32xf32>
    %437 = vector.extract_strided_slice %405 {offsets = [0, 0], sizes = [2, 32], strides = [1, 1]} : vector<2x96xf32> to vector<2x32xf32>
    %438 = arith.addf %436, %437 : vector<2x32xf32>
    %439 = arith.negf %438 : vector<2x32xf32>
    %440 = math.exp %439 : vector<2x32xf32>
    %cst_129 = arith.constant 1.000000e+00 : f32
    %441 = vector.broadcast %cst_129 : f32 to vector<2x32xf32>
    %442 = arith.addf %441, %440 : vector<2x32xf32>
    %443 = arith.divf %441, %442 : vector<2x32xf32>
    %444 = vector.extract_strided_slice %435 {offsets = [0, 32], sizes = [2, 32], strides = [1, 1]} : vector<2x96xf32> to vector<2x32xf32>
    %445 = vector.extract_strided_slice %405 {offsets = [0, 32], sizes = [2, 32], strides = [1, 1]} : vector<2x96xf32> to vector<2x32xf32>
    %446 = arith.addf %444, %445 : vector<2x32xf32>
    %447 = arith.negf %446 : vector<2x32xf32>
    %448 = math.exp %447 : vector<2x32xf32>
    %cst_130 = arith.constant 1.000000e+00 : f32
    %449 = vector.broadcast %cst_130 : f32 to vector<2x32xf32>
    %450 = arith.addf %449, %448 : vector<2x32xf32>
    %451 = arith.divf %449, %450 : vector<2x32xf32>
    %452 = vector.extract_strided_slice %435 {offsets = [0, 64], sizes = [2, 32], strides = [1, 1]} : vector<2x96xf32> to vector<2x32xf32>
    %453 = vector.extract_strided_slice %405 {offsets = [0, 64], sizes = [2, 32], strides = [1, 1]} : vector<2x96xf32> to vector<2x32xf32>
    %454 = vector.broadcast %31 : vector<1x32xf32> to vector<2x32xf32>
    %455 = arith.addf %453, %454 : vector<2x32xf32>
    %456 = arith.mulf %443, %455 : vector<2x32xf32>
    %457 = arith.addf %452, %456 : vector<2x32xf32>
    %458 = math.tanh %457 : vector<2x32xf32>
    %cst_131 = arith.constant 1.000000e+00 : f32
    %459 = vector.broadcast %cst_131 : f32 to vector<2x32xf32>
    %460 = arith.subf %459, %451 : vector<2x32xf32>
    %461 = arith.mulf %460, %458 : vector<2x32xf32>
    %462 = arith.mulf %451, %401 : vector<2x32xf32>
    %463 = arith.addf %461, %462 : vector<2x32xf32>
    %c48_132 = arith.constant 48 : index
    %c0_133 = arith.constant 0 : index
    %464 = vector.load %arg9[%c48_132, %c0_133] : memref<128x64xf32, #tpu.memory_space<vmem>>, vector<2x32xf32>
    tpu.vector_store %arg9[%c48_132, %c0_133], %434 {strides = array<i32>} : memref<128x64xf32, #tpu.memory_space<vmem>>, vector<2x32xf32>,
    %c72_134 = arith.constant 72 : index
    %c32_135 = arith.constant 32 : index
    %465 = vector.load %arg9[%c72_134, %c32_135] : memref<128x64xf32, #tpu.memory_space<vmem>>, vector<2x32xf32>
    tpu.vector_store %arg9[%c72_134, %c32_135], %463 {strides = array<i32>} : memref<128x64xf32, #tpu.memory_space<vmem>>, vector<2x32xf32>,
    %cst_136 = arith.constant dense<0.000000e+00> : vector<2x96xf32>
    %466 = tpu.matmul %434, %25, %cst_136 {dimension_numbers = #tpu.dot_dimension_numbers<[1], [0], [0], [1], [0, 0, 1, 1], [], []>} : vector<2x32xf32>, vector<32x96xf32>, vector<2x96xf32> -> vector<2x96xf32>
    %cst_137 = arith.constant dense<0.000000e+00> : vector<2x96xf32>
    %467 = tpu.matmul %463, %27, %cst_137 {dimension_numbers = #tpu.dot_dimension_numbers<[1], [0], [0], [1], [0, 0, 1, 1], [], []>} : vector<2x32xf32>, vector<32x96xf32>, vector<2x96xf32> -> vector<2x96xf32>
    %c56 = arith.constant 56 : index
    %c0_138 = arith.constant 0 : index
    %468 = vector.load %arg7[%c56, %c0_138] : memref<128x96xf32, #tpu.memory_space<vmem>>, vector<2x96xf32>
    %469 = vector.extract_strided_slice %468 {offsets = [0, 0], sizes = [2, 32], strides = [1, 1]} : vector<2x96xf32> to vector<2x32xf32>
    %470 = vector.extract_strided_slice %466 {offsets = [0, 0], sizes = [2, 32], strides = [1, 1]} : vector<2x96xf32> to vector<2x32xf32>
    %471 = arith.addf %469, %470 : vector<2x32xf32>
    %472 = arith.negf %471 : vector<2x32xf32>
    %473 = math.exp %472 : vector<2x32xf32>
    %cst_139 = arith.constant 1.000000e+00 : f32
    %474 = vector.broadcast %cst_139 : f32 to vector<2x32xf32>
    %475 = arith.addf %474, %473 : vector<2x32xf32>
    %476 = arith.divf %474, %475 : vector<2x32xf32>
    %477 = vector.extract_strided_slice %468 {offsets = [0, 32], sizes = [2, 32], strides = [1, 1]} : vector<2x96xf32> to vector<2x32xf32>
    %478 = vector.extract_strided_slice %466 {offsets = [0, 32], sizes = [2, 32], strides = [1, 1]} : vector<2x96xf32> to vector<2x32xf32>
    %479 = arith.addf %477, %478 : vector<2x32xf32>
    %480 = arith.negf %479 : vector<2x32xf32>
    %481 = math.exp %480 : vector<2x32xf32>
    %cst_140 = arith.constant 1.000000e+00 : f32
    %482 = vector.broadcast %cst_140 : f32 to vector<2x32xf32>
    %483 = arith.addf %482, %481 : vector<2x32xf32>
    %484 = arith.divf %482, %483 : vector<2x32xf32>
    %485 = vector.extract_strided_slice %468 {offsets = [0, 64], sizes = [2, 32], strides = [1, 1]} : vector<2x96xf32> to vector<2x32xf32>
    %486 = vector.extract_strided_slice %466 {offsets = [0, 64], sizes = [2, 32], strides = [1, 1]} : vector<2x96xf32> to vector<2x32xf32>
    %487 = vector.broadcast %29 : vector<1x32xf32> to vector<2x32xf32>
    %488 = arith.addf %486, %487 : vector<2x32xf32>
    %489 = arith.mulf %476, %488 : vector<2x32xf32>
    %490 = arith.addf %485, %489 : vector<2x32xf32>
    %491 = math.tanh %490 : vector<2x32xf32>
    %cst_141 = arith.constant 1.000000e+00 : f32
    %492 = vector.broadcast %cst_141 : f32 to vector<2x32xf32>
    %493 = arith.subf %492, %484 : vector<2x32xf32>
    %494 = arith.mulf %493, %491 : vector<2x32xf32>
    %495 = arith.mulf %484, %434 : vector<2x32xf32>
    %496 = arith.addf %494, %495 : vector<2x32xf32>
    %c64 = arith.constant 64 : index
    %c0_142 = arith.constant 0 : index
    %497 = vector.load %arg8[%c64, %c0_142] : memref<128x96xf32, #tpu.memory_space<vmem>>, vector<2x96xf32>
    %498 = vector.extract_strided_slice %497 {offsets = [0, 0], sizes = [2, 32], strides = [1, 1]} : vector<2x96xf32> to vector<2x32xf32>
    %499 = vector.extract_strided_slice %467 {offsets = [0, 0], sizes = [2, 32], strides = [1, 1]} : vector<2x96xf32> to vector<2x32xf32>
    %500 = arith.addf %498, %499 : vector<2x32xf32>
    %501 = arith.negf %500 : vector<2x32xf32>
    %502 = math.exp %501 : vector<2x32xf32>
    %cst_143 = arith.constant 1.000000e+00 : f32
    %503 = vector.broadcast %cst_143 : f32 to vector<2x32xf32>
    %504 = arith.addf %503, %502 : vector<2x32xf32>
    %505 = arith.divf %503, %504 : vector<2x32xf32>
    %506 = vector.extract_strided_slice %497 {offsets = [0, 32], sizes = [2, 32], strides = [1, 1]} : vector<2x96xf32> to vector<2x32xf32>
    %507 = vector.extract_strided_slice %467 {offsets = [0, 32], sizes = [2, 32], strides = [1, 1]} : vector<2x96xf32> to vector<2x32xf32>
    %508 = arith.addf %506, %507 : vector<2x32xf32>
    %509 = arith.negf %508 : vector<2x32xf32>
    %510 = math.exp %509 : vector<2x32xf32>
    %cst_144 = arith.constant 1.000000e+00 : f32
    %511 = vector.broadcast %cst_144 : f32 to vector<2x32xf32>
    %512 = arith.addf %511, %510 : vector<2x32xf32>
    %513 = arith.divf %511, %512 : vector<2x32xf32>
    %514 = vector.extract_strided_slice %497 {offsets = [0, 64], sizes = [2, 32], strides = [1, 1]} : vector<2x96xf32> to vector<2x32xf32>
    %515 = vector.extract_strided_slice %467 {offsets = [0, 64], sizes = [2, 32], strides = [1, 1]} : vector<2x96xf32> to vector<2x32xf32>
    %516 = vector.broadcast %31 : vector<1x32xf32> to vector<2x32xf32>
    %517 = arith.addf %515, %516 : vector<2x32xf32>
    %518 = arith.mulf %505, %517 : vector<2x32xf32>
    %519 = arith.addf %514, %518 : vector<2x32xf32>
    %520 = math.tanh %519 : vector<2x32xf32>
    %cst_145 = arith.constant 1.000000e+00 : f32
    %521 = vector.broadcast %cst_145 : f32 to vector<2x32xf32>
    %522 = arith.subf %521, %513 : vector<2x32xf32>
    %523 = arith.mulf %522, %520 : vector<2x32xf32>
    %524 = arith.mulf %513, %463 : vector<2x32xf32>
    %525 = arith.addf %523, %524 : vector<2x32xf32>
    %c56_146 = arith.constant 56 : index
    %c0_147 = arith.constant 0 : index
    %526 = vector.load %arg9[%c56_146, %c0_147] : memref<128x64xf32, #tpu.memory_space<vmem>>, vector<2x32xf32>
    tpu.vector_store %arg9[%c56_146, %c0_147], %496 {strides = array<i32>} : memref<128x64xf32, #tpu.memory_space<vmem>>, vector<2x32xf32>,
    %c64_148 = arith.constant 64 : index
    %c32_149 = arith.constant 32 : index
    %527 = vector.load %arg9[%c64_148, %c32_149] : memref<128x64xf32, #tpu.memory_space<vmem>>, vector<2x32xf32>
    tpu.vector_store %arg9[%c64_148, %c32_149], %525 {strides = array<i32>} : memref<128x64xf32, #tpu.memory_space<vmem>>, vector<2x32xf32>,
    %cst_150 = arith.constant dense<0.000000e+00> : vector<2x96xf32>
    %528 = tpu.matmul %496, %25, %cst_150 {dimension_numbers = #tpu.dot_dimension_numbers<[1], [0], [0], [1], [0, 0, 1, 1], [], []>} : vector<2x32xf32>, vector<32x96xf32>, vector<2x96xf32> -> vector<2x96xf32>
    %cst_151 = arith.constant dense<0.000000e+00> : vector<2x96xf32>
    %529 = tpu.matmul %525, %27, %cst_151 {dimension_numbers = #tpu.dot_dimension_numbers<[1], [0], [0], [1], [0, 0, 1, 1], [], []>} : vector<2x32xf32>, vector<32x96xf32>, vector<2x96xf32> -> vector<2x96xf32>
    %c64_152 = arith.constant 64 : index
    %c0_153 = arith.constant 0 : index
    %530 = vector.load %arg7[%c64_152, %c0_153] : memref<128x96xf32, #tpu.memory_space<vmem>>, vector<2x96xf32>
    %531 = vector.extract_strided_slice %530 {offsets = [0, 0], sizes = [2, 32], strides = [1, 1]} : vector<2x96xf32> to vector<2x32xf32>
    %532 = vector.extract_strided_slice %528 {offsets = [0, 0], sizes = [2, 32], strides = [1, 1]} : vector<2x96xf32> to vector<2x32xf32>
    %533 = arith.addf %531, %532 : vector<2x32xf32>
    %534 = arith.negf %533 : vector<2x32xf32>
    %535 = math.exp %534 : vector<2x32xf32>
    %cst_154 = arith.constant 1.000000e+00 : f32
    %536 = vector.broadcast %cst_154 : f32 to vector<2x32xf32>
    %537 = arith.addf %536, %535 : vector<2x32xf32>
    %538 = arith.divf %536, %537 : vector<2x32xf32>
    %539 = vector.extract_strided_slice %530 {offsets = [0, 32], sizes = [2, 32], strides = [1, 1]} : vector<2x96xf32> to vector<2x32xf32>
    %540 = vector.extract_strided_slice %528 {offsets = [0, 32], sizes = [2, 32], strides = [1, 1]} : vector<2x96xf32> to vector<2x32xf32>
    %541 = arith.addf %539, %540 : vector<2x32xf32>
    %542 = arith.negf %541 : vector<2x32xf32>
    %543 = math.exp %542 : vector<2x32xf32>
    %cst_155 = arith.constant 1.000000e+00 : f32
    %544 = vector.broadcast %cst_155 : f32 to vector<2x32xf32>
    %545 = arith.addf %544, %543 : vector<2x32xf32>
    %546 = arith.divf %544, %545 : vector<2x32xf32>
    %547 = vector.extract_strided_slice %530 {offsets = [0, 64], sizes = [2, 32], strides = [1, 1]} : vector<2x96xf32> to vector<2x32xf32>
    %548 = vector.extract_strided_slice %528 {offsets = [0, 64], sizes = [2, 32], strides = [1, 1]} : vector<2x96xf32> to vector<2x32xf32>
    %549 = vector.broadcast %29 : vector<1x32xf32> to vector<2x32xf32>
    %550 = arith.addf %548, %549 : vector<2x32xf32>
    %551 = arith.mulf %538, %550 : vector<2x32xf32>
    %552 = arith.addf %547, %551 : vector<2x32xf32>
    %553 = math.tanh %552 : vector<2x32xf32>
    %cst_156 = arith.constant 1.000000e+00 : f32
    %554 = vector.broadcast %cst_156 : f32 to vector<2x32xf32>
    %555 = arith.subf %554, %546 : vector<2x32xf32>
    %556 = arith.mulf %555, %553 : vector<2x32xf32>
    %557 = arith.mulf %546, %496 : vector<2x32xf32>
    %558 = arith.addf %556, %557 : vector<2x32xf32>
    %c56_157 = arith.constant 56 : index
    %c0_158 = arith.constant 0 : index
    %559 = vector.load %arg8[%c56_157, %c0_158] : memref<128x96xf32, #tpu.memory_space<vmem>>, vector<2x96xf32>
    %560 = vector.extract_strided_slice %559 {offsets = [0, 0], sizes = [2, 32], strides = [1, 1]} : vector<2x96xf32> to vector<2x32xf32>
    %561 = vector.extract_strided_slice %529 {offsets = [0, 0], sizes = [2, 32], strides = [1, 1]} : vector<2x96xf32> to vector<2x32xf32>
    %562 = arith.addf %560, %561 : vector<2x32xf32>
    %563 = arith.negf %562 : vector<2x32xf32>
    %564 = math.exp %563 : vector<2x32xf32>
    %cst_159 = arith.constant 1.000000e+00 : f32
    %565 = vector.broadcast %cst_159 : f32 to vector<2x32xf32>
    %566 = arith.addf %565, %564 : vector<2x32xf32>
    %567 = arith.divf %565, %566 : vector<2x32xf32>
    %568 = vector.extract_strided_slice %559 {offsets = [0, 32], sizes = [2, 32], strides = [1, 1]} : vector<2x96xf32> to vector<2x32xf32>
    %569 = vector.extract_strided_slice %529 {offsets = [0, 32], sizes = [2, 32], strides = [1, 1]} : vector<2x96xf32> to vector<2x32xf32>
    %570 = arith.addf %568, %569 : vector<2x32xf32>
    %571 = arith.negf %570 : vector<2x32xf32>
    %572 = math.exp %571 : vector<2x32xf32>
    %cst_160 = arith.constant 1.000000e+00 : f32
    %573 = vector.broadcast %cst_160 : f32 to vector<2x32xf32>
    %574 = arith.addf %573, %572 : vector<2x32xf32>
    %575 = arith.divf %573, %574 : vector<2x32xf32>
    %576 = vector.extract_strided_slice %559 {offsets = [0, 64], sizes = [2, 32], strides = [1, 1]} : vector<2x96xf32> to vector<2x32xf32>
    %577 = vector.extract_strided_slice %529 {offsets = [0, 64], sizes = [2, 32], strides = [1, 1]} : vector<2x96xf32> to vector<2x32xf32>
    %578 = vector.broadcast %31 : vector<1x32xf32> to vector<2x32xf32>
    %579 = arith.addf %577, %578 : vector<2x32xf32>
    %580 = arith.mulf %567, %579 : vector<2x32xf32>
    %581 = arith.addf %576, %580 : vector<2x32xf32>
    %582 = math.tanh %581 : vector<2x32xf32>
    %cst_161 = arith.constant 1.000000e+00 : f32
    %583 = vector.broadcast %cst_161 : f32 to vector<2x32xf32>
    %584 = arith.subf %583, %575 : vector<2x32xf32>
    %585 = arith.mulf %584, %582 : vector<2x32xf32>
    %586 = arith.mulf %575, %525 : vector<2x32xf32>
    %587 = arith.addf %585, %586 : vector<2x32xf32>
    %c64_162 = arith.constant 64 : index
    %c0_163 = arith.constant 0 : index
    %588 = vector.load %arg9[%c64_162, %c0_163] : memref<128x64xf32, #tpu.memory_space<vmem>>, vector<2x32xf32>
    tpu.vector_store %arg9[%c64_162, %c0_163], %558 {strides = array<i32>} : memref<128x64xf32, #tpu.memory_space<vmem>>, vector<2x32xf32>,
    %c56_164 = arith.constant 56 : index
    %c32_165 = arith.constant 32 : index
    %589 = vector.load %arg9[%c56_164, %c32_165] : memref<128x64xf32, #tpu.memory_space<vmem>>, vector<2x32xf32>
    tpu.vector_store %arg9[%c56_164, %c32_165], %587 {strides = array<i32>} : memref<128x64xf32, #tpu.memory_space<vmem>>, vector<2x32xf32>,
    %cst_166 = arith.constant dense<0.000000e+00> : vector<2x96xf32>
    %590 = tpu.matmul %558, %25, %cst_166 {dimension_numbers = #tpu.dot_dimension_numbers<[1], [0], [0], [1], [0, 0, 1, 1], [], []>} : vector<2x32xf32>, vector<32x96xf32>, vector<2x96xf32> -> vector<2x96xf32>
    %cst_167 = arith.constant dense<0.000000e+00> : vector<2x96xf32>
    %591 = tpu.matmul %587, %27, %cst_167 {dimension_numbers = #tpu.dot_dimension_numbers<[1], [0], [0], [1], [0, 0, 1, 1], [], []>} : vector<2x32xf32>, vector<32x96xf32>, vector<2x96xf32> -> vector<2x96xf32>
    %c72_168 = arith.constant 72 : index
    %c0_169 = arith.constant 0 : index
    %592 = vector.load %arg7[%c72_168, %c0_169] : memref<128x96xf32, #tpu.memory_space<vmem>>, vector<2x96xf32>
    %593 = vector.extract_strided_slice %592 {offsets = [0, 0], sizes = [2, 32], strides = [1, 1]} : vector<2x96xf32> to vector<2x32xf32>
    %594 = vector.extract_strided_slice %590 {offsets = [0, 0], sizes = [2, 32], strides = [1, 1]} : vector<2x96xf32> to vector<2x32xf32>
    %595 = arith.addf %593, %594 : vector<2x32xf32>
    %596 = arith.negf %595 : vector<2x32xf32>
    %597 = math.exp %596 : vector<2x32xf32>
    %cst_170 = arith.constant 1.000000e+00 : f32
    %598 = vector.broadcast %cst_170 : f32 to vector<2x32xf32>
    %599 = arith.addf %598, %597 : vector<2x32xf32>
    %600 = arith.divf %598, %599 : vector<2x32xf32>
    %601 = vector.extract_strided_slice %592 {offsets = [0, 32], sizes = [2, 32], strides = [1, 1]} : vector<2x96xf32> to vector<2x32xf32>
    %602 = vector.extract_strided_slice %590 {offsets = [0, 32], sizes = [2, 32], strides = [1, 1]} : vector<2x96xf32> to vector<2x32xf32>
    %603 = arith.addf %601, %602 : vector<2x32xf32>
    %604 = arith.negf %603 : vector<2x32xf32>
    %605 = math.exp %604 : vector<2x32xf32>
    %cst_171 = arith.constant 1.000000e+00 : f32
    %606 = vector.broadcast %cst_171 : f32 to vector<2x32xf32>
    %607 = arith.addf %606, %605 : vector<2x32xf32>
    %608 = arith.divf %606, %607 : vector<2x32xf32>
    %609 = vector.extract_strided_slice %592 {offsets = [0, 64], sizes = [2, 32], strides = [1, 1]} : vector<2x96xf32> to vector<2x32xf32>
    %610 = vector.extract_strided_slice %590 {offsets = [0, 64], sizes = [2, 32], strides = [1, 1]} : vector<2x96xf32> to vector<2x32xf32>
    %611 = vector.broadcast %29 : vector<1x32xf32> to vector<2x32xf32>
    %612 = arith.addf %610, %611 : vector<2x32xf32>
    %613 = arith.mulf %600, %612 : vector<2x32xf32>
    %614 = arith.addf %609, %613 : vector<2x32xf32>
    %615 = math.tanh %614 : vector<2x32xf32>
    %cst_172 = arith.constant 1.000000e+00 : f32
    %616 = vector.broadcast %cst_172 : f32 to vector<2x32xf32>
    %617 = arith.subf %616, %608 : vector<2x32xf32>
    %618 = arith.mulf %617, %615 : vector<2x32xf32>
    %619 = arith.mulf %608, %558 : vector<2x32xf32>
    %620 = arith.addf %618, %619 : vector<2x32xf32>
    %c48_173 = arith.constant 48 : index
    %c0_174 = arith.constant 0 : index
    %621 = vector.load %arg8[%c48_173, %c0_174] : memref<128x96xf32, #tpu.memory_space<vmem>>, vector<2x96xf32>
    %622 = vector.extract_strided_slice %621 {offsets = [0, 0], sizes = [2, 32], strides = [1, 1]} : vector<2x96xf32> to vector<2x32xf32>
    %623 = vector.extract_strided_slice %591 {offsets = [0, 0], sizes = [2, 32], strides = [1, 1]} : vector<2x96xf32> to vector<2x32xf32>
    %624 = arith.addf %622, %623 : vector<2x32xf32>
    %625 = arith.negf %624 : vector<2x32xf32>
    %626 = math.exp %625 : vector<2x32xf32>
    %cst_175 = arith.constant 1.000000e+00 : f32
    %627 = vector.broadcast %cst_175 : f32 to vector<2x32xf32>
    %628 = arith.addf %627, %626 : vector<2x32xf32>
    %629 = arith.divf %627, %628 : vector<2x32xf32>
    %630 = vector.extract_strided_slice %621 {offsets = [0, 32], sizes = [2, 32], strides = [1, 1]} : vector<2x96xf32> to vector<2x32xf32>
    %631 = vector.extract_strided_slice %591 {offsets = [0, 32], sizes = [2, 32], strides = [1, 1]} : vector<2x96xf32> to vector<2x32xf32>
    %632 = arith.addf %630, %631 : vector<2x32xf32>
    %633 = arith.negf %632 : vector<2x32xf32>
    %634 = math.exp %633 : vector<2x32xf32>
    %cst_176 = arith.constant 1.000000e+00 : f32
    %635 = vector.broadcast %cst_176 : f32 to vector<2x32xf32>
    %636 = arith.addf %635, %634 : vector<2x32xf32>
    %637 = arith.divf %635, %636 : vector<2x32xf32>
    %638 = vector.extract_strided_slice %621 {offsets = [0, 64], sizes = [2, 32], strides = [1, 1]} : vector<2x96xf32> to vector<2x32xf32>
    %639 = vector.extract_strided_slice %591 {offsets = [0, 64], sizes = [2, 32], strides = [1, 1]} : vector<2x96xf32> to vector<2x32xf32>
    %640 = vector.broadcast %31 : vector<1x32xf32> to vector<2x32xf32>
    %641 = arith.addf %639, %640 : vector<2x32xf32>
    %642 = arith.mulf %629, %641 : vector<2x32xf32>
    %643 = arith.addf %638, %642 : vector<2x32xf32>
    %644 = math.tanh %643 : vector<2x32xf32>
    %cst_177 = arith.constant 1.000000e+00 : f32
    %645 = vector.broadcast %cst_177 : f32 to vector<2x32xf32>
    %646 = arith.subf %645, %637 : vector<2x32xf32>
    %647 = arith.mulf %646, %644 : vector<2x32xf32>
    %648 = arith.mulf %637, %587 : vector<2x32xf32>
    %649 = arith.addf %647, %648 : vector<2x32xf32>
    %c72_178 = arith.constant 72 : index
    %c0_179 = arith.constant 0 : index
    %650 = vector.load %arg9[%c72_178, %c0_179] : memref<128x64xf32, #tpu.memory_space<vmem>>, vector<2x32xf32>
    tpu.vector_store %arg9[%c72_178, %c0_179], %620 {strides = array<i32>} : memref<128x64xf32, #tpu.memory_space<vmem>>, vector<2x32xf32>,
    %c48_180 = arith.constant 48 : index
    %c32_181 = arith.constant 32 : index
    %651 = vector.load %arg9[%c48_180, %c32_181] : memref<128x64xf32, #tpu.memory_space<vmem>>, vector<2x32xf32>
    tpu.vector_store %arg9[%c48_180, %c32_181], %649 {strides = array<i32>} : memref<128x64xf32, #tpu.memory_space<vmem>>, vector<2x32xf32>,
    %cst_182 = arith.constant dense<0.000000e+00> : vector<2x96xf32>
    %652 = tpu.matmul %620, %25, %cst_182 {dimension_numbers = #tpu.dot_dimension_numbers<[1], [0], [0], [1], [0, 0, 1, 1], [], []>} : vector<2x32xf32>, vector<32x96xf32>, vector<2x96xf32> -> vector<2x96xf32>
    %cst_183 = arith.constant dense<0.000000e+00> : vector<2x96xf32>
    %653 = tpu.matmul %649, %27, %cst_183 {dimension_numbers = #tpu.dot_dimension_numbers<[1], [0], [0], [1], [0, 0, 1, 1], [], []>} : vector<2x32xf32>, vector<32x96xf32>, vector<2x96xf32> -> vector<2x96xf32>
    %c80_184 = arith.constant 80 : index
    %c0_185 = arith.constant 0 : index
    %654 = vector.load %arg7[%c80_184, %c0_185] : memref<128x96xf32, #tpu.memory_space<vmem>>, vector<2x96xf32>
    %655 = vector.extract_strided_slice %654 {offsets = [0, 0], sizes = [2, 32], strides = [1, 1]} : vector<2x96xf32> to vector<2x32xf32>
    %656 = vector.extract_strided_slice %652 {offsets = [0, 0], sizes = [2, 32], strides = [1, 1]} : vector<2x96xf32> to vector<2x32xf32>
    %657 = arith.addf %655, %656 : vector<2x32xf32>
    %658 = arith.negf %657 : vector<2x32xf32>
    %659 = math.exp %658 : vector<2x32xf32>
    %cst_186 = arith.constant 1.000000e+00 : f32
    %660 = vector.broadcast %cst_186 : f32 to vector<2x32xf32>
    %661 = arith.addf %660, %659 : vector<2x32xf32>
    %662 = arith.divf %660, %661 : vector<2x32xf32>
    %663 = vector.extract_strided_slice %654 {offsets = [0, 32], sizes = [2, 32], strides = [1, 1]} : vector<2x96xf32> to vector<2x32xf32>
    %664 = vector.extract_strided_slice %652 {offsets = [0, 32], sizes = [2, 32], strides = [1, 1]} : vector<2x96xf32> to vector<2x32xf32>
    %665 = arith.addf %663, %664 : vector<2x32xf32>
    %666 = arith.negf %665 : vector<2x32xf32>
    %667 = math.exp %666 : vector<2x32xf32>
    %cst_187 = arith.constant 1.000000e+00 : f32
    %668 = vector.broadcast %cst_187 : f32 to vector<2x32xf32>
    %669 = arith.addf %668, %667 : vector<2x32xf32>
    %670 = arith.divf %668, %669 : vector<2x32xf32>
    %671 = vector.extract_strided_slice %654 {offsets = [0, 64], sizes = [2, 32], strides = [1, 1]} : vector<2x96xf32> to vector<2x32xf32>
    %672 = vector.extract_strided_slice %652 {offsets = [0, 64], sizes = [2, 32], strides = [1, 1]} : vector<2x96xf32> to vector<2x32xf32>
    %673 = vector.broadcast %29 : vector<1x32xf32> to vector<2x32xf32>
    %674 = arith.addf %672, %673 : vector<2x32xf32>
    %675 = arith.mulf %662, %674 : vector<2x32xf32>
    %676 = arith.addf %671, %675 : vector<2x32xf32>
    %677 = math.tanh %676 : vector<2x32xf32>
    %cst_188 = arith.constant 1.000000e+00 : f32
    %678 = vector.broadcast %cst_188 : f32 to vector<2x32xf32>
    %679 = arith.subf %678, %670 : vector<2x32xf32>
    %680 = arith.mulf %679, %677 : vector<2x32xf32>
    %681 = arith.mulf %670, %620 : vector<2x32xf32>
    %682 = arith.addf %680, %681 : vector<2x32xf32>
    %c40_189 = arith.constant 40 : index
    %c0_190 = arith.constant 0 : index
    %683 = vector.load %arg8[%c40_189, %c0_190] : memref<128x96xf32, #tpu.memory_space<vmem>>, vector<2x96xf32>
    %684 = vector.extract_strided_slice %683 {offsets = [0, 0], sizes = [2, 32], strides = [1, 1]} : vector<2x96xf32> to vector<2x32xf32>
    %685 = vector.extract_strided_slice %653 {offsets = [0, 0], sizes = [2, 32], strides = [1, 1]} : vector<2x96xf32> to vector<2x32xf32>
    %686 = arith.addf %684, %685 : vector<2x32xf32>
    %687 = arith.negf %686 : vector<2x32xf32>
    %688 = math.exp %687 : vector<2x32xf32>
    %cst_191 = arith.constant 1.000000e+00 : f32
    %689 = vector.broadcast %cst_191 : f32 to vector<2x32xf32>
    %690 = arith.addf %689, %688 : vector<2x32xf32>
    %691 = arith.divf %689, %690 : vector<2x32xf32>
    %692 = vector.extract_strided_slice %683 {offsets = [0, 32], sizes = [2, 32], strides = [1, 1]} : vector<2x96xf32> to vector<2x32xf32>
    %693 = vector.extract_strided_slice %653 {offsets = [0, 32], sizes = [2, 32], strides = [1, 1]} : vector<2x96xf32> to vector<2x32xf32>
    %694 = arith.addf %692, %693 : vector<2x32xf32>
    %695 = arith.negf %694 : vector<2x32xf32>
    %696 = math.exp %695 : vector<2x32xf32>
    %cst_192 = arith.constant 1.000000e+00 : f32
    %697 = vector.broadcast %cst_192 : f32 to vector<2x32xf32>
    %698 = arith.addf %697, %696 : vector<2x32xf32>
    %699 = arith.divf %697, %698 : vector<2x32xf32>
    %700 = vector.extract_strided_slice %683 {offsets = [0, 64], sizes = [2, 32], strides = [1, 1]} : vector<2x96xf32> to vector<2x32xf32>
    %701 = vector.extract_strided_slice %653 {offsets = [0, 64], sizes = [2, 32], strides = [1, 1]} : vector<2x96xf32> to vector<2x32xf32>
    %702 = vector.broadcast %31 : vector<1x32xf32> to vector<2x32xf32>
    %703 = arith.addf %701, %702 : vector<2x32xf32>
    %704 = arith.mulf %691, %703 : vector<2x32xf32>
    %705 = arith.addf %700, %704 : vector<2x32xf32>
    %706 = math.tanh %705 : vector<2x32xf32>
    %cst_193 = arith.constant 1.000000e+00 : f32
    %707 = vector.broadcast %cst_193 : f32 to vector<2x32xf32>
    %708 = arith.subf %707, %699 : vector<2x32xf32>
    %709 = arith.mulf %708, %706 : vector<2x32xf32>
    %710 = arith.mulf %699, %649 : vector<2x32xf32>
    %711 = arith.addf %709, %710 : vector<2x32xf32>
    %c80_194 = arith.constant 80 : index
    %c0_195 = arith.constant 0 : index
    %712 = vector.load %arg9[%c80_194, %c0_195] : memref<128x64xf32, #tpu.memory_space<vmem>>, vector<2x32xf32>
    tpu.vector_store %arg9[%c80_194, %c0_195], %682 {strides = array<i32>} : memref<128x64xf32, #tpu.memory_space<vmem>>, vector<2x32xf32>,
    %c40_196 = arith.constant 40 : index
    %c32_197 = arith.constant 32 : index
    %713 = vector.load %arg9[%c40_196, %c32_197] : memref<128x64xf32, #tpu.memory_space<vmem>>, vector<2x32xf32>
    tpu.vector_store %arg9[%c40_196, %c32_197], %711 {strides = array<i32>} : memref<128x64xf32, #tpu.memory_space<vmem>>, vector<2x32xf32>,
    %cst_198 = arith.constant dense<0.000000e+00> : vector<2x96xf32>
    %714 = tpu.matmul %682, %25, %cst_198 {dimension_numbers = #tpu.dot_dimension_numbers<[1], [0], [0], [1], [0, 0, 1, 1], [], []>} : vector<2x32xf32>, vector<32x96xf32>, vector<2x96xf32> -> vector<2x96xf32>
    %cst_199 = arith.constant dense<0.000000e+00> : vector<2x96xf32>
    %715 = tpu.matmul %711, %27, %cst_199 {dimension_numbers = #tpu.dot_dimension_numbers<[1], [0], [0], [1], [0, 0, 1, 1], [], []>} : vector<2x32xf32>, vector<32x96xf32>, vector<2x96xf32> -> vector<2x96xf32>
    %c88_200 = arith.constant 88 : index
    %c0_201 = arith.constant 0 : index
    %716 = vector.load %arg7[%c88_200, %c0_201] : memref<128x96xf32, #tpu.memory_space<vmem>>, vector<2x96xf32>
    %717 = vector.extract_strided_slice %716 {offsets = [0, 0], sizes = [2, 32], strides = [1, 1]} : vector<2x96xf32> to vector<2x32xf32>
    %718 = vector.extract_strided_slice %714 {offsets = [0, 0], sizes = [2, 32], strides = [1, 1]} : vector<2x96xf32> to vector<2x32xf32>
    %719 = arith.addf %717, %718 : vector<2x32xf32>
    %720 = arith.negf %719 : vector<2x32xf32>
    %721 = math.exp %720 : vector<2x32xf32>
    %cst_202 = arith.constant 1.000000e+00 : f32
    %722 = vector.broadcast %cst_202 : f32 to vector<2x32xf32>
    %723 = arith.addf %722, %721 : vector<2x32xf32>
    %724 = arith.divf %722, %723 : vector<2x32xf32>
    %725 = vector.extract_strided_slice %716 {offsets = [0, 32], sizes = [2, 32], strides = [1, 1]} : vector<2x96xf32> to vector<2x32xf32>
    %726 = vector.extract_strided_slice %714 {offsets = [0, 32], sizes = [2, 32], strides = [1, 1]} : vector<2x96xf32> to vector<2x32xf32>
    %727 = arith.addf %725, %726 : vector<2x32xf32>
    %728 = arith.negf %727 : vector<2x32xf32>
    %729 = math.exp %728 : vector<2x32xf32>
    %cst_203 = arith.constant 1.000000e+00 : f32
    %730 = vector.broadcast %cst_203 : f32 to vector<2x32xf32>
    %731 = arith.addf %730, %729 : vector<2x32xf32>
    %732 = arith.divf %730, %731 : vector<2x32xf32>
    %733 = vector.extract_strided_slice %716 {offsets = [0, 64], sizes = [2, 32], strides = [1, 1]} : vector<2x96xf32> to vector<2x32xf32>
    %734 = vector.extract_strided_slice %714 {offsets = [0, 64], sizes = [2, 32], strides = [1, 1]} : vector<2x96xf32> to vector<2x32xf32>
    %735 = vector.broadcast %29 : vector<1x32xf32> to vector<2x32xf32>
    %736 = arith.addf %734, %735 : vector<2x32xf32>
    %737 = arith.mulf %724, %736 : vector<2x32xf32>
    %738 = arith.addf %733, %737 : vector<2x32xf32>
    %739 = math.tanh %738 : vector<2x32xf32>
    %cst_204 = arith.constant 1.000000e+00 : f32
    %740 = vector.broadcast %cst_204 : f32 to vector<2x32xf32>
    %741 = arith.subf %740, %732 : vector<2x32xf32>
    %742 = arith.mulf %741, %739 : vector<2x32xf32>
    %743 = arith.mulf %732, %682 : vector<2x32xf32>
    %744 = arith.addf %742, %743 : vector<2x32xf32>
    %c32_205 = arith.constant 32 : index
    %c0_206 = arith.constant 0 : index
    %745 = vector.load %arg8[%c32_205, %c0_206] : memref<128x96xf32, #tpu.memory_space<vmem>>, vector<2x96xf32>
    %746 = vector.extract_strided_slice %745 {offsets = [0, 0], sizes = [2, 32], strides = [1, 1]} : vector<2x96xf32> to vector<2x32xf32>
    %747 = vector.extract_strided_slice %715 {offsets = [0, 0], sizes = [2, 32], strides = [1, 1]} : vector<2x96xf32> to vector<2x32xf32>
    %748 = arith.addf %746, %747 : vector<2x32xf32>
    %749 = arith.negf %748 : vector<2x32xf32>
    %750 = math.exp %749 : vector<2x32xf32>
    %cst_207 = arith.constant 1.000000e+00 : f32
    %751 = vector.broadcast %cst_207 : f32 to vector<2x32xf32>
    %752 = arith.addf %751, %750 : vector<2x32xf32>
    %753 = arith.divf %751, %752 : vector<2x32xf32>
    %754 = vector.extract_strided_slice %745 {offsets = [0, 32], sizes = [2, 32], strides = [1, 1]} : vector<2x96xf32> to vector<2x32xf32>
    %755 = vector.extract_strided_slice %715 {offsets = [0, 32], sizes = [2, 32], strides = [1, 1]} : vector<2x96xf32> to vector<2x32xf32>
    %756 = arith.addf %754, %755 : vector<2x32xf32>
    %757 = arith.negf %756 : vector<2x32xf32>
    %758 = math.exp %757 : vector<2x32xf32>
    %cst_208 = arith.constant 1.000000e+00 : f32
    %759 = vector.broadcast %cst_208 : f32 to vector<2x32xf32>
    %760 = arith.addf %759, %758 : vector<2x32xf32>
    %761 = arith.divf %759, %760 : vector<2x32xf32>
    %762 = vector.extract_strided_slice %745 {offsets = [0, 64], sizes = [2, 32], strides = [1, 1]} : vector<2x96xf32> to vector<2x32xf32>
    %763 = vector.extract_strided_slice %715 {offsets = [0, 64], sizes = [2, 32], strides = [1, 1]} : vector<2x96xf32> to vector<2x32xf32>
    %764 = vector.broadcast %31 : vector<1x32xf32> to vector<2x32xf32>
    %765 = arith.addf %763, %764 : vector<2x32xf32>
    %766 = arith.mulf %753, %765 : vector<2x32xf32>
    %767 = arith.addf %762, %766 : vector<2x32xf32>
    %768 = math.tanh %767 : vector<2x32xf32>
    %cst_209 = arith.constant 1.000000e+00 : f32
    %769 = vector.broadcast %cst_209 : f32 to vector<2x32xf32>
    %770 = arith.subf %769, %761 : vector<2x32xf32>
    %771 = arith.mulf %770, %768 : vector<2x32xf32>
    %772 = arith.mulf %761, %711 : vector<2x32xf32>
    %773 = arith.addf %771, %772 : vector<2x32xf32>
    %c88_210 = arith.constant 88 : index
    %c0_211 = arith.constant 0 : index
    %774 = vector.load %arg9[%c88_210, %c0_211] : memref<128x64xf32, #tpu.memory_space<vmem>>, vector<2x32xf32>
    tpu.vector_store %arg9[%c88_210, %c0_211], %744 {strides = array<i32>} : memref<128x64xf32, #tpu.memory_space<vmem>>, vector<2x32xf32>,
    %c32_212 = arith.constant 32 : index
    %c32_213 = arith.constant 32 : index
    %775 = vector.load %arg9[%c32_212, %c32_213] : memref<128x64xf32, #tpu.memory_space<vmem>>, vector<2x32xf32>
    tpu.vector_store %arg9[%c32_212, %c32_213], %773 {strides = array<i32>} : memref<128x64xf32, #tpu.memory_space<vmem>>, vector<2x32xf32>,
    %cst_214 = arith.constant dense<0.000000e+00> : vector<2x96xf32>
    %776 = tpu.matmul %744, %25, %cst_214 {dimension_numbers = #tpu.dot_dimension_numbers<[1], [0], [0], [1], [0, 0, 1, 1], [], []>} : vector<2x32xf32>, vector<32x96xf32>, vector<2x96xf32> -> vector<2x96xf32>
    %cst_215 = arith.constant dense<0.000000e+00> : vector<2x96xf32>
    %777 = tpu.matmul %773, %27, %cst_215 {dimension_numbers = #tpu.dot_dimension_numbers<[1], [0], [0], [1], [0, 0, 1, 1], [], []>} : vector<2x32xf32>, vector<32x96xf32>, vector<2x96xf32> -> vector<2x96xf32>
    %c96_216 = arith.constant 96 : index
    %c0_217 = arith.constant 0 : index
    %778 = vector.load %arg7[%c96_216, %c0_217] : memref<128x96xf32, #tpu.memory_space<vmem>>, vector<2x96xf32>
    %779 = vector.extract_strided_slice %778 {offsets = [0, 0], sizes = [2, 32], strides = [1, 1]} : vector<2x96xf32> to vector<2x32xf32>
    %780 = vector.extract_strided_slice %776 {offsets = [0, 0], sizes = [2, 32], strides = [1, 1]} : vector<2x96xf32> to vector<2x32xf32>
    %781 = arith.addf %779, %780 : vector<2x32xf32>
    %782 = arith.negf %781 : vector<2x32xf32>
    %783 = math.exp %782 : vector<2x32xf32>
    %cst_218 = arith.constant 1.000000e+00 : f32
    %784 = vector.broadcast %cst_218 : f32 to vector<2x32xf32>
    %785 = arith.addf %784, %783 : vector<2x32xf32>
    %786 = arith.divf %784, %785 : vector<2x32xf32>
    %787 = vector.extract_strided_slice %778 {offsets = [0, 32], sizes = [2, 32], strides = [1, 1]} : vector<2x96xf32> to vector<2x32xf32>
    %788 = vector.extract_strided_slice %776 {offsets = [0, 32], sizes = [2, 32], strides = [1, 1]} : vector<2x96xf32> to vector<2x32xf32>
    %789 = arith.addf %787, %788 : vector<2x32xf32>
    %790 = arith.negf %789 : vector<2x32xf32>
    %791 = math.exp %790 : vector<2x32xf32>
    %cst_219 = arith.constant 1.000000e+00 : f32
    %792 = vector.broadcast %cst_219 : f32 to vector<2x32xf32>
    %793 = arith.addf %792, %791 : vector<2x32xf32>
    %794 = arith.divf %792, %793 : vector<2x32xf32>
    %795 = vector.extract_strided_slice %778 {offsets = [0, 64], sizes = [2, 32], strides = [1, 1]} : vector<2x96xf32> to vector<2x32xf32>
    %796 = vector.extract_strided_slice %776 {offsets = [0, 64], sizes = [2, 32], strides = [1, 1]} : vector<2x96xf32> to vector<2x32xf32>
    %797 = vector.broadcast %29 : vector<1x32xf32> to vector<2x32xf32>
    %798 = arith.addf %796, %797 : vector<2x32xf32>
    %799 = arith.mulf %786, %798 : vector<2x32xf32>
    %800 = arith.addf %795, %799 : vector<2x32xf32>
    %801 = math.tanh %800 : vector<2x32xf32>
    %cst_220 = arith.constant 1.000000e+00 : f32
    %802 = vector.broadcast %cst_220 : f32 to vector<2x32xf32>
    %803 = arith.subf %802, %794 : vector<2x32xf32>
    %804 = arith.mulf %803, %801 : vector<2x32xf32>
    %805 = arith.mulf %794, %744 : vector<2x32xf32>
    %806 = arith.addf %804, %805 : vector<2x32xf32>
    %c24_221 = arith.constant 24 : index
    %c0_222 = arith.constant 0 : index
    %807 = vector.load %arg8[%c24_221, %c0_222] : memref<128x96xf32, #tpu.memory_space<vmem>>, vector<2x96xf32>
    %808 = vector.extract_strided_slice %807 {offsets = [0, 0], sizes = [2, 32], strides = [1, 1]} : vector<2x96xf32> to vector<2x32xf32>
    %809 = vector.extract_strided_slice %777 {offsets = [0, 0], sizes = [2, 32], strides = [1, 1]} : vector<2x96xf32> to vector<2x32xf32>
    %810 = arith.addf %808, %809 : vector<2x32xf32>
    %811 = arith.negf %810 : vector<2x32xf32>
    %812 = math.exp %811 : vector<2x32xf32>
    %cst_223 = arith.constant 1.000000e+00 : f32
    %813 = vector.broadcast %cst_223 : f32 to vector<2x32xf32>
    %814 = arith.addf %813, %812 : vector<2x32xf32>
    %815 = arith.divf %813, %814 : vector<2x32xf32>
    %816 = vector.extract_strided_slice %807 {offsets = [0, 32], sizes = [2, 32], strides = [1, 1]} : vector<2x96xf32> to vector<2x32xf32>
    %817 = vector.extract_strided_slice %777 {offsets = [0, 32], sizes = [2, 32], strides = [1, 1]} : vector<2x96xf32> to vector<2x32xf32>
    %818 = arith.addf %816, %817 : vector<2x32xf32>
    %819 = arith.negf %818 : vector<2x32xf32>
    %820 = math.exp %819 : vector<2x32xf32>
    %cst_224 = arith.constant 1.000000e+00 : f32
    %821 = vector.broadcast %cst_224 : f32 to vector<2x32xf32>
    %822 = arith.addf %821, %820 : vector<2x32xf32>
    %823 = arith.divf %821, %822 : vector<2x32xf32>
    %824 = vector.extract_strided_slice %807 {offsets = [0, 64], sizes = [2, 32], strides = [1, 1]} : vector<2x96xf32> to vector<2x32xf32>
    %825 = vector.extract_strided_slice %777 {offsets = [0, 64], sizes = [2, 32], strides = [1, 1]} : vector<2x96xf32> to vector<2x32xf32>
    %826 = vector.broadcast %31 : vector<1x32xf32> to vector<2x32xf32>
    %827 = arith.addf %825, %826 : vector<2x32xf32>
    %828 = arith.mulf %815, %827 : vector<2x32xf32>
    %829 = arith.addf %824, %828 : vector<2x32xf32>
    %830 = math.tanh %829 : vector<2x32xf32>
    %cst_225 = arith.constant 1.000000e+00 : f32
    %831 = vector.broadcast %cst_225 : f32 to vector<2x32xf32>
    %832 = arith.subf %831, %823 : vector<2x32xf32>
    %833 = arith.mulf %832, %830 : vector<2x32xf32>
    %834 = arith.mulf %823, %773 : vector<2x32xf32>
    %835 = arith.addf %833, %834 : vector<2x32xf32>
    %c96_226 = arith.constant 96 : index
    %c0_227 = arith.constant 0 : index
    %836 = vector.load %arg9[%c96_226, %c0_227] : memref<128x64xf32, #tpu.memory_space<vmem>>, vector<2x32xf32>
    tpu.vector_store %arg9[%c96_226, %c0_227], %806 {strides = array<i32>} : memref<128x64xf32, #tpu.memory_space<vmem>>, vector<2x32xf32>,
    %c24_228 = arith.constant 24 : index
    %c32_229 = arith.constant 32 : index
    %837 = vector.load %arg9[%c24_228, %c32_229] : memref<128x64xf32, #tpu.memory_space<vmem>>, vector<2x32xf32>
    tpu.vector_store %arg9[%c24_228, %c32_229], %835 {strides = array<i32>} : memref<128x64xf32, #tpu.memory_space<vmem>>, vector<2x32xf32>,
    %cst_230 = arith.constant dense<0.000000e+00> : vector<2x96xf32>
    %838 = tpu.matmul %806, %25, %cst_230 {dimension_numbers = #tpu.dot_dimension_numbers<[1], [0], [0], [1], [0, 0, 1, 1], [], []>} : vector<2x32xf32>, vector<32x96xf32>, vector<2x96xf32> -> vector<2x96xf32>
    %cst_231 = arith.constant dense<0.000000e+00> : vector<2x96xf32>
    %839 = tpu.matmul %835, %27, %cst_231 {dimension_numbers = #tpu.dot_dimension_numbers<[1], [0], [0], [1], [0, 0, 1, 1], [], []>} : vector<2x32xf32>, vector<32x96xf32>, vector<2x96xf32> -> vector<2x96xf32>
    %c104_232 = arith.constant 104 : index
    %c0_233 = arith.constant 0 : index
    %840 = vector.load %arg7[%c104_232, %c0_233] : memref<128x96xf32, #tpu.memory_space<vmem>>, vector<2x96xf32>
    %841 = vector.extract_strided_slice %840 {offsets = [0, 0], sizes = [2, 32], strides = [1, 1]} : vector<2x96xf32> to vector<2x32xf32>
    %842 = vector.extract_strided_slice %838 {offsets = [0, 0], sizes = [2, 32], strides = [1, 1]} : vector<2x96xf32> to vector<2x32xf32>
    %843 = arith.addf %841, %842 : vector<2x32xf32>
    %844 = arith.negf %843 : vector<2x32xf32>
    %845 = math.exp %844 : vector<2x32xf32>
    %cst_234 = arith.constant 1.000000e+00 : f32
    %846 = vector.broadcast %cst_234 : f32 to vector<2x32xf32>
    %847 = arith.addf %846, %845 : vector<2x32xf32>
    %848 = arith.divf %846, %847 : vector<2x32xf32>
    %849 = vector.extract_strided_slice %840 {offsets = [0, 32], sizes = [2, 32], strides = [1, 1]} : vector<2x96xf32> to vector<2x32xf32>
    %850 = vector.extract_strided_slice %838 {offsets = [0, 32], sizes = [2, 32], strides = [1, 1]} : vector<2x96xf32> to vector<2x32xf32>
    %851 = arith.addf %849, %850 : vector<2x32xf32>
    %852 = arith.negf %851 : vector<2x32xf32>
    %853 = math.exp %852 : vector<2x32xf32>
    %cst_235 = arith.constant 1.000000e+00 : f32
    %854 = vector.broadcast %cst_235 : f32 to vector<2x32xf32>
    %855 = arith.addf %854, %853 : vector<2x32xf32>
    %856 = arith.divf %854, %855 : vector<2x32xf32>
    %857 = vector.extract_strided_slice %840 {offsets = [0, 64], sizes = [2, 32], strides = [1, 1]} : vector<2x96xf32> to vector<2x32xf32>
    %858 = vector.extract_strided_slice %838 {offsets = [0, 64], sizes = [2, 32], strides = [1, 1]} : vector<2x96xf32> to vector<2x32xf32>
    %859 = vector.broadcast %29 : vector<1x32xf32> to vector<2x32xf32>
    %860 = arith.addf %858, %859 : vector<2x32xf32>
    %861 = arith.mulf %848, %860 : vector<2x32xf32>
    %862 = arith.addf %857, %861 : vector<2x32xf32>
    %863 = math.tanh %862 : vector<2x32xf32>
    %cst_236 = arith.constant 1.000000e+00 : f32
    %864 = vector.broadcast %cst_236 : f32 to vector<2x32xf32>
    %865 = arith.subf %864, %856 : vector<2x32xf32>
    %866 = arith.mulf %865, %863 : vector<2x32xf32>
    %867 = arith.mulf %856, %806 : vector<2x32xf32>
    %868 = arith.addf %866, %867 : vector<2x32xf32>
    %c16_237 = arith.constant 16 : index
    %c0_238 = arith.constant 0 : index
    %869 = vector.load %arg8[%c16_237, %c0_238] : memref<128x96xf32, #tpu.memory_space<vmem>>, vector<2x96xf32>
    %870 = vector.extract_strided_slice %869 {offsets = [0, 0], sizes = [2, 32], strides = [1, 1]} : vector<2x96xf32> to vector<2x32xf32>
    %871 = vector.extract_strided_slice %839 {offsets = [0, 0], sizes = [2, 32], strides = [1, 1]} : vector<2x96xf32> to vector<2x32xf32>
    %872 = arith.addf %870, %871 : vector<2x32xf32>
    %873 = arith.negf %872 : vector<2x32xf32>
    %874 = math.exp %873 : vector<2x32xf32>
    %cst_239 = arith.constant 1.000000e+00 : f32
    %875 = vector.broadcast %cst_239 : f32 to vector<2x32xf32>
    %876 = arith.addf %875, %874 : vector<2x32xf32>
    %877 = arith.divf %875, %876 : vector<2x32xf32>
    %878 = vector.extract_strided_slice %869 {offsets = [0, 32], sizes = [2, 32], strides = [1, 1]} : vector<2x96xf32> to vector<2x32xf32>
    %879 = vector.extract_strided_slice %839 {offsets = [0, 32], sizes = [2, 32], strides = [1, 1]} : vector<2x96xf32> to vector<2x32xf32>
    %880 = arith.addf %878, %879 : vector<2x32xf32>
    %881 = arith.negf %880 : vector<2x32xf32>
    %882 = math.exp %881 : vector<2x32xf32>
    %cst_240 = arith.constant 1.000000e+00 : f32
    %883 = vector.broadcast %cst_240 : f32 to vector<2x32xf32>
    %884 = arith.addf %883, %882 : vector<2x32xf32>
    %885 = arith.divf %883, %884 : vector<2x32xf32>
    %886 = vector.extract_strided_slice %869 {offsets = [0, 64], sizes = [2, 32], strides = [1, 1]} : vector<2x96xf32> to vector<2x32xf32>
    %887 = vector.extract_strided_slice %839 {offsets = [0, 64], sizes = [2, 32], strides = [1, 1]} : vector<2x96xf32> to vector<2x32xf32>
    %888 = vector.broadcast %31 : vector<1x32xf32> to vector<2x32xf32>
    %889 = arith.addf %887, %888 : vector<2x32xf32>
    %890 = arith.mulf %877, %889 : vector<2x32xf32>
    %891 = arith.addf %886, %890 : vector<2x32xf32>
    %892 = math.tanh %891 : vector<2x32xf32>
    %cst_241 = arith.constant 1.000000e+00 : f32
    %893 = vector.broadcast %cst_241 : f32 to vector<2x32xf32>
    %894 = arith.subf %893, %885 : vector<2x32xf32>
    %895 = arith.mulf %894, %892 : vector<2x32xf32>
    %896 = arith.mulf %885, %835 : vector<2x32xf32>
    %897 = arith.addf %895, %896 : vector<2x32xf32>
    %c104_242 = arith.constant 104 : index
    %c0_243 = arith.constant 0 : index
    %898 = vector.load %arg9[%c104_242, %c0_243] : memref<128x64xf32, #tpu.memory_space<vmem>>, vector<2x32xf32>
    tpu.vector_store %arg9[%c104_242, %c0_243], %868 {strides = array<i32>} : memref<128x64xf32, #tpu.memory_space<vmem>>, vector<2x32xf32>,
    %c16_244 = arith.constant 16 : index
    %c32_245 = arith.constant 32 : index
    %899 = vector.load %arg9[%c16_244, %c32_245] : memref<128x64xf32, #tpu.memory_space<vmem>>, vector<2x32xf32>
    tpu.vector_store %arg9[%c16_244, %c32_245], %897 {strides = array<i32>} : memref<128x64xf32, #tpu.memory_space<vmem>>, vector<2x32xf32>,
    %cst_246 = arith.constant dense<0.000000e+00> : vector<2x96xf32>
    %900 = tpu.matmul %868, %25, %cst_246 {dimension_numbers = #tpu.dot_dimension_numbers<[1], [0], [0], [1], [0, 0, 1, 1], [], []>} : vector<2x32xf32>, vector<32x96xf32>, vector<2x96xf32> -> vector<2x96xf32>
    %cst_247 = arith.constant dense<0.000000e+00> : vector<2x96xf32>
    %901 = tpu.matmul %897, %27, %cst_247 {dimension_numbers = #tpu.dot_dimension_numbers<[1], [0], [0], [1], [0, 0, 1, 1], [], []>} : vector<2x32xf32>, vector<32x96xf32>, vector<2x96xf32> -> vector<2x96xf32>
    %c112_248 = arith.constant 112 : index
    %c0_249 = arith.constant 0 : index
    %902 = vector.load %arg7[%c112_248, %c0_249] : memref<128x96xf32, #tpu.memory_space<vmem>>, vector<2x96xf32>
    %903 = vector.extract_strided_slice %902 {offsets = [0, 0], sizes = [2, 32], strides = [1, 1]} : vector<2x96xf32> to vector<2x32xf32>
    %904 = vector.extract_strided_slice %900 {offsets = [0, 0], sizes = [2, 32], strides = [1, 1]} : vector<2x96xf32> to vector<2x32xf32>
    %905 = arith.addf %903, %904 : vector<2x32xf32>
    %906 = arith.negf %905 : vector<2x32xf32>
    %907 = math.exp %906 : vector<2x32xf32>
    %cst_250 = arith.constant 1.000000e+00 : f32
    %908 = vector.broadcast %cst_250 : f32 to vector<2x32xf32>
    %909 = arith.addf %908, %907 : vector<2x32xf32>
    %910 = arith.divf %908, %909 : vector<2x32xf32>
    %911 = vector.extract_strided_slice %902 {offsets = [0, 32], sizes = [2, 32], strides = [1, 1]} : vector<2x96xf32> to vector<2x32xf32>
    %912 = vector.extract_strided_slice %900 {offsets = [0, 32], sizes = [2, 32], strides = [1, 1]} : vector<2x96xf32> to vector<2x32xf32>
    %913 = arith.addf %911, %912 : vector<2x32xf32>
    %914 = arith.negf %913 : vector<2x32xf32>
    %915 = math.exp %914 : vector<2x32xf32>
    %cst_251 = arith.constant 1.000000e+00 : f32
    %916 = vector.broadcast %cst_251 : f32 to vector<2x32xf32>
    %917 = arith.addf %916, %915 : vector<2x32xf32>
    %918 = arith.divf %916, %917 : vector<2x32xf32>
    %919 = vector.extract_strided_slice %902 {offsets = [0, 64], sizes = [2, 32], strides = [1, 1]} : vector<2x96xf32> to vector<2x32xf32>
    %920 = vector.extract_strided_slice %900 {offsets = [0, 64], sizes = [2, 32], strides = [1, 1]} : vector<2x96xf32> to vector<2x32xf32>
    %921 = vector.broadcast %29 : vector<1x32xf32> to vector<2x32xf32>
    %922 = arith.addf %920, %921 : vector<2x32xf32>
    %923 = arith.mulf %910, %922 : vector<2x32xf32>
    %924 = arith.addf %919, %923 : vector<2x32xf32>
    %925 = math.tanh %924 : vector<2x32xf32>
    %cst_252 = arith.constant 1.000000e+00 : f32
    %926 = vector.broadcast %cst_252 : f32 to vector<2x32xf32>
    %927 = arith.subf %926, %918 : vector<2x32xf32>
    %928 = arith.mulf %927, %925 : vector<2x32xf32>
    %929 = arith.mulf %918, %868 : vector<2x32xf32>
    %930 = arith.addf %928, %929 : vector<2x32xf32>
    %c8_253 = arith.constant 8 : index
    %c0_254 = arith.constant 0 : index
    %931 = vector.load %arg8[%c8_253, %c0_254] : memref<128x96xf32, #tpu.memory_space<vmem>>, vector<2x96xf32>
    %932 = vector.extract_strided_slice %931 {offsets = [0, 0], sizes = [2, 32], strides = [1, 1]} : vector<2x96xf32> to vector<2x32xf32>
    %933 = vector.extract_strided_slice %901 {offsets = [0, 0], sizes = [2, 32], strides = [1, 1]} : vector<2x96xf32> to vector<2x32xf32>
    %934 = arith.addf %932, %933 : vector<2x32xf32>
    %935 = arith.negf %934 : vector<2x32xf32>
    %936 = math.exp %935 : vector<2x32xf32>
    %cst_255 = arith.constant 1.000000e+00 : f32
    %937 = vector.broadcast %cst_255 : f32 to vector<2x32xf32>
    %938 = arith.addf %937, %936 : vector<2x32xf32>
    %939 = arith.divf %937, %938 : vector<2x32xf32>
    %940 = vector.extract_strided_slice %931 {offsets = [0, 32], sizes = [2, 32], strides = [1, 1]} : vector<2x96xf32> to vector<2x32xf32>
    %941 = vector.extract_strided_slice %901 {offsets = [0, 32], sizes = [2, 32], strides = [1, 1]} : vector<2x96xf32> to vector<2x32xf32>
    %942 = arith.addf %940, %941 : vector<2x32xf32>
    %943 = arith.negf %942 : vector<2x32xf32>
    %944 = math.exp %943 : vector<2x32xf32>
    %cst_256 = arith.constant 1.000000e+00 : f32
    %945 = vector.broadcast %cst_256 : f32 to vector<2x32xf32>
    %946 = arith.addf %945, %944 : vector<2x32xf32>
    %947 = arith.divf %945, %946 : vector<2x32xf32>
    %948 = vector.extract_strided_slice %931 {offsets = [0, 64], sizes = [2, 32], strides = [1, 1]} : vector<2x96xf32> to vector<2x32xf32>
    %949 = vector.extract_strided_slice %901 {offsets = [0, 64], sizes = [2, 32], strides = [1, 1]} : vector<2x96xf32> to vector<2x32xf32>
    %950 = vector.broadcast %31 : vector<1x32xf32> to vector<2x32xf32>
    %951 = arith.addf %949, %950 : vector<2x32xf32>
    %952 = arith.mulf %939, %951 : vector<2x32xf32>
    %953 = arith.addf %948, %952 : vector<2x32xf32>
    %954 = math.tanh %953 : vector<2x32xf32>
    %cst_257 = arith.constant 1.000000e+00 : f32
    %955 = vector.broadcast %cst_257 : f32 to vector<2x32xf32>
    %956 = arith.subf %955, %947 : vector<2x32xf32>
    %957 = arith.mulf %956, %954 : vector<2x32xf32>
    %958 = arith.mulf %947, %897 : vector<2x32xf32>
    %959 = arith.addf %957, %958 : vector<2x32xf32>
    %c112_258 = arith.constant 112 : index
    %c0_259 = arith.constant 0 : index
    %960 = vector.load %arg9[%c112_258, %c0_259] : memref<128x64xf32, #tpu.memory_space<vmem>>, vector<2x32xf32>
    tpu.vector_store %arg9[%c112_258, %c0_259], %930 {strides = array<i32>} : memref<128x64xf32, #tpu.memory_space<vmem>>, vector<2x32xf32>,
    %c8_260 = arith.constant 8 : index
    %c32_261 = arith.constant 32 : index
    %961 = vector.load %arg9[%c8_260, %c32_261] : memref<128x64xf32, #tpu.memory_space<vmem>>, vector<2x32xf32>
    tpu.vector_store %arg9[%c8_260, %c32_261], %959 {strides = array<i32>} : memref<128x64xf32, #tpu.memory_space<vmem>>, vector<2x32xf32>,
    %cst_262 = arith.constant dense<0.000000e+00> : vector<2x96xf32>
    %962 = tpu.matmul %930, %25, %cst_262 {dimension_numbers = #tpu.dot_dimension_numbers<[1], [0], [0], [1], [0, 0, 1, 1], [], []>} : vector<2x32xf32>, vector<32x96xf32>, vector<2x96xf32> -> vector<2x96xf32>
    %cst_263 = arith.constant dense<0.000000e+00> : vector<2x96xf32>
    %963 = tpu.matmul %959, %27, %cst_263 {dimension_numbers = #tpu.dot_dimension_numbers<[1], [0], [0], [1], [0, 0, 1, 1], [], []>} : vector<2x32xf32>, vector<32x96xf32>, vector<2x96xf32> -> vector<2x96xf32>
    %c120_264 = arith.constant 120 : index
    %c0_265 = arith.constant 0 : index
    %964 = vector.load %arg7[%c120_264, %c0_265] : memref<128x96xf32, #tpu.memory_space<vmem>>, vector<2x96xf32>
    %965 = vector.extract_strided_slice %964 {offsets = [0, 0], sizes = [2, 32], strides = [1, 1]} : vector<2x96xf32> to vector<2x32xf32>
    %966 = vector.extract_strided_slice %962 {offsets = [0, 0], sizes = [2, 32], strides = [1, 1]} : vector<2x96xf32> to vector<2x32xf32>
    %967 = arith.addf %965, %966 : vector<2x32xf32>
    %968 = arith.negf %967 : vector<2x32xf32>
    %969 = math.exp %968 : vector<2x32xf32>
    %cst_266 = arith.constant 1.000000e+00 : f32
    %970 = vector.broadcast %cst_266 : f32 to vector<2x32xf32>
    %971 = arith.addf %970, %969 : vector<2x32xf32>
    %972 = arith.divf %970, %971 : vector<2x32xf32>
    %973 = vector.extract_strided_slice %964 {offsets = [0, 32], sizes = [2, 32], strides = [1, 1]} : vector<2x96xf32> to vector<2x32xf32>
    %974 = vector.extract_strided_slice %962 {offsets = [0, 32], sizes = [2, 32], strides = [1, 1]} : vector<2x96xf32> to vector<2x32xf32>
    %975 = arith.addf %973, %974 : vector<2x32xf32>
    %976 = arith.negf %975 : vector<2x32xf32>
    %977 = math.exp %976 : vector<2x32xf32>
    %cst_267 = arith.constant 1.000000e+00 : f32
    %978 = vector.broadcast %cst_267 : f32 to vector<2x32xf32>
    %979 = arith.addf %978, %977 : vector<2x32xf32>
    %980 = arith.divf %978, %979 : vector<2x32xf32>
    %981 = vector.extract_strided_slice %964 {offsets = [0, 64], sizes = [2, 32], strides = [1, 1]} : vector<2x96xf32> to vector<2x32xf32>
    %982 = vector.extract_strided_slice %962 {offsets = [0, 64], sizes = [2, 32], strides = [1, 1]} : vector<2x96xf32> to vector<2x32xf32>
    %983 = vector.broadcast %29 : vector<1x32xf32> to vector<2x32xf32>
    %984 = arith.addf %982, %983 : vector<2x32xf32>
    %985 = arith.mulf %972, %984 : vector<2x32xf32>
    %986 = arith.addf %981, %985 : vector<2x32xf32>
    %987 = math.tanh %986 : vector<2x32xf32>
    %cst_268 = arith.constant 1.000000e+00 : f32
    %988 = vector.broadcast %cst_268 : f32 to vector<2x32xf32>
    %989 = arith.subf %988, %980 : vector<2x32xf32>
    %990 = arith.mulf %989, %987 : vector<2x32xf32>
    %991 = arith.mulf %980, %930 : vector<2x32xf32>
    %992 = arith.addf %990, %991 : vector<2x32xf32>
    %c0_269 = arith.constant 0 : index
    %c0_270 = arith.constant 0 : index
    %993 = vector.load %arg8[%c0_269, %c0_270] : memref<128x96xf32, #tpu.memory_space<vmem>>, vector<2x96xf32>
    %994 = vector.extract_strided_slice %993 {offsets = [0, 0], sizes = [2, 32], strides = [1, 1]} : vector<2x96xf32> to vector<2x32xf32>
    %995 = vector.extract_strided_slice %963 {offsets = [0, 0], sizes = [2, 32], strides = [1, 1]} : vector<2x96xf32> to vector<2x32xf32>
    %996 = arith.addf %994, %995 : vector<2x32xf32>
    %997 = arith.negf %996 : vector<2x32xf32>
    %998 = math.exp %997 : vector<2x32xf32>
    %cst_271 = arith.constant 1.000000e+00 : f32
    %999 = vector.broadcast %cst_271 : f32 to vector<2x32xf32>
    %1000 = arith.addf %999, %998 : vector<2x32xf32>
    %1001 = arith.divf %999, %1000 : vector<2x32xf32>
    %1002 = vector.extract_strided_slice %993 {offsets = [0, 32], sizes = [2, 32], strides = [1, 1]} : vector<2x96xf32> to vector<2x32xf32>
    %1003 = vector.extract_strided_slice %963 {offsets = [0, 32], sizes = [2, 32], strides = [1, 1]} : vector<2x96xf32> to vector<2x32xf32>
    %1004 = arith.addf %1002, %1003 : vector<2x32xf32>
    %1005 = arith.negf %1004 : vector<2x32xf32>
    %1006 = math.exp %1005 : vector<2x32xf32>
    %cst_272 = arith.constant 1.000000e+00 : f32
    %1007 = vector.broadcast %cst_272 : f32 to vector<2x32xf32>
    %1008 = arith.addf %1007, %1006 : vector<2x32xf32>
    %1009 = arith.divf %1007, %1008 : vector<2x32xf32>
    %1010 = vector.extract_strided_slice %993 {offsets = [0, 64], sizes = [2, 32], strides = [1, 1]} : vector<2x96xf32> to vector<2x32xf32>
    %1011 = vector.extract_strided_slice %963 {offsets = [0, 64], sizes = [2, 32], strides = [1, 1]} : vector<2x96xf32> to vector<2x32xf32>
    %1012 = vector.broadcast %31 : vector<1x32xf32> to vector<2x32xf32>
    %1013 = arith.addf %1011, %1012 : vector<2x32xf32>
    %1014 = arith.mulf %1001, %1013 : vector<2x32xf32>
    %1015 = arith.addf %1010, %1014 : vector<2x32xf32>
    %1016 = math.tanh %1015 : vector<2x32xf32>
    %cst_273 = arith.constant 1.000000e+00 : f32
    %1017 = vector.broadcast %cst_273 : f32 to vector<2x32xf32>
    %1018 = arith.subf %1017, %1009 : vector<2x32xf32>
    %1019 = arith.mulf %1018, %1016 : vector<2x32xf32>
    %1020 = arith.mulf %1009, %959 : vector<2x32xf32>
    %1021 = arith.addf %1019, %1020 : vector<2x32xf32>
    %c120_274 = arith.constant 120 : index
    %c0_275 = arith.constant 0 : index
    %1022 = vector.load %arg9[%c120_274, %c0_275] : memref<128x64xf32, #tpu.memory_space<vmem>>, vector<2x32xf32>
    tpu.vector_store %arg9[%c120_274, %c0_275], %992 {strides = array<i32>} : memref<128x64xf32, #tpu.memory_space<vmem>>, vector<2x32xf32>,
    %c0_276 = arith.constant 0 : index
    %c32_277 = arith.constant 32 : index
    %1023 = vector.load %arg9[%c0_276, %c32_277] : memref<128x64xf32, #tpu.memory_space<vmem>>, vector<2x32xf32>
    tpu.vector_store %arg9[%c0_276, %c32_277], %1021 {strides = array<i32>} : memref<128x64xf32, #tpu.memory_space<vmem>>, vector<2x32xf32>,
    %c0_278 = arith.constant 0 : index
    %c0_279 = arith.constant 0 : index
    %1024 = vector.load %arg9[%c0_278, %c0_279] : memref<128x64xf32, #tpu.memory_space<vmem>>, vector<128x64xf32>
    %c0_280 = arith.constant 0 : index
    %c0_281 = arith.constant 0 : index
    %c0_282 = arith.constant 0 : index
    %1025 = vector.load %arg2[%c0_280, %c0_281, %c0_282] : memref<2x64x96xf32, #tpu.memory_space<vmem>>, vector<1x64x96xf32>
    %1026 = vector.shape_cast %1025 : vector<1x64x96xf32> to vector<64x96xf32>
    %cst_283 = arith.constant dense<0.000000e+00> : vector<128x96xf32>
    %1027 = tpu.matmul %1024, %1026, %cst_283 {dimension_numbers = #tpu.dot_dimension_numbers<[1], [0], [0], [1], [0, 0, 1, 1], [], []>} : vector<128x64xf32>, vector<64x96xf32>, vector<128x96xf32> -> vector<128x96xf32>
    %c1_284 = arith.constant 1 : index
    %c0_285 = arith.constant 0 : index
    %c0_286 = arith.constant 0 : index
    %c0_287 = arith.constant 0 : index
    %1028 = vector.load %arg4[%c1_284, %c0_285, %c0_286, %c0_287] : memref<2x2x1x96xf32, #tpu.memory_space<vmem>>, vector<1x1x1x96xf32>
    %1029 = vector.shape_cast %1028 : vector<1x1x1x96xf32> to vector<1x96xf32>
    %1030 = vector.broadcast %1029 : vector<1x96xf32> to vector<128x96xf32>
    %1031 = arith.addf %1027, %1030 : vector<128x96xf32>
    %c0_288 = arith.constant 0 : index
    %c0_289 = arith.constant 0 : index
    %1032 = vector.load %arg7[%c0_288, %c0_289] : memref<128x96xf32, #tpu.memory_space<vmem>>, vector<128x96xf32>
    tpu.vector_store %arg7[%c0_288, %c0_289], %1031 {strides = array<i32>} : memref<128x96xf32, #tpu.memory_space<vmem>>, vector<128x96xf32>,
    %c1_290 = arith.constant 1 : index
    %c0_291 = arith.constant 0 : index
    %c0_292 = arith.constant 0 : index
    %1033 = vector.load %arg2[%c1_290, %c0_291, %c0_292] : memref<2x64x96xf32, #tpu.memory_space<vmem>>, vector<1x64x96xf32>
    %1034 = vector.shape_cast %1033 : vector<1x64x96xf32> to vector<64x96xf32>
    %cst_293 = arith.constant dense<0.000000e+00> : vector<128x96xf32>
    %1035 = tpu.matmul %1024, %1034, %cst_293 {dimension_numbers = #tpu.dot_dimension_numbers<[1], [0], [0], [1], [0, 0, 1, 1], [], []>} : vector<128x64xf32>, vector<64x96xf32>, vector<128x96xf32> -> vector<128x96xf32>
    %c1_294 = arith.constant 1 : index
    %c1_295 = arith.constant 1 : index
    %c0_296 = arith.constant 0 : index
    %c0_297 = arith.constant 0 : index
    %1036 = vector.load %arg4[%c1_294, %c1_295, %c0_296, %c0_297] : memref<2x2x1x96xf32, #tpu.memory_space<vmem>>, vector<1x1x1x96xf32>
    %1037 = vector.shape_cast %1036 : vector<1x1x1x96xf32> to vector<1x96xf32>
    %1038 = vector.broadcast %1037 : vector<1x96xf32> to vector<128x96xf32>
    %1039 = arith.addf %1035, %1038 : vector<128x96xf32>
    %c0_298 = arith.constant 0 : index
    %c0_299 = arith.constant 0 : index
    %1040 = vector.load %arg8[%c0_298, %c0_299] : memref<128x96xf32, #tpu.memory_space<vmem>>, vector<128x96xf32>
    tpu.vector_store %arg8[%c0_298, %c0_299], %1039 {strides = array<i32>} : memref<128x96xf32, #tpu.memory_space<vmem>>, vector<128x96xf32>,
    %c1_300 = arith.constant 1 : index
    %c0_301 = arith.constant 0 : index
    %c0_302 = arith.constant 0 : index
    %c0_303 = arith.constant 0 : index
    %1041 = vector.load %arg3[%c1_300, %c0_301, %c0_302, %c0_303] : memref<2x2x32x96xf32, #tpu.memory_space<vmem>>, vector<1x1x32x96xf32>
    %1042 = vector.shape_cast %1041 : vector<1x1x32x96xf32> to vector<32x96xf32>
    %c1_304 = arith.constant 1 : index
    %c1_305 = arith.constant 1 : index
    %c0_306 = arith.constant 0 : index
    %c0_307 = arith.constant 0 : index
    %1043 = vector.load %arg3[%c1_304, %c1_305, %c0_306, %c0_307] : memref<2x2x32x96xf32, #tpu.memory_space<vmem>>, vector<1x1x32x96xf32>
    %1044 = vector.shape_cast %1043 : vector<1x1x32x96xf32> to vector<32x96xf32>
    %c1_308 = arith.constant 1 : index
    %c0_309 = arith.constant 0 : index
    %c0_310 = arith.constant 0 : index
    %c0_311 = arith.constant 0 : index
    %1045 = vector.load %arg5[%c1_308, %c0_309, %c0_310, %c0_311] : memref<2x2x1x32xf32, #tpu.memory_space<vmem>>, vector<1x1x1x32xf32>
    %1046 = vector.shape_cast %1045 : vector<1x1x1x32xf32> to vector<1x32xf32>
    %c1_312 = arith.constant 1 : index
    %c1_313 = arith.constant 1 : index
    %c0_314 = arith.constant 0 : index
    %c0_315 = arith.constant 0 : index
    %1047 = vector.load %arg5[%c1_312, %c1_313, %c0_314, %c0_315] : memref<2x2x1x32xf32, #tpu.memory_space<vmem>>, vector<1x1x1x32xf32>
    %1048 = vector.shape_cast %1047 : vector<1x1x1x32xf32> to vector<1x32xf32>
    %cst_316 = arith.constant dense<0.000000e+00> : vector<2x96xf32>
    %1049 = tpu.matmul %23, %1042, %cst_316 {dimension_numbers = #tpu.dot_dimension_numbers<[1], [0], [0], [1], [0, 0, 1, 1], [], []>} : vector<2x32xf32>, vector<32x96xf32>, vector<2x96xf32> -> vector<2x96xf32>
    %cst_317 = arith.constant dense<0.000000e+00> : vector<2x96xf32>
    %1050 = tpu.matmul %23, %1044, %cst_317 {dimension_numbers = #tpu.dot_dimension_numbers<[1], [0], [0], [1], [0, 0, 1, 1], [], []>} : vector<2x32xf32>, vector<32x96xf32>, vector<2x96xf32> -> vector<2x96xf32>
    %c0_318 = arith.constant 0 : index
    %c0_319 = arith.constant 0 : index
    %1051 = vector.load %arg7[%c0_318, %c0_319] : memref<128x96xf32, #tpu.memory_space<vmem>>, vector<2x96xf32>
    %1052 = vector.extract_strided_slice %1051 {offsets = [0, 0], sizes = [2, 32], strides = [1, 1]} : vector<2x96xf32> to vector<2x32xf32>
    %1053 = vector.extract_strided_slice %1049 {offsets = [0, 0], sizes = [2, 32], strides = [1, 1]} : vector<2x96xf32> to vector<2x32xf32>
    %1054 = arith.addf %1052, %1053 : vector<2x32xf32>
    %1055 = arith.negf %1054 : vector<2x32xf32>
    %1056 = math.exp %1055 : vector<2x32xf32>
    %cst_320 = arith.constant 1.000000e+00 : f32
    %1057 = vector.broadcast %cst_320 : f32 to vector<2x32xf32>
    %1058 = arith.addf %1057, %1056 : vector<2x32xf32>
    %1059 = arith.divf %1057, %1058 : vector<2x32xf32>
    %1060 = vector.extract_strided_slice %1051 {offsets = [0, 32], sizes = [2, 32], strides = [1, 1]} : vector<2x96xf32> to vector<2x32xf32>
    %1061 = vector.extract_strided_slice %1049 {offsets = [0, 32], sizes = [2, 32], strides = [1, 1]} : vector<2x96xf32> to vector<2x32xf32>
    %1062 = arith.addf %1060, %1061 : vector<2x32xf32>
    %1063 = arith.negf %1062 : vector<2x32xf32>
    %1064 = math.exp %1063 : vector<2x32xf32>
    %cst_321 = arith.constant 1.000000e+00 : f32
    %1065 = vector.broadcast %cst_321 : f32 to vector<2x32xf32>
    %1066 = arith.addf %1065, %1064 : vector<2x32xf32>
    %1067 = arith.divf %1065, %1066 : vector<2x32xf32>
    %1068 = vector.extract_strided_slice %1051 {offsets = [0, 64], sizes = [2, 32], strides = [1, 1]} : vector<2x96xf32> to vector<2x32xf32>
    %1069 = vector.extract_strided_slice %1049 {offsets = [0, 64], sizes = [2, 32], strides = [1, 1]} : vector<2x96xf32> to vector<2x32xf32>
    %1070 = vector.broadcast %1046 : vector<1x32xf32> to vector<2x32xf32>
    %1071 = arith.addf %1069, %1070 : vector<2x32xf32>
    %1072 = arith.mulf %1059, %1071 : vector<2x32xf32>
    %1073 = arith.addf %1068, %1072 : vector<2x32xf32>
    %1074 = math.tanh %1073 : vector<2x32xf32>
    %cst_322 = arith.constant 1.000000e+00 : f32
    %1075 = vector.broadcast %cst_322 : f32 to vector<2x32xf32>
    %1076 = arith.subf %1075, %1067 : vector<2x32xf32>
    %1077 = arith.mulf %1076, %1074 : vector<2x32xf32>
    %1078 = arith.mulf %1067, %23 : vector<2x32xf32>
    %1079 = arith.addf %1077, %1078 : vector<2x32xf32>
    %c120_323 = arith.constant 120 : index
    %c0_324 = arith.constant 0 : index
    %1080 = vector.load %arg8[%c120_323, %c0_324] : memref<128x96xf32, #tpu.memory_space<vmem>>, vector<2x96xf32>
    %1081 = vector.extract_strided_slice %1080 {offsets = [0, 0], sizes = [2, 32], strides = [1, 1]} : vector<2x96xf32> to vector<2x32xf32>
    %1082 = vector.extract_strided_slice %1050 {offsets = [0, 0], sizes = [2, 32], strides = [1, 1]} : vector<2x96xf32> to vector<2x32xf32>
    %1083 = arith.addf %1081, %1082 : vector<2x32xf32>
    %1084 = arith.negf %1083 : vector<2x32xf32>
    %1085 = math.exp %1084 : vector<2x32xf32>
    %cst_325 = arith.constant 1.000000e+00 : f32
    %1086 = vector.broadcast %cst_325 : f32 to vector<2x32xf32>
    %1087 = arith.addf %1086, %1085 : vector<2x32xf32>
    %1088 = arith.divf %1086, %1087 : vector<2x32xf32>
    %1089 = vector.extract_strided_slice %1080 {offsets = [0, 32], sizes = [2, 32], strides = [1, 1]} : vector<2x96xf32> to vector<2x32xf32>
    %1090 = vector.extract_strided_slice %1050 {offsets = [0, 32], sizes = [2, 32], strides = [1, 1]} : vector<2x96xf32> to vector<2x32xf32>
    %1091 = arith.addf %1089, %1090 : vector<2x32xf32>
    %1092 = arith.negf %1091 : vector<2x32xf32>
    %1093 = math.exp %1092 : vector<2x32xf32>
    %cst_326 = arith.constant 1.000000e+00 : f32
    %1094 = vector.broadcast %cst_326 : f32 to vector<2x32xf32>
    %1095 = arith.addf %1094, %1093 : vector<2x32xf32>
    %1096 = arith.divf %1094, %1095 : vector<2x32xf32>
    %1097 = vector.extract_strided_slice %1080 {offsets = [0, 64], sizes = [2, 32], strides = [1, 1]} : vector<2x96xf32> to vector<2x32xf32>
    %1098 = vector.extract_strided_slice %1050 {offsets = [0, 64], sizes = [2, 32], strides = [1, 1]} : vector<2x96xf32> to vector<2x32xf32>
    %1099 = vector.broadcast %1048 : vector<1x32xf32> to vector<2x32xf32>
    %1100 = arith.addf %1098, %1099 : vector<2x32xf32>
    %1101 = arith.mulf %1088, %1100 : vector<2x32xf32>
    %1102 = arith.addf %1097, %1101 : vector<2x32xf32>
    %1103 = math.tanh %1102 : vector<2x32xf32>
    %cst_327 = arith.constant 1.000000e+00 : f32
    %1104 = vector.broadcast %cst_327 : f32 to vector<2x32xf32>
    %1105 = arith.subf %1104, %1096 : vector<2x32xf32>
    %1106 = arith.mulf %1105, %1103 : vector<2x32xf32>
    %1107 = arith.mulf %1096, %23 : vector<2x32xf32>
    %1108 = arith.addf %1106, %1107 : vector<2x32xf32>
    %cst_328 = arith.constant dense<0.000000e+00> : vector<2x96xf32>
    %1109 = tpu.matmul %1079, %1042, %cst_328 {dimension_numbers = #tpu.dot_dimension_numbers<[1], [0], [0], [1], [0, 0, 1, 1], [], []>} : vector<2x32xf32>, vector<32x96xf32>, vector<2x96xf32> -> vector<2x96xf32>
    %cst_329 = arith.constant dense<0.000000e+00> : vector<2x96xf32>
    %1110 = tpu.matmul %1108, %1044, %cst_329 {dimension_numbers = #tpu.dot_dimension_numbers<[1], [0], [0], [1], [0, 0, 1, 1], [], []>} : vector<2x32xf32>, vector<32x96xf32>, vector<2x96xf32> -> vector<2x96xf32>
    %c8_330 = arith.constant 8 : index
    %c0_331 = arith.constant 0 : index
    %1111 = vector.load %arg7[%c8_330, %c0_331] : memref<128x96xf32, #tpu.memory_space<vmem>>, vector<2x96xf32>
    %1112 = vector.extract_strided_slice %1111 {offsets = [0, 0], sizes = [2, 32], strides = [1, 1]} : vector<2x96xf32> to vector<2x32xf32>
    %1113 = vector.extract_strided_slice %1109 {offsets = [0, 0], sizes = [2, 32], strides = [1, 1]} : vector<2x96xf32> to vector<2x32xf32>
    %1114 = arith.addf %1112, %1113 : vector<2x32xf32>
    %1115 = arith.negf %1114 : vector<2x32xf32>
    %1116 = math.exp %1115 : vector<2x32xf32>
    %cst_332 = arith.constant 1.000000e+00 : f32
    %1117 = vector.broadcast %cst_332 : f32 to vector<2x32xf32>
    %1118 = arith.addf %1117, %1116 : vector<2x32xf32>
    %1119 = arith.divf %1117, %1118 : vector<2x32xf32>
    %1120 = vector.extract_strided_slice %1111 {offsets = [0, 32], sizes = [2, 32], strides = [1, 1]} : vector<2x96xf32> to vector<2x32xf32>
    %1121 = vector.extract_strided_slice %1109 {offsets = [0, 32], sizes = [2, 32], strides = [1, 1]} : vector<2x96xf32> to vector<2x32xf32>
    %1122 = arith.addf %1120, %1121 : vector<2x32xf32>
    %1123 = arith.negf %1122 : vector<2x32xf32>
    %1124 = math.exp %1123 : vector<2x32xf32>
    %cst_333 = arith.constant 1.000000e+00 : f32
    %1125 = vector.broadcast %cst_333 : f32 to vector<2x32xf32>
    %1126 = arith.addf %1125, %1124 : vector<2x32xf32>
    %1127 = arith.divf %1125, %1126 : vector<2x32xf32>
    %1128 = vector.extract_strided_slice %1111 {offsets = [0, 64], sizes = [2, 32], strides = [1, 1]} : vector<2x96xf32> to vector<2x32xf32>
    %1129 = vector.extract_strided_slice %1109 {offsets = [0, 64], sizes = [2, 32], strides = [1, 1]} : vector<2x96xf32> to vector<2x32xf32>
    %1130 = vector.broadcast %1046 : vector<1x32xf32> to vector<2x32xf32>
    %1131 = arith.addf %1129, %1130 : vector<2x32xf32>
    %1132 = arith.mulf %1119, %1131 : vector<2x32xf32>
    %1133 = arith.addf %1128, %1132 : vector<2x32xf32>
    %1134 = math.tanh %1133 : vector<2x32xf32>
    %cst_334 = arith.constant 1.000000e+00 : f32
    %1135 = vector.broadcast %cst_334 : f32 to vector<2x32xf32>
    %1136 = arith.subf %1135, %1127 : vector<2x32xf32>
    %1137 = arith.mulf %1136, %1134 : vector<2x32xf32>
    %1138 = arith.mulf %1127, %1079 : vector<2x32xf32>
    %1139 = arith.addf %1137, %1138 : vector<2x32xf32>
    %c112_335 = arith.constant 112 : index
    %c0_336 = arith.constant 0 : index
    %1140 = vector.load %arg8[%c112_335, %c0_336] : memref<128x96xf32, #tpu.memory_space<vmem>>, vector<2x96xf32>
    %1141 = vector.extract_strided_slice %1140 {offsets = [0, 0], sizes = [2, 32], strides = [1, 1]} : vector<2x96xf32> to vector<2x32xf32>
    %1142 = vector.extract_strided_slice %1110 {offsets = [0, 0], sizes = [2, 32], strides = [1, 1]} : vector<2x96xf32> to vector<2x32xf32>
    %1143 = arith.addf %1141, %1142 : vector<2x32xf32>
    %1144 = arith.negf %1143 : vector<2x32xf32>
    %1145 = math.exp %1144 : vector<2x32xf32>
    %cst_337 = arith.constant 1.000000e+00 : f32
    %1146 = vector.broadcast %cst_337 : f32 to vector<2x32xf32>
    %1147 = arith.addf %1146, %1145 : vector<2x32xf32>
    %1148 = arith.divf %1146, %1147 : vector<2x32xf32>
    %1149 = vector.extract_strided_slice %1140 {offsets = [0, 32], sizes = [2, 32], strides = [1, 1]} : vector<2x96xf32> to vector<2x32xf32>
    %1150 = vector.extract_strided_slice %1110 {offsets = [0, 32], sizes = [2, 32], strides = [1, 1]} : vector<2x96xf32> to vector<2x32xf32>
    %1151 = arith.addf %1149, %1150 : vector<2x32xf32>
    %1152 = arith.negf %1151 : vector<2x32xf32>
    %1153 = math.exp %1152 : vector<2x32xf32>
    %cst_338 = arith.constant 1.000000e+00 : f32
    %1154 = vector.broadcast %cst_338 : f32 to vector<2x32xf32>
    %1155 = arith.addf %1154, %1153 : vector<2x32xf32>
    %1156 = arith.divf %1154, %1155 : vector<2x32xf32>
    %1157 = vector.extract_strided_slice %1140 {offsets = [0, 64], sizes = [2, 32], strides = [1, 1]} : vector<2x96xf32> to vector<2x32xf32>
    %1158 = vector.extract_strided_slice %1110 {offsets = [0, 64], sizes = [2, 32], strides = [1, 1]} : vector<2x96xf32> to vector<2x32xf32>
    %1159 = vector.broadcast %1048 : vector<1x32xf32> to vector<2x32xf32>
    %1160 = arith.addf %1158, %1159 : vector<2x32xf32>
    %1161 = arith.mulf %1148, %1160 : vector<2x32xf32>
    %1162 = arith.addf %1157, %1161 : vector<2x32xf32>
    %1163 = math.tanh %1162 : vector<2x32xf32>
    %cst_339 = arith.constant 1.000000e+00 : f32
    %1164 = vector.broadcast %cst_339 : f32 to vector<2x32xf32>
    %1165 = arith.subf %1164, %1156 : vector<2x32xf32>
    %1166 = arith.mulf %1165, %1163 : vector<2x32xf32>
    %1167 = arith.mulf %1156, %1108 : vector<2x32xf32>
    %1168 = arith.addf %1166, %1167 : vector<2x32xf32>
    %cst_340 = arith.constant dense<0.000000e+00> : vector<2x96xf32>
    %1169 = tpu.matmul %1139, %1042, %cst_340 {dimension_numbers = #tpu.dot_dimension_numbers<[1], [0], [0], [1], [0, 0, 1, 1], [], []>} : vector<2x32xf32>, vector<32x96xf32>, vector<2x96xf32> -> vector<2x96xf32>
    %cst_341 = arith.constant dense<0.000000e+00> : vector<2x96xf32>
    %1170 = tpu.matmul %1168, %1044, %cst_341 {dimension_numbers = #tpu.dot_dimension_numbers<[1], [0], [0], [1], [0, 0, 1, 1], [], []>} : vector<2x32xf32>, vector<32x96xf32>, vector<2x96xf32> -> vector<2x96xf32>
    %c16_342 = arith.constant 16 : index
    %c0_343 = arith.constant 0 : index
    %1171 = vector.load %arg7[%c16_342, %c0_343] : memref<128x96xf32, #tpu.memory_space<vmem>>, vector<2x96xf32>
    %1172 = vector.extract_strided_slice %1171 {offsets = [0, 0], sizes = [2, 32], strides = [1, 1]} : vector<2x96xf32> to vector<2x32xf32>
    %1173 = vector.extract_strided_slice %1169 {offsets = [0, 0], sizes = [2, 32], strides = [1, 1]} : vector<2x96xf32> to vector<2x32xf32>
    %1174 = arith.addf %1172, %1173 : vector<2x32xf32>
    %1175 = arith.negf %1174 : vector<2x32xf32>
    %1176 = math.exp %1175 : vector<2x32xf32>
    %cst_344 = arith.constant 1.000000e+00 : f32
    %1177 = vector.broadcast %cst_344 : f32 to vector<2x32xf32>
    %1178 = arith.addf %1177, %1176 : vector<2x32xf32>
    %1179 = arith.divf %1177, %1178 : vector<2x32xf32>
    %1180 = vector.extract_strided_slice %1171 {offsets = [0, 32], sizes = [2, 32], strides = [1, 1]} : vector<2x96xf32> to vector<2x32xf32>
    %1181 = vector.extract_strided_slice %1169 {offsets = [0, 32], sizes = [2, 32], strides = [1, 1]} : vector<2x96xf32> to vector<2x32xf32>
    %1182 = arith.addf %1180, %1181 : vector<2x32xf32>
    %1183 = arith.negf %1182 : vector<2x32xf32>
    %1184 = math.exp %1183 : vector<2x32xf32>
    %cst_345 = arith.constant 1.000000e+00 : f32
    %1185 = vector.broadcast %cst_345 : f32 to vector<2x32xf32>
    %1186 = arith.addf %1185, %1184 : vector<2x32xf32>
    %1187 = arith.divf %1185, %1186 : vector<2x32xf32>
    %1188 = vector.extract_strided_slice %1171 {offsets = [0, 64], sizes = [2, 32], strides = [1, 1]} : vector<2x96xf32> to vector<2x32xf32>
    %1189 = vector.extract_strided_slice %1169 {offsets = [0, 64], sizes = [2, 32], strides = [1, 1]} : vector<2x96xf32> to vector<2x32xf32>
    %1190 = vector.broadcast %1046 : vector<1x32xf32> to vector<2x32xf32>
    %1191 = arith.addf %1189, %1190 : vector<2x32xf32>
    %1192 = arith.mulf %1179, %1191 : vector<2x32xf32>
    %1193 = arith.addf %1188, %1192 : vector<2x32xf32>
    %1194 = math.tanh %1193 : vector<2x32xf32>
    %cst_346 = arith.constant 1.000000e+00 : f32
    %1195 = vector.broadcast %cst_346 : f32 to vector<2x32xf32>
    %1196 = arith.subf %1195, %1187 : vector<2x32xf32>
    %1197 = arith.mulf %1196, %1194 : vector<2x32xf32>
    %1198 = arith.mulf %1187, %1139 : vector<2x32xf32>
    %1199 = arith.addf %1197, %1198 : vector<2x32xf32>
    %c104_347 = arith.constant 104 : index
    %c0_348 = arith.constant 0 : index
    %1200 = vector.load %arg8[%c104_347, %c0_348] : memref<128x96xf32, #tpu.memory_space<vmem>>, vector<2x96xf32>
    %1201 = vector.extract_strided_slice %1200 {offsets = [0, 0], sizes = [2, 32], strides = [1, 1]} : vector<2x96xf32> to vector<2x32xf32>
    %1202 = vector.extract_strided_slice %1170 {offsets = [0, 0], sizes = [2, 32], strides = [1, 1]} : vector<2x96xf32> to vector<2x32xf32>
    %1203 = arith.addf %1201, %1202 : vector<2x32xf32>
    %1204 = arith.negf %1203 : vector<2x32xf32>
    %1205 = math.exp %1204 : vector<2x32xf32>
    %cst_349 = arith.constant 1.000000e+00 : f32
    %1206 = vector.broadcast %cst_349 : f32 to vector<2x32xf32>
    %1207 = arith.addf %1206, %1205 : vector<2x32xf32>
    %1208 = arith.divf %1206, %1207 : vector<2x32xf32>
    %1209 = vector.extract_strided_slice %1200 {offsets = [0, 32], sizes = [2, 32], strides = [1, 1]} : vector<2x96xf32> to vector<2x32xf32>
    %1210 = vector.extract_strided_slice %1170 {offsets = [0, 32], sizes = [2, 32], strides = [1, 1]} : vector<2x96xf32> to vector<2x32xf32>
    %1211 = arith.addf %1209, %1210 : vector<2x32xf32>
    %1212 = arith.negf %1211 : vector<2x32xf32>
    %1213 = math.exp %1212 : vector<2x32xf32>
    %cst_350 = arith.constant 1.000000e+00 : f32
    %1214 = vector.broadcast %cst_350 : f32 to vector<2x32xf32>
    %1215 = arith.addf %1214, %1213 : vector<2x32xf32>
    %1216 = arith.divf %1214, %1215 : vector<2x32xf32>
    %1217 = vector.extract_strided_slice %1200 {offsets = [0, 64], sizes = [2, 32], strides = [1, 1]} : vector<2x96xf32> to vector<2x32xf32>
    %1218 = vector.extract_strided_slice %1170 {offsets = [0, 64], sizes = [2, 32], strides = [1, 1]} : vector<2x96xf32> to vector<2x32xf32>
    %1219 = vector.broadcast %1048 : vector<1x32xf32> to vector<2x32xf32>
    %1220 = arith.addf %1218, %1219 : vector<2x32xf32>
    %1221 = arith.mulf %1208, %1220 : vector<2x32xf32>
    %1222 = arith.addf %1217, %1221 : vector<2x32xf32>
    %1223 = math.tanh %1222 : vector<2x32xf32>
    %cst_351 = arith.constant 1.000000e+00 : f32
    %1224 = vector.broadcast %cst_351 : f32 to vector<2x32xf32>
    %1225 = arith.subf %1224, %1216 : vector<2x32xf32>
    %1226 = arith.mulf %1225, %1223 : vector<2x32xf32>
    %1227 = arith.mulf %1216, %1168 : vector<2x32xf32>
    %1228 = arith.addf %1226, %1227 : vector<2x32xf32>
    %cst_352 = arith.constant dense<0.000000e+00> : vector<2x96xf32>
    %1229 = tpu.matmul %1199, %1042, %cst_352 {dimension_numbers = #tpu.dot_dimension_numbers<[1], [0], [0], [1], [0, 0, 1, 1], [], []>} : vector<2x32xf32>, vector<32x96xf32>, vector<2x96xf32> -> vector<2x96xf32>
    %cst_353 = arith.constant dense<0.000000e+00> : vector<2x96xf32>
    %1230 = tpu.matmul %1228, %1044, %cst_353 {dimension_numbers = #tpu.dot_dimension_numbers<[1], [0], [0], [1], [0, 0, 1, 1], [], []>} : vector<2x32xf32>, vector<32x96xf32>, vector<2x96xf32> -> vector<2x96xf32>
    %c24_354 = arith.constant 24 : index
    %c0_355 = arith.constant 0 : index
    %1231 = vector.load %arg7[%c24_354, %c0_355] : memref<128x96xf32, #tpu.memory_space<vmem>>, vector<2x96xf32>
    %1232 = vector.extract_strided_slice %1231 {offsets = [0, 0], sizes = [2, 32], strides = [1, 1]} : vector<2x96xf32> to vector<2x32xf32>
    %1233 = vector.extract_strided_slice %1229 {offsets = [0, 0], sizes = [2, 32], strides = [1, 1]} : vector<2x96xf32> to vector<2x32xf32>
    %1234 = arith.addf %1232, %1233 : vector<2x32xf32>
    %1235 = arith.negf %1234 : vector<2x32xf32>
    %1236 = math.exp %1235 : vector<2x32xf32>
    %cst_356 = arith.constant 1.000000e+00 : f32
    %1237 = vector.broadcast %cst_356 : f32 to vector<2x32xf32>
    %1238 = arith.addf %1237, %1236 : vector<2x32xf32>
    %1239 = arith.divf %1237, %1238 : vector<2x32xf32>
    %1240 = vector.extract_strided_slice %1231 {offsets = [0, 32], sizes = [2, 32], strides = [1, 1]} : vector<2x96xf32> to vector<2x32xf32>
    %1241 = vector.extract_strided_slice %1229 {offsets = [0, 32], sizes = [2, 32], strides = [1, 1]} : vector<2x96xf32> to vector<2x32xf32>
    %1242 = arith.addf %1240, %1241 : vector<2x32xf32>
    %1243 = arith.negf %1242 : vector<2x32xf32>
    %1244 = math.exp %1243 : vector<2x32xf32>
    %cst_357 = arith.constant 1.000000e+00 : f32
    %1245 = vector.broadcast %cst_357 : f32 to vector<2x32xf32>
    %1246 = arith.addf %1245, %1244 : vector<2x32xf32>
    %1247 = arith.divf %1245, %1246 : vector<2x32xf32>
    %1248 = vector.extract_strided_slice %1231 {offsets = [0, 64], sizes = [2, 32], strides = [1, 1]} : vector<2x96xf32> to vector<2x32xf32>
    %1249 = vector.extract_strided_slice %1229 {offsets = [0, 64], sizes = [2, 32], strides = [1, 1]} : vector<2x96xf32> to vector<2x32xf32>
    %1250 = vector.broadcast %1046 : vector<1x32xf32> to vector<2x32xf32>
    %1251 = arith.addf %1249, %1250 : vector<2x32xf32>
    %1252 = arith.mulf %1239, %1251 : vector<2x32xf32>
    %1253 = arith.addf %1248, %1252 : vector<2x32xf32>
    %1254 = math.tanh %1253 : vector<2x32xf32>
    %cst_358 = arith.constant 1.000000e+00 : f32
    %1255 = vector.broadcast %cst_358 : f32 to vector<2x32xf32>
    %1256 = arith.subf %1255, %1247 : vector<2x32xf32>
    %1257 = arith.mulf %1256, %1254 : vector<2x32xf32>
    %1258 = arith.mulf %1247, %1199 : vector<2x32xf32>
    %1259 = arith.addf %1257, %1258 : vector<2x32xf32>
    %c96_359 = arith.constant 96 : index
    %c0_360 = arith.constant 0 : index
    %1260 = vector.load %arg8[%c96_359, %c0_360] : memref<128x96xf32, #tpu.memory_space<vmem>>, vector<2x96xf32>
    %1261 = vector.extract_strided_slice %1260 {offsets = [0, 0], sizes = [2, 32], strides = [1, 1]} : vector<2x96xf32> to vector<2x32xf32>
    %1262 = vector.extract_strided_slice %1230 {offsets = [0, 0], sizes = [2, 32], strides = [1, 1]} : vector<2x96xf32> to vector<2x32xf32>
    %1263 = arith.addf %1261, %1262 : vector<2x32xf32>
    %1264 = arith.negf %1263 : vector<2x32xf32>
    %1265 = math.exp %1264 : vector<2x32xf32>
    %cst_361 = arith.constant 1.000000e+00 : f32
    %1266 = vector.broadcast %cst_361 : f32 to vector<2x32xf32>
    %1267 = arith.addf %1266, %1265 : vector<2x32xf32>
    %1268 = arith.divf %1266, %1267 : vector<2x32xf32>
    %1269 = vector.extract_strided_slice %1260 {offsets = [0, 32], sizes = [2, 32], strides = [1, 1]} : vector<2x96xf32> to vector<2x32xf32>
    %1270 = vector.extract_strided_slice %1230 {offsets = [0, 32], sizes = [2, 32], strides = [1, 1]} : vector<2x96xf32> to vector<2x32xf32>
    %1271 = arith.addf %1269, %1270 : vector<2x32xf32>
    %1272 = arith.negf %1271 : vector<2x32xf32>
    %1273 = math.exp %1272 : vector<2x32xf32>
    %cst_362 = arith.constant 1.000000e+00 : f32
    %1274 = vector.broadcast %cst_362 : f32 to vector<2x32xf32>
    %1275 = arith.addf %1274, %1273 : vector<2x32xf32>
    %1276 = arith.divf %1274, %1275 : vector<2x32xf32>
    %1277 = vector.extract_strided_slice %1260 {offsets = [0, 64], sizes = [2, 32], strides = [1, 1]} : vector<2x96xf32> to vector<2x32xf32>
    %1278 = vector.extract_strided_slice %1230 {offsets = [0, 64], sizes = [2, 32], strides = [1, 1]} : vector<2x96xf32> to vector<2x32xf32>
    %1279 = vector.broadcast %1048 : vector<1x32xf32> to vector<2x32xf32>
    %1280 = arith.addf %1278, %1279 : vector<2x32xf32>
    %1281 = arith.mulf %1268, %1280 : vector<2x32xf32>
    %1282 = arith.addf %1277, %1281 : vector<2x32xf32>
    %1283 = math.tanh %1282 : vector<2x32xf32>
    %cst_363 = arith.constant 1.000000e+00 : f32
    %1284 = vector.broadcast %cst_363 : f32 to vector<2x32xf32>
    %1285 = arith.subf %1284, %1276 : vector<2x32xf32>
    %1286 = arith.mulf %1285, %1283 : vector<2x32xf32>
    %1287 = arith.mulf %1276, %1228 : vector<2x32xf32>
    %1288 = arith.addf %1286, %1287 : vector<2x32xf32>
    %cst_364 = arith.constant dense<0.000000e+00> : vector<2x96xf32>
    %1289 = tpu.matmul %1259, %1042, %cst_364 {dimension_numbers = #tpu.dot_dimension_numbers<[1], [0], [0], [1], [0, 0, 1, 1], [], []>} : vector<2x32xf32>, vector<32x96xf32>, vector<2x96xf32> -> vector<2x96xf32>
    %cst_365 = arith.constant dense<0.000000e+00> : vector<2x96xf32>
    %1290 = tpu.matmul %1288, %1044, %cst_365 {dimension_numbers = #tpu.dot_dimension_numbers<[1], [0], [0], [1], [0, 0, 1, 1], [], []>} : vector<2x32xf32>, vector<32x96xf32>, vector<2x96xf32> -> vector<2x96xf32>
    %c32_366 = arith.constant 32 : index
    %c0_367 = arith.constant 0 : index
    %1291 = vector.load %arg7[%c32_366, %c0_367] : memref<128x96xf32, #tpu.memory_space<vmem>>, vector<2x96xf32>
    %1292 = vector.extract_strided_slice %1291 {offsets = [0, 0], sizes = [2, 32], strides = [1, 1]} : vector<2x96xf32> to vector<2x32xf32>
    %1293 = vector.extract_strided_slice %1289 {offsets = [0, 0], sizes = [2, 32], strides = [1, 1]} : vector<2x96xf32> to vector<2x32xf32>
    %1294 = arith.addf %1292, %1293 : vector<2x32xf32>
    %1295 = arith.negf %1294 : vector<2x32xf32>
    %1296 = math.exp %1295 : vector<2x32xf32>
    %cst_368 = arith.constant 1.000000e+00 : f32
    %1297 = vector.broadcast %cst_368 : f32 to vector<2x32xf32>
    %1298 = arith.addf %1297, %1296 : vector<2x32xf32>
    %1299 = arith.divf %1297, %1298 : vector<2x32xf32>
    %1300 = vector.extract_strided_slice %1291 {offsets = [0, 32], sizes = [2, 32], strides = [1, 1]} : vector<2x96xf32> to vector<2x32xf32>
    %1301 = vector.extract_strided_slice %1289 {offsets = [0, 32], sizes = [2, 32], strides = [1, 1]} : vector<2x96xf32> to vector<2x32xf32>
    %1302 = arith.addf %1300, %1301 : vector<2x32xf32>
    %1303 = arith.negf %1302 : vector<2x32xf32>
    %1304 = math.exp %1303 : vector<2x32xf32>
    %cst_369 = arith.constant 1.000000e+00 : f32
    %1305 = vector.broadcast %cst_369 : f32 to vector<2x32xf32>
    %1306 = arith.addf %1305, %1304 : vector<2x32xf32>
    %1307 = arith.divf %1305, %1306 : vector<2x32xf32>
    %1308 = vector.extract_strided_slice %1291 {offsets = [0, 64], sizes = [2, 32], strides = [1, 1]} : vector<2x96xf32> to vector<2x32xf32>
    %1309 = vector.extract_strided_slice %1289 {offsets = [0, 64], sizes = [2, 32], strides = [1, 1]} : vector<2x96xf32> to vector<2x32xf32>
    %1310 = vector.broadcast %1046 : vector<1x32xf32> to vector<2x32xf32>
    %1311 = arith.addf %1309, %1310 : vector<2x32xf32>
    %1312 = arith.mulf %1299, %1311 : vector<2x32xf32>
    %1313 = arith.addf %1308, %1312 : vector<2x32xf32>
    %1314 = math.tanh %1313 : vector<2x32xf32>
    %cst_370 = arith.constant 1.000000e+00 : f32
    %1315 = vector.broadcast %cst_370 : f32 to vector<2x32xf32>
    %1316 = arith.subf %1315, %1307 : vector<2x32xf32>
    %1317 = arith.mulf %1316, %1314 : vector<2x32xf32>
    %1318 = arith.mulf %1307, %1259 : vector<2x32xf32>
    %1319 = arith.addf %1317, %1318 : vector<2x32xf32>
    %c88_371 = arith.constant 88 : index
    %c0_372 = arith.constant 0 : index
    %1320 = vector.load %arg8[%c88_371, %c0_372] : memref<128x96xf32, #tpu.memory_space<vmem>>, vector<2x96xf32>
    %1321 = vector.extract_strided_slice %1320 {offsets = [0, 0], sizes = [2, 32], strides = [1, 1]} : vector<2x96xf32> to vector<2x32xf32>
    %1322 = vector.extract_strided_slice %1290 {offsets = [0, 0], sizes = [2, 32], strides = [1, 1]} : vector<2x96xf32> to vector<2x32xf32>
    %1323 = arith.addf %1321, %1322 : vector<2x32xf32>
    %1324 = arith.negf %1323 : vector<2x32xf32>
    %1325 = math.exp %1324 : vector<2x32xf32>
    %cst_373 = arith.constant 1.000000e+00 : f32
    %1326 = vector.broadcast %cst_373 : f32 to vector<2x32xf32>
    %1327 = arith.addf %1326, %1325 : vector<2x32xf32>
    %1328 = arith.divf %1326, %1327 : vector<2x32xf32>
    %1329 = vector.extract_strided_slice %1320 {offsets = [0, 32], sizes = [2, 32], strides = [1, 1]} : vector<2x96xf32> to vector<2x32xf32>
    %1330 = vector.extract_strided_slice %1290 {offsets = [0, 32], sizes = [2, 32], strides = [1, 1]} : vector<2x96xf32> to vector<2x32xf32>
    %1331 = arith.addf %1329, %1330 : vector<2x32xf32>
    %1332 = arith.negf %1331 : vector<2x32xf32>
    %1333 = math.exp %1332 : vector<2x32xf32>
    %cst_374 = arith.constant 1.000000e+00 : f32
    %1334 = vector.broadcast %cst_374 : f32 to vector<2x32xf32>
    %1335 = arith.addf %1334, %1333 : vector<2x32xf32>
    %1336 = arith.divf %1334, %1335 : vector<2x32xf32>
    %1337 = vector.extract_strided_slice %1320 {offsets = [0, 64], sizes = [2, 32], strides = [1, 1]} : vector<2x96xf32> to vector<2x32xf32>
    %1338 = vector.extract_strided_slice %1290 {offsets = [0, 64], sizes = [2, 32], strides = [1, 1]} : vector<2x96xf32> to vector<2x32xf32>
    %1339 = vector.broadcast %1048 : vector<1x32xf32> to vector<2x32xf32>
    %1340 = arith.addf %1338, %1339 : vector<2x32xf32>
    %1341 = arith.mulf %1328, %1340 : vector<2x32xf32>
    %1342 = arith.addf %1337, %1341 : vector<2x32xf32>
    %1343 = math.tanh %1342 : vector<2x32xf32>
    %cst_375 = arith.constant 1.000000e+00 : f32
    %1344 = vector.broadcast %cst_375 : f32 to vector<2x32xf32>
    %1345 = arith.subf %1344, %1336 : vector<2x32xf32>
    %1346 = arith.mulf %1345, %1343 : vector<2x32xf32>
    %1347 = arith.mulf %1336, %1288 : vector<2x32xf32>
    %1348 = arith.addf %1346, %1347 : vector<2x32xf32>
    %cst_376 = arith.constant dense<0.000000e+00> : vector<2x96xf32>
    %1349 = tpu.matmul %1319, %1042, %cst_376 {dimension_numbers = #tpu.dot_dimension_numbers<[1], [0], [0], [1], [0, 0, 1, 1], [], []>} : vector<2x32xf32>, vector<32x96xf32>, vector<2x96xf32> -> vector<2x96xf32>
    %cst_377 = arith.constant dense<0.000000e+00> : vector<2x96xf32>
    %1350 = tpu.matmul %1348, %1044, %cst_377 {dimension_numbers = #tpu.dot_dimension_numbers<[1], [0], [0], [1], [0, 0, 1, 1], [], []>} : vector<2x32xf32>, vector<32x96xf32>, vector<2x96xf32> -> vector<2x96xf32>
    %c40_378 = arith.constant 40 : index
    %c0_379 = arith.constant 0 : index
    %1351 = vector.load %arg7[%c40_378, %c0_379] : memref<128x96xf32, #tpu.memory_space<vmem>>, vector<2x96xf32>
    %1352 = vector.extract_strided_slice %1351 {offsets = [0, 0], sizes = [2, 32], strides = [1, 1]} : vector<2x96xf32> to vector<2x32xf32>
    %1353 = vector.extract_strided_slice %1349 {offsets = [0, 0], sizes = [2, 32], strides = [1, 1]} : vector<2x96xf32> to vector<2x32xf32>
    %1354 = arith.addf %1352, %1353 : vector<2x32xf32>
    %1355 = arith.negf %1354 : vector<2x32xf32>
    %1356 = math.exp %1355 : vector<2x32xf32>
    %cst_380 = arith.constant 1.000000e+00 : f32
    %1357 = vector.broadcast %cst_380 : f32 to vector<2x32xf32>
    %1358 = arith.addf %1357, %1356 : vector<2x32xf32>
    %1359 = arith.divf %1357, %1358 : vector<2x32xf32>
    %1360 = vector.extract_strided_slice %1351 {offsets = [0, 32], sizes = [2, 32], strides = [1, 1]} : vector<2x96xf32> to vector<2x32xf32>
    %1361 = vector.extract_strided_slice %1349 {offsets = [0, 32], sizes = [2, 32], strides = [1, 1]} : vector<2x96xf32> to vector<2x32xf32>
    %1362 = arith.addf %1360, %1361 : vector<2x32xf32>
    %1363 = arith.negf %1362 : vector<2x32xf32>
    %1364 = math.exp %1363 : vector<2x32xf32>
    %cst_381 = arith.constant 1.000000e+00 : f32
    %1365 = vector.broadcast %cst_381 : f32 to vector<2x32xf32>
    %1366 = arith.addf %1365, %1364 : vector<2x32xf32>
    %1367 = arith.divf %1365, %1366 : vector<2x32xf32>
    %1368 = vector.extract_strided_slice %1351 {offsets = [0, 64], sizes = [2, 32], strides = [1, 1]} : vector<2x96xf32> to vector<2x32xf32>
    %1369 = vector.extract_strided_slice %1349 {offsets = [0, 64], sizes = [2, 32], strides = [1, 1]} : vector<2x96xf32> to vector<2x32xf32>
    %1370 = vector.broadcast %1046 : vector<1x32xf32> to vector<2x32xf32>
    %1371 = arith.addf %1369, %1370 : vector<2x32xf32>
    %1372 = arith.mulf %1359, %1371 : vector<2x32xf32>
    %1373 = arith.addf %1368, %1372 : vector<2x32xf32>
    %1374 = math.tanh %1373 : vector<2x32xf32>
    %cst_382 = arith.constant 1.000000e+00 : f32
    %1375 = vector.broadcast %cst_382 : f32 to vector<2x32xf32>
    %1376 = arith.subf %1375, %1367 : vector<2x32xf32>
    %1377 = arith.mulf %1376, %1374 : vector<2x32xf32>
    %1378 = arith.mulf %1367, %1319 : vector<2x32xf32>
    %1379 = arith.addf %1377, %1378 : vector<2x32xf32>
    %c80_383 = arith.constant 80 : index
    %c0_384 = arith.constant 0 : index
    %1380 = vector.load %arg8[%c80_383, %c0_384] : memref<128x96xf32, #tpu.memory_space<vmem>>, vector<2x96xf32>
    %1381 = vector.extract_strided_slice %1380 {offsets = [0, 0], sizes = [2, 32], strides = [1, 1]} : vector<2x96xf32> to vector<2x32xf32>
    %1382 = vector.extract_strided_slice %1350 {offsets = [0, 0], sizes = [2, 32], strides = [1, 1]} : vector<2x96xf32> to vector<2x32xf32>
    %1383 = arith.addf %1381, %1382 : vector<2x32xf32>
    %1384 = arith.negf %1383 : vector<2x32xf32>
    %1385 = math.exp %1384 : vector<2x32xf32>
    %cst_385 = arith.constant 1.000000e+00 : f32
    %1386 = vector.broadcast %cst_385 : f32 to vector<2x32xf32>
    %1387 = arith.addf %1386, %1385 : vector<2x32xf32>
    %1388 = arith.divf %1386, %1387 : vector<2x32xf32>
    %1389 = vector.extract_strided_slice %1380 {offsets = [0, 32], sizes = [2, 32], strides = [1, 1]} : vector<2x96xf32> to vector<2x32xf32>
    %1390 = vector.extract_strided_slice %1350 {offsets = [0, 32], sizes = [2, 32], strides = [1, 1]} : vector<2x96xf32> to vector<2x32xf32>
    %1391 = arith.addf %1389, %1390 : vector<2x32xf32>
    %1392 = arith.negf %1391 : vector<2x32xf32>
    %1393 = math.exp %1392 : vector<2x32xf32>
    %cst_386 = arith.constant 1.000000e+00 : f32
    %1394 = vector.broadcast %cst_386 : f32 to vector<2x32xf32>
    %1395 = arith.addf %1394, %1393 : vector<2x32xf32>
    %1396 = arith.divf %1394, %1395 : vector<2x32xf32>
    %1397 = vector.extract_strided_slice %1380 {offsets = [0, 64], sizes = [2, 32], strides = [1, 1]} : vector<2x96xf32> to vector<2x32xf32>
    %1398 = vector.extract_strided_slice %1350 {offsets = [0, 64], sizes = [2, 32], strides = [1, 1]} : vector<2x96xf32> to vector<2x32xf32>
    %1399 = vector.broadcast %1048 : vector<1x32xf32> to vector<2x32xf32>
    %1400 = arith.addf %1398, %1399 : vector<2x32xf32>
    %1401 = arith.mulf %1388, %1400 : vector<2x32xf32>
    %1402 = arith.addf %1397, %1401 : vector<2x32xf32>
    %1403 = math.tanh %1402 : vector<2x32xf32>
    %cst_387 = arith.constant 1.000000e+00 : f32
    %1404 = vector.broadcast %cst_387 : f32 to vector<2x32xf32>
    %1405 = arith.subf %1404, %1396 : vector<2x32xf32>
    %1406 = arith.mulf %1405, %1403 : vector<2x32xf32>
    %1407 = arith.mulf %1396, %1348 : vector<2x32xf32>
    %1408 = arith.addf %1406, %1407 : vector<2x32xf32>
    %cst_388 = arith.constant dense<0.000000e+00> : vector<2x96xf32>
    %1409 = tpu.matmul %1379, %1042, %cst_388 {dimension_numbers = #tpu.dot_dimension_numbers<[1], [0], [0], [1], [0, 0, 1, 1], [], []>} : vector<2x32xf32>, vector<32x96xf32>, vector<2x96xf32> -> vector<2x96xf32>
    %cst_389 = arith.constant dense<0.000000e+00> : vector<2x96xf32>
    %1410 = tpu.matmul %1408, %1044, %cst_389 {dimension_numbers = #tpu.dot_dimension_numbers<[1], [0], [0], [1], [0, 0, 1, 1], [], []>} : vector<2x32xf32>, vector<32x96xf32>, vector<2x96xf32> -> vector<2x96xf32>
    %c48_390 = arith.constant 48 : index
    %c0_391 = arith.constant 0 : index
    %1411 = vector.load %arg7[%c48_390, %c0_391] : memref<128x96xf32, #tpu.memory_space<vmem>>, vector<2x96xf32>
    %1412 = vector.extract_strided_slice %1411 {offsets = [0, 0], sizes = [2, 32], strides = [1, 1]} : vector<2x96xf32> to vector<2x32xf32>
    %1413 = vector.extract_strided_slice %1409 {offsets = [0, 0], sizes = [2, 32], strides = [1, 1]} : vector<2x96xf32> to vector<2x32xf32>
    %1414 = arith.addf %1412, %1413 : vector<2x32xf32>
    %1415 = arith.negf %1414 : vector<2x32xf32>
    %1416 = math.exp %1415 : vector<2x32xf32>
    %cst_392 = arith.constant 1.000000e+00 : f32
    %1417 = vector.broadcast %cst_392 : f32 to vector<2x32xf32>
    %1418 = arith.addf %1417, %1416 : vector<2x32xf32>
    %1419 = arith.divf %1417, %1418 : vector<2x32xf32>
    %1420 = vector.extract_strided_slice %1411 {offsets = [0, 32], sizes = [2, 32], strides = [1, 1]} : vector<2x96xf32> to vector<2x32xf32>
    %1421 = vector.extract_strided_slice %1409 {offsets = [0, 32], sizes = [2, 32], strides = [1, 1]} : vector<2x96xf32> to vector<2x32xf32>
    %1422 = arith.addf %1420, %1421 : vector<2x32xf32>
    %1423 = arith.negf %1422 : vector<2x32xf32>
    %1424 = math.exp %1423 : vector<2x32xf32>
    %cst_393 = arith.constant 1.000000e+00 : f32
    %1425 = vector.broadcast %cst_393 : f32 to vector<2x32xf32>
    %1426 = arith.addf %1425, %1424 : vector<2x32xf32>
    %1427 = arith.divf %1425, %1426 : vector<2x32xf32>
    %1428 = vector.extract_strided_slice %1411 {offsets = [0, 64], sizes = [2, 32], strides = [1, 1]} : vector<2x96xf32> to vector<2x32xf32>
    %1429 = vector.extract_strided_slice %1409 {offsets = [0, 64], sizes = [2, 32], strides = [1, 1]} : vector<2x96xf32> to vector<2x32xf32>
    %1430 = vector.broadcast %1046 : vector<1x32xf32> to vector<2x32xf32>
    %1431 = arith.addf %1429, %1430 : vector<2x32xf32>
    %1432 = arith.mulf %1419, %1431 : vector<2x32xf32>
    %1433 = arith.addf %1428, %1432 : vector<2x32xf32>
    %1434 = math.tanh %1433 : vector<2x32xf32>
    %cst_394 = arith.constant 1.000000e+00 : f32
    %1435 = vector.broadcast %cst_394 : f32 to vector<2x32xf32>
    %1436 = arith.subf %1435, %1427 : vector<2x32xf32>
    %1437 = arith.mulf %1436, %1434 : vector<2x32xf32>
    %1438 = arith.mulf %1427, %1379 : vector<2x32xf32>
    %1439 = arith.addf %1437, %1438 : vector<2x32xf32>
    %c72_395 = arith.constant 72 : index
    %c0_396 = arith.constant 0 : index
    %1440 = vector.load %arg8[%c72_395, %c0_396] : memref<128x96xf32, #tpu.memory_space<vmem>>, vector<2x96xf32>
    %1441 = vector.extract_strided_slice %1440 {offsets = [0, 0], sizes = [2, 32], strides = [1, 1]} : vector<2x96xf32> to vector<2x32xf32>
    %1442 = vector.extract_strided_slice %1410 {offsets = [0, 0], sizes = [2, 32], strides = [1, 1]} : vector<2x96xf32> to vector<2x32xf32>
    %1443 = arith.addf %1441, %1442 : vector<2x32xf32>
    %1444 = arith.negf %1443 : vector<2x32xf32>
    %1445 = math.exp %1444 : vector<2x32xf32>
    %cst_397 = arith.constant 1.000000e+00 : f32
    %1446 = vector.broadcast %cst_397 : f32 to vector<2x32xf32>
    %1447 = arith.addf %1446, %1445 : vector<2x32xf32>
    %1448 = arith.divf %1446, %1447 : vector<2x32xf32>
    %1449 = vector.extract_strided_slice %1440 {offsets = [0, 32], sizes = [2, 32], strides = [1, 1]} : vector<2x96xf32> to vector<2x32xf32>
    %1450 = vector.extract_strided_slice %1410 {offsets = [0, 32], sizes = [2, 32], strides = [1, 1]} : vector<2x96xf32> to vector<2x32xf32>
    %1451 = arith.addf %1449, %1450 : vector<2x32xf32>
    %1452 = arith.negf %1451 : vector<2x32xf32>
    %1453 = math.exp %1452 : vector<2x32xf32>
    %cst_398 = arith.constant 1.000000e+00 : f32
    %1454 = vector.broadcast %cst_398 : f32 to vector<2x32xf32>
    %1455 = arith.addf %1454, %1453 : vector<2x32xf32>
    %1456 = arith.divf %1454, %1455 : vector<2x32xf32>
    %1457 = vector.extract_strided_slice %1440 {offsets = [0, 64], sizes = [2, 32], strides = [1, 1]} : vector<2x96xf32> to vector<2x32xf32>
    %1458 = vector.extract_strided_slice %1410 {offsets = [0, 64], sizes = [2, 32], strides = [1, 1]} : vector<2x96xf32> to vector<2x32xf32>
    %1459 = vector.broadcast %1048 : vector<1x32xf32> to vector<2x32xf32>
    %1460 = arith.addf %1458, %1459 : vector<2x32xf32>
    %1461 = arith.mulf %1448, %1460 : vector<2x32xf32>
    %1462 = arith.addf %1457, %1461 : vector<2x32xf32>
    %1463 = math.tanh %1462 : vector<2x32xf32>
    %cst_399 = arith.constant 1.000000e+00 : f32
    %1464 = vector.broadcast %cst_399 : f32 to vector<2x32xf32>
    %1465 = arith.subf %1464, %1456 : vector<2x32xf32>
    %1466 = arith.mulf %1465, %1463 : vector<2x32xf32>
    %1467 = arith.mulf %1456, %1408 : vector<2x32xf32>
    %1468 = arith.addf %1466, %1467 : vector<2x32xf32>
    %cst_400 = arith.constant dense<0.000000e+00> : vector<2x96xf32>
    %1469 = tpu.matmul %1439, %1042, %cst_400 {dimension_numbers = #tpu.dot_dimension_numbers<[1], [0], [0], [1], [0, 0, 1, 1], [], []>} : vector<2x32xf32>, vector<32x96xf32>, vector<2x96xf32> -> vector<2x96xf32>
    %cst_401 = arith.constant dense<0.000000e+00> : vector<2x96xf32>
    %1470 = tpu.matmul %1468, %1044, %cst_401 {dimension_numbers = #tpu.dot_dimension_numbers<[1], [0], [0], [1], [0, 0, 1, 1], [], []>} : vector<2x32xf32>, vector<32x96xf32>, vector<2x96xf32> -> vector<2x96xf32>
    %c56_402 = arith.constant 56 : index
    %c0_403 = arith.constant 0 : index
    %1471 = vector.load %arg7[%c56_402, %c0_403] : memref<128x96xf32, #tpu.memory_space<vmem>>, vector<2x96xf32>
    %1472 = vector.extract_strided_slice %1471 {offsets = [0, 0], sizes = [2, 32], strides = [1, 1]} : vector<2x96xf32> to vector<2x32xf32>
    %1473 = vector.extract_strided_slice %1469 {offsets = [0, 0], sizes = [2, 32], strides = [1, 1]} : vector<2x96xf32> to vector<2x32xf32>
    %1474 = arith.addf %1472, %1473 : vector<2x32xf32>
    %1475 = arith.negf %1474 : vector<2x32xf32>
    %1476 = math.exp %1475 : vector<2x32xf32>
    %cst_404 = arith.constant 1.000000e+00 : f32
    %1477 = vector.broadcast %cst_404 : f32 to vector<2x32xf32>
    %1478 = arith.addf %1477, %1476 : vector<2x32xf32>
    %1479 = arith.divf %1477, %1478 : vector<2x32xf32>
    %1480 = vector.extract_strided_slice %1471 {offsets = [0, 32], sizes = [2, 32], strides = [1, 1]} : vector<2x96xf32> to vector<2x32xf32>
    %1481 = vector.extract_strided_slice %1469 {offsets = [0, 32], sizes = [2, 32], strides = [1, 1]} : vector<2x96xf32> to vector<2x32xf32>
    %1482 = arith.addf %1480, %1481 : vector<2x32xf32>
    %1483 = arith.negf %1482 : vector<2x32xf32>
    %1484 = math.exp %1483 : vector<2x32xf32>
    %cst_405 = arith.constant 1.000000e+00 : f32
    %1485 = vector.broadcast %cst_405 : f32 to vector<2x32xf32>
    %1486 = arith.addf %1485, %1484 : vector<2x32xf32>
    %1487 = arith.divf %1485, %1486 : vector<2x32xf32>
    %1488 = vector.extract_strided_slice %1471 {offsets = [0, 64], sizes = [2, 32], strides = [1, 1]} : vector<2x96xf32> to vector<2x32xf32>
    %1489 = vector.extract_strided_slice %1469 {offsets = [0, 64], sizes = [2, 32], strides = [1, 1]} : vector<2x96xf32> to vector<2x32xf32>
    %1490 = vector.broadcast %1046 : vector<1x32xf32> to vector<2x32xf32>
    %1491 = arith.addf %1489, %1490 : vector<2x32xf32>
    %1492 = arith.mulf %1479, %1491 : vector<2x32xf32>
    %1493 = arith.addf %1488, %1492 : vector<2x32xf32>
    %1494 = math.tanh %1493 : vector<2x32xf32>
    %cst_406 = arith.constant 1.000000e+00 : f32
    %1495 = vector.broadcast %cst_406 : f32 to vector<2x32xf32>
    %1496 = arith.subf %1495, %1487 : vector<2x32xf32>
    %1497 = arith.mulf %1496, %1494 : vector<2x32xf32>
    %1498 = arith.mulf %1487, %1439 : vector<2x32xf32>
    %1499 = arith.addf %1497, %1498 : vector<2x32xf32>
    %c64_407 = arith.constant 64 : index
    %c0_408 = arith.constant 0 : index
    %1500 = vector.load %arg8[%c64_407, %c0_408] : memref<128x96xf32, #tpu.memory_space<vmem>>, vector<2x96xf32>
    %1501 = vector.extract_strided_slice %1500 {offsets = [0, 0], sizes = [2, 32], strides = [1, 1]} : vector<2x96xf32> to vector<2x32xf32>
    %1502 = vector.extract_strided_slice %1470 {offsets = [0, 0], sizes = [2, 32], strides = [1, 1]} : vector<2x96xf32> to vector<2x32xf32>
    %1503 = arith.addf %1501, %1502 : vector<2x32xf32>
    %1504 = arith.negf %1503 : vector<2x32xf32>
    %1505 = math.exp %1504 : vector<2x32xf32>
    %cst_409 = arith.constant 1.000000e+00 : f32
    %1506 = vector.broadcast %cst_409 : f32 to vector<2x32xf32>
    %1507 = arith.addf %1506, %1505 : vector<2x32xf32>
    %1508 = arith.divf %1506, %1507 : vector<2x32xf32>
    %1509 = vector.extract_strided_slice %1500 {offsets = [0, 32], sizes = [2, 32], strides = [1, 1]} : vector<2x96xf32> to vector<2x32xf32>
    %1510 = vector.extract_strided_slice %1470 {offsets = [0, 32], sizes = [2, 32], strides = [1, 1]} : vector<2x96xf32> to vector<2x32xf32>
    %1511 = arith.addf %1509, %1510 : vector<2x32xf32>
    %1512 = arith.negf %1511 : vector<2x32xf32>
    %1513 = math.exp %1512 : vector<2x32xf32>
    %cst_410 = arith.constant 1.000000e+00 : f32
    %1514 = vector.broadcast %cst_410 : f32 to vector<2x32xf32>
    %1515 = arith.addf %1514, %1513 : vector<2x32xf32>
    %1516 = arith.divf %1514, %1515 : vector<2x32xf32>
    %1517 = vector.extract_strided_slice %1500 {offsets = [0, 64], sizes = [2, 32], strides = [1, 1]} : vector<2x96xf32> to vector<2x32xf32>
    %1518 = vector.extract_strided_slice %1470 {offsets = [0, 64], sizes = [2, 32], strides = [1, 1]} : vector<2x96xf32> to vector<2x32xf32>
    %1519 = vector.broadcast %1048 : vector<1x32xf32> to vector<2x32xf32>
    %1520 = arith.addf %1518, %1519 : vector<2x32xf32>
    %1521 = arith.mulf %1508, %1520 : vector<2x32xf32>
    %1522 = arith.addf %1517, %1521 : vector<2x32xf32>
    %1523 = math.tanh %1522 : vector<2x32xf32>
    %cst_411 = arith.constant 1.000000e+00 : f32
    %1524 = vector.broadcast %cst_411 : f32 to vector<2x32xf32>
    %1525 = arith.subf %1524, %1516 : vector<2x32xf32>
    %1526 = arith.mulf %1525, %1523 : vector<2x32xf32>
    %1527 = arith.mulf %1516, %1468 : vector<2x32xf32>
    %1528 = arith.addf %1526, %1527 : vector<2x32xf32>
    %cst_412 = arith.constant dense<0.000000e+00> : vector<2x96xf32>
    %1529 = tpu.matmul %1499, %1042, %cst_412 {dimension_numbers = #tpu.dot_dimension_numbers<[1], [0], [0], [1], [0, 0, 1, 1], [], []>} : vector<2x32xf32>, vector<32x96xf32>, vector<2x96xf32> -> vector<2x96xf32>
    %cst_413 = arith.constant dense<0.000000e+00> : vector<2x96xf32>
    %1530 = tpu.matmul %1528, %1044, %cst_413 {dimension_numbers = #tpu.dot_dimension_numbers<[1], [0], [0], [1], [0, 0, 1, 1], [], []>} : vector<2x32xf32>, vector<32x96xf32>, vector<2x96xf32> -> vector<2x96xf32>
    %c64_414 = arith.constant 64 : index
    %c0_415 = arith.constant 0 : index
    %1531 = vector.load %arg7[%c64_414, %c0_415] : memref<128x96xf32, #tpu.memory_space<vmem>>, vector<2x96xf32>
    %1532 = vector.extract_strided_slice %1531 {offsets = [0, 0], sizes = [2, 32], strides = [1, 1]} : vector<2x96xf32> to vector<2x32xf32>
    %1533 = vector.extract_strided_slice %1529 {offsets = [0, 0], sizes = [2, 32], strides = [1, 1]} : vector<2x96xf32> to vector<2x32xf32>
    %1534 = arith.addf %1532, %1533 : vector<2x32xf32>
    %1535 = arith.negf %1534 : vector<2x32xf32>
    %1536 = math.exp %1535 : vector<2x32xf32>
    %cst_416 = arith.constant 1.000000e+00 : f32
    %1537 = vector.broadcast %cst_416 : f32 to vector<2x32xf32>
    %1538 = arith.addf %1537, %1536 : vector<2x32xf32>
    %1539 = arith.divf %1537, %1538 : vector<2x32xf32>
    %1540 = vector.extract_strided_slice %1531 {offsets = [0, 32], sizes = [2, 32], strides = [1, 1]} : vector<2x96xf32> to vector<2x32xf32>
    %1541 = vector.extract_strided_slice %1529 {offsets = [0, 32], sizes = [2, 32], strides = [1, 1]} : vector<2x96xf32> to vector<2x32xf32>
    %1542 = arith.addf %1540, %1541 : vector<2x32xf32>
    %1543 = arith.negf %1542 : vector<2x32xf32>
    %1544 = math.exp %1543 : vector<2x32xf32>
    %cst_417 = arith.constant 1.000000e+00 : f32
    %1545 = vector.broadcast %cst_417 : f32 to vector<2x32xf32>
    %1546 = arith.addf %1545, %1544 : vector<2x32xf32>
    %1547 = arith.divf %1545, %1546 : vector<2x32xf32>
    %1548 = vector.extract_strided_slice %1531 {offsets = [0, 64], sizes = [2, 32], strides = [1, 1]} : vector<2x96xf32> to vector<2x32xf32>
    %1549 = vector.extract_strided_slice %1529 {offsets = [0, 64], sizes = [2, 32], strides = [1, 1]} : vector<2x96xf32> to vector<2x32xf32>
    %1550 = vector.broadcast %1046 : vector<1x32xf32> to vector<2x32xf32>
    %1551 = arith.addf %1549, %1550 : vector<2x32xf32>
    %1552 = arith.mulf %1539, %1551 : vector<2x32xf32>
    %1553 = arith.addf %1548, %1552 : vector<2x32xf32>
    %1554 = math.tanh %1553 : vector<2x32xf32>
    %cst_418 = arith.constant 1.000000e+00 : f32
    %1555 = vector.broadcast %cst_418 : f32 to vector<2x32xf32>
    %1556 = arith.subf %1555, %1547 : vector<2x32xf32>
    %1557 = arith.mulf %1556, %1554 : vector<2x32xf32>
    %1558 = arith.mulf %1547, %1499 : vector<2x32xf32>
    %1559 = arith.addf %1557, %1558 : vector<2x32xf32>
    %c56_419 = arith.constant 56 : index
    %c0_420 = arith.constant 0 : index
    %1560 = vector.load %arg8[%c56_419, %c0_420] : memref<128x96xf32, #tpu.memory_space<vmem>>, vector<2x96xf32>
    %1561 = vector.extract_strided_slice %1560 {offsets = [0, 0], sizes = [2, 32], strides = [1, 1]} : vector<2x96xf32> to vector<2x32xf32>
    %1562 = vector.extract_strided_slice %1530 {offsets = [0, 0], sizes = [2, 32], strides = [1, 1]} : vector<2x96xf32> to vector<2x32xf32>
    %1563 = arith.addf %1561, %1562 : vector<2x32xf32>
    %1564 = arith.negf %1563 : vector<2x32xf32>
    %1565 = math.exp %1564 : vector<2x32xf32>
    %cst_421 = arith.constant 1.000000e+00 : f32
    %1566 = vector.broadcast %cst_421 : f32 to vector<2x32xf32>
    %1567 = arith.addf %1566, %1565 : vector<2x32xf32>
    %1568 = arith.divf %1566, %1567 : vector<2x32xf32>
    %1569 = vector.extract_strided_slice %1560 {offsets = [0, 32], sizes = [2, 32], strides = [1, 1]} : vector<2x96xf32> to vector<2x32xf32>
    %1570 = vector.extract_strided_slice %1530 {offsets = [0, 32], sizes = [2, 32], strides = [1, 1]} : vector<2x96xf32> to vector<2x32xf32>
    %1571 = arith.addf %1569, %1570 : vector<2x32xf32>
    %1572 = arith.negf %1571 : vector<2x32xf32>
    %1573 = math.exp %1572 : vector<2x32xf32>
    %cst_422 = arith.constant 1.000000e+00 : f32
    %1574 = vector.broadcast %cst_422 : f32 to vector<2x32xf32>
    %1575 = arith.addf %1574, %1573 : vector<2x32xf32>
    %1576 = arith.divf %1574, %1575 : vector<2x32xf32>
    %1577 = vector.extract_strided_slice %1560 {offsets = [0, 64], sizes = [2, 32], strides = [1, 1]} : vector<2x96xf32> to vector<2x32xf32>
    %1578 = vector.extract_strided_slice %1530 {offsets = [0, 64], sizes = [2, 32], strides = [1, 1]} : vector<2x96xf32> to vector<2x32xf32>
    %1579 = vector.broadcast %1048 : vector<1x32xf32> to vector<2x32xf32>
    %1580 = arith.addf %1578, %1579 : vector<2x32xf32>
    %1581 = arith.mulf %1568, %1580 : vector<2x32xf32>
    %1582 = arith.addf %1577, %1581 : vector<2x32xf32>
    %1583 = math.tanh %1582 : vector<2x32xf32>
    %cst_423 = arith.constant 1.000000e+00 : f32
    %1584 = vector.broadcast %cst_423 : f32 to vector<2x32xf32>
    %1585 = arith.subf %1584, %1576 : vector<2x32xf32>
    %1586 = arith.mulf %1585, %1583 : vector<2x32xf32>
    %1587 = arith.mulf %1576, %1528 : vector<2x32xf32>
    %1588 = arith.addf %1586, %1587 : vector<2x32xf32>
    %cst_424 = arith.constant dense<0.000000e+00> : vector<2x96xf32>
    %1589 = tpu.matmul %1559, %1042, %cst_424 {dimension_numbers = #tpu.dot_dimension_numbers<[1], [0], [0], [1], [0, 0, 1, 1], [], []>} : vector<2x32xf32>, vector<32x96xf32>, vector<2x96xf32> -> vector<2x96xf32>
    %cst_425 = arith.constant dense<0.000000e+00> : vector<2x96xf32>
    %1590 = tpu.matmul %1588, %1044, %cst_425 {dimension_numbers = #tpu.dot_dimension_numbers<[1], [0], [0], [1], [0, 0, 1, 1], [], []>} : vector<2x32xf32>, vector<32x96xf32>, vector<2x96xf32> -> vector<2x96xf32>
    %c72_426 = arith.constant 72 : index
    %c0_427 = arith.constant 0 : index
    %1591 = vector.load %arg7[%c72_426, %c0_427] : memref<128x96xf32, #tpu.memory_space<vmem>>, vector<2x96xf32>
    %1592 = vector.extract_strided_slice %1591 {offsets = [0, 0], sizes = [2, 32], strides = [1, 1]} : vector<2x96xf32> to vector<2x32xf32>
    %1593 = vector.extract_strided_slice %1589 {offsets = [0, 0], sizes = [2, 32], strides = [1, 1]} : vector<2x96xf32> to vector<2x32xf32>
    %1594 = arith.addf %1592, %1593 : vector<2x32xf32>
    %1595 = arith.negf %1594 : vector<2x32xf32>
    %1596 = math.exp %1595 : vector<2x32xf32>
    %cst_428 = arith.constant 1.000000e+00 : f32
    %1597 = vector.broadcast %cst_428 : f32 to vector<2x32xf32>
    %1598 = arith.addf %1597, %1596 : vector<2x32xf32>
    %1599 = arith.divf %1597, %1598 : vector<2x32xf32>
    %1600 = vector.extract_strided_slice %1591 {offsets = [0, 32], sizes = [2, 32], strides = [1, 1]} : vector<2x96xf32> to vector<2x32xf32>
    %1601 = vector.extract_strided_slice %1589 {offsets = [0, 32], sizes = [2, 32], strides = [1, 1]} : vector<2x96xf32> to vector<2x32xf32>
    %1602 = arith.addf %1600, %1601 : vector<2x32xf32>
    %1603 = arith.negf %1602 : vector<2x32xf32>
    %1604 = math.exp %1603 : vector<2x32xf32>
    %cst_429 = arith.constant 1.000000e+00 : f32
    %1605 = vector.broadcast %cst_429 : f32 to vector<2x32xf32>
    %1606 = arith.addf %1605, %1604 : vector<2x32xf32>
    %1607 = arith.divf %1605, %1606 : vector<2x32xf32>
    %1608 = vector.extract_strided_slice %1591 {offsets = [0, 64], sizes = [2, 32], strides = [1, 1]} : vector<2x96xf32> to vector<2x32xf32>
    %1609 = vector.extract_strided_slice %1589 {offsets = [0, 64], sizes = [2, 32], strides = [1, 1]} : vector<2x96xf32> to vector<2x32xf32>
    %1610 = vector.broadcast %1046 : vector<1x32xf32> to vector<2x32xf32>
    %1611 = arith.addf %1609, %1610 : vector<2x32xf32>
    %1612 = arith.mulf %1599, %1611 : vector<2x32xf32>
    %1613 = arith.addf %1608, %1612 : vector<2x32xf32>
    %1614 = math.tanh %1613 : vector<2x32xf32>
    %cst_430 = arith.constant 1.000000e+00 : f32
    %1615 = vector.broadcast %cst_430 : f32 to vector<2x32xf32>
    %1616 = arith.subf %1615, %1607 : vector<2x32xf32>
    %1617 = arith.mulf %1616, %1614 : vector<2x32xf32>
    %1618 = arith.mulf %1607, %1559 : vector<2x32xf32>
    %1619 = arith.addf %1617, %1618 : vector<2x32xf32>
    %c48_431 = arith.constant 48 : index
    %c0_432 = arith.constant 0 : index
    %1620 = vector.load %arg8[%c48_431, %c0_432] : memref<128x96xf32, #tpu.memory_space<vmem>>, vector<2x96xf32>
    %1621 = vector.extract_strided_slice %1620 {offsets = [0, 0], sizes = [2, 32], strides = [1, 1]} : vector<2x96xf32> to vector<2x32xf32>
    %1622 = vector.extract_strided_slice %1590 {offsets = [0, 0], sizes = [2, 32], strides = [1, 1]} : vector<2x96xf32> to vector<2x32xf32>
    %1623 = arith.addf %1621, %1622 : vector<2x32xf32>
    %1624 = arith.negf %1623 : vector<2x32xf32>
    %1625 = math.exp %1624 : vector<2x32xf32>
    %cst_433 = arith.constant 1.000000e+00 : f32
    %1626 = vector.broadcast %cst_433 : f32 to vector<2x32xf32>
    %1627 = arith.addf %1626, %1625 : vector<2x32xf32>
    %1628 = arith.divf %1626, %1627 : vector<2x32xf32>
    %1629 = vector.extract_strided_slice %1620 {offsets = [0, 32], sizes = [2, 32], strides = [1, 1]} : vector<2x96xf32> to vector<2x32xf32>
    %1630 = vector.extract_strided_slice %1590 {offsets = [0, 32], sizes = [2, 32], strides = [1, 1]} : vector<2x96xf32> to vector<2x32xf32>
    %1631 = arith.addf %1629, %1630 : vector<2x32xf32>
    %1632 = arith.negf %1631 : vector<2x32xf32>
    %1633 = math.exp %1632 : vector<2x32xf32>
    %cst_434 = arith.constant 1.000000e+00 : f32
    %1634 = vector.broadcast %cst_434 : f32 to vector<2x32xf32>
    %1635 = arith.addf %1634, %1633 : vector<2x32xf32>
    %1636 = arith.divf %1634, %1635 : vector<2x32xf32>
    %1637 = vector.extract_strided_slice %1620 {offsets = [0, 64], sizes = [2, 32], strides = [1, 1]} : vector<2x96xf32> to vector<2x32xf32>
    %1638 = vector.extract_strided_slice %1590 {offsets = [0, 64], sizes = [2, 32], strides = [1, 1]} : vector<2x96xf32> to vector<2x32xf32>
    %1639 = vector.broadcast %1048 : vector<1x32xf32> to vector<2x32xf32>
    %1640 = arith.addf %1638, %1639 : vector<2x32xf32>
    %1641 = arith.mulf %1628, %1640 : vector<2x32xf32>
    %1642 = arith.addf %1637, %1641 : vector<2x32xf32>
    %1643 = math.tanh %1642 : vector<2x32xf32>
    %cst_435 = arith.constant 1.000000e+00 : f32
    %1644 = vector.broadcast %cst_435 : f32 to vector<2x32xf32>
    %1645 = arith.subf %1644, %1636 : vector<2x32xf32>
    %1646 = arith.mulf %1645, %1643 : vector<2x32xf32>
    %1647 = arith.mulf %1636, %1588 : vector<2x32xf32>
    %1648 = arith.addf %1646, %1647 : vector<2x32xf32>
    %cst_436 = arith.constant dense<0.000000e+00> : vector<2x96xf32>
    %1649 = tpu.matmul %1619, %1042, %cst_436 {dimension_numbers = #tpu.dot_dimension_numbers<[1], [0], [0], [1], [0, 0, 1, 1], [], []>} : vector<2x32xf32>, vector<32x96xf32>, vector<2x96xf32> -> vector<2x96xf32>
    %cst_437 = arith.constant dense<0.000000e+00> : vector<2x96xf32>
    %1650 = tpu.matmul %1648, %1044, %cst_437 {dimension_numbers = #tpu.dot_dimension_numbers<[1], [0], [0], [1], [0, 0, 1, 1], [], []>} : vector<2x32xf32>, vector<32x96xf32>, vector<2x96xf32> -> vector<2x96xf32>
    %c80_438 = arith.constant 80 : index
    %c0_439 = arith.constant 0 : index
    %1651 = vector.load %arg7[%c80_438, %c0_439] : memref<128x96xf32, #tpu.memory_space<vmem>>, vector<2x96xf32>
    %1652 = vector.extract_strided_slice %1651 {offsets = [0, 0], sizes = [2, 32], strides = [1, 1]} : vector<2x96xf32> to vector<2x32xf32>
    %1653 = vector.extract_strided_slice %1649 {offsets = [0, 0], sizes = [2, 32], strides = [1, 1]} : vector<2x96xf32> to vector<2x32xf32>
    %1654 = arith.addf %1652, %1653 : vector<2x32xf32>
    %1655 = arith.negf %1654 : vector<2x32xf32>
    %1656 = math.exp %1655 : vector<2x32xf32>
    %cst_440 = arith.constant 1.000000e+00 : f32
    %1657 = vector.broadcast %cst_440 : f32 to vector<2x32xf32>
    %1658 = arith.addf %1657, %1656 : vector<2x32xf32>
    %1659 = arith.divf %1657, %1658 : vector<2x32xf32>
    %1660 = vector.extract_strided_slice %1651 {offsets = [0, 32], sizes = [2, 32], strides = [1, 1]} : vector<2x96xf32> to vector<2x32xf32>
    %1661 = vector.extract_strided_slice %1649 {offsets = [0, 32], sizes = [2, 32], strides = [1, 1]} : vector<2x96xf32> to vector<2x32xf32>
    %1662 = arith.addf %1660, %1661 : vector<2x32xf32>
    %1663 = arith.negf %1662 : vector<2x32xf32>
    %1664 = math.exp %1663 : vector<2x32xf32>
    %cst_441 = arith.constant 1.000000e+00 : f32
    %1665 = vector.broadcast %cst_441 : f32 to vector<2x32xf32>
    %1666 = arith.addf %1665, %1664 : vector<2x32xf32>
    %1667 = arith.divf %1665, %1666 : vector<2x32xf32>
    %1668 = vector.extract_strided_slice %1651 {offsets = [0, 64], sizes = [2, 32], strides = [1, 1]} : vector<2x96xf32> to vector<2x32xf32>
    %1669 = vector.extract_strided_slice %1649 {offsets = [0, 64], sizes = [2, 32], strides = [1, 1]} : vector<2x96xf32> to vector<2x32xf32>
    %1670 = vector.broadcast %1046 : vector<1x32xf32> to vector<2x32xf32>
    %1671 = arith.addf %1669, %1670 : vector<2x32xf32>
    %1672 = arith.mulf %1659, %1671 : vector<2x32xf32>
    %1673 = arith.addf %1668, %1672 : vector<2x32xf32>
    %1674 = math.tanh %1673 : vector<2x32xf32>
    %cst_442 = arith.constant 1.000000e+00 : f32
    %1675 = vector.broadcast %cst_442 : f32 to vector<2x32xf32>
    %1676 = arith.subf %1675, %1667 : vector<2x32xf32>
    %1677 = arith.mulf %1676, %1674 : vector<2x32xf32>
    %1678 = arith.mulf %1667, %1619 : vector<2x32xf32>
    %1679 = arith.addf %1677, %1678 : vector<2x32xf32>
    %c40_443 = arith.constant 40 : index
    %c0_444 = arith.constant 0 : index
    %1680 = vector.load %arg8[%c40_443, %c0_444] : memref<128x96xf32, #tpu.memory_space<vmem>>, vector<2x96xf32>
    %1681 = vector.extract_strided_slice %1680 {offsets = [0, 0], sizes = [2, 32], strides = [1, 1]} : vector<2x96xf32> to vector<2x32xf32>
    %1682 = vector.extract_strided_slice %1650 {offsets = [0, 0], sizes = [2, 32], strides = [1, 1]} : vector<2x96xf32> to vector<2x32xf32>
    %1683 = arith.addf %1681, %1682 : vector<2x32xf32>
    %1684 = arith.negf %1683 : vector<2x32xf32>
    %1685 = math.exp %1684 : vector<2x32xf32>
    %cst_445 = arith.constant 1.000000e+00 : f32
    %1686 = vector.broadcast %cst_445 : f32 to vector<2x32xf32>
    %1687 = arith.addf %1686, %1685 : vector<2x32xf32>
    %1688 = arith.divf %1686, %1687 : vector<2x32xf32>
    %1689 = vector.extract_strided_slice %1680 {offsets = [0, 32], sizes = [2, 32], strides = [1, 1]} : vector<2x96xf32> to vector<2x32xf32>
    %1690 = vector.extract_strided_slice %1650 {offsets = [0, 32], sizes = [2, 32], strides = [1, 1]} : vector<2x96xf32> to vector<2x32xf32>
    %1691 = arith.addf %1689, %1690 : vector<2x32xf32>
    %1692 = arith.negf %1691 : vector<2x32xf32>
    %1693 = math.exp %1692 : vector<2x32xf32>
    %cst_446 = arith.constant 1.000000e+00 : f32
    %1694 = vector.broadcast %cst_446 : f32 to vector<2x32xf32>
    %1695 = arith.addf %1694, %1693 : vector<2x32xf32>
    %1696 = arith.divf %1694, %1695 : vector<2x32xf32>
    %1697 = vector.extract_strided_slice %1680 {offsets = [0, 64], sizes = [2, 32], strides = [1, 1]} : vector<2x96xf32> to vector<2x32xf32>
    %1698 = vector.extract_strided_slice %1650 {offsets = [0, 64], sizes = [2, 32], strides = [1, 1]} : vector<2x96xf32> to vector<2x32xf32>
    %1699 = vector.broadcast %1048 : vector<1x32xf32> to vector<2x32xf32>
    %1700 = arith.addf %1698, %1699 : vector<2x32xf32>
    %1701 = arith.mulf %1688, %1700 : vector<2x32xf32>
    %1702 = arith.addf %1697, %1701 : vector<2x32xf32>
    %1703 = math.tanh %1702 : vector<2x32xf32>
    %cst_447 = arith.constant 1.000000e+00 : f32
    %1704 = vector.broadcast %cst_447 : f32 to vector<2x32xf32>
    %1705 = arith.subf %1704, %1696 : vector<2x32xf32>
    %1706 = arith.mulf %1705, %1703 : vector<2x32xf32>
    %1707 = arith.mulf %1696, %1648 : vector<2x32xf32>
    %1708 = arith.addf %1706, %1707 : vector<2x32xf32>
    %cst_448 = arith.constant dense<0.000000e+00> : vector<2x96xf32>
    %1709 = tpu.matmul %1679, %1042, %cst_448 {dimension_numbers = #tpu.dot_dimension_numbers<[1], [0], [0], [1], [0, 0, 1, 1], [], []>} : vector<2x32xf32>, vector<32x96xf32>, vector<2x96xf32> -> vector<2x96xf32>
    %cst_449 = arith.constant dense<0.000000e+00> : vector<2x96xf32>
    %1710 = tpu.matmul %1708, %1044, %cst_449 {dimension_numbers = #tpu.dot_dimension_numbers<[1], [0], [0], [1], [0, 0, 1, 1], [], []>} : vector<2x32xf32>, vector<32x96xf32>, vector<2x96xf32> -> vector<2x96xf32>
    %c88_450 = arith.constant 88 : index
    %c0_451 = arith.constant 0 : index
    %1711 = vector.load %arg7[%c88_450, %c0_451] : memref<128x96xf32, #tpu.memory_space<vmem>>, vector<2x96xf32>
    %1712 = vector.extract_strided_slice %1711 {offsets = [0, 0], sizes = [2, 32], strides = [1, 1]} : vector<2x96xf32> to vector<2x32xf32>
    %1713 = vector.extract_strided_slice %1709 {offsets = [0, 0], sizes = [2, 32], strides = [1, 1]} : vector<2x96xf32> to vector<2x32xf32>
    %1714 = arith.addf %1712, %1713 : vector<2x32xf32>
    %1715 = arith.negf %1714 : vector<2x32xf32>
    %1716 = math.exp %1715 : vector<2x32xf32>
    %cst_452 = arith.constant 1.000000e+00 : f32
    %1717 = vector.broadcast %cst_452 : f32 to vector<2x32xf32>
    %1718 = arith.addf %1717, %1716 : vector<2x32xf32>
    %1719 = arith.divf %1717, %1718 : vector<2x32xf32>
    %1720 = vector.extract_strided_slice %1711 {offsets = [0, 32], sizes = [2, 32], strides = [1, 1]} : vector<2x96xf32> to vector<2x32xf32>
    %1721 = vector.extract_strided_slice %1709 {offsets = [0, 32], sizes = [2, 32], strides = [1, 1]} : vector<2x96xf32> to vector<2x32xf32>
    %1722 = arith.addf %1720, %1721 : vector<2x32xf32>
    %1723 = arith.negf %1722 : vector<2x32xf32>
    %1724 = math.exp %1723 : vector<2x32xf32>
    %cst_453 = arith.constant 1.000000e+00 : f32
    %1725 = vector.broadcast %cst_453 : f32 to vector<2x32xf32>
    %1726 = arith.addf %1725, %1724 : vector<2x32xf32>
    %1727 = arith.divf %1725, %1726 : vector<2x32xf32>
    %1728 = vector.extract_strided_slice %1711 {offsets = [0, 64], sizes = [2, 32], strides = [1, 1]} : vector<2x96xf32> to vector<2x32xf32>
    %1729 = vector.extract_strided_slice %1709 {offsets = [0, 64], sizes = [2, 32], strides = [1, 1]} : vector<2x96xf32> to vector<2x32xf32>
    %1730 = vector.broadcast %1046 : vector<1x32xf32> to vector<2x32xf32>
    %1731 = arith.addf %1729, %1730 : vector<2x32xf32>
    %1732 = arith.mulf %1719, %1731 : vector<2x32xf32>
    %1733 = arith.addf %1728, %1732 : vector<2x32xf32>
    %1734 = math.tanh %1733 : vector<2x32xf32>
    %cst_454 = arith.constant 1.000000e+00 : f32
    %1735 = vector.broadcast %cst_454 : f32 to vector<2x32xf32>
    %1736 = arith.subf %1735, %1727 : vector<2x32xf32>
    %1737 = arith.mulf %1736, %1734 : vector<2x32xf32>
    %1738 = arith.mulf %1727, %1679 : vector<2x32xf32>
    %1739 = arith.addf %1737, %1738 : vector<2x32xf32>
    %c32_455 = arith.constant 32 : index
    %c0_456 = arith.constant 0 : index
    %1740 = vector.load %arg8[%c32_455, %c0_456] : memref<128x96xf32, #tpu.memory_space<vmem>>, vector<2x96xf32>
    %1741 = vector.extract_strided_slice %1740 {offsets = [0, 0], sizes = [2, 32], strides = [1, 1]} : vector<2x96xf32> to vector<2x32xf32>
    %1742 = vector.extract_strided_slice %1710 {offsets = [0, 0], sizes = [2, 32], strides = [1, 1]} : vector<2x96xf32> to vector<2x32xf32>
    %1743 = arith.addf %1741, %1742 : vector<2x32xf32>
    %1744 = arith.negf %1743 : vector<2x32xf32>
    %1745 = math.exp %1744 : vector<2x32xf32>
    %cst_457 = arith.constant 1.000000e+00 : f32
    %1746 = vector.broadcast %cst_457 : f32 to vector<2x32xf32>
    %1747 = arith.addf %1746, %1745 : vector<2x32xf32>
    %1748 = arith.divf %1746, %1747 : vector<2x32xf32>
    %1749 = vector.extract_strided_slice %1740 {offsets = [0, 32], sizes = [2, 32], strides = [1, 1]} : vector<2x96xf32> to vector<2x32xf32>
    %1750 = vector.extract_strided_slice %1710 {offsets = [0, 32], sizes = [2, 32], strides = [1, 1]} : vector<2x96xf32> to vector<2x32xf32>
    %1751 = arith.addf %1749, %1750 : vector<2x32xf32>
    %1752 = arith.negf %1751 : vector<2x32xf32>
    %1753 = math.exp %1752 : vector<2x32xf32>
    %cst_458 = arith.constant 1.000000e+00 : f32
    %1754 = vector.broadcast %cst_458 : f32 to vector<2x32xf32>
    %1755 = arith.addf %1754, %1753 : vector<2x32xf32>
    %1756 = arith.divf %1754, %1755 : vector<2x32xf32>
    %1757 = vector.extract_strided_slice %1740 {offsets = [0, 64], sizes = [2, 32], strides = [1, 1]} : vector<2x96xf32> to vector<2x32xf32>
    %1758 = vector.extract_strided_slice %1710 {offsets = [0, 64], sizes = [2, 32], strides = [1, 1]} : vector<2x96xf32> to vector<2x32xf32>
    %1759 = vector.broadcast %1048 : vector<1x32xf32> to vector<2x32xf32>
    %1760 = arith.addf %1758, %1759 : vector<2x32xf32>
    %1761 = arith.mulf %1748, %1760 : vector<2x32xf32>
    %1762 = arith.addf %1757, %1761 : vector<2x32xf32>
    %1763 = math.tanh %1762 : vector<2x32xf32>
    %cst_459 = arith.constant 1.000000e+00 : f32
    %1764 = vector.broadcast %cst_459 : f32 to vector<2x32xf32>
    %1765 = arith.subf %1764, %1756 : vector<2x32xf32>
    %1766 = arith.mulf %1765, %1763 : vector<2x32xf32>
    %1767 = arith.mulf %1756, %1708 : vector<2x32xf32>
    %1768 = arith.addf %1766, %1767 : vector<2x32xf32>
    %cst_460 = arith.constant dense<0.000000e+00> : vector<2x96xf32>
    %1769 = tpu.matmul %1739, %1042, %cst_460 {dimension_numbers = #tpu.dot_dimension_numbers<[1], [0], [0], [1], [0, 0, 1, 1], [], []>} : vector<2x32xf32>, vector<32x96xf32>, vector<2x96xf32> -> vector<2x96xf32>
    %cst_461 = arith.constant dense<0.000000e+00> : vector<2x96xf32>
    %1770 = tpu.matmul %1768, %1044, %cst_461 {dimension_numbers = #tpu.dot_dimension_numbers<[1], [0], [0], [1], [0, 0, 1, 1], [], []>} : vector<2x32xf32>, vector<32x96xf32>, vector<2x96xf32> -> vector<2x96xf32>
    %c96_462 = arith.constant 96 : index
    %c0_463 = arith.constant 0 : index
    %1771 = vector.load %arg7[%c96_462, %c0_463] : memref<128x96xf32, #tpu.memory_space<vmem>>, vector<2x96xf32>
    %1772 = vector.extract_strided_slice %1771 {offsets = [0, 0], sizes = [2, 32], strides = [1, 1]} : vector<2x96xf32> to vector<2x32xf32>
    %1773 = vector.extract_strided_slice %1769 {offsets = [0, 0], sizes = [2, 32], strides = [1, 1]} : vector<2x96xf32> to vector<2x32xf32>
    %1774 = arith.addf %1772, %1773 : vector<2x32xf32>
    %1775 = arith.negf %1774 : vector<2x32xf32>
    %1776 = math.exp %1775 : vector<2x32xf32>
    %cst_464 = arith.constant 1.000000e+00 : f32
    %1777 = vector.broadcast %cst_464 : f32 to vector<2x32xf32>
    %1778 = arith.addf %1777, %1776 : vector<2x32xf32>
    %1779 = arith.divf %1777, %1778 : vector<2x32xf32>
    %1780 = vector.extract_strided_slice %1771 {offsets = [0, 32], sizes = [2, 32], strides = [1, 1]} : vector<2x96xf32> to vector<2x32xf32>
    %1781 = vector.extract_strided_slice %1769 {offsets = [0, 32], sizes = [2, 32], strides = [1, 1]} : vector<2x96xf32> to vector<2x32xf32>
    %1782 = arith.addf %1780, %1781 : vector<2x32xf32>
    %1783 = arith.negf %1782 : vector<2x32xf32>
    %1784 = math.exp %1783 : vector<2x32xf32>
    %cst_465 = arith.constant 1.000000e+00 : f32
    %1785 = vector.broadcast %cst_465 : f32 to vector<2x32xf32>
    %1786 = arith.addf %1785, %1784 : vector<2x32xf32>
    %1787 = arith.divf %1785, %1786 : vector<2x32xf32>
    %1788 = vector.extract_strided_slice %1771 {offsets = [0, 64], sizes = [2, 32], strides = [1, 1]} : vector<2x96xf32> to vector<2x32xf32>
    %1789 = vector.extract_strided_slice %1769 {offsets = [0, 64], sizes = [2, 32], strides = [1, 1]} : vector<2x96xf32> to vector<2x32xf32>
    %1790 = vector.broadcast %1046 : vector<1x32xf32> to vector<2x32xf32>
    %1791 = arith.addf %1789, %1790 : vector<2x32xf32>
    %1792 = arith.mulf %1779, %1791 : vector<2x32xf32>
    %1793 = arith.addf %1788, %1792 : vector<2x32xf32>
    %1794 = math.tanh %1793 : vector<2x32xf32>
    %cst_466 = arith.constant 1.000000e+00 : f32
    %1795 = vector.broadcast %cst_466 : f32 to vector<2x32xf32>
    %1796 = arith.subf %1795, %1787 : vector<2x32xf32>
    %1797 = arith.mulf %1796, %1794 : vector<2x32xf32>
    %1798 = arith.mulf %1787, %1739 : vector<2x32xf32>
    %1799 = arith.addf %1797, %1798 : vector<2x32xf32>
    %c24_467 = arith.constant 24 : index
    %c0_468 = arith.constant 0 : index
    %1800 = vector.load %arg8[%c24_467, %c0_468] : memref<128x96xf32, #tpu.memory_space<vmem>>, vector<2x96xf32>
    %1801 = vector.extract_strided_slice %1800 {offsets = [0, 0], sizes = [2, 32], strides = [1, 1]} : vector<2x96xf32> to vector<2x32xf32>
    %1802 = vector.extract_strided_slice %1770 {offsets = [0, 0], sizes = [2, 32], strides = [1, 1]} : vector<2x96xf32> to vector<2x32xf32>
    %1803 = arith.addf %1801, %1802 : vector<2x32xf32>
    %1804 = arith.negf %1803 : vector<2x32xf32>
    %1805 = math.exp %1804 : vector<2x32xf32>
    %cst_469 = arith.constant 1.000000e+00 : f32
    %1806 = vector.broadcast %cst_469 : f32 to vector<2x32xf32>
    %1807 = arith.addf %1806, %1805 : vector<2x32xf32>
    %1808 = arith.divf %1806, %1807 : vector<2x32xf32>
    %1809 = vector.extract_strided_slice %1800 {offsets = [0, 32], sizes = [2, 32], strides = [1, 1]} : vector<2x96xf32> to vector<2x32xf32>
    %1810 = vector.extract_strided_slice %1770 {offsets = [0, 32], sizes = [2, 32], strides = [1, 1]} : vector<2x96xf32> to vector<2x32xf32>
    %1811 = arith.addf %1809, %1810 : vector<2x32xf32>
    %1812 = arith.negf %1811 : vector<2x32xf32>
    %1813 = math.exp %1812 : vector<2x32xf32>
    %cst_470 = arith.constant 1.000000e+00 : f32
    %1814 = vector.broadcast %cst_470 : f32 to vector<2x32xf32>
    %1815 = arith.addf %1814, %1813 : vector<2x32xf32>
    %1816 = arith.divf %1814, %1815 : vector<2x32xf32>
    %1817 = vector.extract_strided_slice %1800 {offsets = [0, 64], sizes = [2, 32], strides = [1, 1]} : vector<2x96xf32> to vector<2x32xf32>
    %1818 = vector.extract_strided_slice %1770 {offsets = [0, 64], sizes = [2, 32], strides = [1, 1]} : vector<2x96xf32> to vector<2x32xf32>
    %1819 = vector.broadcast %1048 : vector<1x32xf32> to vector<2x32xf32>
    %1820 = arith.addf %1818, %1819 : vector<2x32xf32>
    %1821 = arith.mulf %1808, %1820 : vector<2x32xf32>
    %1822 = arith.addf %1817, %1821 : vector<2x32xf32>
    %1823 = math.tanh %1822 : vector<2x32xf32>
    %cst_471 = arith.constant 1.000000e+00 : f32
    %1824 = vector.broadcast %cst_471 : f32 to vector<2x32xf32>
    %1825 = arith.subf %1824, %1816 : vector<2x32xf32>
    %1826 = arith.mulf %1825, %1823 : vector<2x32xf32>
    %1827 = arith.mulf %1816, %1768 : vector<2x32xf32>
    %1828 = arith.addf %1826, %1827 : vector<2x32xf32>
    %cst_472 = arith.constant dense<0.000000e+00> : vector<2x96xf32>
    %1829 = tpu.matmul %1799, %1042, %cst_472 {dimension_numbers = #tpu.dot_dimension_numbers<[1], [0], [0], [1], [0, 0, 1, 1], [], []>} : vector<2x32xf32>, vector<32x96xf32>, vector<2x96xf32> -> vector<2x96xf32>
    %cst_473 = arith.constant dense<0.000000e+00> : vector<2x96xf32>
    %1830 = tpu.matmul %1828, %1044, %cst_473 {dimension_numbers = #tpu.dot_dimension_numbers<[1], [0], [0], [1], [0, 0, 1, 1], [], []>} : vector<2x32xf32>, vector<32x96xf32>, vector<2x96xf32> -> vector<2x96xf32>
    %c104_474 = arith.constant 104 : index
    %c0_475 = arith.constant 0 : index
    %1831 = vector.load %arg7[%c104_474, %c0_475] : memref<128x96xf32, #tpu.memory_space<vmem>>, vector<2x96xf32>
    %1832 = vector.extract_strided_slice %1831 {offsets = [0, 0], sizes = [2, 32], strides = [1, 1]} : vector<2x96xf32> to vector<2x32xf32>
    %1833 = vector.extract_strided_slice %1829 {offsets = [0, 0], sizes = [2, 32], strides = [1, 1]} : vector<2x96xf32> to vector<2x32xf32>
    %1834 = arith.addf %1832, %1833 : vector<2x32xf32>
    %1835 = arith.negf %1834 : vector<2x32xf32>
    %1836 = math.exp %1835 : vector<2x32xf32>
    %cst_476 = arith.constant 1.000000e+00 : f32
    %1837 = vector.broadcast %cst_476 : f32 to vector<2x32xf32>
    %1838 = arith.addf %1837, %1836 : vector<2x32xf32>
    %1839 = arith.divf %1837, %1838 : vector<2x32xf32>
    %1840 = vector.extract_strided_slice %1831 {offsets = [0, 32], sizes = [2, 32], strides = [1, 1]} : vector<2x96xf32> to vector<2x32xf32>
    %1841 = vector.extract_strided_slice %1829 {offsets = [0, 32], sizes = [2, 32], strides = [1, 1]} : vector<2x96xf32> to vector<2x32xf32>
    %1842 = arith.addf %1840, %1841 : vector<2x32xf32>
    %1843 = arith.negf %1842 : vector<2x32xf32>
    %1844 = math.exp %1843 : vector<2x32xf32>
    %cst_477 = arith.constant 1.000000e+00 : f32
    %1845 = vector.broadcast %cst_477 : f32 to vector<2x32xf32>
    %1846 = arith.addf %1845, %1844 : vector<2x32xf32>
    %1847 = arith.divf %1845, %1846 : vector<2x32xf32>
    %1848 = vector.extract_strided_slice %1831 {offsets = [0, 64], sizes = [2, 32], strides = [1, 1]} : vector<2x96xf32> to vector<2x32xf32>
    %1849 = vector.extract_strided_slice %1829 {offsets = [0, 64], sizes = [2, 32], strides = [1, 1]} : vector<2x96xf32> to vector<2x32xf32>
    %1850 = vector.broadcast %1046 : vector<1x32xf32> to vector<2x32xf32>
    %1851 = arith.addf %1849, %1850 : vector<2x32xf32>
    %1852 = arith.mulf %1839, %1851 : vector<2x32xf32>
    %1853 = arith.addf %1848, %1852 : vector<2x32xf32>
    %1854 = math.tanh %1853 : vector<2x32xf32>
    %cst_478 = arith.constant 1.000000e+00 : f32
    %1855 = vector.broadcast %cst_478 : f32 to vector<2x32xf32>
    %1856 = arith.subf %1855, %1847 : vector<2x32xf32>
    %1857 = arith.mulf %1856, %1854 : vector<2x32xf32>
    %1858 = arith.mulf %1847, %1799 : vector<2x32xf32>
    %1859 = arith.addf %1857, %1858 : vector<2x32xf32>
    %c16_479 = arith.constant 16 : index
    %c0_480 = arith.constant 0 : index
    %1860 = vector.load %arg8[%c16_479, %c0_480] : memref<128x96xf32, #tpu.memory_space<vmem>>, vector<2x96xf32>
    %1861 = vector.extract_strided_slice %1860 {offsets = [0, 0], sizes = [2, 32], strides = [1, 1]} : vector<2x96xf32> to vector<2x32xf32>
    %1862 = vector.extract_strided_slice %1830 {offsets = [0, 0], sizes = [2, 32], strides = [1, 1]} : vector<2x96xf32> to vector<2x32xf32>
    %1863 = arith.addf %1861, %1862 : vector<2x32xf32>
    %1864 = arith.negf %1863 : vector<2x32xf32>
    %1865 = math.exp %1864 : vector<2x32xf32>
    %cst_481 = arith.constant 1.000000e+00 : f32
    %1866 = vector.broadcast %cst_481 : f32 to vector<2x32xf32>
    %1867 = arith.addf %1866, %1865 : vector<2x32xf32>
    %1868 = arith.divf %1866, %1867 : vector<2x32xf32>
    %1869 = vector.extract_strided_slice %1860 {offsets = [0, 32], sizes = [2, 32], strides = [1, 1]} : vector<2x96xf32> to vector<2x32xf32>
    %1870 = vector.extract_strided_slice %1830 {offsets = [0, 32], sizes = [2, 32], strides = [1, 1]} : vector<2x96xf32> to vector<2x32xf32>
    %1871 = arith.addf %1869, %1870 : vector<2x32xf32>
    %1872 = arith.negf %1871 : vector<2x32xf32>
    %1873 = math.exp %1872 : vector<2x32xf32>
    %cst_482 = arith.constant 1.000000e+00 : f32
    %1874 = vector.broadcast %cst_482 : f32 to vector<2x32xf32>
    %1875 = arith.addf %1874, %1873 : vector<2x32xf32>
    %1876 = arith.divf %1874, %1875 : vector<2x32xf32>
    %1877 = vector.extract_strided_slice %1860 {offsets = [0, 64], sizes = [2, 32], strides = [1, 1]} : vector<2x96xf32> to vector<2x32xf32>
    %1878 = vector.extract_strided_slice %1830 {offsets = [0, 64], sizes = [2, 32], strides = [1, 1]} : vector<2x96xf32> to vector<2x32xf32>
    %1879 = vector.broadcast %1048 : vector<1x32xf32> to vector<2x32xf32>
    %1880 = arith.addf %1878, %1879 : vector<2x32xf32>
    %1881 = arith.mulf %1868, %1880 : vector<2x32xf32>
    %1882 = arith.addf %1877, %1881 : vector<2x32xf32>
    %1883 = math.tanh %1882 : vector<2x32xf32>
    %cst_483 = arith.constant 1.000000e+00 : f32
    %1884 = vector.broadcast %cst_483 : f32 to vector<2x32xf32>
    %1885 = arith.subf %1884, %1876 : vector<2x32xf32>
    %1886 = arith.mulf %1885, %1883 : vector<2x32xf32>
    %1887 = arith.mulf %1876, %1828 : vector<2x32xf32>
    %1888 = arith.addf %1886, %1887 : vector<2x32xf32>
    %cst_484 = arith.constant dense<0.000000e+00> : vector<2x96xf32>
    %1889 = tpu.matmul %1859, %1042, %cst_484 {dimension_numbers = #tpu.dot_dimension_numbers<[1], [0], [0], [1], [0, 0, 1, 1], [], []>} : vector<2x32xf32>, vector<32x96xf32>, vector<2x96xf32> -> vector<2x96xf32>
    %cst_485 = arith.constant dense<0.000000e+00> : vector<2x96xf32>
    %1890 = tpu.matmul %1888, %1044, %cst_485 {dimension_numbers = #tpu.dot_dimension_numbers<[1], [0], [0], [1], [0, 0, 1, 1], [], []>} : vector<2x32xf32>, vector<32x96xf32>, vector<2x96xf32> -> vector<2x96xf32>
    %c112_486 = arith.constant 112 : index
    %c0_487 = arith.constant 0 : index
    %1891 = vector.load %arg7[%c112_486, %c0_487] : memref<128x96xf32, #tpu.memory_space<vmem>>, vector<2x96xf32>
    %1892 = vector.extract_strided_slice %1891 {offsets = [0, 0], sizes = [2, 32], strides = [1, 1]} : vector<2x96xf32> to vector<2x32xf32>
    %1893 = vector.extract_strided_slice %1889 {offsets = [0, 0], sizes = [2, 32], strides = [1, 1]} : vector<2x96xf32> to vector<2x32xf32>
    %1894 = arith.addf %1892, %1893 : vector<2x32xf32>
    %1895 = arith.negf %1894 : vector<2x32xf32>
    %1896 = math.exp %1895 : vector<2x32xf32>
    %cst_488 = arith.constant 1.000000e+00 : f32
    %1897 = vector.broadcast %cst_488 : f32 to vector<2x32xf32>
    %1898 = arith.addf %1897, %1896 : vector<2x32xf32>
    %1899 = arith.divf %1897, %1898 : vector<2x32xf32>
    %1900 = vector.extract_strided_slice %1891 {offsets = [0, 32], sizes = [2, 32], strides = [1, 1]} : vector<2x96xf32> to vector<2x32xf32>
    %1901 = vector.extract_strided_slice %1889 {offsets = [0, 32], sizes = [2, 32], strides = [1, 1]} : vector<2x96xf32> to vector<2x32xf32>
    %1902 = arith.addf %1900, %1901 : vector<2x32xf32>
    %1903 = arith.negf %1902 : vector<2x32xf32>
    %1904 = math.exp %1903 : vector<2x32xf32>
    %cst_489 = arith.constant 1.000000e+00 : f32
    %1905 = vector.broadcast %cst_489 : f32 to vector<2x32xf32>
    %1906 = arith.addf %1905, %1904 : vector<2x32xf32>
    %1907 = arith.divf %1905, %1906 : vector<2x32xf32>
    %1908 = vector.extract_strided_slice %1891 {offsets = [0, 64], sizes = [2, 32], strides = [1, 1]} : vector<2x96xf32> to vector<2x32xf32>
    %1909 = vector.extract_strided_slice %1889 {offsets = [0, 64], sizes = [2, 32], strides = [1, 1]} : vector<2x96xf32> to vector<2x32xf32>
    %1910 = vector.broadcast %1046 : vector<1x32xf32> to vector<2x32xf32>
    %1911 = arith.addf %1909, %1910 : vector<2x32xf32>
    %1912 = arith.mulf %1899, %1911 : vector<2x32xf32>
    %1913 = arith.addf %1908, %1912 : vector<2x32xf32>
    %1914 = math.tanh %1913 : vector<2x32xf32>
    %cst_490 = arith.constant 1.000000e+00 : f32
    %1915 = vector.broadcast %cst_490 : f32 to vector<2x32xf32>
    %1916 = arith.subf %1915, %1907 : vector<2x32xf32>
    %1917 = arith.mulf %1916, %1914 : vector<2x32xf32>
    %1918 = arith.mulf %1907, %1859 : vector<2x32xf32>
    %1919 = arith.addf %1917, %1918 : vector<2x32xf32>
    %c8_491 = arith.constant 8 : index
    %c0_492 = arith.constant 0 : index
    %1920 = vector.load %arg8[%c8_491, %c0_492] : memref<128x96xf32, #tpu.memory_space<vmem>>, vector<2x96xf32>
    %1921 = vector.extract_strided_slice %1920 {offsets = [0, 0], sizes = [2, 32], strides = [1, 1]} : vector<2x96xf32> to vector<2x32xf32>
    %1922 = vector.extract_strided_slice %1890 {offsets = [0, 0], sizes = [2, 32], strides = [1, 1]} : vector<2x96xf32> to vector<2x32xf32>
    %1923 = arith.addf %1921, %1922 : vector<2x32xf32>
    %1924 = arith.negf %1923 : vector<2x32xf32>
    %1925 = math.exp %1924 : vector<2x32xf32>
    %cst_493 = arith.constant 1.000000e+00 : f32
    %1926 = vector.broadcast %cst_493 : f32 to vector<2x32xf32>
    %1927 = arith.addf %1926, %1925 : vector<2x32xf32>
    %1928 = arith.divf %1926, %1927 : vector<2x32xf32>
    %1929 = vector.extract_strided_slice %1920 {offsets = [0, 32], sizes = [2, 32], strides = [1, 1]} : vector<2x96xf32> to vector<2x32xf32>
    %1930 = vector.extract_strided_slice %1890 {offsets = [0, 32], sizes = [2, 32], strides = [1, 1]} : vector<2x96xf32> to vector<2x32xf32>
    %1931 = arith.addf %1929, %1930 : vector<2x32xf32>
    %1932 = arith.negf %1931 : vector<2x32xf32>
    %1933 = math.exp %1932 : vector<2x32xf32>
    %cst_494 = arith.constant 1.000000e+00 : f32
    %1934 = vector.broadcast %cst_494 : f32 to vector<2x32xf32>
    %1935 = arith.addf %1934, %1933 : vector<2x32xf32>
    %1936 = arith.divf %1934, %1935 : vector<2x32xf32>
    %1937 = vector.extract_strided_slice %1920 {offsets = [0, 64], sizes = [2, 32], strides = [1, 1]} : vector<2x96xf32> to vector<2x32xf32>
    %1938 = vector.extract_strided_slice %1890 {offsets = [0, 64], sizes = [2, 32], strides = [1, 1]} : vector<2x96xf32> to vector<2x32xf32>
    %1939 = vector.broadcast %1048 : vector<1x32xf32> to vector<2x32xf32>
    %1940 = arith.addf %1938, %1939 : vector<2x32xf32>
    %1941 = arith.mulf %1928, %1940 : vector<2x32xf32>
    %1942 = arith.addf %1937, %1941 : vector<2x32xf32>
    %1943 = math.tanh %1942 : vector<2x32xf32>
    %cst_495 = arith.constant 1.000000e+00 : f32
    %1944 = vector.broadcast %cst_495 : f32 to vector<2x32xf32>
    %1945 = arith.subf %1944, %1936 : vector<2x32xf32>
    %1946 = arith.mulf %1945, %1943 : vector<2x32xf32>
    %1947 = arith.mulf %1936, %1888 : vector<2x32xf32>
    %1948 = arith.addf %1946, %1947 : vector<2x32xf32>
    %cst_496 = arith.constant dense<0.000000e+00> : vector<2x96xf32>
    %1949 = tpu.matmul %1919, %1042, %cst_496 {dimension_numbers = #tpu.dot_dimension_numbers<[1], [0], [0], [1], [0, 0, 1, 1], [], []>} : vector<2x32xf32>, vector<32x96xf32>, vector<2x96xf32> -> vector<2x96xf32>
    %cst_497 = arith.constant dense<0.000000e+00> : vector<2x96xf32>
    %1950 = tpu.matmul %1948, %1044, %cst_497 {dimension_numbers = #tpu.dot_dimension_numbers<[1], [0], [0], [1], [0, 0, 1, 1], [], []>} : vector<2x32xf32>, vector<32x96xf32>, vector<2x96xf32> -> vector<2x96xf32>
    %c120_498 = arith.constant 120 : index
    %c0_499 = arith.constant 0 : index
    %1951 = vector.load %arg7[%c120_498, %c0_499] : memref<128x96xf32, #tpu.memory_space<vmem>>, vector<2x96xf32>
    %1952 = vector.extract_strided_slice %1951 {offsets = [0, 0], sizes = [2, 32], strides = [1, 1]} : vector<2x96xf32> to vector<2x32xf32>
    %1953 = vector.extract_strided_slice %1949 {offsets = [0, 0], sizes = [2, 32], strides = [1, 1]} : vector<2x96xf32> to vector<2x32xf32>
    %1954 = arith.addf %1952, %1953 : vector<2x32xf32>
    %1955 = arith.negf %1954 : vector<2x32xf32>
    %1956 = math.exp %1955 : vector<2x32xf32>
    %cst_500 = arith.constant 1.000000e+00 : f32
    %1957 = vector.broadcast %cst_500 : f32 to vector<2x32xf32>
    %1958 = arith.addf %1957, %1956 : vector<2x32xf32>
    %1959 = arith.divf %1957, %1958 : vector<2x32xf32>
    %1960 = vector.extract_strided_slice %1951 {offsets = [0, 32], sizes = [2, 32], strides = [1, 1]} : vector<2x96xf32> to vector<2x32xf32>
    %1961 = vector.extract_strided_slice %1949 {offsets = [0, 32], sizes = [2, 32], strides = [1, 1]} : vector<2x96xf32> to vector<2x32xf32>
    %1962 = arith.addf %1960, %1961 : vector<2x32xf32>
    %1963 = arith.negf %1962 : vector<2x32xf32>
    %1964 = math.exp %1963 : vector<2x32xf32>
    %cst_501 = arith.constant 1.000000e+00 : f32
    %1965 = vector.broadcast %cst_501 : f32 to vector<2x32xf32>
    %1966 = arith.addf %1965, %1964 : vector<2x32xf32>
    %1967 = arith.divf %1965, %1966 : vector<2x32xf32>
    %1968 = vector.extract_strided_slice %1951 {offsets = [0, 64], sizes = [2, 32], strides = [1, 1]} : vector<2x96xf32> to vector<2x32xf32>
    %1969 = vector.extract_strided_slice %1949 {offsets = [0, 64], sizes = [2, 32], strides = [1, 1]} : vector<2x96xf32> to vector<2x32xf32>
    %1970 = vector.broadcast %1046 : vector<1x32xf32> to vector<2x32xf32>
    %1971 = arith.addf %1969, %1970 : vector<2x32xf32>
    %1972 = arith.mulf %1959, %1971 : vector<2x32xf32>
    %1973 = arith.addf %1968, %1972 : vector<2x32xf32>
    %1974 = math.tanh %1973 : vector<2x32xf32>
    %cst_502 = arith.constant 1.000000e+00 : f32
    %1975 = vector.broadcast %cst_502 : f32 to vector<2x32xf32>
    %1976 = arith.subf %1975, %1967 : vector<2x32xf32>
    %1977 = arith.mulf %1976, %1974 : vector<2x32xf32>
    %1978 = arith.mulf %1967, %1919 : vector<2x32xf32>
    %1979 = arith.addf %1977, %1978 : vector<2x32xf32>
    %c0_503 = arith.constant 0 : index
    %c0_504 = arith.constant 0 : index
    %1980 = vector.load %arg8[%c0_503, %c0_504] : memref<128x96xf32, #tpu.memory_space<vmem>>, vector<2x96xf32>
    %1981 = vector.extract_strided_slice %1980 {offsets = [0, 0], sizes = [2, 32], strides = [1, 1]} : vector<2x96xf32> to vector<2x32xf32>
    %1982 = vector.extract_strided_slice %1950 {offsets = [0, 0], sizes = [2, 32], strides = [1, 1]} : vector<2x96xf32> to vector<2x32xf32>
    %1983 = arith.addf %1981, %1982 : vector<2x32xf32>
    %1984 = arith.negf %1983 : vector<2x32xf32>
    %1985 = math.exp %1984 : vector<2x32xf32>
    %cst_505 = arith.constant 1.000000e+00 : f32
    %1986 = vector.broadcast %cst_505 : f32 to vector<2x32xf32>
    %1987 = arith.addf %1986, %1985 : vector<2x32xf32>
    %1988 = arith.divf %1986, %1987 : vector<2x32xf32>
    %1989 = vector.extract_strided_slice %1980 {offsets = [0, 32], sizes = [2, 32], strides = [1, 1]} : vector<2x96xf32> to vector<2x32xf32>
    %1990 = vector.extract_strided_slice %1950 {offsets = [0, 32], sizes = [2, 32], strides = [1, 1]} : vector<2x96xf32> to vector<2x32xf32>
    %1991 = arith.addf %1989, %1990 : vector<2x32xf32>
    %1992 = arith.negf %1991 : vector<2x32xf32>
    %1993 = math.exp %1992 : vector<2x32xf32>
    %cst_506 = arith.constant 1.000000e+00 : f32
    %1994 = vector.broadcast %cst_506 : f32 to vector<2x32xf32>
    %1995 = arith.addf %1994, %1993 : vector<2x32xf32>
    %1996 = arith.divf %1994, %1995 : vector<2x32xf32>
    %1997 = vector.extract_strided_slice %1980 {offsets = [0, 64], sizes = [2, 32], strides = [1, 1]} : vector<2x96xf32> to vector<2x32xf32>
    %1998 = vector.extract_strided_slice %1950 {offsets = [0, 64], sizes = [2, 32], strides = [1, 1]} : vector<2x96xf32> to vector<2x32xf32>
    %1999 = vector.broadcast %1048 : vector<1x32xf32> to vector<2x32xf32>
    %2000 = arith.addf %1998, %1999 : vector<2x32xf32>
    %2001 = arith.mulf %1988, %2000 : vector<2x32xf32>
    %2002 = arith.addf %1997, %2001 : vector<2x32xf32>
    %2003 = math.tanh %2002 : vector<2x32xf32>
    %cst_507 = arith.constant 1.000000e+00 : f32
    %2004 = vector.broadcast %cst_507 : f32 to vector<2x32xf32>
    %2005 = arith.subf %2004, %1996 : vector<2x32xf32>
    %2006 = arith.mulf %2005, %2003 : vector<2x32xf32>
    %2007 = arith.mulf %1996, %1948 : vector<2x32xf32>
    %2008 = arith.addf %2006, %2007 : vector<2x32xf32>
    %c0_508 = arith.constant 0 : index
    %c0_509 = arith.constant 0 : index
    %2009 = vector.load %arg6[%c0_508, %c0_509] : memref<2x64xf32, #tpu.memory_space<vmem>>, vector<2x32xf32>
    tpu.vector_store %arg6[%c0_508, %c0_509], %2008 {strides = array<i32>} : memref<2x64xf32, #tpu.memory_space<vmem>>, vector<2x32xf32>,
    %c0_510 = arith.constant 0 : index
    %c32_511 = arith.constant 32 : index
    %2010 = vector.load %arg6[%c0_510, %c32_511] : memref<2x64xf32, #tpu.memory_space<vmem>>, vector<2x32xf32>
    tpu.vector_store %arg6[%c0_510, %c32_511], %1979 {strides = array<i32>} : memref<2x64xf32, #tpu.memory_space<vmem>>, vector<2x32xf32>,
    return
  }
}

</mosaic_0001>

<bundles_post_ra>
// kernel: gru_block_forward.1
= control target key start
LH: loop header
LB: loop body
LE: loop exit
PB: predicated region body
PF: predicated region fallthrough
CT: control target
= control target key end

     0   :  { %11 = vsyncpa [#allocation6], 0  ;;  %s11066_s0 = inlined_call_operand.vmem [shape: f32[128,1], index: 0, kind: input, shape index: {}]   ;;  %s11067_s1 = inlined_call_operand.vmem [shape: f32[2,1,96], index: 1, kind: input, shape index: {}]   ;;  %s11068_s2 = inlined_call_operand.vmem [shape: f32[2,64,96], index: 2, kind: input, shape index: {}]   ;;  %s11069_s3 = inlined_call_operand.hbm [shape: f32[2,2,32,96], index: 3, kind: input, shape index: {}]   ;;  %s11070_s4 = inlined_call_operand.vmem [shape: f32[2,2,1,96], index: 4, kind: input, shape index: {}]   ;;  %s11071_s5 = inlined_call_operand.vmem [shape: f32[2,2,1,32], index: 5, kind: input, shape index: {}]   ;;  %s11072_s6 = inlined_call_operand.hbm [shape: f32[2,64], index: 6, kind: output, shape index: {}]  }
   0x1   :  { %12 = vsyncpa [#allocation7], 0  ;;  %s9213_s21 = smov [#allocation5]  }
   0x2   :  { %s24_s22 = sshll.u32 %s9213_s21, 4  ;;  %s25_s22 = int_to_ptr.vmem [resolvable:$true] %s24_s22 }
   0x3   :  { %s9177_s23 = scalar_lea.vmem %s25_s22, 2048  ;;  %p9182_p1 = scmp.lt.s32.totalorder %s25_s22, %s25_s22 }
   0x4   :  { %p9178_p0 = scmp.ne.s32.totalorder %s25_s22, %s9177_s23  ;;  %p9183_p2 = scmp.lt.s32.totalorder %s9177_s23, %s9177_s23 }
   0x6   :  { %p9184_p3 = por %p9183_p2, %p9182_p1 }
   0x8   :  { %p9185_p4 = pnand %p9184_p3, %p9178_p0 }
   0xa   :  { %9188 = shalt.err (!%p9185_p4)
}
   0xb   :  { %s9214_s24 = smov 128   ;;  %s9215_s25 = smov 8  }
   0xc   :  { %30 = dma.hbm_to_vmem [thread:$0]  %s11069_s3, 2048, %s25_s22, [#allocation6], %s9214_s24, %s9214_s24, %s9215_s25  }
   0xd   :  { %9209 = dma.done.wait [#allocation6], 2048  }
   0xe   :  { %9210 = vsyncadd [#allocation6], 4294965248  ;;  %v9216_v0 = vmov 0.0   ;;  %vm9217_vm0 = vmmov 0   ;;  %v9218_v1 = vmov 0   ;;  %v9266_v2 = vld [vmem:[#allocation5 + $0x18] sm:$0xff] }
   0xf   :  { %7954 = vmatprep.subr.mxu0 %v9216_v0  ;;  %7965 = vmatprep.subr.mxu1 %v9216_v0  ;;  %v9268_v3 = vld [vmem:[#allocation5 + $0x38] sm:$0xff]  ;;  %v9270_v4 = vld [vmem:[#allocation5 + $0x10] sm:$0xff]  ;;  %v9278_v6 = vld [vmem:[#allocation5 + $0x8] sm:$0xff]  ;;  %s9219_s7 = smov 64   ;;  %vm180_vm1 = vcmask 785408   ;;  %vm261_vm2 = vcmask 523264  }
  0x10   :  { %7962 = vmatprep.mubr.msk.f32.mxu0 %vm9217_vm0, %v9216_v0  ;;  %7973 = vmatprep.mubr.msk.f32.mxu1 %vm9217_vm0, %v9216_v0  ;;  %v9274_v5 = vld [vmem:[#allocation5 + $0x30] sm:$0xff]  ;;  %v9280_v7 = vld [vmem:[#allocation5 + $0x28] sm:$0xff]  ;;  %v9286_v8 = vld [vmem:[#allocation5] sm:$0xff]  ;;  %262 = vst.msk [vmem:[#allocation4] sm:$0xff] %vm261_vm2, %v9216_v0  ;;  %s9220_s20 = smov 96   ;;  %vm512_vm3 = vcmask 517376  }
  0x11   :  { %8747 = vset.pattern.permute.xlu0 %v9218_v1  ;;  %8748 = vset.pattern.permute.xlu1 %v9218_v1  ;;  %v9288_v9 = vld [vmem:[#allocation5 + $0x20] sm:$0xff]  ;;  %v53_v13 = vld [vmem:[%s11066_s0 + $0x78] sm:$0xff]  ;;  %263 = vst.msk [vmem:[#allocation4 + $0x8] sm:$0xff] %vm261_vm2, %v9216_v0  ;;  %264 = vst.msk [vmem:[#allocation4 + $0x10] sm:$0xff] %vm261_vm2, %v9216_v0  ;;  %vm510_vm4 = vcmask 254976   ;;  %vm290_vm5 = vcmask 261120  }
  0x12   :  { %7955 = vmatpush3.msra.mxu0 %v9266_v2  ;;  %7966 = vmatpush3.msra.mxu1 %v9268_v3  ;;  %v7413_v10 = vld [vmem:[%s11071_s5] ss:$0 sm:$0xff]  ;;  %v7415_v11 = vld [vmem:[%s11071_s5 + $0x1] ss:$0 sm:$0xff]  ;;  %265 = vst.msk [vmem:[#allocation4 + $0x18] sm:$0xff] %vm261_vm2, %v9216_v0  ;;  %266 = vst.msk [vmem:[#allocation4 + $0x20] sm:$0xff] %vm261_vm2, %v9216_v0 }
  0x13   :  { %7956 = vmatprep.subr.mxu0 %v9216_v0  ;;  %7967 = vmatprep.subr.mxu1 %v9216_v0  ;;  %v38_v12 = vld [vmem:[%s11066_s0] sm:$0xff]  ;;  %267 = vst.msk [vmem:[#allocation4 + $0x28] sm:$0xff] %vm261_vm2, %v9216_v0  ;;  %268 = vst.msk [vmem:[#allocation4 + $0x30] sm:$0xff] %vm261_vm2, %v9216_v0 }
  0x14   :  { %7957 = vmatpush3.msra.mxu0 %v9270_v4  ;;  %7968 = vmatpush3.msra.mxu1 %v9274_v5  ;;  %v9341_v16 = vld [vmem:[%s11067_s1] ss:$0 sm:$0xff]  ;;  %v9346_v17 = vld [vmem:[%s11067_s1 + $0x1] ss:$0 sm:$0xff]  ;;  %269 = vst.msk [vmem:[#allocation4 + $0x38] sm:$0xff] %vm261_vm2, %v9216_v0  ;;  %270 = vst.msk [vmem:[#allocation4 + $0x40] sm:$0xff] %vm261_vm2, %v9216_v0 }
  0x15   :  { %7958 = vmatprep.subr.mxu0 %v9216_v0  ;;  %7969 = vmatprep.subr.mxu1 %v9216_v0  ;;  %v9351_v18 = vld [vmem:[%s11070_s4] ss:$0 sm:$0xff]  ;;  %v9356_v19 = vld [vmem:[%s11070_s4 + $0x1] ss:$0 sm:$0xff]  ;;  %271 = vst.msk [vmem:[#allocation4 + $0x48] sm:$0xff] %vm261_vm2, %v9216_v0  ;;  %272 = vst.msk [vmem:[#allocation4 + $0x50] sm:$0xff] %vm261_vm2, %v9216_v0 }
  0x16   :  { %7959 = vmatpush3.msra.mxu0 %v9278_v6  ;;  %7970 = vmatpush3.msra.mxu1 %v9280_v7  ;;  %273 = vst.msk [vmem:[#allocation4 + $0x58] sm:$0xff] %vm261_vm2, %v9216_v0  ;;  %274 = vst.msk [vmem:[#allocation4 + $0x60] sm:$0xff] %vm261_vm2, %v9216_v0 }
  0x17   :  { %7960 = vmatprep.subr.mxu0 %v9216_v0  ;;  %7971 = vmatprep.subr.mxu1 %v9216_v0  ;;  %275 = vst.msk [vmem:[#allocation4 + $0x68] sm:$0xff] %vm261_vm2, %v9216_v0  ;;  %276 = vst.msk [vmem:[#allocation4 + $0x70] sm:$0xff] %vm261_vm2, %v9216_v0 }
  0x18   :  { %7961 = vmatpush3.msra.mxu0 %v9286_v8  ;;  %7972 = vmatpush3.msra.mxu1 %v9288_v9  ;;  %277 = vst.msk [vmem:[#allocation4 + $0x78] sm:$0xff] %vm261_vm2, %v9216_v0 }
  0x19   :  { %7963 = vmatmul.mubr.f32.vlgmr.msra.gmra.mxu0 %v9216_v0  ;;  %7974 = vmatmul.mubr.f32.vlgmr.msra.gmra.mxu1 %v9216_v0 }
  0x1a   :  { %447 = vrot.lane.b32.xlu0 %v7413_v10, %s9219_s7  ;;  %483 = vrot.lane.b32.xlu1 %v7415_v11, %s9219_s7 }
  0x1b   :  { %7976 = vmatprep.subr.mxu0 %v9216_v0  ;;  %7987 = vmatprep.subr.mxu1 %v9216_v0 }
  0x1c   :  { %7977 = vmatpush3.msra.mxu0 %v9266_v2  ;;  %7988 = vmatpush3.msra.mxu1 %v9268_v3 }
  0x1d   :  { %7978 = vmatprep.subr.mxu0 %v9216_v0  ;;  %7989 = vmatprep.subr.mxu1 %v9216_v0 }
  0x1e   :  { %57 = vperm.xlu0 %8747, %v38_v12   ;;  %132 = vperm.xlu1 %8748, %v53_v13   ;;  %v39_v13 = vld [vmem:[%s11066_s0 + $0x8] sm:$0xff] }
  0x1f   :  { %7979 = vmatpush3.msra.mxu0 %v9270_v4  ;;  %7990 = vmatpush3.msra.mxu1 %v9274_v5 }
  0x20   :  { %7980 = vmatprep.subr.mxu0 %v9216_v0  ;;  %7991 = vmatprep.subr.mxu1 %v9216_v0 }
  0x21   :  { %7981 = vmatpush3.msra.mxu0 %v9278_v6  ;;  %7992 = vmatpush3.msra.mxu1 %v9280_v7 }
  0x22   :  { %7982 = vmatprep.subr.mxu0 %v9216_v0  ;;  %7993 = vmatprep.subr.mxu1 %v9216_v0 }
  0x23   :  { %7983 = vmatpush3.msra.mxu0 %v9286_v8  ;;  %7984 = vmatprep.mubr.msk.f32.mxu0 %vm9217_vm0, %v9216_v0 }
  0x24   :  { %7994 = vmatpush3.msra.mxu1 %v9288_v9  ;;  %7995 = vmatprep.mubr.msk.f32.mxu1 %vm9217_vm0, %v9216_v0 }
  0x25   :  { %7998 = vmatprep.subr.mxu0 %v9216_v0  ;;  %8009 = vmatprep.subr.mxu1 %v9216_v0 }
  0x8c   :  { %v9334_v14 = vpop.permute.xlu0 %447  ;;  %v9336_v15 = vpop.permute.xlu1 %483 }
  0x99   :  { %v58_v20 = vpop.permute.xlu0 %57  ;;  %v133_v21 = vpop.permute.xlu1 %132 }
  0x9a   :  { %v141_v22 = vmul.f32 %v9341_v16, %v58_v20  ;;  %v205_v23 = vmul.f32 %v9346_v17, %v58_v20  ;;  %v156_v24 = vmul.f32 %v9341_v16, %v133_v21  ;;  %v220_v25 = vmul.f32 %v9346_v17, %v133_v21  ;;  %v52_v20 = vld [vmem:[%s11066_s0 + $0x70] sm:$0xff] }
  0x9c   :  { %v164_v26 = vadd.f32 %v9351_v18, %v141_v22  ;;  %v229_v27 = vadd.f32 %v9356_v19, %v205_v23  ;;  %v179_v28 = vadd.f32 %v9351_v18, %v156_v24  ;;  %v244_v29 = vadd.f32 %v9356_v19, %v220_v25 }
  0x9e   :  { %181 = vst.msk [vmem:[#allocation2] sm:$0xff] %vm180_vm1, %v164_v26  ;;  %245 = vst.msk [vmem:[#allocation3] sm:$0xff] %vm180_vm1, %v229_v27 }
  0x9f   :  { %196 = vst.msk [vmem:[#allocation2 + $0x78] sm:$0xff] %vm180_vm1, %v179_v28  ;;  %260 = vst.msk [vmem:[#allocation3 + $0x78] sm:$0xff] %vm180_vm1, %v244_v29 }
  0xa5   :  { %v434_v37 = vld [vmem:[#allocation2] sm:$0x3] }
  0xa6   :  { %v470_v36 = vld [vmem:[#allocation3 + $0x78] sm:$0x3] }
  0xd9   :  { %v360_v30 = vpop.f32.mrf.mxu0  ;;  %v430_v31 = vpop.f32.mrf.mxu1 }
  0xda   :  { %v450_v32 = vadd.f32 %v9334_v14, %v360_v30  ;;  %v486_v33 = vadd.f32 %v9336_v15, %v430_v31  ;;  %v471_v38 = vadd.f32 %v470_v36, %v430_v31  ;;  %v435_v39 = vadd.f32 %v434_v37, %v360_v30 }
  0xdb   :  { %v7964_v34 = vpop.f32.mrf.mxu0  ;;  %v7975_v35 = vpop.f32.mrf.mxu1 }
  0xdc   :  { %452 = vrot.lane.b32.xlu1 %v450_v32, %s9219_s7  ;;  %488 = vrot.lane.b32.xlu0 %v486_v33, %s9219_s7  ;;  %v7414_v40 = vmul.f32 -1.442695, %v471_v38  ;;  %v7412_v41 = vmul.f32 -1.442695, %v435_v39 }
  0xde   :  { %8749 = vpow2.f32 %v7414_v40 }
  0xdf   :  { %8751 = vpow2.f32 %v7412_v41 }
  0xeb   :  { %v8750_v42 = vpop.eup %8749 }
  0xec   :  { %v8752_v43 = vpop.eup %8751  ;;  %v475_v44 = vadd.f32 1.0, %v8750_v42 }
  0xed   :  { %v439_v45 = vadd.f32 1.0, %v8752_v43 }
  0xee   :  { %8753 = vrcp.f32 %v475_v44 }
  0xef   :  { %8755 = vrcp.f32 %v439_v45 }
  0xfb   :  { %v8754_v46 = vpop.eup %8753 }
  0xfc   :  { %v8756_v47 = vpop.eup %8755  ;;  %v498_v60 = vsub.f32 1.0, %v8754_v46  ;;  %v504_v1 = vmul.f32 0.0, %v8754_v46 }
  0xfd   :  { %v462_v58 = vsub.f32 1.0, %v8756_v47  ;;  %v468_v61 = vmul.f32 0.0, %v8756_v47 }
 0x14e   :  { %v453_v48 = vpop.permute.xlu1 %452  ;;  %v489_v49 = vpop.permute.xlu0 %488 }
 0x14f   :  { %v455_v50 = vmul.f32 %v8756_v47, %v453_v48  ;;  %v491_v51 = vmul.f32 %v8754_v46, %v489_v49 }
 0x151   :  { %457 = vrot.lane.b32.xlu1 %v455_v50, %s9219_s7  ;;  %493 = vrot.lane.b32.xlu0 %v491_v51, %s9219_s7 }
 0x1c3   :  { %v458_v52 = vpop.permute.xlu1 %457  ;;  %v494_v53 = vpop.permute.xlu0 %493 }
 0x1c4   :  { %v460_v54 = vadd.f32 %v458_v52, %v434_v37  ;;  %v496_v55 = vadd.f32 %v494_v53, %v470_v36 }
 0x1c6   :  { %8757 = vtanh.f32 %v460_v54 }
 0x1c7   :  { %8759 = vtanh.f32 %v496_v55 }
 0x1d3   :  { %v8758_v56 = vpop.eup %8757 }
 0x1d4   :  { %v8760_v57 = vpop.eup %8759  ;;  %464 = vrot.lane.b32.xlu1 %v8758_v56, %s9220_s20 }
 0x1d5   :  { %500 = vrot.lane.b32.xlu0 %v8760_v57, %s9220_s20 }
 0x246   :  { %v465_v59 = vpop.permute.xlu1 %464 }
 0x247   :  { %v467_v62 = vmul.f32 %v465_v59, %v462_v58  ;;  %v501_v63 = vpop.permute.xlu0 %500 }
 0x248   :  { %v503_v10 = vmul.f32 %v501_v63, %v498_v60 }
 0x249   :  { %v9410_v11 = vadd.f32 %v468_v61, %v467_v62 }
 0x24a   :  { %v9412_v12 = vadd.f32 %v504_v1, %v503_v10 }
 0x24b   :  { %507 = vrot.lane.b32.xlu1 %v9410_v11, %s9220_s20 }
 0x24c   :  { %587 = vrot.lane.b32.xlu0 %v9412_v12, %s9220_s20  ;;  %513 = vst.msk [vmem:[#allocation4 + $0x78] sm:$0x3] %vm512_vm3, %v9412_v12 }
 0x24f   :  { %62 = vperm.xlu1 %8748, %v39_v13  }
 0x250   :  { %127 = vperm.xlu0 %8747, %v52_v20  }
 0x2bd   :  { %v508_v21 = vpop.permute.xlu1 %507 }
 0x2be   :  { %511 = vst.msk [vmem:[#allocation4] sm:$0x3] %vm510_vm4, %v508_v21  ;;  %v588_v22 = vpop.permute.xlu0 %587  ;;  %7985 = vmatmul.mubr.msk.f32.vlgmr.msra.gmra.mxu0 %vm290_vm5, %v508_v21 }
 0x2bf   :  { %7996 = vmatmul.mubr.msk.f32.vlgmr.msra.gmra.mxu1 %vm290_vm5, %v588_v22  ;;  %7999 = vmatpush3.msra.mxu0 %v9266_v2 }
 0x2c0   :  { %8010 = vmatpush3.msra.mxu1 %v9268_v3  ;;  %8000 = vmatprep.subr.mxu0 %v9216_v0 }
 0x2c1   :  { %8011 = vmatprep.subr.mxu1 %v9216_v0  ;;  %8001 = vmatpush3.msra.mxu0 %v9270_v4 }
 0x2c2   :  { %8012 = vmatpush3.msra.mxu1 %v9274_v5  ;;  %8002 = vmatprep.subr.mxu0 %v9216_v0 }
 0x2c3   :  { %8013 = vmatprep.subr.mxu1 %v9216_v0  ;;  %8003 = vmatpush3.msra.mxu0 %v9278_v6 }
 0x2c4   :  { %8014 = vmatpush3.msra.mxu1 %v9280_v7  ;;  %8004 = vmatprep.subr.mxu0 %v9216_v0 }
 0x2c5   :  { %8015 = vmatprep.subr.mxu1 %v9216_v0  ;;  %8005 = vmatpush3.msra.mxu0 %v9286_v8 }
 0x2c6   :  { %8006 = vmatprep.mubr.msk.f32.mxu0 %vm9217_vm0, %v9216_v0  ;;  %8016 = vmatpush3.msra.mxu1 %v9288_v9 }
 0x2c7   :  { %8017 = vmatprep.mubr.msk.f32.mxu1 %vm9217_vm0, %v9216_v0  ;;  %8020 = vmatprep.subr.mxu0 %v9216_v0 }
 0x2c8   :  { %8031 = vmatprep.subr.mxu1 %v9216_v0 }
 0x2ca   :  { %v63_v23 = vpop.permute.xlu1 %62 }
 0x2cb   :  { %v142_v24 = vmul.f32 %v9341_v16, %v63_v23  ;;  %v206_v25 = vmul.f32 %v9346_v17, %v63_v23  ;;  %v128_v26 = vpop.permute.xlu0 %127 }
 0x2cc   :  { %v155_v27 = vmul.f32 %v9341_v16, %v128_v26  ;;  %v219_v28 = vmul.f32 %v9346_v17, %v128_v26 }
 0x2cd   :  { %v165_v29 = vadd.f32 %v9351_v18, %v142_v24  ;;  %v230_v30 = vadd.f32 %v9356_v19, %v206_v25  ;;  %v40_v24 = vld [vmem:[%s11066_s0 + $0x10] sm:$0xff] }
 0x2ce   :  { %v178_v31 = vadd.f32 %v9351_v18, %v155_v27  ;;  %v243_v32 = vadd.f32 %v9356_v19, %v219_v28 }
 0x2cf   :  { %182 = vst.msk [vmem:[#allocation2 + $0x8] sm:$0xff] %vm180_vm1, %v165_v29  ;;  %246 = vst.msk [vmem:[#allocation3 + $0x8] sm:$0xff] %vm180_vm1, %v230_v30 }
 0x2d0   :  { %195 = vst.msk [vmem:[#allocation2 + $0x70] sm:$0xff] %vm180_vm1, %v178_v31  ;;  %259 = vst.msk [vmem:[#allocation3 + $0x70] sm:$0xff] %vm180_vm1, %v243_v32 }
 0x2d6   :  { %v661_v39 = vld [vmem:[#allocation2 + $0x8] sm:$0x3] }
 0x2d7   :  { %v689_v41 = vld [vmem:[#allocation3 + $0x70] sm:$0x3] }
 0x37e   :  { %v582_v33 = vpop.f32.mrf.mxu0 }
 0x37f   :  { %v669_v34 = vadd.f32 %v582_v33, %v9334_v14  ;;  %v657_v35 = vpop.f32.mrf.mxu1  ;;  %v662_v40 = vadd.f32 %v661_v39, %v582_v33 }
 0x380   :  { %v697_v36 = vadd.f32 %v657_v35, %v9336_v15  ;;  %v7986_v37 = vpop.f32.mrf.mxu0  ;;  %v690_v42 = vadd.f32 %v689_v41, %v657_v35 }
 0x381   :  { %v7997_v38 = vpop.f32.mrf.mxu1  ;;  %671 = vrot.lane.b32.xlu1 %v669_v34, %s9219_s7  ;;  %v7418_v43 = vmul.f32 -1.442695, %v662_v40 }
 0x382   :  { %699 = vrot.lane.b32.xlu0 %v697_v36, %s9219_s7  ;;  %v7419_v44 = vmul.f32 -1.442695, %v690_v42 }
 0x383   :  { %8761 = vpow2.f32 %v7418_v43 }
 0x384   :  { %8763 = vpow2.f32 %v7419_v44 }
 0x390   :  { %v8762_v45 = vpop.eup %8761 }
 0x391   :  { %v8764_v46 = vpop.eup %8763  ;;  %v666_v47 = vadd.f32 1.0, %v8762_v45 }
 0x392   :  { %v694_v48 = vadd.f32 1.0, %v8764_v46 }
 0x393   :  { %8765 = vrcp.f32 %v666_v47 }
 0x394   :  { %8767 = vrcp.f32 %v694_v48 }
 0x3a0   :  { %v8766_v49 = vpop.eup %8765 }
 0x3a1   :  { %v8768_v51 = vpop.eup %8767  ;;  %v681_v61 = vsub.f32 1.0, %v8766_v49  ;;  %v687_v1 = vmul.f32 %v8766_v49, %v9410_v11  ;;  %v51_v11 = vld [vmem:[%s11066_s0 + $0x68] sm:$0xff] }
 0x3a2   :  { %v709_v63 = vsub.f32 1.0, %v8768_v51  ;;  %v715_v20 = vmul.f32 %v8768_v51, %v9412_v12 }
 0x3f3   :  { %v672_v50 = vpop.permute.xlu1 %671 }
 0x3f4   :  { %v674_v52 = vmul.f32 %v8766_v49, %v672_v50  ;;  %v700_v53 = vpop.permute.xlu0 %699 }
 0x3f5   :  { %v702_v54 = vmul.f32 %v8768_v51, %v700_v53 }
 0x3f6   :  { %676 = vrot.lane.b32.xlu1 %v674_v52, %s9219_s7 }
 0x3f7   :  { %704 = vrot.lane.b32.xlu0 %v702_v54, %s9219_s7 }
 0x468   :  { %v677_v55 = vpop.permute.xlu1 %676 }
 0x469   :  { %v679_v56 = vadd.f32 %v677_v55, %v661_v39  ;;  %v705_v57 = vpop.permute.xlu0 %704 }
 0x46a   :  { %v707_v58 = vadd.f32 %v705_v57, %v689_v41 }
 0x46b   :  { %8769 = vtanh.f32 %v679_v56 }
 0x46c   :  { %8771 = vtanh.f32 %v707_v58 }
 0x478   :  { %v8770_v59 = vpop.eup %8769 }
 0x479   :  { %v8772_v60 = vpop.eup %8771  ;;  %683 = vrot.lane.b32.xlu1 %v8770_v59, %s9220_s20 }
 0x47a   :  { %711 = vrot.lane.b32.xlu0 %v8772_v60, %s9220_s20 }
 0x4eb   :  { %v684_v62 = vpop.permute.xlu1 %683 }
 0x4ec   :  { %v686_v10 = vmul.f32 %v684_v62, %v681_v61  ;;  %v712_v13 = vpop.permute.xlu0 %711 }
 0x4ed   :  { %v714_v21 = vmul.f32 %v712_v13, %v709_v63 }
 0x4ee   :  { %v9471_v22 = vadd.f32 %v687_v1, %v686_v10 }
 0x4ef   :  { %v9473_v23 = vadd.f32 %v715_v20, %v714_v21 }
 0x4f0   :  { %718 = vrot.lane.b32.xlu1 %v9471_v22, %s9220_s20 }
 0x4f1   :  { %796 = vrot.lane.b32.xlu0 %v9473_v23, %s9220_s20  ;;  %722 = vst.msk [vmem:[#allocation4 + $0x70] sm:$0x3] %vm512_vm3, %v9473_v23 }
 0x4f4   :  { %67 = vperm.xlu1 %8748, %v40_v24  }
 0x4f5   :  { %122 = vperm.xlu0 %8747, %v51_v11  }
 0x562   :  { %v719_v12 = vpop.permute.xlu1 %718 }
 0x563   :  { %721 = vst.msk [vmem:[#allocation4 + $0x8] sm:$0x3] %vm510_vm4, %v719_v12  ;;  %v797_v25 = vpop.permute.xlu0 %796  ;;  %8007 = vmatmul.mubr.msk.f32.vlgmr.msra.gmra.mxu0 %vm290_vm5, %v719_v12 }
 0x564   :  { %8018 = vmatmul.mubr.msk.f32.vlgmr.msra.gmra.mxu1 %vm290_vm5, %v797_v25  ;;  %8021 = vmatpush3.msra.mxu0 %v9266_v2 }
 0x565   :  { %8032 = vmatpush3.msra.mxu1 %v9268_v3  ;;  %8022 = vmatprep.subr.mxu0 %v9216_v0 }
 0x566   :  { %8033 = vmatprep.subr.mxu1 %v9216_v0  ;;  %8023 = vmatpush3.msra.mxu0 %v9270_v4 }
 0x567   :  { %8034 = vmatpush3.msra.mxu1 %v9274_v5  ;;  %8024 = vmatprep.subr.mxu0 %v9216_v0 }
 0x568   :  { %8035 = vmatprep.subr.mxu1 %v9216_v0  ;;  %8025 = vmatpush3.msra.mxu0 %v9278_v6 }
 0x569   :  { %8036 = vmatpush3.msra.mxu1 %v9280_v7  ;;  %8026 = vmatprep.subr.mxu0 %v9216_v0 }
 0x56a   :  { %8037 = vmatprep.subr.mxu1 %v9216_v0  ;;  %8027 = vmatpush3.msra.mxu0 %v9286_v8 }
 0x56b   :  { %8028 = vmatprep.mubr.msk.f32.mxu0 %vm9217_vm0, %v9216_v0  ;;  %8038 = vmatpush3.msra.mxu1 %v9288_v9 }
 0x56c   :  { %8039 = vmatprep.mubr.msk.f32.mxu1 %vm9217_vm0, %v9216_v0  ;;  %8042 = vmatprep.subr.mxu0 %v9216_v0 }
 0x56d   :  { %8053 = vmatprep.subr.mxu1 %v9216_v0 }
 0x56f   :  { %v68_v26 = vpop.permute.xlu1 %67 }
 0x570   :  { %v143_v27 = vmul.f32 %v9341_v16, %v68_v26  ;;  %v207_v28 = vmul.f32 %v9346_v17, %v68_v26  ;;  %v123_v29 = vpop.permute.xlu0 %122 }
 0x571   :  { %v154_v30 = vmul.f32 %v9341_v16, %v123_v29  ;;  %v218_v31 = vmul.f32 %v9346_v17, %v123_v29 }
 0x572   :  { %v166_v32 = vadd.f32 %v9351_v18, %v143_v27  ;;  %v231_v33 = vadd.f32 %v9356_v19, %v207_v28  ;;  %v41_v27 = vld [vmem:[%s11066_s0 + $0x18] sm:$0xff] }
 0x573   :  { %v177_v34 = vadd.f32 %v9351_v18, %v154_v30  ;;  %v242_v35 = vadd.f32 %v9356_v19, %v218_v31 }
 0x574   :  { %183 = vst.msk [vmem:[#allocation2 + $0x10] sm:$0xff] %vm180_vm1, %v166_v32  ;;  %247 = vst.msk [vmem:[#allocation3 + $0x10] sm:$0xff] %vm180_vm1, %v231_v33 }
 0x575   :  { %194 = vst.msk [vmem:[#allocation2 + $0x68] sm:$0xff] %vm180_vm1, %v177_v34  ;;  %258 = vst.msk [vmem:[#allocation3 + $0x68] sm:$0xff] %vm180_vm1, %v242_v35 }
 0x57b   :  { %v870_v42 = vld [vmem:[#allocation2 + $0x10] sm:$0x3] }
 0x57c   :  { %v898_v44 = vld [vmem:[#allocation3 + $0x68] sm:$0x3] }
 0x623   :  { %v791_v36 = vpop.f32.mrf.mxu0 }
 0x624   :  { %v878_v37 = vadd.f32 %v791_v36, %v9334_v14  ;;  %v866_v38 = vpop.f32.mrf.mxu1  ;;  %v871_v43 = vadd.f32 %v870_v42, %v791_v36 }
 0x625   :  { %v906_v39 = vadd.f32 %v866_v38, %v9336_v15  ;;  %v8008_v40 = vpop.f32.mrf.mxu0  ;;  %v899_v45 = vadd.f32 %v898_v44, %v866_v38 }
 0x626   :  { %v8019_v41 = vpop.f32.mrf.mxu1  ;;  %880 = vrot.lane.b32.xlu1 %v878_v37, %s9219_s7  ;;  %v7422_v46 = vmul.f32 -1.442695, %v871_v43 }
 0x627   :  { %908 = vrot.lane.b32.xlu0 %v906_v39, %s9219_s7  ;;  %v7423_v47 = vmul.f32 -1.442695, %v899_v45 }
 0x628   :  { %8773 = vpow2.f32 %v7422_v46 }
 0x629   :  { %8775 = vpow2.f32 %v7423_v47 }
 0x635   :  { %v8774_v48 = vpop.eup %8773 }
 0x636   :  { %v8776_v49 = vpop.eup %8775  ;;  %v875_v50 = vadd.f32 1.0, %v8774_v48 }
 0x637   :  { %v903_v51 = vadd.f32 1.0, %v8776_v49 }
 0x638   :  { %8777 = vrcp.f32 %v875_v50 }
 0x639   :  { %8779 = vrcp.f32 %v903_v51 }
 0x645   :  { %v8778_v52 = vpop.eup %8777 }
 0x646   :  { %v8780_v54 = vpop.eup %8779  ;;  %v890_v1 = vsub.f32 1.0, %v8778_v52  ;;  %v896_v20 = vmul.f32 %v8778_v52, %v9471_v22  ;;  %v50_v22 = vld [vmem:[%s11066_s0 + $0x60] sm:$0xff] }
 0x647   :  { %v918_v13 = vsub.f32 1.0, %v8780_v54  ;;  %v924_v11 = vmul.f32 %v8780_v54, %v9473_v23 }
 0x698   :  { %v881_v53 = vpop.permute.xlu1 %880 }
 0x699   :  { %v883_v55 = vmul.f32 %v8778_v52, %v881_v53  ;;  %v909_v56 = vpop.permute.xlu0 %908 }
 0x69a   :  { %v911_v57 = vmul.f32 %v8780_v54, %v909_v56 }
 0x69b   :  { %885 = vrot.lane.b32.xlu1 %v883_v55, %s9219_s7 }
 0x69c   :  { %913 = vrot.lane.b32.xlu0 %v911_v57, %s9219_s7 }
 0x70d   :  { %v886_v58 = vpop.permute.xlu1 %885 }
 0x70e   :  { %v888_v59 = vadd.f32 %v886_v58, %v870_v42  ;;  %v914_v60 = vpop.permute.xlu0 %913 }
 0x70f   :  { %v916_v61 = vadd.f32 %v914_v60, %v898_v44 }
 0x710   :  { %8781 = vtanh.f32 %v888_v59 }
 0x711   :  { %8783 = vtanh.f32 %v916_v61 }
 0x71d   :  { %v8782_v62 = vpop.eup %8781 }
 0x71e   :  { %v8784_v63 = vpop.eup %8783  ;;  %892 = vrot.lane.b32.xlu1 %v8782_v62, %s9220_s20 }
 0x71f   :  { %920 = vrot.lane.b32.xlu0 %v8784_v63, %s9220_s20 }
 0x790   :  { %v893_v10 = vpop.permute.xlu1 %892 }
 0x791   :  { %v895_v21 = vmul.f32 %v893_v10, %v890_v1  ;;  %v921_v24 = vpop.permute.xlu0 %920 }
 0x792   :  { %v923_v12 = vmul.f32 %v921_v24, %v918_v13 }
 0x793   :  { %v9532_v25 = vadd.f32 %v896_v20, %v895_v21 }
 0x794   :  { %v9534_v26 = vadd.f32 %v924_v11, %v923_v12 }
 0x795   :  { %927 = vrot.lane.b32.xlu1 %v9532_v25, %s9220_s20 }
 0x796   :  { %1005 = vrot.lane.b32.xlu0 %v9534_v26, %s9220_s20  ;;  %931 = vst.msk [vmem:[#allocation4 + $0x68] sm:$0x3] %vm512_vm3, %v9534_v26 }
 0x799   :  { %72 = vperm.xlu1 %8748, %v41_v27  }
 0x79a   :  { %117 = vperm.xlu0 %8747, %v50_v22  }
 0x807   :  { %v928_v23 = vpop.permute.xlu1 %927 }
 0x808   :  { %930 = vst.msk [vmem:[#allocation4 + $0x10] sm:$0x3] %vm510_vm4, %v928_v23  ;;  %v1006_v28 = vpop.permute.xlu0 %1005  ;;  %8029 = vmatmul.mubr.msk.f32.vlgmr.msra.gmra.mxu0 %vm290_vm5, %v928_v23 }
 0x809   :  { %8040 = vmatmul.mubr.msk.f32.vlgmr.msra.gmra.mxu1 %vm290_vm5, %v1006_v28  ;;  %8043 = vmatpush3.msra.mxu0 %v9266_v2 }
 0x80a   :  { %8054 = vmatpush3.msra.mxu1 %v9268_v3  ;;  %8044 = vmatprep.subr.mxu0 %v9216_v0 }
 0x80b   :  { %8055 = vmatprep.subr.mxu1 %v9216_v0  ;;  %8045 = vmatpush3.msra.mxu0 %v9270_v4 }
 0x80c   :  { %8056 = vmatpush3.msra.mxu1 %v9274_v5  ;;  %8046 = vmatprep.subr.mxu0 %v9216_v0 }
 0x80d   :  { %8057 = vmatprep.subr.mxu1 %v9216_v0  ;;  %8047 = vmatpush3.msra.mxu0 %v9278_v6 }
 0x80e   :  { %8058 = vmatpush3.msra.mxu1 %v9280_v7  ;;  %8048 = vmatprep.subr.mxu0 %v9216_v0 }
 0x80f   :  { %8059 = vmatprep.subr.mxu1 %v9216_v0  ;;  %8049 = vmatpush3.msra.mxu0 %v9286_v8 }
 0x810   :  { %8050 = vmatprep.mubr.msk.f32.mxu0 %vm9217_vm0, %v9216_v0  ;;  %8060 = vmatpush3.msra.mxu1 %v9288_v9 }
 0x811   :  { %8061 = vmatprep.mubr.msk.f32.mxu1 %vm9217_vm0, %v9216_v0  ;;  %8064 = vmatprep.subr.mxu0 %v9216_v0 }
 0x812   :  { %8075 = vmatprep.subr.mxu1 %v9216_v0 }
 0x814   :  { %v73_v29 = vpop.permute.xlu1 %72 }
 0x815   :  { %v144_v30 = vmul.f32 %v9341_v16, %v73_v29  ;;  %v208_v31 = vmul.f32 %v9346_v17, %v73_v29  ;;  %v118_v32 = vpop.permute.xlu0 %117 }
 0x816   :  { %v153_v33 = vmul.f32 %v9341_v16, %v118_v32  ;;  %v217_v34 = vmul.f32 %v9346_v17, %v118_v32 }
 0x817   :  { %v167_v35 = vadd.f32 %v9351_v18, %v144_v30  ;;  %v232_v36 = vadd.f32 %v9356_v19, %v208_v31  ;;  %v42_v30 = vld [vmem:[%s11066_s0 + $0x20] sm:$0xff] }
 0x818   :  { %v176_v37 = vadd.f32 %v9351_v18, %v153_v33  ;;  %v241_v38 = vadd.f32 %v9356_v19, %v217_v34 }
 0x819   :  { %184 = vst.msk [vmem:[#allocation2 + $0x18] sm:$0xff] %vm180_vm1, %v167_v35  ;;  %248 = vst.msk [vmem:[#allocation3 + $0x18] sm:$0xff] %vm180_vm1, %v232_v36 }
 0x81a   :  { %193 = vst.msk [vmem:[#allocation2 + $0x60] sm:$0xff] %vm180_vm1, %v176_v37  ;;  %257 = vst.msk [vmem:[#allocation3 + $0x60] sm:$0xff] %vm180_vm1, %v241_v38 }
 0x820   :  { %v1079_v45 = vld [vmem:[#allocation2 + $0x18] sm:$0x3] }
 0x821   :  { %v1107_v47 = vld [vmem:[#allocation3 + $0x60] sm:$0x3] }
 0x8c8   :  { %v1000_v39 = vpop.f32.mrf.mxu0 }
 0x8c9   :  { %v1087_v40 = vadd.f32 %v1000_v39, %v9334_v14  ;;  %v1075_v41 = vpop.f32.mrf.mxu1  ;;  %v1080_v46 = vadd.f32 %v1079_v45, %v1000_v39 }
 0x8ca   :  { %v1115_v42 = vadd.f32 %v1075_v41, %v9336_v15  ;;  %v8030_v43 = vpop.f32.mrf.mxu0  ;;  %v1108_v48 = vadd.f32 %v1107_v47, %v1075_v41 }
 0x8cb   :  { %v8041_v44 = vpop.f32.mrf.mxu1  ;;  %1089 = vrot.lane.b32.xlu1 %v1087_v40, %s9219_s7  ;;  %v7426_v49 = vmul.f32 -1.442695, %v1080_v46 }
 0x8cc   :  { %1117 = vrot.lane.b32.xlu0 %v1115_v42, %s9219_s7  ;;  %v7427_v50 = vmul.f32 -1.442695, %v1108_v48 }
 0x8cd   :  { %8785 = vpow2.f32 %v7426_v49 }
 0x8ce   :  { %8787 = vpow2.f32 %v7427_v50 }
 0x8da   :  { %v8786_v51 = vpop.eup %8785 }
 0x8db   :  { %v8788_v52 = vpop.eup %8787  ;;  %v1084_v53 = vadd.f32 1.0, %v8786_v51 }
 0x8dc   :  { %v1112_v54 = vadd.f32 1.0, %v8788_v52 }
 0x8dd   :  { %8789 = vrcp.f32 %v1084_v53 }
 0x8de   :  { %8791 = vrcp.f32 %v1112_v54 }
 0x8ea   :  { %v8790_v55 = vpop.eup %8789 }
 0x8eb   :  { %v8792_v57 = vpop.eup %8791  ;;  %v1099_v20 = vsub.f32 1.0, %v8790_v55  ;;  %v1105_v11 = vmul.f32 %v8790_v55, %v9532_v25  ;;  %v49_v25 = vld [vmem:[%s11066_s0 + $0x58] sm:$0xff] }
 0x8ec   :  { %v1127_v24 = vsub.f32 1.0, %v8792_v57  ;;  %v1133_v22 = vmul.f32 %v8792_v57, %v9534_v26 }
 0x93d   :  { %v1090_v56 = vpop.permute.xlu1 %1089 }
 0x93e   :  { %v1092_v58 = vmul.f32 %v8790_v55, %v1090_v56  ;;  %v1118_v59 = vpop.permute.xlu0 %1117 }
 0x93f   :  { %v1120_v60 = vmul.f32 %v8792_v57, %v1118_v59 }
 0x940   :  { %1094 = vrot.lane.b32.xlu1 %v1092_v58, %s9219_s7 }
 0x941   :  { %1122 = vrot.lane.b32.xlu0 %v1120_v60, %s9219_s7 }
 0x9b2   :  { %v1095_v61 = vpop.permute.xlu1 %1094 }
 0x9b3   :  { %v1097_v62 = vadd.f32 %v1095_v61, %v1079_v45  ;;  %v1123_v63 = vpop.permute.xlu0 %1122 }
 0x9b4   :  { %v1125_v1 = vadd.f32 %v1123_v63, %v1107_v47 }
 0x9b5   :  { %8793 = vtanh.f32 %v1097_v62 }
 0x9b6   :  { %8795 = vtanh.f32 %v1125_v1 }
 0x9c2   :  { %v8794_v10 = vpop.eup %8793 }
 0x9c3   :  { %v8796_v13 = vpop.eup %8795  ;;  %1101 = vrot.lane.b32.xlu1 %v8794_v10, %s9220_s20 }
 0x9c4   :  { %1129 = vrot.lane.b32.xlu0 %v8796_v13, %s9220_s20 }
 0xa35   :  { %v1102_v21 = vpop.permute.xlu1 %1101 }
 0xa36   :  { %v1104_v12 = vmul.f32 %v1102_v21, %v1099_v20  ;;  %v1130_v27 = vpop.permute.xlu0 %1129 }
 0xa37   :  { %v1132_v23 = vmul.f32 %v1130_v27, %v1127_v24  ;;  %v43_v27 = vld [vmem:[%s11066_s0 + $0x28] sm:$0xff] }
 0xa38   :  { %v9593_v28 = vadd.f32 %v1105_v11, %v1104_v12 }
 0xa39   :  { %v9595_v29 = vadd.f32 %v1133_v22, %v1132_v23  ;;  %v48_v22 = vld [vmem:[%s11066_s0 + $0x50] sm:$0xff] }
 0xa3a   :  { %1136 = vrot.lane.b32.xlu1 %v9593_v28, %s9220_s20 }
 0xa3b   :  { %1214 = vrot.lane.b32.xlu0 %v9595_v29, %s9220_s20  ;;  %1140 = vst.msk [vmem:[#allocation4 + $0x60] sm:$0x3] %vm512_vm3, %v9595_v29 }
 0xa3e   :  { %77 = vperm.xlu1 %8748, %v42_v30   ;;  %v9676_v30 = vld [vmem:[#allocation5 + $0x38] sm:$0xff] }
 0xa3f   :  { %112 = vperm.xlu0 %8747, %v49_v25   ;;  %v9681_v25 = vld [vmem:[#allocation5 + $0x10] sm:$0xff] }
 0xaac   :  { %v1137_v26 = vpop.permute.xlu1 %1136 }
 0xaad   :  { %1139 = vst.msk [vmem:[#allocation4 + $0x18] sm:$0x3] %vm510_vm4, %v1137_v26  ;;  %v1215_v31 = vpop.permute.xlu0 %1214  ;;  %8051 = vmatmul.mubr.msk.f32.vlgmr.msra.gmra.mxu0 %vm290_vm5, %v1137_v26  ;;  %v9684_v26 = vld [vmem:[#allocation5 + $0x30] sm:$0xff] }
 0xaae   :  { %8062 = vmatmul.mubr.msk.f32.vlgmr.msra.gmra.mxu1 %vm290_vm5, %v1215_v31  ;;  %8065 = vmatpush3.msra.mxu0 %v9266_v2  ;;  %v9689_v31 = vld [vmem:[#allocation5 + $0x8] sm:$0xff] }
 0xaaf   :  { %8076 = vmatpush3.msra.mxu1 %v9268_v3  ;;  %8066 = vmatprep.subr.mxu0 %v9216_v0 }
 0xab0   :  { %8077 = vmatprep.subr.mxu1 %v9216_v0  ;;  %8067 = vmatpush3.msra.mxu0 %v9270_v4 }
 0xab1   :  { %8078 = vmatpush3.msra.mxu1 %v9274_v5  ;;  %8068 = vmatprep.subr.mxu0 %v9216_v0 }
 0xab2   :  { %8079 = vmatprep.subr.mxu1 %v9216_v0  ;;  %8069 = vmatpush3.msra.mxu0 %v9278_v6 }
 0xab3   :  { %8080 = vmatpush3.msra.mxu1 %v9280_v7  ;;  %8070 = vmatprep.subr.mxu0 %v9216_v0 }
 0xab4   :  { %8081 = vmatprep.subr.mxu1 %v9216_v0  ;;  %8071 = vmatpush3.msra.mxu0 %v9286_v8 }
 0xab5   :  { %8072 = vmatprep.mubr.msk.f32.mxu0 %vm9217_vm0, %v9216_v0  ;;  %8082 = vmatpush3.msra.mxu1 %v9288_v9 }
 0xab6   :  { %8083 = vmatprep.mubr.msk.f32.mxu1 %vm9217_vm0, %v9216_v0  ;;  %8086 = vmatprep.subr.mxu0 %v9216_v0 }
 0xab7   :  { %8097 = vmatprep.subr.mxu1 %v9216_v0 }
 0xab9   :  { %v78_v2 = vpop.permute.xlu1 %77 }
 0xaba   :  { %v145_v3 = vmul.f32 %v9341_v16, %v78_v2  ;;  %v209_v4 = vmul.f32 %v9346_v17, %v78_v2  ;;  %v113_v5 = vpop.permute.xlu0 %112  ;;  %v9692_v2 = vld [vmem:[#allocation5 + $0x28] sm:$0xff] }
 0xabb   :  { %v152_v6 = vmul.f32 %v9341_v16, %v113_v5  ;;  %v216_v7 = vmul.f32 %v9346_v17, %v113_v5 }
 0xabc   :  { %v168_v8 = vadd.f32 %v9351_v18, %v145_v3  ;;  %v233_v9 = vadd.f32 %v9356_v19, %v209_v4  ;;  %v9697_v3 = vld [vmem:[#allocation5] sm:$0xff] }
 0xabd   :  { %v175_v32 = vadd.f32 %v9351_v18, %v152_v6  ;;  %v240_v33 = vadd.f32 %v9356_v19, %v216_v7  ;;  %v9702_v4 = vld [vmem:[#allocation5 + $0x20] sm:$0xff] }
 0xabe   :  { %185 = vst.msk [vmem:[#allocation2 + $0x20] sm:$0xff] %vm180_vm1, %v168_v8  ;;  %249 = vst.msk [vmem:[#allocation3 + $0x20] sm:$0xff] %vm180_vm1, %v233_v9 }
 0xabf   :  { %192 = vst.msk [vmem:[#allocation2 + $0x58] sm:$0xff] %vm180_vm1, %v175_v32  ;;  %256 = vst.msk [vmem:[#allocation3 + $0x58] sm:$0xff] %vm180_vm1, %v240_v33 }
 0xac5   :  { %v1288_v40 = vld [vmem:[#allocation2 + $0x20] sm:$0x3] }
 0xac6   :  { %v1316_v42 = vld [vmem:[#allocation3 + $0x58] sm:$0x3] }
 0xb6d   :  { %v1209_v34 = vpop.f32.mrf.mxu0 }
 0xb6e   :  { %v1296_v35 = vadd.f32 %v1209_v34, %v9334_v14  ;;  %v1284_v36 = vpop.f32.mrf.mxu1  ;;  %v1289_v41 = vadd.f32 %v1288_v40, %v1209_v34 }
 0xb6f   :  { %v1324_v37 = vadd.f32 %v1284_v36, %v9336_v15  ;;  %v8052_v38 = vpop.f32.mrf.mxu0  ;;  %v1317_v43 = vadd.f32 %v1316_v42, %v1284_v36 }
 0xb70   :  { %v8063_v39 = vpop.f32.mrf.mxu1  ;;  %1298 = vrot.lane.b32.xlu1 %v1296_v35, %s9219_s7  ;;  %v7430_v44 = vmul.f32 -1.442695, %v1289_v41 }
 0xb71   :  { %1326 = vrot.lane.b32.xlu0 %v1324_v37, %s9219_s7  ;;  %v7431_v45 = vmul.f32 -1.442695, %v1317_v43 }
 0xb72   :  { %8797 = vpow2.f32 %v7430_v44 }
 0xb73   :  { %8799 = vpow2.f32 %v7431_v45 }
 0xb7f   :  { %v8798_v46 = vpop.eup %8797 }
 0xb80   :  { %v8800_v47 = vpop.eup %8799  ;;  %v1293_v48 = vadd.f32 1.0, %v8798_v46 }
 0xb81   :  { %v1321_v49 = vadd.f32 1.0, %v8800_v47 }
 0xb82   :  { %8801 = vrcp.f32 %v1293_v48 }
 0xb83   :  { %8803 = vrcp.f32 %v1321_v49 }
 0xb8f   :  { %v8802_v50 = vpop.eup %8801 }
 0xb90   :  { %v8804_v52 = vpop.eup %8803  ;;  %v1308_v62 = vsub.f32 1.0, %v8802_v50  ;;  %v1314_v10 = vmul.f32 %v8802_v50, %v9593_v28 }
 0xb91   :  { %v1336_v1 = vsub.f32 1.0, %v8804_v52  ;;  %v1342_v21 = vmul.f32 %v8804_v52, %v9595_v29  ;;  %v9673_v29 = vld [vmem:[#allocation5 + $0x18] sm:$0xff] }
 0xbe2   :  { %v1299_v51 = vpop.permute.xlu1 %1298 }
 0xbe3   :  { %v1301_v53 = vmul.f32 %v8802_v50, %v1299_v51  ;;  %v1327_v54 = vpop.permute.xlu0 %1326 }
 0xbe4   :  { %v1329_v55 = vmul.f32 %v8804_v52, %v1327_v54 }
 0xbe5   :  { %1303 = vrot.lane.b32.xlu1 %v1301_v53, %s9219_s7 }
 0xbe6   :  { %1331 = vrot.lane.b32.xlu0 %v1329_v55, %s9219_s7 }
 0xc57   :  { %v1304_v56 = vpop.permute.xlu1 %1303 }
 0xc58   :  { %v1306_v57 = vadd.f32 %v1304_v56, %v1288_v40  ;;  %v1332_v58 = vpop.permute.xlu0 %1331 }
 0xc59   :  { %v1334_v59 = vadd.f32 %v1332_v58, %v1316_v42 }
 0xc5a   :  { %8805 = vtanh.f32 %v1306_v57 }
 0xc5b   :  { %8807 = vtanh.f32 %v1334_v59 }
 0xc67   :  { %v8806_v60 = vpop.eup %8805 }
 0xc68   :  { %v8808_v61 = vpop.eup %8807  ;;  %1310 = vrot.lane.b32.xlu1 %v8806_v60, %s9220_s20 }
 0xc69   :  { %1338 = vrot.lane.b32.xlu0 %v8808_v61, %s9220_s20 }
 0xcda   :  { %v1311_v63 = vpop.permute.xlu1 %1310 }
 0xcdb   :  { %v1313_v13 = vmul.f32 %v1311_v63, %v1308_v62  ;;  %v1339_v20 = vpop.permute.xlu0 %1338 }
 0xcdc   :  { %v1341_v24 = vmul.f32 %v1339_v20, %v1336_v1 }
 0xcdd   :  { %v9654_v11 = vadd.f32 %v1314_v10, %v1313_v13 }
 0xcde   :  { %v9656_v12 = vadd.f32 %v1342_v21, %v1341_v24 }
 0xcdf   :  { %1345 = vrot.lane.b32.xlu1 %v9654_v11, %s9220_s20 }
 0xce0   :  { %1423 = vrot.lane.b32.xlu0 %v9656_v12, %s9220_s20  ;;  %1349 = vst.msk [vmem:[#allocation4 + $0x58] sm:$0x3] %vm512_vm3, %v9656_v12 }
 0xce3   :  { %82 = vperm.xlu1 %8748, %v43_v27  }
 0xce4   :  { %107 = vperm.xlu0 %8747, %v48_v22   ;;  %v44_v22 = vld [vmem:[%s11066_s0 + $0x30] sm:$0xff] }
 0xd51   :  { %v1346_v23 = vpop.permute.xlu1 %1345 }
 0xd52   :  { %1348 = vst.msk [vmem:[#allocation4 + $0x20] sm:$0x3] %vm510_vm4, %v1346_v23  ;;  %v1424_v28 = vpop.permute.xlu0 %1423  ;;  %8073 = vmatmul.mubr.msk.f32.vlgmr.msra.gmra.mxu0 %vm290_vm5, %v1346_v23 }
 0xd53   :  { %8084 = vmatmul.mubr.msk.f32.vlgmr.msra.gmra.mxu1 %vm290_vm5, %v1424_v28  ;;  %8087 = vmatpush3.msra.mxu0 %v9673_v29 }
 0xd54   :  { %8098 = vmatpush3.msra.mxu1 %v9676_v30  ;;  %8088 = vmatprep.subr.mxu0 %v9216_v0 }
 0xd55   :  { %8099 = vmatprep.subr.mxu1 %v9216_v0  ;;  %8089 = vmatpush3.msra.mxu0 %v9681_v25 }
 0xd56   :  { %8100 = vmatpush3.msra.mxu1 %v9684_v26  ;;  %8090 = vmatprep.subr.mxu0 %v9216_v0 }
 0xd57   :  { %8101 = vmatprep.subr.mxu1 %v9216_v0  ;;  %8091 = vmatpush3.msra.mxu0 %v9689_v31 }
 0xd58   :  { %8102 = vmatpush3.msra.mxu1 %v9692_v2  ;;  %8092 = vmatprep.subr.mxu0 %v9216_v0 }
 0xd59   :  { %8103 = vmatprep.subr.mxu1 %v9216_v0  ;;  %8093 = vmatpush3.msra.mxu0 %v9697_v3 }
 0xd5a   :  { %8094 = vmatprep.mubr.msk.f32.mxu0 %vm9217_vm0, %v9216_v0  ;;  %8104 = vmatpush3.msra.mxu1 %v9702_v4 }
 0xd5b   :  { %8105 = vmatprep.mubr.msk.f32.mxu1 %vm9217_vm0, %v9216_v0  ;;  %8108 = vmatprep.subr.mxu0 %v9216_v0 }
 0xd5c   :  { %8119 = vmatprep.subr.mxu1 %v9216_v0 }
 0xd5e   :  { %v83_v5 = vpop.permute.xlu1 %82 }
 0xd5f   :  { %v146_v6 = vmul.f32 %v9341_v16, %v83_v5  ;;  %v210_v7 = vmul.f32 %v9346_v17, %v83_v5  ;;  %v108_v8 = vpop.permute.xlu0 %107  ;;  %v9773_v5 = vld [vmem:[%s11067_s1] ss:$0 sm:$0xff] }
 0xd60   :  { %v151_v9 = vmul.f32 %v9341_v16, %v108_v8  ;;  %v215_v32 = vmul.f32 %v9346_v17, %v108_v8 }
 0xd61   :  { %v169_v33 = vadd.f32 %v9351_v18, %v146_v6  ;;  %v234_v34 = vadd.f32 %v9356_v19, %v210_v7  ;;  %v9779_v7 = vld [vmem:[%s11067_s1 + $0x1] ss:$0 sm:$0xff] }
 0xd62   :  { %v174_v35 = vadd.f32 %v9351_v18, %v151_v9  ;;  %v239_v36 = vadd.f32 %v9356_v19, %v215_v32 }
 0xd63   :  { %186 = vst.msk [vmem:[#allocation2 + $0x28] sm:$0xff] %vm180_vm1, %v169_v33  ;;  %250 = vst.msk [vmem:[#allocation3 + $0x28] sm:$0xff] %vm180_vm1, %v234_v34  ;;  %v9787_v34 = vld [vmem:[%s11070_s4] ss:$0 sm:$0xff] }
 0xd64   :  { %191 = vst.msk [vmem:[#allocation2 + $0x50] sm:$0xff] %vm180_vm1, %v174_v35  ;;  %255 = vst.msk [vmem:[#allocation3 + $0x50] sm:$0xff] %vm180_vm1, %v239_v36  ;;  %v9793_v36 = vld [vmem:[%s11070_s4 + $0x1] ss:$0 sm:$0xff] }
 0xd6a   :  { %v1497_v18 = vld [vmem:[#allocation2 + $0x28] sm:$0x3] }
 0xd6b   :  { %v1525_v41 = vld [vmem:[#allocation3 + $0x50] sm:$0x3] }
 0xe12   :  { %v1418_v37 = vpop.f32.mrf.mxu0 }
 0xe13   :  { %v1505_v16 = vadd.f32 %v1418_v37, %v9334_v14  ;;  %v1493_v17 = vpop.f32.mrf.mxu1  ;;  %v1498_v19 = vadd.f32 %v1497_v18, %v1418_v37 }
 0xe14   :  { %v1533_v38 = vadd.f32 %v1493_v17, %v9336_v15  ;;  %v8074_v39 = vpop.f32.mrf.mxu0  ;;  %v1526_v42 = vadd.f32 %v1525_v41, %v1493_v17 }
 0xe15   :  { %v8085_v40 = vpop.f32.mrf.mxu1  ;;  %1507 = vrot.lane.b32.xlu1 %v1505_v16, %s9219_s7  ;;  %v7434_v43 = vmul.f32 -1.442695, %v1498_v19 }
 0xe16   :  { %1535 = vrot.lane.b32.xlu0 %v1533_v38, %s9219_s7  ;;  %v7435_v44 = vmul.f32 -1.442695, %v1526_v42 }
 0xe17   :  { %8809 = vpow2.f32 %v7434_v43 }
 0xe18   :  { %8811 = vpow2.f32 %v7435_v44 }
 0xe24   :  { %v8810_v45 = vpop.eup %8809 }
 0xe25   :  { %v8812_v46 = vpop.eup %8811  ;;  %v1502_v47 = vadd.f32 1.0, %v8810_v45 }
 0xe26   :  { %v1530_v48 = vadd.f32 1.0, %v8812_v46 }
 0xe27   :  { %8813 = vrcp.f32 %v1502_v47 }
 0xe28   :  { %8815 = vrcp.f32 %v1530_v48 }
 0xe34   :  { %v8814_v49 = vpop.eup %8813 }
 0xe35   :  { %v8816_v51 = vpop.eup %8815  ;;  %v1517_v61 = vsub.f32 1.0, %v8814_v49  ;;  %v1523_v1 = vmul.f32 %v8814_v49, %v9654_v11  ;;  %v47_v11 = vld [vmem:[%s11066_s0 + $0x48] sm:$0xff] }
 0xe36   :  { %v1545_v63 = vsub.f32 1.0, %v8816_v51  ;;  %v1551_v20 = vmul.f32 %v8816_v51, %v9656_v12 }
 0xe87   :  { %v1508_v50 = vpop.permute.xlu1 %1507 }
 0xe88   :  { %v1510_v52 = vmul.f32 %v8814_v49, %v1508_v50  ;;  %v1536_v53 = vpop.permute.xlu0 %1535 }
 0xe89   :  { %v1538_v54 = vmul.f32 %v8816_v51, %v1536_v53 }
 0xe8a   :  { %1512 = vrot.lane.b32.xlu1 %v1510_v52, %s9219_s7 }
 0xe8b   :  { %1540 = vrot.lane.b32.xlu0 %v1538_v54, %s9219_s7 }
 0xefc   :  { %v1513_v55 = vpop.permute.xlu1 %1512 }
 0xefd   :  { %v1515_v56 = vadd.f32 %v1513_v55, %v1497_v18  ;;  %v1541_v57 = vpop.permute.xlu0 %1540 }
 0xefe   :  { %v1543_v58 = vadd.f32 %v1541_v57, %v1525_v41 }
 0xeff   :  { %8817 = vtanh.f32 %v1515_v56 }
 0xf00   :  { %8819 = vtanh.f32 %v1543_v58 }
 0xf0c   :  { %v8818_v59 = vpop.eup %8817 }
 0xf0d   :  { %v8820_v60 = vpop.eup %8819  ;;  %1519 = vrot.lane.b32.xlu1 %v8818_v59, %s9220_s20 }
 0xf0e   :  { %1547 = vrot.lane.b32.xlu0 %v8820_v60, %s9220_s20 }
 0xf7f   :  { %v1520_v62 = vpop.permute.xlu1 %1519 }
 0xf80   :  { %v1522_v10 = vmul.f32 %v1520_v62, %v1517_v61  ;;  %v1548_v13 = vpop.permute.xlu0 %1547 }
 0xf81   :  { %v1550_v21 = vmul.f32 %v1548_v13, %v1545_v63 }
 0xf82   :  { %v9731_v24 = vadd.f32 %v1523_v1, %v1522_v10 }
 0xf83   :  { %v9733_v27 = vadd.f32 %v1551_v20, %v1550_v21 }
 0xf84   :  { %1554 = vrot.lane.b32.xlu1 %v9731_v24, %s9220_s20 }
 0xf85   :  { %1632 = vrot.lane.b32.xlu0 %v9733_v27, %s9220_s20  ;;  %1558 = vst.msk [vmem:[#allocation4 + $0x50] sm:$0x3] %vm512_vm3, %v9733_v27 }
 0xf88   :  { %87 = vperm.xlu1 %8748, %v44_v22  }
 0xf89   :  { %102 = vperm.xlu0 %8747, %v47_v11  }
 0xff6   :  { %v1555_v12 = vpop.permute.xlu1 %1554 }
 0xff7   :  { %1557 = vst.msk [vmem:[#allocation4 + $0x28] sm:$0x3] %vm510_vm4, %v1555_v12  ;;  %v1633_v23 = vpop.permute.xlu0 %1632  ;;  %8095 = vmatmul.mubr.msk.f32.vlgmr.msra.gmra.mxu0 %vm290_vm5, %v1555_v12 }
 0xff8   :  { %8106 = vmatmul.mubr.msk.f32.vlgmr.msra.gmra.mxu1 %vm290_vm5, %v1633_v23  ;;  %8109 = vmatpush3.msra.mxu0 %v9673_v29 }
 0xff9   :  { %8120 = vmatpush3.msra.mxu1 %v9676_v30  ;;  %8110 = vmatprep.subr.mxu0 %v9216_v0 }
 0xffa   :  { %8121 = vmatprep.subr.mxu1 %v9216_v0  ;;  %8111 = vmatpush3.msra.mxu0 %v9681_v25 }
 0xffb   :  { %8122 = vmatpush3.msra.mxu1 %v9684_v26  ;;  %8112 = vmatprep.subr.mxu0 %v9216_v0 }
 0xffc   :  { %8123 = vmatprep.subr.mxu1 %v9216_v0  ;;  %8113 = vmatpush3.msra.mxu0 %v9689_v31 }
 0xffd   :  { %8124 = vmatpush3.msra.mxu1 %v9692_v2  ;;  %8114 = vmatprep.subr.mxu0 %v9216_v0 }
 0xffe   :  { %8125 = vmatprep.subr.mxu1 %v9216_v0  ;;  %8115 = vmatpush3.msra.mxu0 %v9697_v3 }
 0xfff   :  { %8116 = vmatprep.mubr.msk.f32.mxu0 %vm9217_vm0, %v9216_v0  ;;  %8126 = vmatpush3.msra.mxu1 %v9702_v4 }
0x1000   :  { %8127 = vmatprep.mubr.msk.f32.mxu1 %vm9217_vm0, %v9216_v0  ;;  %8130 = vmatprep.subr.mxu0 %v9216_v0 }
0x1001   :  { %8141 = vmatprep.subr.mxu1 %v9216_v0 }
0x1003   :  { %v88_v28 = vpop.permute.xlu1 %87 }
0x1004   :  { %v147_v6 = vmul.f32 %v9773_v5, %v88_v28  ;;  %v211_v8 = vmul.f32 %v9779_v7, %v88_v28  ;;  %v103_v9 = vpop.permute.xlu0 %102 }
0x1005   :  { %v150_v32 = vmul.f32 %v9773_v5, %v103_v9  ;;  %v214_v33 = vmul.f32 %v9779_v7, %v103_v9 }
0x1006   :  { %v170_v35 = vadd.f32 %v9787_v34, %v147_v6  ;;  %v235_v37 = vadd.f32 %v9793_v36, %v211_v8  ;;  %v45_v6 = vld [vmem:[%s11066_s0 + $0x38] sm:$0xff] }
0x1007   :  { %v173_v16 = vadd.f32 %v9787_v34, %v150_v32  ;;  %v238_v17 = vadd.f32 %v9793_v36, %v214_v33 }
0x1008   :  { %187 = vst.msk [vmem:[#allocation2 + $0x30] sm:$0xff] %vm180_vm1, %v170_v35  ;;  %251 = vst.msk [vmem:[#allocation3 + $0x30] sm:$0xff] %vm180_vm1, %v235_v37 }
0x1009   :  { %190 = vst.msk [vmem:[#allocation2 + $0x48] sm:$0xff] %vm180_vm1, %v173_v16  ;;  %254 = vst.msk [vmem:[#allocation3 + $0x48] sm:$0xff] %vm180_vm1, %v238_v17 }
0x100f   :  { %v1706_v42 = vld [vmem:[#allocation2 + $0x30] sm:$0x3] }
0x1010   :  { %v1734_v44 = vld [vmem:[#allocation3 + $0x48] sm:$0x3] }
0x10b7   :  { %v1627_v38 = vpop.f32.mrf.mxu0 }
0x10b8   :  { %v1714_v39 = vadd.f32 %v1627_v38, %v9334_v14  ;;  %v1702_v40 = vpop.f32.mrf.mxu1  ;;  %v1707_v43 = vadd.f32 %v1706_v42, %v1627_v38 }
0x10b9   :  { %v1742_v18 = vadd.f32 %v1702_v40, %v9336_v15  ;;  %v8096_v19 = vpop.f32.mrf.mxu0  ;;  %v1735_v45 = vadd.f32 %v1734_v44, %v1702_v40 }
0x10ba   :  { %v8107_v41 = vpop.f32.mrf.mxu1  ;;  %1716 = vrot.lane.b32.xlu1 %v1714_v39, %s9219_s7  ;;  %v7438_v46 = vmul.f32 -1.442695, %v1707_v43 }
0x10bb   :  { %1744 = vrot.lane.b32.xlu0 %v1742_v18, %s9219_s7  ;;  %v7439_v47 = vmul.f32 -1.442695, %v1735_v45 }
0x10bc   :  { %8821 = vpow2.f32 %v7438_v46 }
0x10bd   :  { %8823 = vpow2.f32 %v7439_v47 }
0x10c9   :  { %v8822_v48 = vpop.eup %8821 }
0x10ca   :  { %v8824_v49 = vpop.eup %8823  ;;  %v1711_v50 = vadd.f32 1.0, %v8822_v48 }
0x10cb   :  { %v1739_v51 = vadd.f32 1.0, %v8824_v49 }
0x10cc   :  { %8825 = vrcp.f32 %v1711_v50 }
0x10cd   :  { %8827 = vrcp.f32 %v1739_v51 }
0x10d9   :  { %v8826_v52 = vpop.eup %8825 }
0x10da   :  { %v8828_v54 = vpop.eup %8827  ;;  %v1726_v1 = vsub.f32 1.0, %v8826_v52  ;;  %v1732_v20 = vmul.f32 %v8826_v52, %v9731_v24  ;;  %v46_v24 = vld [vmem:[%s11066_s0 + $0x40] sm:$0xff] }
0x10db   :  { %v1754_v13 = vsub.f32 1.0, %v8828_v54  ;;  %v1760_v11 = vmul.f32 %v8828_v54, %v9733_v27 }
0x112c   :  { %v1717_v53 = vpop.permute.xlu1 %1716 }
0x112d   :  { %v1719_v55 = vmul.f32 %v8826_v52, %v1717_v53  ;;  %v1745_v56 = vpop.permute.xlu0 %1744 }
0x112e   :  { %v1747_v57 = vmul.f32 %v8828_v54, %v1745_v56 }
0x112f   :  { %1721 = vrot.lane.b32.xlu1 %v1719_v55, %s9219_s7 }
0x1130   :  { %1749 = vrot.lane.b32.xlu0 %v1747_v57, %s9219_s7 }
0x11a1   :  { %v1722_v58 = vpop.permute.xlu1 %1721 }
0x11a2   :  { %v1724_v59 = vadd.f32 %v1722_v58, %v1706_v42  ;;  %v1750_v60 = vpop.permute.xlu0 %1749 }
0x11a3   :  { %v1752_v61 = vadd.f32 %v1750_v60, %v1734_v44 }
0x11a4   :  { %8829 = vtanh.f32 %v1724_v59 }
0x11a5   :  { %8831 = vtanh.f32 %v1752_v61 }
0x11b1   :  { %v8830_v62 = vpop.eup %8829 }
0x11b2   :  { %v8832_v63 = vpop.eup %8831  ;;  %1728 = vrot.lane.b32.xlu1 %v8830_v62, %s9220_s20 }
0x11b3   :  { %1756 = vrot.lane.b32.xlu0 %v8832_v63, %s9220_s20 }
0x1224   :  { %v1729_v10 = vpop.permute.xlu1 %1728 }
0x1225   :  { %v1731_v21 = vmul.f32 %v1729_v10, %v1726_v1  ;;  %v1757_v22 = vpop.permute.xlu0 %1756 }
0x1226   :  { %v1759_v12 = vmul.f32 %v1757_v22, %v1754_v13 }
0x1227   :  { %v9812_v23 = vadd.f32 %v1732_v20, %v1731_v21 }
0x1228   :  { %v9814_v28 = vadd.f32 %v1760_v11, %v1759_v12 }
0x1229   :  { %1763 = vrot.lane.b32.xlu1 %v9812_v23, %s9220_s20 }
0x122a   :  { %1841 = vrot.lane.b32.xlu0 %v9814_v28, %s9220_s20  ;;  %1767 = vst.msk [vmem:[#allocation4 + $0x48] sm:$0x3] %vm512_vm3, %v9814_v28 }
0x122d   :  { %92 = vperm.xlu1 %8748, %v45_v6  }
0x122e   :  { %97 = vperm.xlu0 %8747, %v46_v24  }
0x129b   :  { %v1764_v27 = vpop.permute.xlu1 %1763 }
0x129c   :  { %1766 = vst.msk [vmem:[#allocation4 + $0x30] sm:$0x3] %vm510_vm4, %v1764_v27  ;;  %v1842_v8 = vpop.permute.xlu0 %1841  ;;  %8117 = vmatmul.mubr.msk.f32.vlgmr.msra.gmra.mxu0 %vm290_vm5, %v1764_v27 }
0x129d   :  { %8128 = vmatmul.mubr.msk.f32.vlgmr.msra.gmra.mxu1 %vm290_vm5, %v1842_v8  ;;  %8131 = vmatpush3.msra.mxu0 %v9673_v29 }
0x129e   :  { %8142 = vmatpush3.msra.mxu1 %v9676_v30  ;;  %8132 = vmatprep.subr.mxu0 %v9216_v0 }
0x129f   :  { %8143 = vmatprep.subr.mxu1 %v9216_v0  ;;  %8133 = vmatpush3.msra.mxu0 %v9681_v25 }
0x12a0   :  { %8144 = vmatpush3.msra.mxu1 %v9684_v26  ;;  %8134 = vmatprep.subr.mxu0 %v9216_v0 }
0x12a1   :  { %8145 = vmatprep.subr.mxu1 %v9216_v0  ;;  %8135 = vmatpush3.msra.mxu0 %v9689_v31 }
0x12a2   :  { %8146 = vmatpush3.msra.mxu1 %v9692_v2  ;;  %8136 = vmatprep.subr.mxu0 %v9216_v0 }
0x12a3   :  { %8147 = vmatprep.subr.mxu1 %v9216_v0  ;;  %8137 = vmatpush3.msra.mxu0 %v9697_v3 }
0x12a4   :  { %8138 = vmatprep.mubr.msk.f32.mxu0 %vm9217_vm0, %v9216_v0  ;;  %8148 = vmatpush3.msra.mxu1 %v9702_v4 }
0x12a5   :  { %8149 = vmatprep.mubr.msk.f32.mxu1 %vm9217_vm0, %v9216_v0  ;;  %8152 = vmatprep.subr.mxu0 %v9216_v0 }
0x12a6   :  { %8163 = vmatprep.subr.mxu1 %v9216_v0 }
0x12a8   :  { %v93_v9 = vpop.permute.xlu1 %92 }
0x12a9   :  { %v148_v32 = vmul.f32 %v9773_v5, %v93_v9  ;;  %v212_v33 = vmul.f32 %v9779_v7, %v93_v9  ;;  %v98_v35 = vpop.permute.xlu0 %97 }
0x12aa   :  { %v149_v37 = vmul.f32 %v9773_v5, %v98_v35  ;;  %v213_v16 = vmul.f32 %v9779_v7, %v98_v35 }
0x12ab   :  { %v171_v17 = vadd.f32 %v9787_v34, %v148_v32  ;;  %v236_v38 = vadd.f32 %v9793_v36, %v212_v33 }
0x12ac   :  { %v172_v39 = vadd.f32 %v9787_v34, %v149_v37  ;;  %v237_v40 = vadd.f32 %v9793_v36, %v213_v16 }
0x12ad   :  { %188 = vst.msk [vmem:[#allocation2 + $0x38] sm:$0xff] %vm180_vm1, %v171_v17  ;;  %252 = vst.msk [vmem:[#allocation3 + $0x38] sm:$0xff] %vm180_vm1, %v236_v38 }
0x12ae   :  { %189 = vst.msk [vmem:[#allocation2 + $0x40] sm:$0xff] %vm180_vm1, %v172_v39  ;;  %253 = vst.msk [vmem:[#allocation3 + $0x40] sm:$0xff] %vm180_vm1, %v237_v40 }
0x12b4   :  { %v1915_v34 = vld [vmem:[#allocation2 + $0x38] sm:$0x3] }
0x12b5   :  { %v1943_v43 = vld [vmem:[#allocation3 + $0x40] sm:$0x3]  ;;  %v2152_v16 = vld [vmem:[#allocation3 + $0x38] sm:$0x3] }
0x12b6   :  { %v2124_v35 = vld [vmem:[#allocation2 + $0x40] sm:$0x3] }
0x135c   :  { %v1836_v18 = vpop.f32.mrf.mxu0 }
0x135d   :  { %v1923_v5 = vadd.f32 %v1836_v18, %v9334_v14  ;;  %v1911_v7 = vpop.f32.mrf.mxu1  ;;  %v1916_v36 = vadd.f32 %v1915_v34, %v1836_v18 }
0x135e   :  { %v1951_v19 = vadd.f32 %v1911_v7, %v9336_v15  ;;  %v8118_v41 = vpop.f32.mrf.mxu0  ;;  %v1944_v44 = vadd.f32 %v1943_v43, %v1911_v7 }
0x135f   :  { %v8129_v42 = vpop.f32.mrf.mxu1  ;;  %1925 = vrot.lane.b32.xlu1 %v1923_v5, %s9219_s7  ;;  %v7442_v45 = vmul.f32 -1.442695, %v1916_v36 }
0x1360   :  { %1953 = vrot.lane.b32.xlu0 %v1951_v19, %s9219_s7  ;;  %v7443_v46 = vmul.f32 -1.442695, %v1944_v44 }
0x1361   :  { %8833 = vpow2.f32 %v7442_v45 }
0x1362   :  { %8835 = vpow2.f32 %v7443_v46 }
0x136e   :  { %v8834_v47 = vpop.eup %8833 }
0x136f   :  { %v8836_v48 = vpop.eup %8835  ;;  %v1920_v49 = vadd.f32 1.0, %v8834_v47 }
0x1370   :  { %v1948_v50 = vadd.f32 1.0, %v8836_v48 }
0x1371   :  { %8837 = vrcp.f32 %v1920_v49 }
0x1372   :  { %8839 = vrcp.f32 %v1948_v50 }
0x137e   :  { %v8838_v51 = vpop.eup %8837 }
0x137f   :  { %v8840_v53 = vpop.eup %8839  ;;  %v1935_v63 = vsub.f32 1.0, %v8838_v51  ;;  %v1941_v13 = vmul.f32 %v8838_v51, %v9812_v23 }
0x1380   :  { %v1963_v10 = vsub.f32 1.0, %v8840_v53  ;;  %v1969_v22 = vmul.f32 %v8840_v53, %v9814_v28 }
0x13d1   :  { %v1926_v52 = vpop.permute.xlu1 %1925 }
0x13d2   :  { %v1928_v54 = vmul.f32 %v8838_v51, %v1926_v52  ;;  %v1954_v55 = vpop.permute.xlu0 %1953 }
0x13d3   :  { %v1956_v56 = vmul.f32 %v8840_v53, %v1954_v55 }
0x13d4   :  { %1930 = vrot.lane.b32.xlu1 %v1928_v54, %s9219_s7 }
0x13d5   :  { %1958 = vrot.lane.b32.xlu0 %v1956_v56, %s9219_s7 }
0x1446   :  { %v1931_v57 = vpop.permute.xlu1 %1930 }
0x1447   :  { %v1933_v58 = vadd.f32 %v1931_v57, %v1915_v34  ;;  %v1959_v59 = vpop.permute.xlu0 %1958 }
0x1448   :  { %v1961_v60 = vadd.f32 %v1959_v59, %v1943_v43 }
0x1449   :  { %8841 = vtanh.f32 %v1933_v58 }
0x144a   :  { %8843 = vtanh.f32 %v1961_v60 }
0x1456   :  { %v8842_v61 = vpop.eup %8841 }
0x1457   :  { %v8844_v62 = vpop.eup %8843  ;;  %1937 = vrot.lane.b32.xlu1 %v8842_v61, %s9220_s20 }
0x1458   :  { %1965 = vrot.lane.b32.xlu0 %v8844_v62, %s9220_s20 }
0x14c9   :  { %v1938_v1 = vpop.permute.xlu1 %1937 }
0x14ca   :  { %v1940_v20 = vmul.f32 %v1938_v1, %v1935_v63  ;;  %v1966_v21 = vpop.permute.xlu0 %1965 }
0x14cb   :  { %v1968_v11 = vmul.f32 %v1966_v21, %v1963_v10  ;;  %v2333_v21 = vld [vmem:[#allocation2 + $0x48] sm:$0x3] }
0x14cc   :  { %v9873_v12 = vadd.f32 %v1941_v13, %v1940_v20 }
0x14cd   :  { %v9875_v6 = vadd.f32 %v1969_v22, %v1968_v11  ;;  %v2361_v11 = vld [vmem:[#allocation3 + $0x30] sm:$0x3] }
0x14ce   :  { %1972 = vrot.lane.b32.xlu1 %v9873_v12, %s9220_s20 }
0x14cf   :  { %2050 = vrot.lane.b32.xlu0 %v9875_v6, %s9220_s20  ;;  %1976 = vst.msk [vmem:[#allocation4 + $0x40] sm:$0x3] %vm512_vm3, %v9875_v6 }
0x1540   :  { %v1973_v24 = vpop.permute.xlu1 %1972 }
0x1541   :  { %1975 = vst.msk [vmem:[#allocation4 + $0x38] sm:$0x3] %vm510_vm4, %v1973_v24  ;;  %v2051_v23 = vpop.permute.xlu0 %2050  ;;  %8139 = vmatmul.mubr.msk.f32.vlgmr.msra.gmra.mxu0 %vm290_vm5, %v1973_v24 }
0x1542   :  { %8150 = vmatmul.mubr.msk.f32.vlgmr.msra.gmra.mxu1 %vm290_vm5, %v2051_v23  ;;  %8153 = vmatpush3.msra.mxu0 %v9673_v29 }
0x1543   :  { %8164 = vmatpush3.msra.mxu1 %v9676_v30  ;;  %8154 = vmatprep.subr.mxu0 %v9216_v0 }
0x1544   :  { %8165 = vmatprep.subr.mxu1 %v9216_v0  ;;  %8155 = vmatpush3.msra.mxu0 %v9681_v25 }
0x1545   :  { %8166 = vmatpush3.msra.mxu1 %v9684_v26  ;;  %8156 = vmatprep.subr.mxu0 %v9216_v0 }
0x1546   :  { %8167 = vmatprep.subr.mxu1 %v9216_v0  ;;  %8157 = vmatpush3.msra.mxu0 %v9689_v31 }
0x1547   :  { %8168 = vmatpush3.msra.mxu1 %v9692_v2  ;;  %8158 = vmatprep.subr.mxu0 %v9216_v0 }
0x1548   :  { %8169 = vmatprep.subr.mxu1 %v9216_v0  ;;  %8159 = vmatpush3.msra.mxu0 %v9697_v3 }
0x1549   :  { %8160 = vmatprep.mubr.msk.f32.mxu0 %vm9217_vm0, %v9216_v0  ;;  %8170 = vmatpush3.msra.mxu1 %v9702_v4 }
0x154a   :  { %8171 = vmatprep.mubr.msk.f32.mxu1 %vm9217_vm0, %v9216_v0  ;;  %8174 = vmatprep.subr.mxu0 %v9216_v0 }
0x154b   :  { %8185 = vmatprep.subr.mxu1 %v9216_v0 }
0x1601   :  { %v2045_v28 = vpop.f32.mrf.mxu0 }
0x1602   :  { %v2132_v27 = vadd.f32 %v2045_v28, %v9334_v14  ;;  %v2120_v8 = vpop.f32.mrf.mxu1  ;;  %v2125_v37 = vadd.f32 %v2124_v35, %v2045_v28 }
0x1603   :  { %v2160_v9 = vadd.f32 %v2120_v8, %v9336_v15  ;;  %v8140_v32 = vpop.f32.mrf.mxu0  ;;  %v2153_v17 = vadd.f32 %v2152_v16, %v2120_v8 }
0x1604   :  { %v8151_v33 = vpop.f32.mrf.mxu1  ;;  %2134 = vrot.lane.b32.xlu1 %v2132_v27, %s9219_s7  ;;  %v7446_v38 = vmul.f32 -1.442695, %v2125_v37 }
0x1605   :  { %2162 = vrot.lane.b32.xlu0 %v2160_v9, %s9219_s7  ;;  %v7447_v39 = vmul.f32 -1.442695, %v2153_v17 }
0x1606   :  { %8845 = vpow2.f32 %v7446_v38 }
0x1607   :  { %8847 = vpow2.f32 %v7447_v39 }
0x1613   :  { %v8846_v40 = vpop.eup %8845 }
0x1614   :  { %v8848_v18 = vpop.eup %8847  ;;  %v2129_v5 = vadd.f32 1.0, %v8846_v40 }
0x1615   :  { %v2157_v7 = vadd.f32 1.0, %v8848_v18 }
0x1616   :  { %8849 = vrcp.f32 %v2129_v5 }
0x1617   :  { %8851 = vrcp.f32 %v2157_v7 }
0x1623   :  { %v8850_v19 = vpop.eup %8849 }
0x1624   :  { %v8852_v42 = vpop.eup %8851  ;;  %v2144_v50 = vsub.f32 1.0, %v8850_v19  ;;  %v2150_v53 = vmul.f32 %v8850_v19, %v9873_v12 }
0x1625   :  { %v2172_v52 = vsub.f32 1.0, %v8852_v42  ;;  %v2178_v56 = vmul.f32 %v8852_v42, %v9875_v6 }
0x1676   :  { %v2135_v41 = vpop.permute.xlu1 %2134 }
0x1677   :  { %v2137_v34 = vmul.f32 %v8850_v19, %v2135_v41  ;;  %v2163_v36 = vpop.permute.xlu0 %2162 }
0x1678   :  { %v2165_v43 = vmul.f32 %v8852_v42, %v2163_v36 }
0x1679   :  { %2139 = vrot.lane.b32.xlu1 %v2137_v34, %s9219_s7 }
0x167a   :  { %2167 = vrot.lane.b32.xlu0 %v2165_v43, %s9219_s7 }
0x16eb   :  { %v2140_v44 = vpop.permute.xlu1 %2139 }
0x16ec   :  { %v2142_v45 = vadd.f32 %v2140_v44, %v2124_v35  ;;  %v2168_v46 = vpop.permute.xlu0 %2167 }
0x16ed   :  { %v2170_v47 = vadd.f32 %v2168_v46, %v2152_v16 }
0x16ee   :  { %8853 = vtanh.f32 %v2142_v45 }
0x16ef   :  { %8855 = vtanh.f32 %v2170_v47 }
0x16fb   :  { %v8854_v48 = vpop.eup %8853 }
0x16fc   :  { %v8856_v49 = vpop.eup %8855  ;;  %2146 = vrot.lane.b32.xlu1 %v8854_v48, %s9220_s20 }
0x16fd   :  { %2174 = vrot.lane.b32.xlu0 %v8856_v49, %s9220_s20 }
0x176e   :  { %v2147_v51 = vpop.permute.xlu1 %2146 }
0x176f   :  { %v2149_v54 = vmul.f32 %v2147_v51, %v2144_v50  ;;  %v2175_v55 = vpop.permute.xlu0 %2174 }
0x1770   :  { %v2177_v57 = vmul.f32 %v2175_v55, %v2172_v52  ;;  %v2542_v55 = vld [vmem:[#allocation2 + $0x50] sm:$0x3] }
0x1771   :  { %v9916_v58 = vadd.f32 %v2150_v53, %v2149_v54 }
0x1772   :  { %v9918_v59 = vadd.f32 %v2178_v56, %v2177_v57  ;;  %v2570_v57 = vld [vmem:[#allocation3 + $0x28] sm:$0x3] }
0x1773   :  { %2181 = vrot.lane.b32.xlu1 %v9916_v58, %s9220_s20 }
0x1774   :  { %2185 = vst.msk [vmem:[#allocation4 + $0x38] sm:$0x3] %vm512_vm3, %v9918_v59  ;;  %2259 = vrot.lane.b32.xlu0 %v9918_v59, %s9220_s20 }
0x17e5   :  { %v2182_v60 = vpop.permute.xlu1 %2181 }
0x17e6   :  { %2184 = vst.msk [vmem:[#allocation4 + $0x40] sm:$0x3] %vm510_vm4, %v2182_v60  ;;  %v2260_v61 = vpop.permute.xlu0 %2259  ;;  %8161 = vmatmul.mubr.msk.f32.vlgmr.msra.gmra.mxu0 %vm290_vm5, %v2182_v60 }
0x17e7   :  { %8172 = vmatmul.mubr.msk.f32.vlgmr.msra.gmra.mxu1 %vm290_vm5, %v2260_v61  ;;  %8175 = vmatpush3.msra.mxu0 %v9673_v29 }
0x17e8   :  { %8186 = vmatpush3.msra.mxu1 %v9676_v30  ;;  %8176 = vmatprep.subr.mxu0 %v9216_v0 }
0x17e9   :  { %8187 = vmatprep.subr.mxu1 %v9216_v0  ;;  %8177 = vmatpush3.msra.mxu0 %v9681_v25 }
0x17ea   :  { %8188 = vmatpush3.msra.mxu1 %v9684_v26  ;;  %8178 = vmatprep.subr.mxu0 %v9216_v0 }
0x17eb   :  { %8189 = vmatprep.subr.mxu1 %v9216_v0  ;;  %8179 = vmatpush3.msra.mxu0 %v9689_v31 }
0x17ec   :  { %8190 = vmatpush3.msra.mxu1 %v9692_v2  ;;  %8180 = vmatprep.subr.mxu0 %v9216_v0 }
0x17ed   :  { %8191 = vmatprep.subr.mxu1 %v9216_v0  ;;  %8181 = vmatpush3.msra.mxu0 %v9697_v3 }
0x17ee   :  { %8182 = vmatprep.mubr.msk.f32.mxu0 %vm9217_vm0, %v9216_v0  ;;  %8192 = vmatpush3.msra.mxu1 %v9702_v4 }
0x17ef   :  { %8193 = vmatprep.mubr.msk.f32.mxu1 %vm9217_vm0, %v9216_v0  ;;  %8196 = vmatprep.subr.mxu0 %v9216_v0 }
0x17f0   :  { %8207 = vmatprep.subr.mxu1 %v9216_v0 }
0x18a6   :  { %v2254_v62 = vpop.f32.mrf.mxu0 }
0x18a7   :  { %v2341_v63 = vadd.f32 %v2254_v62, %v9334_v14  ;;  %v2329_v1 = vpop.f32.mrf.mxu1  ;;  %v2334_v22 = vadd.f32 %v2333_v21, %v2254_v62 }
0x18a8   :  { %v2369_v10 = vadd.f32 %v2329_v1, %v9336_v15  ;;  %v8162_v13 = vpop.f32.mrf.mxu0  ;;  %v2362_v12 = vadd.f32 %v2361_v11, %v2329_v1 }
0x18a9   :  { %v8173_v20 = vpop.f32.mrf.mxu1  ;;  %2343 = vrot.lane.b32.xlu1 %v2341_v63, %s9219_s7  ;;  %v7450_v6 = vmul.f32 -1.442695, %v2334_v22 }
0x18aa   :  { %2371 = vrot.lane.b32.xlu0 %v2369_v10, %s9219_s7  ;;  %v7451_v24 = vmul.f32 -1.442695, %v2362_v12 }
0x18ab   :  { %8857 = vpow2.f32 %v7450_v6 }
0x18ac   :  { %8859 = vpow2.f32 %v7451_v24 }
0x18b8   :  { %v8858_v23 = vpop.eup %8857 }
0x18b9   :  { %v8860_v28 = vpop.eup %8859  ;;  %v2338_v27 = vadd.f32 1.0, %v8858_v23 }
0x18ba   :  { %v2366_v8 = vadd.f32 1.0, %v8860_v28 }
0x18bb   :  { %8861 = vrcp.f32 %v2338_v27 }
0x18bc   :  { %8863 = vrcp.f32 %v2366_v8 }
0x18c8   :  { %v8862_v9 = vpop.eup %8861 }
0x18c9   :  { %v8864_v33 = vpop.eup %8863  ;;  %v2353_v7 = vsub.f32 1.0, %v8862_v9  ;;  %v2359_v42 = vmul.f32 %v8862_v9, %v9916_v58 }
0x18ca   :  { %v2381_v41 = vsub.f32 1.0, %v8864_v33  ;;  %v2387_v43 = vmul.f32 %v8864_v33, %v9918_v59 }
0x191b   :  { %v2344_v32 = vpop.permute.xlu1 %2343 }
0x191c   :  { %v2346_v35 = vmul.f32 %v8862_v9, %v2344_v32  ;;  %v2372_v37 = vpop.permute.xlu0 %2371 }
0x191d   :  { %v2374_v16 = vmul.f32 %v8864_v33, %v2372_v37 }
0x191e   :  { %2348 = vrot.lane.b32.xlu1 %v2346_v35, %s9219_s7 }
0x191f   :  { %2376 = vrot.lane.b32.xlu0 %v2374_v16, %s9219_s7 }
0x1990   :  { %v2349_v17 = vpop.permute.xlu1 %2348 }
0x1991   :  { %v2351_v38 = vadd.f32 %v2349_v17, %v2333_v21  ;;  %v2377_v39 = vpop.permute.xlu0 %2376 }
0x1992   :  { %v2379_v40 = vadd.f32 %v2377_v39, %v2361_v11 }
0x1993   :  { %8865 = vtanh.f32 %v2351_v38 }
0x1994   :  { %8867 = vtanh.f32 %v2379_v40 }
0x19a0   :  { %v8866_v18 = vpop.eup %8865 }
0x19a1   :  { %v8868_v5 = vpop.eup %8867  ;;  %2355 = vrot.lane.b32.xlu1 %v8866_v18, %s9220_s20 }
0x19a2   :  { %2383 = vrot.lane.b32.xlu0 %v8868_v5, %s9220_s20  ;;  %v2779_v5 = vld [vmem:[#allocation3 + $0x20] sm:$0x3] }
0x1a13   :  { %v2356_v19 = vpop.permute.xlu1 %2355 }
0x1a14   :  { %v2358_v34 = vmul.f32 %v2356_v19, %v2353_v7  ;;  %v2384_v36 = vpop.permute.xlu0 %2383 }
0x1a15   :  { %v2386_v44 = vmul.f32 %v2384_v36, %v2381_v41 }
0x1a16   :  { %v9959_v45 = vadd.f32 %v2359_v42, %v2358_v34 }
0x1a17   :  { %v9961_v46 = vadd.f32 %v2387_v43, %v2386_v44 }
0x1a18   :  { %2390 = vrot.lane.b32.xlu1 %v9959_v45, %s9220_s20 }
0x1a19   :  { %2394 = vst.msk [vmem:[#allocation4 + $0x30] sm:$0x3] %vm512_vm3, %v9961_v46  ;;  %2468 = vrot.lane.b32.xlu0 %v9961_v46, %s9220_s20 }
0x1a8a   :  { %v2391_v47 = vpop.permute.xlu1 %2390 }
0x1a8b   :  { %2393 = vst.msk [vmem:[#allocation4 + $0x48] sm:$0x3] %vm510_vm4, %v2391_v47  ;;  %v2469_v48 = vpop.permute.xlu0 %2468  ;;  %8183 = vmatmul.mubr.msk.f32.vlgmr.msra.gmra.mxu0 %vm290_vm5, %v2391_v47 }
0x1a8c   :  { %8194 = vmatmul.mubr.msk.f32.vlgmr.msra.gmra.mxu1 %vm290_vm5, %v2469_v48  ;;  %8197 = vmatpush3.msra.mxu0 %v9673_v29 }
0x1a8d   :  { %8208 = vmatpush3.msra.mxu1 %v9676_v30  ;;  %8198 = vmatprep.subr.mxu0 %v9216_v0 }
0x1a8e   :  { %8209 = vmatprep.subr.mxu1 %v9216_v0  ;;  %8199 = vmatpush3.msra.mxu0 %v9681_v25 }
0x1a8f   :  { %8210 = vmatpush3.msra.mxu1 %v9684_v26  ;;  %8200 = vmatprep.subr.mxu0 %v9216_v0 }
0x1a90   :  { %8211 = vmatprep.subr.mxu1 %v9216_v0  ;;  %8201 = vmatpush3.msra.mxu0 %v9689_v31 }
0x1a91   :  { %8212 = vmatpush3.msra.mxu1 %v9692_v2  ;;  %8202 = vmatprep.subr.mxu0 %v9216_v0 }
0x1a92   :  { %8213 = vmatprep.subr.mxu1 %v9216_v0  ;;  %8203 = vmatpush3.msra.mxu0 %v9697_v3 }
0x1a93   :  { %8204 = vmatprep.mubr.msk.f32.mxu0 %vm9217_vm0, %v9216_v0  ;;  %8214 = vmatpush3.msra.mxu1 %v9702_v4 }
0x1a94   :  { %8215 = vmatprep.mubr.msk.f32.mxu1 %vm9217_vm0, %v9216_v0  ;;  %8218 = vmatprep.subr.mxu0 %v9216_v0 }
0x1a95   :  { %8229 = vmatprep.subr.mxu1 %v9216_v0 }
0x1b4b   :  { %v2463_v49 = vpop.f32.mrf.mxu0 }
0x1b4c   :  { %v2550_v50 = vadd.f32 %v2463_v49, %v9334_v14  ;;  %v2538_v51 = vpop.f32.mrf.mxu1  ;;  %v2543_v56 = vadd.f32 %v2542_v55, %v2463_v49 }
0x1b4d   :  { %v2578_v52 = vadd.f32 %v2538_v51, %v9336_v15  ;;  %v8184_v53 = vpop.f32.mrf.mxu0  ;;  %v2571_v58 = vadd.f32 %v2570_v57, %v2538_v51 }
0x1b4e   :  { %v8195_v54 = vpop.f32.mrf.mxu1  ;;  %2552 = vrot.lane.b32.xlu1 %v2550_v50, %s9219_s7  ;;  %v7454_v59 = vmul.f32 -1.442695, %v2543_v56 }
0x1b4f   :  { %2580 = vrot.lane.b32.xlu0 %v2578_v52, %s9219_s7  ;;  %v7455_v60 = vmul.f32 -1.442695, %v2571_v58 }
0x1b50   :  { %8869 = vpow2.f32 %v7454_v59 }
0x1b51   :  { %8871 = vpow2.f32 %v7455_v60 }
0x1b5d   :  { %v8870_v61 = vpop.eup %8869 }
0x1b5e   :  { %v8872_v62 = vpop.eup %8871  ;;  %v2547_v63 = vadd.f32 1.0, %v8870_v61 }
0x1b5f   :  { %v2575_v1 = vadd.f32 1.0, %v8872_v62 }
0x1b60   :  { %8873 = vrcp.f32 %v2547_v63 }
0x1b61   :  { %8875 = vrcp.f32 %v2575_v1 }
0x1b6d   :  { %v8874_v10 = vpop.eup %8873 }
0x1b6e   :  { %v8876_v20 = vpop.eup %8875  ;;  %v2562_v8 = vsub.f32 1.0, %v8874_v10  ;;  %v2568_v33 = vmul.f32 %v8874_v10, %v9959_v45 }
0x1b6f   :  { %v2590_v32 = vsub.f32 1.0, %v8876_v20  ;;  %v2596_v16 = vmul.f32 %v8876_v20, %v9961_v46 }
0x1bc0   :  { %v2553_v13 = vpop.permute.xlu1 %2552 }
0x1bc1   :  { %v2555_v21 = vmul.f32 %v8874_v10, %v2553_v13  ;;  %v2581_v22 = vpop.permute.xlu0 %2580 }
0x1bc2   :  { %v2583_v11 = vmul.f32 %v8876_v20, %v2581_v22  ;;  %v10061_v22 = vld [vmem:[#allocation5 + $0x38] sm:$0xff] }
0x1bc3   :  { %2557 = vrot.lane.b32.xlu1 %v2555_v21, %s9219_s7  ;;  %v10058_v21 = vld [vmem:[#allocation5 + $0x18] sm:$0xff] }
0x1bc4   :  { %2585 = vrot.lane.b32.xlu0 %v2583_v11, %s9219_s7  ;;  %v10066_v11 = vld [vmem:[#allocation5 + $0x10] sm:$0xff] }
0x1c35   :  { %v2558_v12 = vpop.permute.xlu1 %2557 }
0x1c36   :  { %v2560_v6 = vadd.f32 %v2558_v12, %v2542_v55  ;;  %v2586_v24 = vpop.permute.xlu0 %2585  ;;  %v10069_v12 = vld [vmem:[#allocation5 + $0x30] sm:$0xff] }
0x1c37   :  { %v2588_v23 = vadd.f32 %v2586_v24, %v2570_v57  ;;  %v10077_v24 = vld [vmem:[#allocation5 + $0x28] sm:$0xff] }
0x1c38   :  { %8877 = vtanh.f32 %v2560_v6  ;;  %v10074_v6 = vld [vmem:[#allocation5 + $0x8] sm:$0xff] }
0x1c39   :  { %8879 = vtanh.f32 %v2588_v23  ;;  %v10082_v23 = vld [vmem:[#allocation5] sm:$0xff] }
0x1c45   :  { %v8878_v28 = vpop.eup %8877 }
0x1c46   :  { %v8880_v27 = vpop.eup %8879  ;;  %2564 = vrot.lane.b32.xlu1 %v8878_v28, %s9220_s20  ;;  %v10087_v28 = vld [vmem:[#allocation5 + $0x20] sm:$0xff] }
0x1c47   :  { %2592 = vrot.lane.b32.xlu0 %v8880_v27, %s9220_s20 }
0x1cb8   :  { %v2565_v9 = vpop.permute.xlu1 %2564 }
0x1cb9   :  { %v2567_v35 = vmul.f32 %v2565_v9, %v2562_v8  ;;  %v2593_v37 = vpop.permute.xlu0 %2592 }
0x1cba   :  { %v2595_v17 = vmul.f32 %v2593_v37, %v2590_v32  ;;  %v2960_v37 = vld [vmem:[#allocation2 + $0x60] sm:$0x3] }
0x1cbb   :  { %v10002_v38 = vadd.f32 %v2568_v33, %v2567_v35 }
0x1cbc   :  { %v10004_v39 = vadd.f32 %v2596_v16, %v2595_v17  ;;  %v2988_v17 = vld [vmem:[#allocation3 + $0x18] sm:$0x3] }
0x1cbd   :  { %2599 = vrot.lane.b32.xlu1 %v10002_v38, %s9220_s20 }
0x1cbe   :  { %2603 = vst.msk [vmem:[#allocation4 + $0x28] sm:$0x3] %vm512_vm3, %v10004_v39  ;;  %2677 = vrot.lane.b32.xlu0 %v10004_v39, %s9220_s20 }
0x1d2f   :  { %v2600_v40 = vpop.permute.xlu1 %2599 }
0x1d30   :  { %2602 = vst.msk [vmem:[#allocation4 + $0x50] sm:$0x3] %vm510_vm4, %v2600_v40  ;;  %v2678_v18 = vpop.permute.xlu0 %2677  ;;  %8205 = vmatmul.mubr.msk.f32.vlgmr.msra.gmra.mxu0 %vm290_vm5, %v2600_v40 }
0x1d31   :  { %8216 = vmatmul.mubr.msk.f32.vlgmr.msra.gmra.mxu1 %vm290_vm5, %v2678_v18  ;;  %8219 = vmatpush3.msra.mxu0 %v9673_v29 }
0x1d32   :  { %8230 = vmatpush3.msra.mxu1 %v9676_v30  ;;  %8220 = vmatprep.subr.mxu0 %v9216_v0 }
0x1d33   :  { %8231 = vmatprep.subr.mxu1 %v9216_v0  ;;  %8221 = vmatpush3.msra.mxu0 %v9681_v25 }
0x1d34   :  { %8232 = vmatpush3.msra.mxu1 %v9684_v26  ;;  %8222 = vmatprep.subr.mxu0 %v9216_v0 }
0x1d35   :  { %8233 = vmatprep.subr.mxu1 %v9216_v0  ;;  %8223 = vmatpush3.msra.mxu0 %v9689_v31 }
0x1d36   :  { %8234 = vmatpush3.msra.mxu1 %v9692_v2  ;;  %8224 = vmatprep.subr.mxu0 %v9216_v0 }
0x1d37   :  { %8235 = vmatprep.subr.mxu1 %v9216_v0  ;;  %8225 = vmatpush3.msra.mxu0 %v9697_v3  ;;  %v2751_v3 = vld [vmem:[#allocation2 + $0x58] sm:$0x3] }
0x1d38   :  { %8226 = vmatprep.mubr.msk.f32.mxu0 %vm9217_vm0, %v9216_v0  ;;  %8236 = vmatpush3.msra.mxu1 %v9702_v4 }
0x1d39   :  { %8237 = vmatprep.mubr.msk.f32.mxu1 %vm9217_vm0, %v9216_v0  ;;  %8240 = vmatprep.subr.mxu0 %v9216_v0 }
0x1d3a   :  { %8251 = vmatprep.subr.mxu1 %v9216_v0 }
0x1df0   :  { %v2672_v29 = vpop.f32.mrf.mxu0 }
0x1df1   :  { %v2759_v30 = vadd.f32 %v2672_v29, %v9334_v14  ;;  %v2747_v25 = vpop.f32.mrf.mxu1  ;;  %v2752_v4 = vadd.f32 %v2751_v3, %v2672_v29 }
0x1df2   :  { %v2787_v26 = vadd.f32 %v2747_v25, %v9336_v15  ;;  %v8206_v31 = vpop.f32.mrf.mxu0  ;;  %v2780_v7 = vadd.f32 %v2779_v5, %v2747_v25 }
0x1df3   :  { %v8217_v2 = vpop.f32.mrf.mxu1  ;;  %2761 = vrot.lane.b32.xlu1 %v2759_v30, %s9219_s7  ;;  %v7458_v19 = vmul.f32 -1.442695, %v2752_v4 }
0x1df4   :  { %2789 = vrot.lane.b32.xlu0 %v2787_v26, %s9219_s7  ;;  %v7459_v41 = vmul.f32 -1.442695, %v2780_v7 }
0x1df5   :  { %8881 = vpow2.f32 %v7458_v19 }
0x1df6   :  { %8883 = vpow2.f32 %v7459_v41 }
0x1e02   :  { %v8882_v42 = vpop.eup %8881 }
0x1e03   :  { %v8884_v34 = vpop.eup %8883  ;;  %v2756_v36 = vadd.f32 1.0, %v8882_v42 }
0x1e04   :  { %v2784_v43 = vadd.f32 1.0, %v8884_v34 }
0x1e05   :  { %8885 = vrcp.f32 %v2756_v36 }
0x1e06   :  { %8887 = vrcp.f32 %v2784_v43 }
0x1e12   :  { %v8886_v44 = vpop.eup %8885 }
0x1e13   :  { %v8888_v46 = vpop.eup %8887  ;;  %v2771_v56 = vsub.f32 1.0, %v8886_v44  ;;  %v2777_v59 = vmul.f32 %v8886_v44, %v10002_v38 }
0x1e14   :  { %v2799_v58 = vsub.f32 1.0, %v8888_v46  ;;  %v2805_v62 = vmul.f32 %v8888_v46, %v10004_v39 }
0x1e65   :  { %v2762_v45 = vpop.permute.xlu1 %2761 }
0x1e66   :  { %v2764_v47 = vmul.f32 %v8886_v44, %v2762_v45  ;;  %v2790_v48 = vpop.permute.xlu0 %2789 }
0x1e67   :  { %v2792_v49 = vmul.f32 %v8888_v46, %v2790_v48 }
0x1e68   :  { %2766 = vrot.lane.b32.xlu1 %v2764_v47, %s9219_s7 }
0x1e69   :  { %2794 = vrot.lane.b32.xlu0 %v2792_v49, %s9219_s7 }
0x1eda   :  { %v2767_v50 = vpop.permute.xlu1 %2766 }
0x1edb   :  { %v2769_v51 = vadd.f32 %v2767_v50, %v2751_v3  ;;  %v2795_v52 = vpop.permute.xlu0 %2794 }
0x1edc   :  { %v2797_v53 = vadd.f32 %v2795_v52, %v2779_v5 }
0x1edd   :  { %8889 = vtanh.f32 %v2769_v51 }
0x1ede   :  { %8891 = vtanh.f32 %v2797_v53 }
0x1eea   :  { %v8890_v54 = vpop.eup %8889 }
0x1eeb   :  { %v8892_v55 = vpop.eup %8891  ;;  %2773 = vrot.lane.b32.xlu1 %v8890_v54, %s9220_s20 }
0x1eec   :  { %2801 = vrot.lane.b32.xlu0 %v8892_v55, %s9220_s20 }
0x1f5d   :  { %v2774_v57 = vpop.permute.xlu1 %2773 }
0x1f5e   :  { %v2776_v60 = vmul.f32 %v2774_v57, %v2771_v56  ;;  %v2802_v61 = vpop.permute.xlu0 %2801 }
0x1f5f   :  { %v2804_v63 = vmul.f32 %v2802_v61, %v2799_v58  ;;  %v3169_v61 = vld [vmem:[#allocation2 + $0x68] sm:$0x3] }
0x1f60   :  { %v10045_v1 = vadd.f32 %v2777_v59, %v2776_v60 }
0x1f61   :  { %v10047_v10 = vadd.f32 %v2805_v62, %v2804_v63  ;;  %v3197_v63 = vld [vmem:[#allocation3 + $0x10] sm:$0x3] }
0x1f62   :  { %2808 = vrot.lane.b32.xlu1 %v10045_v1, %s9220_s20 }
0x1f63   :  { %2812 = vst.msk [vmem:[#allocation4 + $0x20] sm:$0x3] %vm512_vm3, %v10047_v10  ;;  %2886 = vrot.lane.b32.xlu0 %v10047_v10, %s9220_s20 }
0x1fd4   :  { %v2809_v13 = vpop.permute.xlu1 %2808 }
0x1fd5   :  { %2811 = vst.msk [vmem:[#allocation4 + $0x58] sm:$0x3] %vm510_vm4, %v2809_v13  ;;  %v2887_v20 = vpop.permute.xlu0 %2886  ;;  %8227 = vmatmul.mubr.msk.f32.vlgmr.msra.gmra.mxu0 %vm290_vm5, %v2809_v13 }
0x1fd6   :  { %8238 = vmatmul.mubr.msk.f32.vlgmr.msra.gmra.mxu1 %vm290_vm5, %v2887_v20  ;;  %8241 = vmatpush3.msra.mxu0 %v10058_v21 }
0x1fd7   :  { %8252 = vmatpush3.msra.mxu1 %v10061_v22  ;;  %8242 = vmatprep.subr.mxu0 %v9216_v0 }
0x1fd8   :  { %8253 = vmatprep.subr.mxu1 %v9216_v0  ;;  %8243 = vmatpush3.msra.mxu0 %v10066_v11 }
0x1fd9   :  { %8254 = vmatpush3.msra.mxu1 %v10069_v12  ;;  %8244 = vmatprep.subr.mxu0 %v9216_v0 }
0x1fda   :  { %8255 = vmatprep.subr.mxu1 %v9216_v0  ;;  %8245 = vmatpush3.msra.mxu0 %v10074_v6 }
0x1fdb   :  { %8256 = vmatpush3.msra.mxu1 %v10077_v24  ;;  %8246 = vmatprep.subr.mxu0 %v9216_v0 }
0x1fdc   :  { %8257 = vmatprep.subr.mxu1 %v9216_v0  ;;  %8247 = vmatpush3.msra.mxu0 %v10082_v23 }
0x1fdd   :  { %8248 = vmatprep.mubr.msk.f32.mxu0 %vm9217_vm0, %v9216_v0  ;;  %8258 = vmatpush3.msra.mxu1 %v10087_v28 }
0x1fde   :  { %8259 = vmatprep.mubr.msk.f32.mxu1 %vm9217_vm0, %v9216_v0  ;;  %8262 = vmatprep.subr.mxu0 %v9216_v0 }
0x1fdf   :  { %8273 = vmatprep.subr.mxu1 %v9216_v0 }
0x2095   :  { %v2881_v27 = vpop.f32.mrf.mxu0 }
0x2096   :  { %v2968_v8 = vadd.f32 %v2881_v27, %v9334_v14  ;;  %v2956_v9 = vpop.f32.mrf.mxu1  ;;  %v2961_v16 = vadd.f32 %v2960_v37, %v2881_v27 }
0x2097   :  { %v2996_v32 = vadd.f32 %v2956_v9, %v9336_v15  ;;  %v8228_v33 = vpop.f32.mrf.mxu0  ;;  %v2989_v38 = vadd.f32 %v2988_v17, %v2956_v9 }
0x2098   :  { %v8239_v35 = vpop.f32.mrf.mxu1  ;;  %2970 = vrot.lane.b32.xlu1 %v2968_v8, %s9219_s7  ;;  %v7462_v39 = vmul.f32 -1.442695, %v2961_v16 }
0x2099   :  { %2998 = vrot.lane.b32.xlu0 %v2996_v32, %s9219_s7  ;;  %v7463_v40 = vmul.f32 -1.442695, %v2989_v38 }
0x209a   :  { %8893 = vpow2.f32 %v7462_v39 }
0x209b   :  { %8895 = vpow2.f32 %v7463_v40 }
0x20a7   :  { %v8894_v18 = vpop.eup %8893 }
0x20a8   :  { %v8896_v29 = vpop.eup %8895  ;;  %v2965_v30 = vadd.f32 1.0, %v8894_v18 }
0x20a9   :  { %v2993_v25 = vadd.f32 1.0, %v8896_v29 }
0x20aa   :  { %8897 = vrcp.f32 %v2965_v30 }
0x20ab   :  { %8899 = vrcp.f32 %v2993_v25 }
0x20b7   :  { %v8898_v26 = vpop.eup %8897 }
0x20b8   :  { %v8900_v2 = vpop.eup %8899  ;;  %v2980_v43 = vsub.f32 1.0, %v8898_v26  ;;  %v2986_v46 = vmul.f32 %v8898_v26, %v10045_v1 }
0x20b9   :  { %v3008_v45 = vsub.f32 1.0, %v8900_v2  ;;  %v3014_v49 = vmul.f32 %v8900_v2, %v10047_v10 }
0x210a   :  { %v2971_v31 = vpop.permute.xlu1 %2970 }
0x210b   :  { %v2973_v3 = vmul.f32 %v8898_v26, %v2971_v31  ;;  %v2999_v4 = vpop.permute.xlu0 %2998 }
0x210c   :  { %v3001_v5 = vmul.f32 %v8900_v2, %v2999_v4 }
0x210d   :  { %2975 = vrot.lane.b32.xlu1 %v2973_v3, %s9219_s7 }
0x210e   :  { %3003 = vrot.lane.b32.xlu0 %v3001_v5, %s9219_s7 }
0x217f   :  { %v2976_v7 = vpop.permute.xlu1 %2975 }
0x2180   :  { %v2978_v19 = vadd.f32 %v2976_v7, %v2960_v37  ;;  %v3004_v41 = vpop.permute.xlu0 %3003 }
0x2181   :  { %v3006_v42 = vadd.f32 %v3004_v41, %v2988_v17 }
0x2182   :  { %8901 = vtanh.f32 %v2978_v19 }
0x2183   :  { %8903 = vtanh.f32 %v3006_v42 }
0x218f   :  { %v8902_v34 = vpop.eup %8901 }
0x2190   :  { %v8904_v36 = vpop.eup %8903  ;;  %2982 = vrot.lane.b32.xlu1 %v8902_v34, %s9220_s20 }
0x2191   :  { %3010 = vrot.lane.b32.xlu0 %v8904_v36, %s9220_s20 }
0x2202   :  { %v2983_v44 = vpop.permute.xlu1 %2982 }
0x2203   :  { %v2985_v47 = vmul.f32 %v2983_v44, %v2980_v43  ;;  %v3011_v48 = vpop.permute.xlu0 %3010  ;;  %v3406_v43 = vld [vmem:[#allocation3 + $0x8] sm:$0x3] }
0x2204   :  { %v3013_v50 = vmul.f32 %v3011_v48, %v3008_v45 }
0x2205   :  { %v10104_v51 = vadd.f32 %v2986_v46, %v2985_v47 }
0x2206   :  { %v10106_v52 = vadd.f32 %v3014_v49, %v3013_v50 }
0x2207   :  { %3017 = vrot.lane.b32.xlu1 %v10104_v51, %s9220_s20 }
0x2208   :  { %3021 = vst.msk [vmem:[#allocation4 + $0x18] sm:$0x3] %vm512_vm3, %v10106_v52  ;;  %3095 = vrot.lane.b32.xlu0 %v10106_v52, %s9220_s20 }
0x2279   :  { %v3018_v53 = vpop.permute.xlu1 %3017 }
0x227a   :  { %3020 = vst.msk [vmem:[#allocation4 + $0x60] sm:$0x3] %vm510_vm4, %v3018_v53  ;;  %v3096_v54 = vpop.permute.xlu0 %3095  ;;  %8249 = vmatmul.mubr.msk.f32.vlgmr.msra.gmra.mxu0 %vm290_vm5, %v3018_v53 }
0x227b   :  { %8260 = vmatmul.mubr.msk.f32.vlgmr.msra.gmra.mxu1 %vm290_vm5, %v3096_v54  ;;  %8263 = vmatpush3.msra.mxu0 %v10058_v21 }
0x227c   :  { %8274 = vmatpush3.msra.mxu1 %v10061_v22  ;;  %8264 = vmatprep.subr.mxu0 %v9216_v0 }
0x227d   :  { %8275 = vmatprep.subr.mxu1 %v9216_v0  ;;  %8265 = vmatpush3.msra.mxu0 %v10066_v11 }
0x227e   :  { %8276 = vmatpush3.msra.mxu1 %v10069_v12  ;;  %8266 = vmatprep.subr.mxu0 %v9216_v0 }
0x227f   :  { %8277 = vmatprep.subr.mxu1 %v9216_v0  ;;  %8267 = vmatpush3.msra.mxu0 %v10074_v6 }
0x2280   :  { %8278 = vmatpush3.msra.mxu1 %v10077_v24  ;;  %8268 = vmatprep.subr.mxu0 %v9216_v0 }
0x2281   :  { %8279 = vmatprep.subr.mxu1 %v9216_v0  ;;  %8269 = vmatpush3.msra.mxu0 %v10082_v23 }
0x2282   :  { %8270 = vmatprep.mubr.msk.f32.mxu0 %vm9217_vm0, %v9216_v0  ;;  %8280 = vmatpush3.msra.mxu1 %v10087_v28 }
0x2283   :  { %8281 = vmatprep.mubr.msk.f32.mxu1 %vm9217_vm0, %v9216_v0  ;;  %8284 = vmatprep.subr.mxu0 %v9216_v0 }
0x2284   :  { %8295 = vmatprep.subr.mxu1 %v9216_v0 }
0x233a   :  { %v3090_v55 = vpop.f32.mrf.mxu0 }
0x233b   :  { %v3177_v56 = vadd.f32 %v3090_v55, %v9334_v14  ;;  %v3165_v57 = vpop.f32.mrf.mxu1  ;;  %v3170_v62 = vadd.f32 %v3169_v61, %v3090_v55 }
0x233c   :  { %v3205_v58 = vadd.f32 %v3165_v57, %v9336_v15  ;;  %v8250_v59 = vpop.f32.mrf.mxu0  ;;  %v3198_v1 = vadd.f32 %v3197_v63, %v3165_v57 }
0x233d   :  { %v8261_v60 = vpop.f32.mrf.mxu1  ;;  %3179 = vrot.lane.b32.xlu1 %v3177_v56, %s9219_s7  ;;  %v7466_v10 = vmul.f32 -1.442695, %v3170_v62 }
0x233e   :  { %3207 = vrot.lane.b32.xlu0 %v3205_v58, %s9219_s7  ;;  %v7467_v13 = vmul.f32 -1.442695, %v3198_v1 }
0x233f   :  { %8905 = vpow2.f32 %v7466_v10 }
0x2340   :  { %8907 = vpow2.f32 %v7467_v13 }
0x234c   :  { %v8906_v20 = vpop.eup %8905 }
0x234d   :  { %v8908_v27 = vpop.eup %8907  ;;  %v3174_v8 = vadd.f32 1.0, %v8906_v20 }
0x234e   :  { %v3202_v9 = vadd.f32 1.0, %v8908_v27 }
0x234f   :  { %8909 = vrcp.f32 %v3174_v8 }
0x2350   :  { %8911 = vrcp.f32 %v3202_v9 }
0x235c   :  { %v8910_v32 = vpop.eup %8909 }
0x235d   :  { %v8912_v35 = vpop.eup %8911  ;;  %v3189_v25 = vsub.f32 1.0, %v8910_v32  ;;  %v3195_v2 = vmul.f32 %v8910_v32, %v10104_v51 }
0x235e   :  { %v3217_v31 = vsub.f32 1.0, %v8912_v35  ;;  %v3223_v5 = vmul.f32 %v8912_v35, %v10106_v52 }
0x23af   :  { %v3180_v33 = vpop.permute.xlu1 %3179 }
0x23b0   :  { %v3182_v37 = vmul.f32 %v8910_v32, %v3180_v33  ;;  %v3208_v16 = vpop.permute.xlu0 %3207 }
0x23b1   :  { %v3210_v17 = vmul.f32 %v8912_v35, %v3208_v16 }
0x23b2   :  { %3184 = vrot.lane.b32.xlu1 %v3182_v37, %s9219_s7 }
0x23b3   :  { %3212 = vrot.lane.b32.xlu0 %v3210_v17, %s9219_s7 }
0x2424   :  { %v3185_v38 = vpop.permute.xlu1 %3184 }
0x2425   :  { %v3187_v39 = vadd.f32 %v3185_v38, %v3169_v61  ;;  %v3213_v40 = vpop.permute.xlu0 %3212 }
0x2426   :  { %v3215_v18 = vadd.f32 %v3213_v40, %v3197_v63 }
0x2427   :  { %8913 = vtanh.f32 %v3187_v39 }
0x2428   :  { %8915 = vtanh.f32 %v3215_v18  ;;  %v3587_v18 = vld [vmem:[#allocation2 + $0x78] sm:$0x3] }
0x2434   :  { %v8914_v29 = vpop.eup %8913 }
0x2435   :  { %v8916_v30 = vpop.eup %8915  ;;  %3191 = vrot.lane.b32.xlu1 %v8914_v29, %s9220_s20 }
0x2436   :  { %3219 = vrot.lane.b32.xlu0 %v8916_v30, %s9220_s20  ;;  %v3615_v30 = vld [vmem:[#allocation3] sm:$0x3] }
0x24a7   :  { %v3192_v26 = vpop.permute.xlu1 %3191 }
0x24a8   :  { %v3194_v3 = vmul.f32 %v3192_v26, %v3189_v25  ;;  %v3220_v4 = vpop.permute.xlu0 %3219 }
0x24a9   :  { %v3222_v7 = vmul.f32 %v3220_v4, %v3217_v31 }
0x24aa   :  { %v10147_v19 = vadd.f32 %v3195_v2, %v3194_v3 }
0x24ab   :  { %v10149_v41 = vadd.f32 %v3223_v5, %v3222_v7 }
0x24ac   :  { %3226 = vrot.lane.b32.xlu1 %v10147_v19, %s9220_s20 }
0x24ad   :  { %3230 = vst.msk [vmem:[#allocation4 + $0x10] sm:$0x3] %vm512_vm3, %v10149_v41  ;;  %3304 = vrot.lane.b32.xlu0 %v10149_v41, %s9220_s20 }
0x251e   :  { %v3227_v42 = vpop.permute.xlu1 %3226 }
0x251f   :  { %3229 = vst.msk [vmem:[#allocation4 + $0x68] sm:$0x3] %vm510_vm4, %v3227_v42  ;;  %v3305_v34 = vpop.permute.xlu0 %3304  ;;  %8271 = vmatmul.mubr.msk.f32.vlgmr.msra.gmra.mxu0 %vm290_vm5, %v3227_v42 }
0x2520   :  { %8282 = vmatmul.mubr.msk.f32.vlgmr.msra.gmra.mxu1 %vm290_vm5, %v3305_v34  ;;  %8285 = vmatpush3.msra.mxu0 %v10058_v21  ;;  %v3672_v34 = vld [vmem:[%s11068_s2 + $0x38] sm:$0xff] }
0x2521   :  { %8296 = vmatpush3.msra.mxu1 %v10061_v22  ;;  %8286 = vmatprep.subr.mxu0 %v9216_v0 }
0x2522   :  { %8297 = vmatprep.subr.mxu1 %v9216_v0  ;;  %8287 = vmatpush3.msra.mxu0 %v10066_v11 }
0x2523   :  { %8298 = vmatpush3.msra.mxu1 %v10069_v12  ;;  %8288 = vmatprep.subr.mxu0 %v9216_v0 }
0x2524   :  { %8299 = vmatprep.subr.mxu1 %v9216_v0  ;;  %8289 = vmatpush3.msra.mxu0 %v10074_v6 }
0x2525   :  { %8300 = vmatpush3.msra.mxu1 %v10077_v24  ;;  %8290 = vmatprep.subr.mxu0 %v9216_v0 }
0x2526   :  { %8301 = vmatprep.subr.mxu1 %v9216_v0  ;;  %8291 = vmatpush3.msra.mxu0 %v10082_v23  ;;  %v3378_v23 = vld [vmem:[#allocation2 + $0x70] sm:$0x3] }
0x2527   :  { %8292 = vmatprep.mubr.msk.f32.mxu0 %vm9217_vm0, %v9216_v0  ;;  %8302 = vmatpush3.msra.mxu1 %v10087_v28 }
0x2528   :  { %8303 = vmatprep.mubr.msk.f32.mxu1 %vm9217_vm0, %v9216_v0  ;;  %8306 = vmatprep.subr.mxu0 %v3672_v34 }
0x25df   :  { %v3299_v21 = vpop.f32.mrf.mxu0 }
0x25e0   :  { %v3386_v22 = vadd.f32 %v3299_v21, %v9334_v14  ;;  %v3374_v11 = vpop.f32.mrf.mxu1  ;;  %v3379_v36 = vadd.f32 %v3378_v23, %v3299_v21  ;;  %v7501_v21 = vld [vmem:[%s11068_s2 + $0x78] sm:$0xff] }
0x25e1   :  { %v3414_v12 = vadd.f32 %v3374_v11, %v9336_v15  ;;  %v8272_v6 = vpop.f32.mrf.mxu0  ;;  %v3407_v44 = vadd.f32 %v3406_v43, %v3374_v11  ;;  %8346 = vmatprep.subr.mxu1 %v7501_v21 }
0x25e2   :  { %v8283_v24 = vpop.f32.mrf.mxu1  ;;  %3388 = vrot.lane.b32.xlu1 %v3386_v22, %s9219_s7  ;;  %v7470_v28 = vmul.f32 -1.442695, %v3379_v36  ;;  %v3671_v22 = vld [vmem:[%s11068_s2 + $0x30] sm:$0xff]  ;;  %v3670_v36 = vld [vmem:[%s11068_s2 + $0x28] sm:$0xff] }
0x25e3   :  { %3416 = vrot.lane.b32.xlu0 %v3414_v12, %s9219_s7  ;;  %v7471_v45 = vmul.f32 -1.442695, %v3407_v44  ;;  %v3669_v44 = vld [vmem:[%s11068_s2 + $0x20] sm:$0xff] }
0x25e4   :  { %8917 = vpow2.f32 %v7470_v28  ;;  %v7498_v28 = vld [vmem:[%s11068_s2 + $0x60] sm:$0xff] }
0x25e5   :  { %8919 = vpow2.f32 %v7471_v45  ;;  %v3668_v45 = vld [vmem:[%s11068_s2 + $0x18] sm:$0xff] }
0x25f1   :  { %v8918_v46 = vpop.eup %8917 }
0x25f2   :  { %v8920_v47 = vpop.eup %8919  ;;  %v3383_v48 = vadd.f32 1.0, %v8918_v46  ;;  %v7497_v46 = vld [vmem:[%s11068_s2 + $0x58] sm:$0xff] }
0x25f3   :  { %v3411_v49 = vadd.f32 1.0, %v8920_v47  ;;  %v3667_v47 = vld [vmem:[%s11068_s2 + $0x10] sm:$0xff] }
0x25f4   :  { %8921 = vrcp.f32 %v3383_v48  ;;  %v7496_v48 = vld [vmem:[%s11068_s2 + $0x50] sm:$0xff] }
0x25f5   :  { %8923 = vrcp.f32 %v3411_v49  ;;  %v3666_v49 = vld [vmem:[%s11068_s2 + $0x8] sm:$0xff] }
0x2601   :  { %v8922_v50 = vpop.eup %8921 }
0x2602   :  { %v8924_v52 = vpop.eup %8923  ;;  %v3398_v62 = vsub.f32 1.0, %v8922_v50  ;;  %v3404_v10 = vmul.f32 %v8922_v50, %v10147_v19 }
0x2603   :  { %v3426_v1 = vsub.f32 1.0, %v8924_v52  ;;  %v3432_v27 = vmul.f32 %v8924_v52, %v10149_v41 }
0x2654   :  { %v3389_v51 = vpop.permute.xlu1 %3388 }
0x2655   :  { %v3391_v53 = vmul.f32 %v8922_v50, %v3389_v51  ;;  %v3417_v54 = vpop.permute.xlu0 %3416  ;;  %v7495_v50 = vld [vmem:[%s11068_s2 + $0x48] sm:$0xff]  ;;  %v3665_v51 = vld [vmem:[%s11068_s2] sm:$0xff] }
0x2656   :  { %v3419_v55 = vmul.f32 %v8924_v52, %v3417_v54  ;;  %v7494_v52 = vld [vmem:[%s11068_s2 + $0x40] sm:$0xff] }
0x2657   :  { %3393 = vrot.lane.b32.xlu1 %v3391_v53, %s9219_s7 }
0x2658   :  { %3421 = vrot.lane.b32.xlu0 %v3419_v55, %s9219_s7 }
0x26c9   :  { %v3394_v56 = vpop.permute.xlu1 %3393 }
0x26ca   :  { %v3396_v57 = vadd.f32 %v3394_v56, %v3378_v23  ;;  %v3422_v58 = vpop.permute.xlu0 %3421  ;;  %v7500_v23 = vld [vmem:[%s11068_s2 + $0x70] sm:$0xff] }
0x26cb   :  { %v3424_v59 = vadd.f32 %v3422_v58, %v3406_v43  ;;  %v7499_v43 = vld [vmem:[%s11068_s2 + $0x68] sm:$0xff] }
0x26cc   :  { %8925 = vtanh.f32 %v3396_v57 }
0x26cd   :  { %8927 = vtanh.f32 %v3424_v59 }
0x26d9   :  { %v8926_v60 = vpop.eup %8925 }
0x26da   :  { %v8928_v61 = vpop.eup %8927  ;;  %3400 = vrot.lane.b32.xlu1 %v8926_v60, %s9220_s20 }
0x26db   :  { %3428 = vrot.lane.b32.xlu0 %v8928_v61, %s9220_s20 }
0x274c   :  { %v3401_v63 = vpop.permute.xlu1 %3400 }
0x274d   :  { %v3403_v13 = vmul.f32 %v3401_v63, %v3398_v62  ;;  %v3429_v20 = vpop.permute.xlu0 %3428 }
0x274e   :  { %v3431_v8 = vmul.f32 %v3429_v20, %v3426_v1  ;;  %v10275_v20 = vld [vmem:[#allocation5 + $0x78] sm:$0xff] }
0x274f   :  { %v10188_v9 = vadd.f32 %v3404_v10, %v3403_v13 }
0x2750   :  { %v10190_v32 = vadd.f32 %v3432_v27, %v3431_v8  ;;  %v10277_v27 = vld [vmem:[#allocation5 + $0x58] sm:$0xff]  ;;  %v3651_v8 = vld [vmem:[#allocation4 + $0x10] sm:$0xff] }
0x2751   :  { %3435 = vrot.lane.b32.xlu1 %v10188_v9, %s9220_s20 }
0x2752   :  { %3439 = vst.msk [vmem:[#allocation4 + $0x8] sm:$0x3] %vm512_vm3, %v10190_v32  ;;  %3513 = vrot.lane.b32.xlu0 %v10190_v32, %s9220_s20 }
0x2759   :  { %v3650_v13 = vld [vmem:[#allocation4 + $0x8] sm:$0xff] }
0x27c3   :  { %v3436_v33 = vpop.permute.xlu1 %3435 }
0x27c4   :  { %3438 = vst.msk [vmem:[#allocation4 + $0x70] sm:$0x3] %vm510_vm4, %v3436_v33  ;;  %v3514_v35 = vpop.permute.xlu0 %3513  ;;  %8293 = vmatmul.mubr.msk.f32.vlgmr.msra.gmra.mxu0 %vm290_vm5, %v3436_v33  ;;  %v10289_v33 = vld [vmem:[#allocation5 + $0x50] sm:$0xff] }
0x27c5   :  { %8304 = vmatmul.mubr.msk.f32.vlgmr.msra.gmra.mxu1 %vm290_vm5, %v3514_v35  ;;  %8307 = vmatpush3.msra.mxu0 %v3672_v34  ;;  %v3653_v35 = vld [vmem:[#allocation4 + $0x20] sm:$0xff] }
0x27c6   :  { %8347 = vmatpush3.msra.mxu1 %v7501_v21  ;;  %8308 = vmatprep.subr.mxu0 %v3671_v22 }
0x27c7   :  { %8309 = vmatpush3.msra.mxu0 %v3671_v22  ;;  %8348 = vmatprep.subr.mxu1 %v7500_v23 }
0x27c8   :  { %8349 = vmatpush3.msra.mxu1 %v7500_v23  ;;  %8310 = vmatprep.subr.mxu0 %v3670_v36 }
0x27c9   :  { %8350 = vmatprep.subr.mxu1 %v7499_v43  ;;  %8311 = vmatpush3.msra.mxu0 %v3670_v36 }
0x27ca   :  { %8351 = vmatpush3.msra.mxu1 %v7499_v43  ;;  %8312 = vmatprep.subr.mxu0 %v3669_v44 }
0x27cb   :  { %8352 = vmatprep.subr.mxu1 %v7498_v28  ;;  %8313 = vmatpush3.msra.mxu0 %v3669_v44 }
0x27cc   :  { %8353 = vmatpush3.msra.mxu1 %v7498_v28  ;;  %8314 = vmatprep.subr.mxu0 %v3668_v45 }
0x27cd   :  { %8354 = vmatprep.subr.mxu1 %v7497_v46  ;;  %8315 = vmatpush3.msra.mxu0 %v3668_v45 }
0x27ce   :  { %8355 = vmatpush3.msra.mxu1 %v7497_v46  ;;  %8316 = vmatprep.subr.mxu0 %v3667_v47 }
0x27cf   :  { %8356 = vmatprep.subr.mxu1 %v7496_v48  ;;  %8317 = vmatpush3.msra.mxu0 %v3667_v47 }
0x27d0   :  { %8357 = vmatpush3.msra.mxu1 %v7496_v48  ;;  %8318 = vmatprep.subr.mxu0 %v3666_v49 }
0x27d1   :  { %8358 = vmatprep.subr.mxu1 %v7495_v50  ;;  %8319 = vmatpush3.msra.mxu0 %v3666_v49 }
0x27d2   :  { %8359 = vmatpush3.msra.mxu1 %v7495_v50  ;;  %8320 = vmatprep.subr.mxu0 %v3665_v51 }
0x27d3   :  { %8360 = vmatprep.subr.mxu1 %v7494_v52  ;;  %8321 = vmatpush3.msra.mxu0 %v3665_v51 }
0x27d4   :  { %8361 = vmatpush3.msra.mxu1 %v7494_v52  ;;  %8386 = vmatprep.subr.mxu0 %v9216_v0 }
0x27d5   :  { %8397 = vmatprep.subr.mxu1 %v9216_v0 }
0x2884   :  { %v3508_v37 = vpop.f32.mrf.mxu0 }
0x2885   :  { %v3595_v16 = vadd.f32 %v3508_v37, %v9334_v14  ;;  %v3583_v17 = vpop.f32.mrf.mxu1  ;;  %v3588_v29 = vadd.f32 %v3587_v18, %v3508_v37  ;;  %v3654_v37 = vld [vmem:[#allocation4 + $0x28] sm:$0xff] }
0x2886   :  { %v3623_v38 = vadd.f32 %v3583_v17, %v9336_v15  ;;  %v8294_v39 = vpop.f32.mrf.mxu0  ;;  %v3616_v25 = vadd.f32 %v3615_v30, %v3583_v17  ;;  %v10301_v17 = vld [vmem:[#allocation5 + $0x48] sm:$0xff] }
0x2887   :  { %v8305_v40 = vpop.f32.mrf.mxu1  ;;  %3597 = vrot.lane.b32.xlu1 %v3595_v16, %s9219_s7  ;;  %v7474_v26 = vmul.f32 -1.442695, %v3588_v29  ;;  %v10298_v16 = vld [vmem:[#allocation5 + $0x68] sm:$0xff]  ;;  %v3656_v39 = vld [vmem:[#allocation4 + $0x38] sm:$0xff]  ;;  %v3657_v29 = vld [vmem:[#allocation4 + $0x40] sm:$0xff] }
0x2888   :  { %3625 = vrot.lane.b32.xlu0 %v3623_v38, %s9219_s7  ;;  %v7475_v31 = vmul.f32 -1.442695, %v3616_v25  ;;  %v3655_v38 = vld [vmem:[#allocation4 + $0x30] sm:$0xff]  ;;  %v10310_v40 = vld [vmem:[#allocation5 + $0x60] sm:$0xff] }
0x2889   :  { %8929 = vpow2.f32 %v7474_v26  ;;  %v3659_v25 = vld [vmem:[#allocation4 + $0x50] sm:$0xff]  ;;  %v3660_v26 = vld [vmem:[#allocation4 + $0x58] sm:$0xff] }
0x288a   :  { %8931 = vpow2.f32 %v7475_v31  ;;  %v3661_v31 = vld [vmem:[#allocation4 + $0x60] sm:$0xff] }
0x2896   :  { %v8930_v2 = vpop.eup %8929 }
0x2897   :  { %v8932_v3 = vpop.eup %8931  ;;  %v3592_v14 = vadd.f32 1.0, %v8930_v2  ;;  %v3662_v2 = vld [vmem:[#allocation4 + $0x68] sm:$0xff] }
0x2898   :  { %v3620_v4 = vadd.f32 1.0, %v8932_v3  ;;  %v3663_v3 = vld [vmem:[#allocation4 + $0x70] sm:$0xff] }
0x2899   :  { %8933 = vrcp.f32 %v3592_v14  ;;  %v7523_v14 = vld [vmem:[%s11071_s5 + $0x2] ss:$0 sm:$0xff] }
0x289a   :  { %8935 = vrcp.f32 %v3620_v4  ;;  %v7525_v4 = vld [vmem:[%s11071_s5 + $0x3] ss:$0 sm:$0xff] }
0x28a6   :  { %v10205_v15 = vpop.eup %8933 }
0x28a7   :  { %v10207_v7 = vpop.eup %8935  ;;  %v3607_v55 = vsub.f32 1.0, %v10205_v15  ;;  %v3613_v58 = vmul.f32 %v10205_v15, %v10188_v9  ;;  %v3652_v9 = vld [vmem:[#allocation4 + $0x18] sm:$0xff] }
0x28a8   :  { %v3635_v57 = vsub.f32 1.0, %v10207_v7  ;;  %v3641_v61 = vmul.f32 %v10207_v7, %v10190_v32  ;;  %v10286_v32 = vld [vmem:[#allocation5 + $0x70] sm:$0xff] }
0x28f9   :  { %v3598_v5 = vpop.permute.xlu1 %3597 }
0x28fa   :  { %v3600_v19 = vmul.f32 %v10205_v15, %v3598_v5  ;;  %v3626_v41 = vpop.permute.xlu0 %3625 }
0x28fb   :  { %v3628_v42 = vmul.f32 %v10207_v7, %v3626_v41  ;;  %v10375_v7 = vld [vmem:[%s11070_s4 + $0x2] ss:$0 sm:$0xff] }
0x28fc   :  { %3602 = vrot.lane.b32.xlu1 %v3600_v19, %s9219_s7  ;;  %v10380_v19 = vld [vmem:[%s11070_s4 + $0x3] ss:$0 sm:$0xff]  ;;  %s9221_s4 = smov [#allocation8]  }
0x28fd   :  { %3630 = vrot.lane.b32.xlu0 %v3628_v42, %s9219_s7 }
0x296e   :  { %v3603_v11 = vpop.permute.xlu1 %3602 }
0x296f   :  { %v3605_v12 = vadd.f32 %v3603_v11, %v3587_v18  ;;  %v3631_v6 = vpop.permute.xlu0 %3630  ;;  %v10313_v18 = vld [vmem:[#allocation5 + $0x40] sm:$0xff] }
0x2970   :  { %v3633_v24 = vadd.f32 %v3631_v6, %v3615_v30  ;;  %v3658_v30 = vld [vmem:[#allocation4 + $0x48] sm:$0xff] }
0x2971   :  { %8937 = vtanh.f32 %v3605_v12 }
0x2972   :  { %8939 = vtanh.f32 %v3633_v24 }
0x297e   :  { %v8938_v53 = vpop.eup %8937 }
0x297f   :  { %v8940_v54 = vpop.eup %8939  ;;  %3609 = vrot.lane.b32.xlu1 %v8938_v53, %s9220_s20 }
0x2980   :  { %3637 = vrot.lane.b32.xlu0 %v8940_v54, %s9220_s20 }
0x2984   :  { %4271 = vrot.lane.b32.xlu0 %v7525_v4, %s9219_s7 }
0x29f1   :  { %v3610_v56 = vpop.permute.xlu1 %3609 }
0x29f2   :  { %v3612_v59 = vmul.f32 %v3610_v56, %v3607_v55  ;;  %v3638_v60 = vpop.permute.xlu0 %3637 }
0x29f3   :  { %v3640_v62 = vmul.f32 %v3638_v60, %v3635_v57 }
0x29f4   :  { %v3614_v63 = vadd.f32 %v3613_v58, %v3612_v59 }
0x29f5   :  { %v3642_v1 = vadd.f32 %v3641_v61, %v3640_v62 }
0x29f6   :  { %3644 = vrot.lane.b32.xlu1 %v3614_v63, %s9220_s20 }
0x29f7   :  { %3648 = vst.msk [vmem:[#allocation4] sm:$0x3] %vm512_vm3, %v3642_v1 }
0x29fa   :  { %4235 = vrot.lane.b32.xlu1 %v7523_v14, %s9219_s7 }
0x29fe   :  { %v3649_v10 = vld [vmem:[#allocation4] sm:$0xff] }
0x29ff   :  { %8322 = vmatprep.mubr.msk.f32.mxu0 %vm261_vm2, %v3649_v10  ;;  %8362 = vmatprep.mubr.msk.f32.mxu1 %vm261_vm2, %v3649_v10 }
0x2a00   :  { %8323 = vmatmul.mubr.msk.f32.vlgmr.msra.gmra.mxu0 %vm261_vm2, %v3650_v13  ;;  %8363 = vmatmul.mubr.msk.f32.vlgmr.msra.gmra.mxu1 %vm261_vm2, %v3650_v13 }
0x2a01   :  { %8325 = vmatprep.mubr.msk.f32.mxu0 %vm261_vm2, %v3651_v8  ;;  %8365 = vmatprep.mubr.msk.f32.mxu1 %vm261_vm2, %v3651_v8 }
0x2a02   :  { %8398 = vmatpush3.msra.mxu1 %v10275_v20  ;;  %8387 = vmatpush3.msra.mxu0 %v10277_v27 }
0x2a03   :  { %8399 = vmatprep.subr.mxu1 %v9216_v0  ;;  %8388 = vmatprep.subr.mxu0 %v9216_v0 }
0x2a04   :  { %8326 = vmatmul.mubr.msk.f32.gmra.mxu0 %vm261_vm2, %v3652_v9  ;;  %8366 = vmatmul.mubr.msk.f32.gmra.mxu1 %vm261_vm2, %v3652_v9 }
0x2a05   :  { %8328 = vmatprep.mubr.msk.f32.mxu0 %vm261_vm2, %v3653_v35  ;;  %8368 = vmatprep.mubr.msk.f32.mxu1 %vm261_vm2, %v3653_v35 }
0x2a06   :  { %8400 = vmatpush3.msra.mxu1 %v10286_v32  ;;  %8389 = vmatpush3.msra.mxu0 %v10289_v33 }
0x2a07   :  { %8401 = vmatprep.subr.mxu1 %v9216_v0  ;;  %8390 = vmatprep.subr.mxu0 %v9216_v0 }
0x2a08   :  { %8329 = vmatmul.mubr.msk.f32.gmra.mxu0 %vm261_vm2, %v3654_v37  ;;  %8369 = vmatmul.mubr.msk.f32.gmra.mxu1 %vm261_vm2, %v3654_v37 }
0x2a09   :  { %8331 = vmatprep.mubr.msk.f32.mxu0 %vm261_vm2, %v3655_v38  ;;  %8371 = vmatprep.mubr.msk.f32.mxu1 %vm261_vm2, %v3655_v38 }
0x2a0a   :  { %8402 = vmatpush3.msra.mxu1 %v10298_v16  ;;  %8391 = vmatpush3.msra.mxu0 %v10301_v17 }
0x2a0b   :  { %8403 = vmatprep.subr.mxu1 %v9216_v0  ;;  %8392 = vmatprep.subr.mxu0 %v9216_v0 }
0x2a0c   :  { %8332 = vmatmul.mubr.msk.f32.gmra.mxu0 %vm261_vm2, %v3656_v39  ;;  %8372 = vmatmul.mubr.msk.f32.gmra.mxu1 %vm261_vm2, %v3656_v39 }
0x2a0d   :  { %8334 = vmatprep.mubr.msk.f32.mxu0 %vm261_vm2, %v3657_v29  ;;  %8374 = vmatprep.mubr.msk.f32.mxu1 %vm261_vm2, %v3657_v29 }
0x2a0e   :  { %8404 = vmatpush3.msra.mxu1 %v10310_v40  ;;  %8393 = vmatpush3.msra.mxu0 %v10313_v18 }
0x2a0f   :  { %8408 = vmatprep.subr.mxu0 %v9216_v0  ;;  %8419 = vmatprep.subr.mxu1 %v9216_v0 }
0x2a10   :  { %8335 = vmatmul.mubr.msk.f32.gmra.mxu0 %vm261_vm2, %v3658_v30  ;;  %8375 = vmatmul.mubr.msk.f32.gmra.mxu1 %vm261_vm2, %v3658_v30 }
0x2a11   :  { %8337 = vmatprep.mubr.msk.f32.mxu0 %vm261_vm2, %v3659_v25  ;;  %8377 = vmatprep.mubr.msk.f32.mxu1 %vm261_vm2, %v3659_v25 }
0x2a14   :  { %8338 = vmatmul.mubr.msk.f32.gmra.mxu0 %vm261_vm2, %v3660_v26  ;;  %8378 = vmatmul.mubr.msk.f32.gmra.mxu1 %vm261_vm2, %v3660_v26 }
0x2a15   :  { %8340 = vmatprep.mubr.msk.f32.mxu0 %vm261_vm2, %v3661_v31  ;;  %8380 = vmatprep.mubr.msk.f32.mxu1 %vm261_vm2, %v3661_v31 }
0x2a18   :  { %8341 = vmatmul.mubr.msk.f32.gmra.mxu0 %vm261_vm2, %v3662_v2  ;;  %8381 = vmatmul.mubr.msk.f32.gmra.mxu1 %vm261_vm2, %v3662_v2 }
0x2a19   :  { %8343 = vmatprep.mubr.msk.f32.mxu0 %vm261_vm2, %v3663_v3  ;;  %8383 = vmatprep.mubr.msk.f32.mxu1 %vm261_vm2, %v3663_v3 }
0x2a68   :  { %v3645_v15 = vpop.permute.xlu1 %3644 }
0x2a69   :  { %3647 = vst.msk [vmem:[#allocation4 + $0x78] sm:$0x3] %vm510_vm4, %v3645_v15 }
0x2a70   :  { %v3664_v5 = vld [vmem:[#allocation4 + $0x78] sm:$0xff] }
0x2a71   :  { %8344 = vmatmul.mubr.msk.f32.gmra.mxu0 %vm261_vm2, %v3664_v5  ;;  %8384 = vmatmul.mubr.msk.f32.gmra.mxu1 %vm261_vm2, %v3664_v5 }
0x2a72   :  { %8394 = vmatprep.mubr.msk.f32.mxu0 %vm9217_vm0, %v9216_v0  ;;  %8405 = vmatprep.mubr.msk.f32.mxu1 %vm9217_vm0, %v9216_v0 }
0x2a75   :  { %8395 = vmatmul.mubr.f32.vlgmr.msra.gmra.mxu0 %v9216_v0  ;;  %8406 = vmatmul.mubr.f32.vlgmr.msra.gmra.mxu1 %v9216_v0 }
0x2a76   :  { %8409 = vmatpush3.msra.mxu0 %v10277_v27  ;;  %8420 = vmatpush3.msra.mxu1 %v10275_v20 }
0x2a77   :  { %8410 = vmatprep.subr.mxu0 %v9216_v0  ;;  %8421 = vmatprep.subr.mxu1 %v9216_v0 }
0x2a78   :  { %8411 = vmatpush3.msra.mxu0 %v10289_v33  ;;  %8422 = vmatpush3.msra.mxu1 %v10286_v32 }
0x2a79   :  { %8412 = vmatprep.subr.mxu0 %v9216_v0  ;;  %8423 = vmatprep.subr.mxu1 %v9216_v0 }
0x2a7a   :  { %8413 = vmatpush3.msra.mxu0 %v10301_v17  ;;  %8424 = vmatpush3.msra.mxu1 %v10298_v16 }
0x2a7b   :  { %8414 = vmatprep.subr.mxu0 %v9216_v0  ;;  %8425 = vmatprep.subr.mxu1 %v9216_v0 }
0x2a7c   :  { %8426 = vmatpush3.msra.mxu1 %v10310_v40  ;;  %8427 = vmatprep.mubr.msk.f32.mxu1 %vm9217_vm0, %v9216_v0 }
0x2a7d   :  { %8415 = vmatpush3.msra.mxu0 %v10313_v18  ;;  %8416 = vmatprep.mubr.msk.f32.mxu0 %vm9217_vm0, %v9216_v0 }
0x2a7e   :  { %8430 = vmatprep.subr.mxu0 %v9216_v0  ;;  %8441 = vmatprep.subr.mxu1 %v9216_v0 }
0x2ac0   :  { %v8324_v41 = vpop.f32.mrf.mxu0  ;;  %v8364_v42 = vpop.f32.mrf.mxu1 }
0x2ac1   :  { %v3801_v34 = vadd.f32 %v8324_v41, %v10375_v7  ;;  %v3979_v21 = vadd.f32 %v8364_v42, %v10380_v19 }
0x2ac2   :  { %v3795_v22 = vpop.f32.mrf.mxu0  ;;  %v3973_v11 = vpop.f32.mrf.mxu1 }
0x2ac3   :  { %3875 = vst.msk [vmem:[#allocation2 + $0x8] sm:$0xff] %vm180_vm1, %v3801_v34  ;;  %4053 = vst.msk [vmem:[#allocation3 + $0x8] sm:$0xff] %vm180_vm1, %v3979_v21  ;;  %v3796_v12 = vadd.f32 %v10375_v7, %v3795_v22  ;;  %v3974_v6 = vadd.f32 %v10380_v19, %v3973_v11 }
0x2ac4   :  { %v8327_v24 = vpop.f32.mrf.mxu0  ;;  %v8367_v23 = vpop.f32.mrf.mxu1 }
0x2ac5   :  { %3874 = vst.msk [vmem:[#allocation2] sm:$0xff] %vm180_vm1, %v3796_v12  ;;  %4052 = vst.msk [vmem:[#allocation3] sm:$0xff] %vm180_vm1, %v3974_v6  ;;  %v3811_v36 = vadd.f32 %v8327_v24, %v10375_v7  ;;  %v3989_v43 = vadd.f32 %v8367_v23, %v10380_v19  ;;  %v10440_v6 = vpop.permute.xlu1 %4235  ;;  %v10442_v24 = vpop.permute.xlu0 %4271 }
0x2ac6   :  { %v3805_v44 = vpop.f32.mrf.mxu0  ;;  %v3983_v28 = vpop.f32.mrf.mxu1 }
0x2ac7   :  { %3877 = vst.msk [vmem:[#allocation2 + $0x18] sm:$0xff] %vm180_vm1, %v3811_v36  ;;  %4055 = vst.msk [vmem:[#allocation3 + $0x18] sm:$0xff] %vm180_vm1, %v3989_v43  ;;  %v3806_v45 = vadd.f32 %v10375_v7, %v3805_v44  ;;  %v3984_v46 = vadd.f32 %v10380_v19, %v3983_v28 }
0x2ac8   :  { %v8330_v47 = vpop.f32.mrf.mxu0  ;;  %v8370_v48 = vpop.f32.mrf.mxu1 }
0x2ac9   :  { %3876 = vst.msk [vmem:[#allocation2 + $0x10] sm:$0xff] %vm180_vm1, %v3806_v45  ;;  %4054 = vst.msk [vmem:[#allocation3 + $0x10] sm:$0xff] %vm180_vm1, %v3984_v46  ;;  %v3821_v49 = vadd.f32 %v8330_v47, %v10375_v7  ;;  %v3999_v50 = vadd.f32 %v8370_v48, %v10380_v19 }
0x2aca   :  { %v3815_v51 = vpop.f32.mrf.mxu0  ;;  %v3993_v52 = vpop.f32.mrf.mxu1 }
0x2acb   :  { %3879 = vst.msk [vmem:[#allocation2 + $0x28] sm:$0xff] %vm180_vm1, %v3821_v49  ;;  %4057 = vst.msk [vmem:[#allocation3 + $0x28] sm:$0xff] %vm180_vm1, %v3999_v50  ;;  %v3816_v53 = vadd.f32 %v10375_v7, %v3815_v51  ;;  %v3994_v54 = vadd.f32 %v10380_v19, %v3993_v52 }
0x2acc   :  { %v8333_v55 = vpop.f32.mrf.mxu0  ;;  %v8373_v56 = vpop.f32.mrf.mxu1 }
0x2acd   :  { %3878 = vst.msk [vmem:[#allocation2 + $0x20] sm:$0xff] %vm180_vm1, %v3816_v53  ;;  %4056 = vst.msk [vmem:[#allocation3 + $0x20] sm:$0xff] %vm180_vm1, %v3994_v54  ;;  %v3831_v57 = vadd.f32 %v8333_v55, %v10375_v7  ;;  %v4009_v58 = vadd.f32 %v8373_v56, %v10380_v19 }
0x2ace   :  { %v3825_v59 = vpop.f32.mrf.mxu0  ;;  %v4003_v60 = vpop.f32.mrf.mxu1 }
0x2acf   :  { %3881 = vst.msk [vmem:[#allocation2 + $0x38] sm:$0xff] %vm180_vm1, %v3831_v57  ;;  %4059 = vst.msk [vmem:[#allocation3 + $0x38] sm:$0xff] %vm180_vm1, %v4009_v58  ;;  %v3826_v61 = vadd.f32 %v10375_v7, %v3825_v59  ;;  %v4004_v62 = vadd.f32 %v10380_v19, %v4003_v60 }
0x2ad0   :  { %v8336_v63 = vpop.f32.mrf.mxu0  ;;  %v8376_v1 = vpop.f32.mrf.mxu1 }
0x2ad1   :  { %3880 = vst.msk [vmem:[#allocation2 + $0x30] sm:$0xff] %vm180_vm1, %v3826_v61  ;;  %4058 = vst.msk [vmem:[#allocation3 + $0x30] sm:$0xff] %vm180_vm1, %v4004_v62  ;;  %v3841_v10 = vadd.f32 %v8336_v63, %v10375_v7  ;;  %v4019_v13 = vadd.f32 %v8376_v1, %v10380_v19 }
0x2ad2   :  { %v3835_v8 = vpop.f32.mrf.mxu0  ;;  %v4013_v9 = vpop.f32.mrf.mxu1 }
0x2ad3   :  { %3883 = vst.msk [vmem:[#allocation2 + $0x48] sm:$0xff] %vm180_vm1, %v3841_v10  ;;  %4061 = vst.msk [vmem:[#allocation3 + $0x48] sm:$0xff] %vm180_vm1, %v4019_v13  ;;  %v3836_v35 = vadd.f32 %v10375_v7, %v3835_v8  ;;  %v4014_v37 = vadd.f32 %v10380_v19, %v4013_v9 }
0x2ad4   :  { %v8339_v38 = vpop.f32.mrf.mxu0  ;;  %v8379_v39 = vpop.f32.mrf.mxu1 }
0x2ad5   :  { %3882 = vst.msk [vmem:[#allocation2 + $0x40] sm:$0xff] %vm180_vm1, %v3836_v35  ;;  %4060 = vst.msk [vmem:[#allocation3 + $0x40] sm:$0xff] %vm180_vm1, %v4014_v37  ;;  %v3851_v29 = vadd.f32 %v8339_v38, %v10375_v7  ;;  %v4029_v30 = vadd.f32 %v8379_v39, %v10380_v19 }
0x2ad6   :  { %v3845_v25 = vpop.f32.mrf.mxu0  ;;  %v4023_v26 = vpop.f32.mrf.mxu1 }
0x2ad7   :  { %3885 = vst.msk [vmem:[#allocation2 + $0x58] sm:$0xff] %vm180_vm1, %v3851_v29  ;;  %4063 = vst.msk [vmem:[#allocation3 + $0x58] sm:$0xff] %vm180_vm1, %v4029_v30  ;;  %v3846_v31 = vadd.f32 %v10375_v7, %v3845_v25  ;;  %v4024_v2 = vadd.f32 %v10380_v19, %v4023_v26 }
0x2ad8   :  { %v8342_v3 = vpop.f32.mrf.mxu0  ;;  %v8382_v14 = vpop.f32.mrf.mxu1 }
0x2ad9   :  { %3884 = vst.msk [vmem:[#allocation2 + $0x50] sm:$0xff] %vm180_vm1, %v3846_v31  ;;  %4062 = vst.msk [vmem:[#allocation3 + $0x50] sm:$0xff] %vm180_vm1, %v4024_v2  ;;  %v3861_v4 = vadd.f32 %v8342_v3, %v10375_v7  ;;  %v4039_v15 = vadd.f32 %v8382_v14, %v10380_v19 }
0x2ada   :  { %v3855_v5 = vpop.f32.mrf.mxu0  ;;  %v4033_v41 = vpop.f32.mrf.mxu1 }
0x2adb   :  { %3887 = vst.msk [vmem:[#allocation2 + $0x68] sm:$0xff] %vm180_vm1, %v3861_v4  ;;  %4065 = vst.msk [vmem:[#allocation3 + $0x68] sm:$0xff] %vm180_vm1, %v4039_v15  ;;  %v3856_v42 = vadd.f32 %v10375_v7, %v3855_v5  ;;  %v4034_v34 = vadd.f32 %v10380_v19, %v4033_v41 }
0x2add   :  { %3886 = vst.msk [vmem:[#allocation2 + $0x60] sm:$0xff] %vm180_vm1, %v3856_v42  ;;  %4064 = vst.msk [vmem:[#allocation3 + $0x60] sm:$0xff] %vm180_vm1, %v4034_v34 }
0x2b31   :  { %v8345_v21 = vpop.f32.mrf.mxu0  ;;  %v8385_v22 = vpop.f32.mrf.mxu1 }
0x2b32   :  { %v3871_v11 = vadd.f32 %v8345_v21, %v10375_v7  ;;  %v4049_v12 = vadd.f32 %v8385_v22, %v10380_v19 }
0x2b33   :  { %v3865_v23 = vpop.f32.mrf.mxu0  ;;  %v4043_v36 = vpop.f32.mrf.mxu1 }
0x2b34   :  { %3889 = vst.msk [vmem:[#allocation2 + $0x78] sm:$0xff] %vm180_vm1, %v3871_v11  ;;  %4067 = vst.msk [vmem:[#allocation3 + $0x78] sm:$0xff] %vm180_vm1, %v4049_v12  ;;  %v3866_v43 = vadd.f32 %v10375_v7, %v3865_v23  ;;  %v4044_v44 = vadd.f32 %v10380_v19, %v4043_v36  ;;  %v4222_v7 = vld [vmem:[#allocation2] sm:$0x3]  ;;  %v4444_v11 = vld [vmem:[#allocation2 + $0x8] sm:$0x3] }
0x2b35   :  { %v4148_v28 = vpop.f32.mrf.mxu0  ;;  %v4218_v45 = vpop.f32.mrf.mxu1 }
0x2b36   :  { %3888 = vst.msk [vmem:[#allocation2 + $0x70] sm:$0xff] %vm180_vm1, %v3866_v43  ;;  %4066 = vst.msk [vmem:[#allocation3 + $0x70] sm:$0xff] %vm180_vm1, %v4044_v44  ;;  %v4238_v46 = vadd.f32 %v10440_v6, %v4148_v28  ;;  %v4274_v47 = vadd.f32 %v10442_v24, %v4218_v45  ;;  %v4223_v51 = vadd.f32 %v4222_v7, %v4148_v28 }
0x2b37   :  { %v8407_v48 = vpop.f32.mrf.mxu1  ;;  %v8396_v49 = vpop.f32.mrf.mxu0 }
0x2b38   :  { %4276 = vrot.lane.b32.xlu0 %v4274_v47, %s9219_s7  ;;  %4240 = vrot.lane.b32.xlu1 %v4238_v46, %s9219_s7  ;;  %v7522_v52 = vmul.f32 -1.442695, %v4223_v51 }
0x2b3a   :  { %8941 = vpow2.f32 %v7522_v52 }
0x2b3b   :  { %v4258_v50 = vld [vmem:[#allocation3 + $0x78] sm:$0x3] }
0x2b3c   :  { %v4259_v19 = vadd.f32 %v4258_v50, %v4218_v45 }
0x2b3d   :  { %v4472_v22 = vld [vmem:[#allocation3 + $0x70] sm:$0x3] }
0x2b3e   :  { %v7524_v53 = vmul.f32 -1.442695, %v4259_v19 }
0x2b40   :  { %8943 = vpow2.f32 %v7524_v53 }
0x2b47   :  { %v8942_v54 = vpop.eup %8941 }
0x2b48   :  { %v4227_v56 = vadd.f32 1.0, %v8942_v54 }
0x2b4a   :  { %8945 = vrcp.f32 %v4227_v56 }
0x2b4d   :  { %v8944_v55 = vpop.eup %8943 }
0x2b4e   :  { %v4263_v57 = vadd.f32 1.0, %v8944_v55 }
0x2b50   :  { %8947 = vrcp.f32 %v4263_v57 }
0x2b57   :  { %v8946_v58 = vpop.eup %8945 }
0x2b58   :  { %v4250_v39 = vsub.f32 1.0, %v8946_v58  ;;  %v4256_v26 = vmul.f32 0.0, %v8946_v58 }
0x2b5d   :  { %v8948_v59 = vpop.eup %8947 }
0x2b5e   :  { %v4286_v37 = vsub.f32 1.0, %v8948_v59  ;;  %v4292_v29 = vmul.f32 0.0, %v8948_v59 }
0x2baa   :  { %v4277_v60 = vpop.permute.xlu0 %4276  ;;  %v4241_v61 = vpop.permute.xlu1 %4240 }
0x2bab   :  { %v4279_v62 = vmul.f32 %v8948_v59, %v4277_v60  ;;  %v4243_v63 = vmul.f32 %v8946_v58, %v4241_v61 }
0x2bad   :  { %4281 = vrot.lane.b32.xlu0 %v4279_v62, %s9219_s7  ;;  %4245 = vrot.lane.b32.xlu1 %v4243_v63, %s9219_s7 }
0x2c1f   :  { %v4282_v1 = vpop.permute.xlu0 %4281  ;;  %v4246_v10 = vpop.permute.xlu1 %4245 }
0x2c20   :  { %v4284_v13 = vadd.f32 %v4282_v1, %v4258_v50  ;;  %v4248_v8 = vadd.f32 %v4246_v10, %v4222_v7 }
0x2c22   :  { %8949 = vtanh.f32 %v4284_v13 }
0x2c23   :  { %8951 = vtanh.f32 %v4248_v8 }
0x2c2f   :  { %v8950_v9 = vpop.eup %8949 }
0x2c30   :  { %v8952_v35 = vpop.eup %8951  ;;  %4288 = vrot.lane.b32.xlu0 %v8950_v9, %s9220_s20 }
0x2c31   :  { %4252 = vrot.lane.b32.xlu1 %v8952_v35, %s9220_s20 }
0x2ca2   :  { %v4289_v38 = vpop.permute.xlu0 %4288 }
0x2ca3   :  { %v4291_v30 = vmul.f32 %v4289_v38, %v4286_v37  ;;  %v4253_v25 = vpop.permute.xlu1 %4252 }
0x2ca4   :  { %v4255_v31 = vmul.f32 %v4253_v25, %v4250_v39  ;;  %v4678_v25 = vld [vmem:[#allocation3 + $0x68] sm:$0x3] }
0x2ca5   :  { %v10458_v2 = vadd.f32 %v4292_v29, %v4291_v30 }
0x2ca6   :  { %v10460_v3 = vadd.f32 %v4256_v26, %v4255_v31  ;;  %v4650_v26 = vld [vmem:[#allocation2 + $0x10] sm:$0x3] }
0x2ca7   :  { %4370 = vrot.lane.b32.xlu0 %v10458_v2, %s9220_s20 }
0x2ca8   :  { %4295 = vrot.lane.b32.xlu1 %v10460_v3, %s9220_s20 }
0x2d19   :  { %v4371_v14 = vpop.permute.xlu0 %4370 }
0x2d1a   :  { %v4296_v4 = vpop.permute.xlu1 %4295  ;;  %8428 = vmatmul.mubr.msk.f32.vlgmr.msra.gmra.mxu1 %vm290_vm5, %v4371_v14 }
0x2d1b   :  { %8417 = vmatmul.mubr.msk.f32.vlgmr.msra.gmra.mxu0 %vm290_vm5, %v4296_v4  ;;  %8442 = vmatpush3.msra.mxu1 %v10275_v20 }
0x2d1c   :  { %8431 = vmatpush3.msra.mxu0 %v10277_v27  ;;  %8443 = vmatprep.subr.mxu1 %v9216_v0 }
0x2d1d   :  { %8432 = vmatprep.subr.mxu0 %v9216_v0  ;;  %8444 = vmatpush3.msra.mxu1 %v10286_v32 }
0x2d1e   :  { %8433 = vmatpush3.msra.mxu0 %v10289_v33  ;;  %8445 = vmatprep.subr.mxu1 %v9216_v0 }
0x2d1f   :  { %8434 = vmatprep.subr.mxu0 %v9216_v0  ;;  %8446 = vmatpush3.msra.mxu1 %v10298_v16 }
0x2d20   :  { %8435 = vmatpush3.msra.mxu0 %v10301_v17  ;;  %8447 = vmatprep.subr.mxu1 %v9216_v0 }
0x2d21   :  { %8436 = vmatprep.subr.mxu0 %v9216_v0  ;;  %8448 = vmatpush3.msra.mxu1 %v10310_v40 }
0x2d22   :  { %8449 = vmatprep.mubr.msk.f32.mxu1 %vm9217_vm0, %v9216_v0  ;;  %8437 = vmatpush3.msra.mxu0 %v10313_v18 }
0x2d23   :  { %8438 = vmatprep.mubr.msk.f32.mxu0 %vm9217_vm0, %v9216_v0  ;;  %8452 = vmatprep.subr.mxu0 %v9216_v0 }
0x2d24   :  { %8463 = vmatprep.subr.mxu1 %v9216_v0 }
0x2dda   :  { %v4440_v15 = vpop.f32.mrf.mxu1 }
0x2ddb   :  { %v4365_v5 = vpop.f32.mrf.mxu0  ;;  %v4480_v41 = vadd.f32 %v4440_v15, %v10442_v24  ;;  %v4473_v12 = vadd.f32 %v4472_v22, %v4440_v15 }
0x2ddc   :  { %v4452_v42 = vadd.f32 %v4365_v5, %v10440_v6  ;;  %v8429_v34 = vpop.f32.mrf.mxu1  ;;  %v4445_v23 = vadd.f32 %v4444_v11, %v4365_v5 }
0x2ddd   :  { %v8418_v21 = vpop.f32.mrf.mxu0  ;;  %4482 = vrot.lane.b32.xlu0 %v4480_v41, %s9219_s7  ;;  %v7529_v36 = vmul.f32 -1.442695, %v4473_v12 }
0x2dde   :  { %4454 = vrot.lane.b32.xlu1 %v4452_v42, %s9219_s7  ;;  %v7528_v43 = vmul.f32 -1.442695, %v4445_v23 }
0x2ddf   :  { %8953 = vpow2.f32 %v7529_v36 }
0x2de0   :  { %8955 = vpow2.f32 %v7528_v43 }
0x2dec   :  { %v8954_v44 = vpop.eup %8953 }
0x2ded   :  { %v8956_v28 = vpop.eup %8955  ;;  %v4477_v45 = vadd.f32 1.0, %v8954_v44 }
0x2dee   :  { %v4449_v46 = vadd.f32 1.0, %v8956_v28 }
0x2def   :  { %8957 = vrcp.f32 %v4477_v45 }
0x2df0   :  { %8959 = vrcp.f32 %v4449_v46 }
0x2dfc   :  { %v8958_v47 = vpop.eup %8957 }
0x2dfd   :  { %v8960_v49 = vpop.eup %8959  ;;  %v4492_v57 = vsub.f32 1.0, %v8958_v47  ;;  %v4498_v60 = vmul.f32 %v8958_v47, %v10458_v2 }
0x2dfe   :  { %v4464_v59 = vsub.f32 1.0, %v8960_v49  ;;  %v4470_v63 = vmul.f32 %v8960_v49, %v10460_v3 }
0x2e4f   :  { %v4483_v48 = vpop.permute.xlu0 %4482 }
0x2e50   :  { %v4485_v50 = vmul.f32 %v8958_v47, %v4483_v48  ;;  %v4455_v7 = vpop.permute.xlu1 %4454 }
0x2e51   :  { %v4457_v51 = vmul.f32 %v8960_v49, %v4455_v7 }
0x2e52   :  { %4487 = vrot.lane.b32.xlu0 %v4485_v50, %s9219_s7 }
0x2e53   :  { %4459 = vrot.lane.b32.xlu1 %v4457_v51, %s9219_s7 }
0x2ec4   :  { %v4488_v19 = vpop.permute.xlu0 %4487 }
0x2ec5   :  { %v4490_v52 = vadd.f32 %v4488_v19, %v4472_v22  ;;  %v4460_v53 = vpop.permute.xlu1 %4459 }
0x2ec6   :  { %v4462_v54 = vadd.f32 %v4460_v53, %v4444_v11 }
0x2ec7   :  { %8961 = vtanh.f32 %v4490_v52 }
0x2ec8   :  { %8963 = vtanh.f32 %v4462_v54 }
0x2ed4   :  { %v8962_v55 = vpop.eup %8961 }
0x2ed5   :  { %v8964_v56 = vpop.eup %8963  ;;  %4494 = vrot.lane.b32.xlu0 %v8962_v55, %s9220_s20 }
0x2ed6   :  { %4466 = vrot.lane.b32.xlu1 %v8964_v56, %s9220_s20 }
0x2f47   :  { %v4495_v58 = vpop.permute.xlu0 %4494 }
0x2f48   :  { %v4497_v61 = vmul.f32 %v4495_v58, %v4492_v57  ;;  %v4467_v62 = vpop.permute.xlu1 %4466 }
0x2f49   :  { %v4469_v1 = vmul.f32 %v4467_v62, %v4464_v59  ;;  %v4884_v62 = vld [vmem:[#allocation3 + $0x60] sm:$0x3] }
0x2f4a   :  { %v10498_v10 = vadd.f32 %v4498_v60, %v4497_v61 }
0x2f4b   :  { %v10500_v13 = vadd.f32 %v4470_v63, %v4469_v1  ;;  %v4856_v63 = vld [vmem:[#allocation2 + $0x18] sm:$0x3] }
0x2f4c   :  { %4576 = vrot.lane.b32.xlu0 %v10498_v10, %s9220_s20 }
0x2f4d   :  { %4501 = vrot.lane.b32.xlu1 %v10500_v13, %s9220_s20 }
0x2fbe   :  { %v4577_v8 = vpop.permute.xlu0 %4576 }
0x2fbf   :  { %v4502_v9 = vpop.permute.xlu1 %4501  ;;  %8450 = vmatmul.mubr.msk.f32.vlgmr.msra.gmra.mxu1 %vm290_vm5, %v4577_v8 }
0x2fc0   :  { %8439 = vmatmul.mubr.msk.f32.vlgmr.msra.gmra.mxu0 %vm290_vm5, %v4502_v9  ;;  %8464 = vmatpush3.msra.mxu1 %v10275_v20 }
0x2fc1   :  { %8453 = vmatpush3.msra.mxu0 %v10277_v27  ;;  %8465 = vmatprep.subr.mxu1 %v9216_v0 }
0x2fc2   :  { %8454 = vmatprep.subr.mxu0 %v9216_v0  ;;  %8466 = vmatpush3.msra.mxu1 %v10286_v32 }
0x2fc3   :  { %8455 = vmatpush3.msra.mxu0 %v10289_v33  ;;  %8467 = vmatprep.subr.mxu1 %v9216_v0 }
0x2fc4   :  { %8456 = vmatprep.subr.mxu0 %v9216_v0  ;;  %8468 = vmatpush3.msra.mxu1 %v10298_v16 }
0x2fc5   :  { %8457 = vmatpush3.msra.mxu0 %v10301_v17  ;;  %8469 = vmatprep.subr.mxu1 %v9216_v0 }
0x2fc6   :  { %8458 = vmatprep.subr.mxu0 %v9216_v0  ;;  %8470 = vmatpush3.msra.mxu1 %v10310_v40 }
0x2fc7   :  { %8471 = vmatprep.mubr.msk.f32.mxu1 %vm9217_vm0, %v9216_v0  ;;  %8459 = vmatpush3.msra.mxu0 %v10313_v18 }
0x2fc8   :  { %8460 = vmatprep.mubr.msk.f32.mxu0 %vm9217_vm0, %v9216_v0  ;;  %8474 = vmatprep.subr.mxu0 %v9216_v0 }
0x2fc9   :  { %8485 = vmatprep.subr.mxu1 %v9216_v0 }
0x307f   :  { %v4646_v35 = vpop.f32.mrf.mxu1 }
0x3080   :  { %v4571_v37 = vpop.f32.mrf.mxu0  ;;  %v4686_v38 = vadd.f32 %v4646_v35, %v10442_v24  ;;  %v4679_v31 = vadd.f32 %v4678_v25, %v4646_v35 }
0x3081   :  { %v4658_v39 = vadd.f32 %v4571_v37, %v10440_v6  ;;  %v8451_v29 = vpop.f32.mrf.mxu1  ;;  %v4651_v2 = vadd.f32 %v4650_v26, %v4571_v37 }
0x3082   :  { %v8440_v30 = vpop.f32.mrf.mxu0  ;;  %4688 = vrot.lane.b32.xlu0 %v4686_v38, %s9219_s7  ;;  %v7533_v3 = vmul.f32 -1.442695, %v4679_v31 }
0x3083   :  { %4660 = vrot.lane.b32.xlu1 %v4658_v39, %s9219_s7  ;;  %v7532_v14 = vmul.f32 -1.442695, %v4651_v2 }
0x3084   :  { %8965 = vpow2.f32 %v7533_v3 }
0x3085   :  { %8967 = vpow2.f32 %v7532_v14 }
0x3091   :  { %v8966_v4 = vpop.eup %8965 }
0x3092   :  { %v8968_v15 = vpop.eup %8967  ;;  %v4683_v5 = vadd.f32 1.0, %v8966_v4 }
0x3093   :  { %v4655_v41 = vadd.f32 1.0, %v8968_v15 }
0x3094   :  { %8969 = vrcp.f32 %v4683_v5 }
0x3095   :  { %8971 = vrcp.f32 %v4655_v41 }
0x30a1   :  { %v8970_v42 = vpop.eup %8969 }
0x30a2   :  { %v8972_v21 = vpop.eup %8971  ;;  %v4698_v46 = vsub.f32 1.0, %v8970_v42  ;;  %v4704_v49 = vmul.f32 %v8970_v42, %v10498_v10 }
0x30a3   :  { %v4670_v48 = vsub.f32 1.0, %v8972_v21  ;;  %v4676_v51 = vmul.f32 %v8972_v21, %v10500_v13 }
0x30f4   :  { %v4689_v34 = vpop.permute.xlu0 %4688 }
0x30f5   :  { %v4691_v22 = vmul.f32 %v8970_v42, %v4689_v34  ;;  %v4661_v11 = vpop.permute.xlu1 %4660 }
0x30f6   :  { %v4663_v12 = vmul.f32 %v8972_v21, %v4661_v11 }
0x30f7   :  { %4693 = vrot.lane.b32.xlu0 %v4691_v22, %s9219_s7 }
0x30f8   :  { %4665 = vrot.lane.b32.xlu1 %v4663_v12, %s9219_s7 }
0x3169   :  { %v4694_v23 = vpop.permute.xlu0 %4693 }
0x316a   :  { %v4696_v36 = vadd.f32 %v4694_v23, %v4678_v25  ;;  %v4666_v43 = vpop.permute.xlu1 %4665 }
0x316b   :  { %v4668_v44 = vadd.f32 %v4666_v43, %v4650_v26 }
0x316c   :  { %8973 = vtanh.f32 %v4696_v36 }
0x316d   :  { %8975 = vtanh.f32 %v4668_v44 }
0x3179   :  { %v8974_v28 = vpop.eup %8973 }
0x317a   :  { %v8976_v45 = vpop.eup %8975  ;;  %4700 = vrot.lane.b32.xlu0 %v8974_v28, %s9220_s20 }
0x317b   :  { %4672 = vrot.lane.b32.xlu1 %v8976_v45, %s9220_s20 }
0x31ec   :  { %v4701_v47 = vpop.permute.xlu0 %4700 }
0x31ed   :  { %v4703_v50 = vmul.f32 %v4701_v47, %v4698_v46  ;;  %v4673_v7 = vpop.permute.xlu1 %4672 }
0x31ee   :  { %v4675_v19 = vmul.f32 %v4673_v7, %v4670_v48 }
0x31ef   :  { %v10538_v52 = vadd.f32 %v4704_v49, %v4703_v50 }
0x31f0   :  { %v10540_v53 = vadd.f32 %v4676_v51, %v4675_v19 }
0x31f1   :  { %4782 = vrot.lane.b32.xlu0 %v10538_v52, %s9220_s20 }
0x31f2   :  { %4707 = vrot.lane.b32.xlu1 %v10540_v53, %s9220_s20 }
0x3263   :  { %v4783_v54 = vpop.permute.xlu0 %4782 }
0x3264   :  { %v4708_v55 = vpop.permute.xlu1 %4707  ;;  %8472 = vmatmul.mubr.msk.f32.vlgmr.msra.gmra.mxu1 %vm290_vm5, %v4783_v54 }
0x3265   :  { %8461 = vmatmul.mubr.msk.f32.vlgmr.msra.gmra.mxu0 %vm290_vm5, %v4708_v55  ;;  %8486 = vmatpush3.msra.mxu1 %v10275_v20 }
0x3266   :  { %8475 = vmatpush3.msra.mxu0 %v10277_v27  ;;  %8487 = vmatprep.subr.mxu1 %v9216_v0 }
0x3267   :  { %8476 = vmatprep.subr.mxu0 %v9216_v0  ;;  %8488 = vmatpush3.msra.mxu1 %v10286_v32 }
0x3268   :  { %8477 = vmatpush3.msra.mxu0 %v10289_v33  ;;  %8489 = vmatprep.subr.mxu1 %v9216_v0 }
0x3269   :  { %8478 = vmatprep.subr.mxu0 %v9216_v0  ;;  %8490 = vmatpush3.msra.mxu1 %v10298_v16 }
0x326a   :  { %8479 = vmatpush3.msra.mxu0 %v10301_v17  ;;  %8491 = vmatprep.subr.mxu1 %v9216_v0 }
0x326b   :  { %8480 = vmatprep.subr.mxu0 %v9216_v0  ;;  %8492 = vmatpush3.msra.mxu1 %v10310_v40 }
0x326c   :  { %8493 = vmatprep.mubr.msk.f32.mxu1 %vm9217_vm0, %v9216_v0  ;;  %8481 = vmatpush3.msra.mxu0 %v10313_v18 }
0x326d   :  { %8482 = vmatprep.mubr.msk.f32.mxu0 %vm9217_vm0, %v9216_v0  ;;  %8496 = vmatprep.subr.mxu0 %v9216_v0 }
0x326e   :  { %8507 = vmatprep.subr.mxu1 %v9216_v0 }
0x3324   :  { %v4852_v56 = vpop.f32.mrf.mxu1 }
0x3325   :  { %v4777_v57 = vpop.f32.mrf.mxu0  ;;  %v4892_v58 = vadd.f32 %v4852_v56, %v10442_v24  ;;  %v4885_v1 = vadd.f32 %v4884_v62, %v4852_v56 }
0x3326   :  { %v4864_v59 = vadd.f32 %v4777_v57, %v10440_v6  ;;  %v8473_v60 = vpop.f32.mrf.mxu1  ;;  %v4857_v10 = vadd.f32 %v4856_v63, %v4777_v57 }
0x3327   :  { %v8462_v61 = vpop.f32.mrf.mxu0  ;;  %4894 = vrot.lane.b32.xlu0 %v4892_v58, %s9219_s7  ;;  %v7537_v13 = vmul.f32 -1.442695, %v4885_v1 }
0x3328   :  { %4866 = vrot.lane.b32.xlu1 %v4864_v59, %s9219_s7  ;;  %v7536_v8 = vmul.f32 -1.442695, %v4857_v10 }
0x3329   :  { %8977 = vpow2.f32 %v7537_v13 }
0x332a   :  { %8979 = vpow2.f32 %v7536_v8 }
0x3336   :  { %v8978_v9 = vpop.eup %8977 }
0x3337   :  { %v8980_v35 = vpop.eup %8979  ;;  %v4889_v37 = vadd.f32 1.0, %v8978_v9 }
0x3338   :  { %v4861_v38 = vadd.f32 1.0, %v8980_v35 }
0x3339   :  { %8981 = vrcp.f32 %v4889_v37 }
0x333a   :  { %8983 = vrcp.f32 %v4861_v38 }
0x3346   :  { %v8982_v39 = vpop.eup %8981 }
0x3347   :  { %v8984_v30 = vpop.eup %8983  ;;  %v4904_v41 = vsub.f32 1.0, %v8982_v39  ;;  %v4910_v21 = vmul.f32 %v8982_v39, %v10538_v52 }
0x3348   :  { %v4876_v34 = vsub.f32 1.0, %v8984_v30  ;;  %v4882_v12 = vmul.f32 %v8984_v30, %v10540_v53 }
0x3399   :  { %v4895_v29 = vpop.permute.xlu0 %4894 }
0x339a   :  { %v4897_v25 = vmul.f32 %v8982_v39, %v4895_v29  ;;  %v4867_v26 = vpop.permute.xlu1 %4866 }
0x339b   :  { %v4869_v31 = vmul.f32 %v8984_v30, %v4867_v26  ;;  %v10631_v26 = vld [vmem:[#allocation5 + $0x58] sm:$0xff] }
0x339c   :  { %4899 = vrot.lane.b32.xlu0 %v4897_v25, %s9219_s7  ;;  %v10628_v25 = vld [vmem:[#allocation5 + $0x78] sm:$0xff] }
0x339d   :  { %4871 = vrot.lane.b32.xlu1 %v4869_v31, %s9219_s7  ;;  %v10636_v31 = vld [vmem:[#allocation5 + $0x70] sm:$0xff] }
0x340e   :  { %v4900_v2 = vpop.permute.xlu0 %4899 }
0x340f   :  { %v4902_v3 = vadd.f32 %v4900_v2, %v4884_v62  ;;  %v4872_v14 = vpop.permute.xlu1 %4871  ;;  %v10639_v2 = vld [vmem:[#allocation5 + $0x50] sm:$0xff] }
0x3410   :  { %v4874_v4 = vadd.f32 %v4872_v14, %v4856_v63  ;;  %v10647_v14 = vld [vmem:[#allocation5 + $0x48] sm:$0xff] }
0x3411   :  { %8985 = vtanh.f32 %v4902_v3  ;;  %v10644_v3 = vld [vmem:[#allocation5 + $0x68] sm:$0xff] }
0x3412   :  { %8987 = vtanh.f32 %v4874_v4  ;;  %v10652_v4 = vld [vmem:[#allocation5 + $0x60] sm:$0xff] }
0x341e   :  { %v8986_v15 = vpop.eup %8985 }
0x341f   :  { %v8988_v5 = vpop.eup %8987  ;;  %4906 = vrot.lane.b32.xlu0 %v8986_v15, %s9220_s20  ;;  %v10657_v15 = vld [vmem:[#allocation5 + $0x40] sm:$0xff] }
0x3420   :  { %4878 = vrot.lane.b32.xlu1 %v8988_v5, %s9220_s20 }
0x3491   :  { %v4907_v42 = vpop.permute.xlu0 %4906 }
0x3492   :  { %v4909_v22 = vmul.f32 %v4907_v42, %v4904_v41  ;;  %v4879_v11 = vpop.permute.xlu1 %4878 }
0x3493   :  { %v4881_v23 = vmul.f32 %v4879_v11, %v4876_v34  ;;  %v5296_v11 = vld [vmem:[#allocation3 + $0x50] sm:$0x3] }
0x3494   :  { %v10578_v36 = vadd.f32 %v4910_v21, %v4909_v22 }
0x3495   :  { %v10580_v43 = vadd.f32 %v4882_v12, %v4881_v23  ;;  %v5268_v12 = vld [vmem:[#allocation2 + $0x28] sm:$0x3] }
0x3496   :  { %4988 = vrot.lane.b32.xlu0 %v10578_v36, %s9220_s20 }
0x3497   :  { %4913 = vrot.lane.b32.xlu1 %v10580_v43, %s9220_s20 }
0x3508   :  { %v4989_v44 = vpop.permute.xlu0 %4988 }
0x3509   :  { %v4914_v28 = vpop.permute.xlu1 %4913  ;;  %8494 = vmatmul.mubr.msk.f32.vlgmr.msra.gmra.mxu1 %vm290_vm5, %v4989_v44 }
0x350a   :  { %8483 = vmatmul.mubr.msk.f32.vlgmr.msra.gmra.mxu0 %vm290_vm5, %v4914_v28  ;;  %8508 = vmatpush3.msra.mxu1 %v10275_v20 }
0x350b   :  { %8497 = vmatpush3.msra.mxu0 %v10277_v27  ;;  %8509 = vmatprep.subr.mxu1 %v9216_v0 }
0x350c   :  { %8498 = vmatprep.subr.mxu0 %v9216_v0  ;;  %8510 = vmatpush3.msra.mxu1 %v10286_v32 }
0x350d   :  { %8499 = vmatpush3.msra.mxu0 %v10289_v33  ;;  %8511 = vmatprep.subr.mxu1 %v9216_v0 }
0x350e   :  { %8500 = vmatprep.subr.mxu0 %v9216_v0  ;;  %8512 = vmatpush3.msra.mxu1 %v10298_v16 }
0x350f   :  { %8501 = vmatpush3.msra.mxu0 %v10301_v17  ;;  %8513 = vmatprep.subr.mxu1 %v9216_v0 }
0x3510   :  { %8502 = vmatprep.subr.mxu0 %v9216_v0  ;;  %8514 = vmatpush3.msra.mxu1 %v10310_v40  ;;  %v5090_v40 = vld [vmem:[#allocation3 + $0x58] sm:$0x3] }
0x3511   :  { %8515 = vmatprep.mubr.msk.f32.mxu1 %vm9217_vm0, %v9216_v0  ;;  %8503 = vmatpush3.msra.mxu0 %v10313_v18  ;;  %v5062_v18 = vld [vmem:[#allocation2 + $0x20] sm:$0x3] }
0x3512   :  { %8504 = vmatprep.mubr.msk.f32.mxu0 %vm9217_vm0, %v9216_v0  ;;  %8518 = vmatprep.subr.mxu0 %v9216_v0 }
0x3513   :  { %8529 = vmatprep.subr.mxu1 %v9216_v0 }
0x35c9   :  { %v5058_v20 = vpop.f32.mrf.mxu1 }
0x35ca   :  { %v4983_v27 = vpop.f32.mrf.mxu0  ;;  %v5098_v32 = vadd.f32 %v5058_v20, %v10442_v24  ;;  %v5091_v45 = vadd.f32 %v5090_v40, %v5058_v20 }
0x35cb   :  { %v5070_v33 = vadd.f32 %v4983_v27, %v10440_v6  ;;  %v8495_v16 = vpop.f32.mrf.mxu1  ;;  %v5063_v46 = vadd.f32 %v5062_v18, %v4983_v27 }
0x35cc   :  { %v8484_v17 = vpop.f32.mrf.mxu0  ;;  %5100 = vrot.lane.b32.xlu0 %v5098_v32, %s9219_s7  ;;  %v7541_v47 = vmul.f32 -1.442695, %v5091_v45 }
0x35cd   :  { %5072 = vrot.lane.b32.xlu1 %v5070_v33, %s9219_s7  ;;  %v7540_v48 = vmul.f32 -1.442695, %v5063_v46 }
0x35ce   :  { %8989 = vpow2.f32 %v7541_v47 }
0x35cf   :  { %8991 = vpow2.f32 %v7540_v48 }
0x35db   :  { %v8990_v49 = vpop.eup %8989 }
0x35dc   :  { %v8992_v50 = vpop.eup %8991  ;;  %v5095_v7 = vadd.f32 1.0, %v8990_v49 }
0x35dd   :  { %v5067_v51 = vadd.f32 1.0, %v8992_v50 }
0x35de   :  { %8993 = vrcp.f32 %v5095_v7 }
0x35df   :  { %8995 = vrcp.f32 %v5067_v51 }
0x35eb   :  { %v8994_v19 = vpop.eup %8993 }
0x35ec   :  { %v8996_v53 = vpop.eup %8995  ;;  %v5110_v63 = vsub.f32 1.0, %v8994_v19  ;;  %v5116_v13 = vmul.f32 %v8994_v19, %v10578_v36 }
0x35ed   :  { %v5082_v10 = vsub.f32 1.0, %v8996_v53  ;;  %v5088_v35 = vmul.f32 %v8996_v53, %v10580_v43 }
0x363e   :  { %v5101_v52 = vpop.permute.xlu0 %5100 }
0x363f   :  { %v5103_v54 = vmul.f32 %v8994_v19, %v5101_v52  ;;  %v5073_v55 = vpop.permute.xlu1 %5072 }
0x3640   :  { %v5075_v56 = vmul.f32 %v8996_v53, %v5073_v55 }
0x3641   :  { %5105 = vrot.lane.b32.xlu0 %v5103_v54, %s9219_s7 }
0x3642   :  { %5077 = vrot.lane.b32.xlu1 %v5075_v56, %s9219_s7 }
0x36b3   :  { %v5106_v57 = vpop.permute.xlu0 %5105 }
0x36b4   :  { %v5108_v58 = vadd.f32 %v5106_v57, %v5090_v40  ;;  %v5078_v59 = vpop.permute.xlu1 %5077 }
0x36b5   :  { %v5080_v60 = vadd.f32 %v5078_v59, %v5062_v18 }
0x36b6   :  { %8997 = vtanh.f32 %v5108_v58 }
0x36b7   :  { %8999 = vtanh.f32 %v5080_v60 }
0x36c3   :  { %v8998_v61 = vpop.eup %8997 }
0x36c4   :  { %v9000_v62 = vpop.eup %8999  ;;  %5112 = vrot.lane.b32.xlu0 %v8998_v61, %s9220_s20 }
0x36c5   :  { %5084 = vrot.lane.b32.xlu1 %v9000_v62, %s9220_s20 }
0x3736   :  { %v5113_v1 = vpop.permute.xlu0 %5112 }
0x3737   :  { %v5115_v8 = vmul.f32 %v5113_v1, %v5110_v63  ;;  %v5085_v9 = vpop.permute.xlu1 %5084 }
0x3738   :  { %v5087_v37 = vmul.f32 %v5085_v9, %v5082_v10  ;;  %v5502_v9 = vld [vmem:[#allocation3 + $0x48] sm:$0x3] }
0x3739   :  { %v10618_v38 = vadd.f32 %v5116_v13, %v5115_v8 }
0x373a   :  { %v10620_v39 = vadd.f32 %v5088_v35, %v5087_v37  ;;  %v5474_v35 = vld [vmem:[#allocation2 + $0x30] sm:$0x3] }
0x373b   :  { %5194 = vrot.lane.b32.xlu0 %v10618_v38, %s9220_s20 }
0x373c   :  { %5119 = vrot.lane.b32.xlu1 %v10620_v39, %s9220_s20 }
0x37ad   :  { %v5195_v29 = vpop.permute.xlu0 %5194 }
0x37ae   :  { %v5120_v30 = vpop.permute.xlu1 %5119  ;;  %8516 = vmatmul.mubr.msk.f32.vlgmr.msra.gmra.mxu1 %vm290_vm5, %v5195_v29 }
0x37af   :  { %8505 = vmatmul.mubr.msk.f32.vlgmr.msra.gmra.mxu0 %vm290_vm5, %v5120_v30  ;;  %8530 = vmatpush3.msra.mxu1 %v10628_v25 }
0x37b0   :  { %8519 = vmatpush3.msra.mxu0 %v10631_v26  ;;  %8531 = vmatprep.subr.mxu1 %v9216_v0 }
0x37b1   :  { %8520 = vmatprep.subr.mxu0 %v9216_v0  ;;  %8532 = vmatpush3.msra.mxu1 %v10636_v31 }
0x37b2   :  { %8521 = vmatpush3.msra.mxu0 %v10639_v2  ;;  %8533 = vmatprep.subr.mxu1 %v9216_v0 }
0x37b3   :  { %8522 = vmatprep.subr.mxu0 %v9216_v0  ;;  %8534 = vmatpush3.msra.mxu1 %v10644_v3 }
0x37b4   :  { %8523 = vmatpush3.msra.mxu0 %v10647_v14  ;;  %8535 = vmatprep.subr.mxu1 %v9216_v0 }
0x37b5   :  { %8524 = vmatprep.subr.mxu0 %v9216_v0  ;;  %8536 = vmatpush3.msra.mxu1 %v10652_v4 }
0x37b6   :  { %8537 = vmatprep.mubr.msk.f32.mxu1 %vm9217_vm0, %v9216_v0  ;;  %8525 = vmatpush3.msra.mxu0 %v10657_v15 }
0x37b7   :  { %8526 = vmatprep.mubr.msk.f32.mxu0 %vm9217_vm0, %v9216_v0  ;;  %8540 = vmatprep.subr.mxu0 %v9216_v0 }
0x37b8   :  { %8551 = vmatprep.subr.mxu1 %v9216_v0 }
0x386e   :  { %v5264_v5 = vpop.f32.mrf.mxu1 }
0x386f   :  { %v5189_v41 = vpop.f32.mrf.mxu0  ;;  %v5304_v42 = vadd.f32 %v5264_v5, %v10442_v24  ;;  %v5297_v23 = vadd.f32 %v5296_v11, %v5264_v5 }
0x3870   :  { %v5276_v34 = vadd.f32 %v5189_v41, %v10440_v6  ;;  %v8517_v21 = vpop.f32.mrf.mxu1  ;;  %v5269_v36 = vadd.f32 %v5268_v12, %v5189_v41 }
0x3871   :  { %v8506_v22 = vpop.f32.mrf.mxu0  ;;  %5306 = vrot.lane.b32.xlu0 %v5304_v42, %s9219_s7  ;;  %v7545_v43 = vmul.f32 -1.442695, %v5297_v23 }
0x3872   :  { %5278 = vrot.lane.b32.xlu1 %v5276_v34, %s9219_s7  ;;  %v7544_v44 = vmul.f32 -1.442695, %v5269_v36 }
0x3873   :  { %9001 = vpow2.f32 %v7545_v43 }
0x3874   :  { %9003 = vpow2.f32 %v7544_v44 }
0x3880   :  { %v9002_v28 = vpop.eup %9001 }
0x3881   :  { %v9004_v20 = vpop.eup %9003  ;;  %v5301_v27 = vadd.f32 1.0, %v9002_v28 }
0x3882   :  { %v5273_v32 = vadd.f32 1.0, %v9004_v20 }
0x3883   :  { %9005 = vrcp.f32 %v5301_v27 }
0x3884   :  { %9007 = vrcp.f32 %v5273_v32 }
0x3890   :  { %v9006_v33 = vpop.eup %9005 }
0x3891   :  { %v9008_v17 = vpop.eup %9007  ;;  %v5316_v51 = vsub.f32 1.0, %v9006_v33  ;;  %v5322_v53 = vmul.f32 %v9006_v33, %v10618_v38 }
0x3892   :  { %v5288_v52 = vsub.f32 1.0, %v9008_v17  ;;  %v5294_v56 = vmul.f32 %v9008_v17, %v10620_v39 }
0x38e3   :  { %v5307_v16 = vpop.permute.xlu0 %5306 }
0x38e4   :  { %v5309_v40 = vmul.f32 %v9006_v33, %v5307_v16  ;;  %v5279_v18 = vpop.permute.xlu1 %5278 }
0x38e5   :  { %v5281_v45 = vmul.f32 %v9008_v17, %v5279_v18 }
0x38e6   :  { %5311 = vrot.lane.b32.xlu0 %v5309_v40, %s9219_s7 }
0x38e7   :  { %5283 = vrot.lane.b32.xlu1 %v5281_v45, %s9219_s7 }
0x3958   :  { %v5312_v46 = vpop.permute.xlu0 %5311 }
0x3959   :  { %v5314_v47 = vadd.f32 %v5312_v46, %v5296_v11  ;;  %v5284_v48 = vpop.permute.xlu1 %5283 }
0x395a   :  { %v5286_v49 = vadd.f32 %v5284_v48, %v5268_v12 }
0x395b   :  { %9009 = vtanh.f32 %v5314_v47 }
0x395c   :  { %9011 = vtanh.f32 %v5286_v49 }
0x3968   :  { %v9010_v50 = vpop.eup %9009 }
0x3969   :  { %v9012_v7 = vpop.eup %9011  ;;  %5318 = vrot.lane.b32.xlu0 %v9010_v50, %s9220_s20 }
0x396a   :  { %5290 = vrot.lane.b32.xlu1 %v9012_v7, %s9220_s20 }
0x39db   :  { %v5319_v19 = vpop.permute.xlu0 %5318 }
0x39dc   :  { %v5321_v54 = vmul.f32 %v5319_v19, %v5316_v51  ;;  %v5291_v55 = vpop.permute.xlu1 %5290 }
0x39dd   :  { %v5293_v57 = vmul.f32 %v5291_v55, %v5288_v52  ;;  %v5708_v55 = vld [vmem:[#allocation3 + $0x40] sm:$0x3] }
0x39de   :  { %v10674_v58 = vadd.f32 %v5322_v53, %v5321_v54 }
0x39df   :  { %v10676_v59 = vadd.f32 %v5294_v56, %v5293_v57  ;;  %v5680_v56 = vld [vmem:[#allocation2 + $0x38] sm:$0x3] }
0x39e0   :  { %5400 = vrot.lane.b32.xlu0 %v10674_v58, %s9220_s20 }
0x39e1   :  { %5325 = vrot.lane.b32.xlu1 %v10676_v59, %s9220_s20 }
0x3a52   :  { %v5401_v60 = vpop.permute.xlu0 %5400 }
0x3a53   :  { %v5326_v61 = vpop.permute.xlu1 %5325  ;;  %8538 = vmatmul.mubr.msk.f32.vlgmr.msra.gmra.mxu1 %vm290_vm5, %v5401_v60 }
0x3a54   :  { %8527 = vmatmul.mubr.msk.f32.vlgmr.msra.gmra.mxu0 %vm290_vm5, %v5326_v61  ;;  %8552 = vmatpush3.msra.mxu1 %v10628_v25 }
0x3a55   :  { %8541 = vmatpush3.msra.mxu0 %v10631_v26  ;;  %8553 = vmatprep.subr.mxu1 %v9216_v0 }
0x3a56   :  { %8542 = vmatprep.subr.mxu0 %v9216_v0  ;;  %8554 = vmatpush3.msra.mxu1 %v10636_v31 }
0x3a57   :  { %8543 = vmatpush3.msra.mxu0 %v10639_v2  ;;  %8555 = vmatprep.subr.mxu1 %v9216_v0 }
0x3a58   :  { %8544 = vmatprep.subr.mxu0 %v9216_v0  ;;  %8556 = vmatpush3.msra.mxu1 %v10644_v3 }
0x3a59   :  { %8545 = vmatpush3.msra.mxu0 %v10647_v14  ;;  %8557 = vmatprep.subr.mxu1 %v9216_v0 }
0x3a5a   :  { %8546 = vmatprep.subr.mxu0 %v9216_v0  ;;  %8558 = vmatpush3.msra.mxu1 %v10652_v4 }
0x3a5b   :  { %8559 = vmatprep.mubr.msk.f32.mxu1 %vm9217_vm0, %v9216_v0  ;;  %8547 = vmatpush3.msra.mxu0 %v10657_v15 }
0x3a5c   :  { %8548 = vmatprep.mubr.msk.f32.mxu0 %vm9217_vm0, %v9216_v0  ;;  %8562 = vmatprep.subr.mxu0 %v9216_v0 }
0x3a5d   :  { %8573 = vmatprep.subr.mxu1 %v9216_v0 }
0x3b13   :  { %v5470_v62 = vpop.f32.mrf.mxu1 }
0x3b14   :  { %v5395_v63 = vpop.f32.mrf.mxu0  ;;  %v5510_v1 = vadd.f32 %v5470_v62, %v10442_v24  ;;  %v5503_v37 = vadd.f32 %v5502_v9, %v5470_v62 }
0x3b15   :  { %v5482_v10 = vadd.f32 %v5395_v63, %v10440_v6  ;;  %v8539_v13 = vpop.f32.mrf.mxu1  ;;  %v5475_v38 = vadd.f32 %v5474_v35, %v5395_v63 }
0x3b16   :  { %v8528_v8 = vpop.f32.mrf.mxu0  ;;  %5512 = vrot.lane.b32.xlu0 %v5510_v1, %s9219_s7  ;;  %v7549_v39 = vmul.f32 -1.442695, %v5503_v37 }
0x3b17   :  { %5484 = vrot.lane.b32.xlu1 %v5482_v10, %s9219_s7  ;;  %v7548_v29 = vmul.f32 -1.442695, %v5475_v38 }
0x3b18   :  { %9013 = vpow2.f32 %v7549_v39 }
0x3b19   :  { %9015 = vpow2.f32 %v7548_v29 }
0x3b25   :  { %v9014_v30 = vpop.eup %9013 }
0x3b26   :  { %v9016_v5 = vpop.eup %9015  ;;  %v5507_v41 = vadd.f32 1.0, %v9014_v30 }
0x3b27   :  { %v5479_v42 = vadd.f32 1.0, %v9016_v5 }
0x3b28   :  { %9017 = vrcp.f32 %v5507_v41 }
0x3b29   :  { %9019 = vrcp.f32 %v5479_v42 }
0x3b35   :  { %v9018_v34 = vpop.eup %9017 }
0x3b36   :  { %v9020_v22 = vpop.eup %9019  ;;  %v5522_v32 = vsub.f32 1.0, %v9018_v34  ;;  %v5528_v17 = vmul.f32 %v9018_v34, %v10674_v58 }
0x3b37   :  { %v5494_v16 = vsub.f32 1.0, %v9020_v22  ;;  %v5500_v45 = vmul.f32 %v9020_v22, %v10676_v59 }
0x3b88   :  { %v5513_v21 = vpop.permute.xlu0 %5512 }
0x3b89   :  { %v5515_v11 = vmul.f32 %v9018_v34, %v5513_v21  ;;  %v5485_v12 = vpop.permute.xlu1 %5484 }
0x3b8a   :  { %v5487_v23 = vmul.f32 %v9020_v22, %v5485_v12 }
0x3b8b   :  { %5517 = vrot.lane.b32.xlu0 %v5515_v11, %s9219_s7 }
0x3b8c   :  { %5489 = vrot.lane.b32.xlu1 %v5487_v23, %s9219_s7 }
0x3bfd   :  { %v5518_v36 = vpop.permute.xlu0 %5517 }
0x3bfe   :  { %v5520_v43 = vadd.f32 %v5518_v36, %v5502_v9  ;;  %v5490_v44 = vpop.permute.xlu1 %5489 }
0x3bff   :  { %v5492_v28 = vadd.f32 %v5490_v44, %v5474_v35 }
0x3c00   :  { %9021 = vtanh.f32 %v5520_v43 }
0x3c01   :  { %9023 = vtanh.f32 %v5492_v28 }
0x3c0d   :  { %v9022_v20 = vpop.eup %9021 }
0x3c0e   :  { %v9024_v27 = vpop.eup %9023  ;;  %5524 = vrot.lane.b32.xlu0 %v9022_v20, %s9220_s20 }
0x3c0f   :  { %5496 = vrot.lane.b32.xlu1 %v9024_v27, %s9220_s20 }
0x3c80   :  { %v5525_v33 = vpop.permute.xlu0 %5524 }
0x3c81   :  { %v5527_v40 = vmul.f32 %v5525_v33, %v5522_v32  ;;  %v5497_v18 = vpop.permute.xlu1 %5496 }
0x3c82   :  { %v5499_v46 = vmul.f32 %v5497_v18, %v5494_v16  ;;  %v5914_v18 = vld [vmem:[#allocation3 + $0x38] sm:$0x3] }
0x3c83   :  { %v10714_v47 = vadd.f32 %v5528_v17, %v5527_v40 }
0x3c84   :  { %v10716_v48 = vadd.f32 %v5500_v45, %v5499_v46  ;;  %v5886_v45 = vld [vmem:[#allocation2 + $0x40] sm:$0x3] }
0x3c85   :  { %5606 = vrot.lane.b32.xlu0 %v10714_v47, %s9220_s20 }
0x3c86   :  { %5531 = vrot.lane.b32.xlu1 %v10716_v48, %s9220_s20 }
0x3cf7   :  { %v5607_v49 = vpop.permute.xlu0 %5606 }
0x3cf8   :  { %v5532_v50 = vpop.permute.xlu1 %5531  ;;  %8560 = vmatmul.mubr.msk.f32.vlgmr.msra.gmra.mxu1 %vm290_vm5, %v5607_v49 }
0x3cf9   :  { %8549 = vmatmul.mubr.msk.f32.vlgmr.msra.gmra.mxu0 %vm290_vm5, %v5532_v50  ;;  %8574 = vmatpush3.msra.mxu1 %v10628_v25 }
0x3cfa   :  { %8563 = vmatpush3.msra.mxu0 %v10631_v26  ;;  %8575 = vmatprep.subr.mxu1 %v9216_v0 }
0x3cfb   :  { %8564 = vmatprep.subr.mxu0 %v9216_v0  ;;  %8576 = vmatpush3.msra.mxu1 %v10636_v31 }
0x3cfc   :  { %8565 = vmatpush3.msra.mxu0 %v10639_v2  ;;  %8577 = vmatprep.subr.mxu1 %v9216_v0 }
0x3cfd   :  { %8566 = vmatprep.subr.mxu0 %v9216_v0  ;;  %8578 = vmatpush3.msra.mxu1 %v10644_v3 }
0x3cfe   :  { %8567 = vmatpush3.msra.mxu0 %v10647_v14  ;;  %8579 = vmatprep.subr.mxu1 %v9216_v0 }
0x3cff   :  { %8568 = vmatprep.subr.mxu0 %v9216_v0  ;;  %8580 = vmatpush3.msra.mxu1 %v10652_v4 }
0x3d00   :  { %8581 = vmatprep.mubr.msk.f32.mxu1 %vm9217_vm0, %v9216_v0  ;;  %8569 = vmatpush3.msra.mxu0 %v10657_v15 }
0x3d01   :  { %8570 = vmatprep.mubr.msk.f32.mxu0 %vm9217_vm0, %v9216_v0  ;;  %8584 = vmatprep.subr.mxu0 %v9216_v0 }
0x3d02   :  { %8595 = vmatprep.subr.mxu1 %v9216_v0 }
0x3db8   :  { %v5676_v7 = vpop.f32.mrf.mxu1 }
0x3db9   :  { %v5601_v51 = vpop.f32.mrf.mxu0  ;;  %v5716_v19 = vadd.f32 %v5676_v7, %v10442_v24  ;;  %v5709_v57 = vadd.f32 %v5708_v55, %v5676_v7 }
0x3dba   :  { %v5688_v52 = vadd.f32 %v5601_v51, %v10440_v6  ;;  %v8561_v53 = vpop.f32.mrf.mxu1  ;;  %v5681_v58 = vadd.f32 %v5680_v56, %v5601_v51 }
0x3dbb   :  { %v8550_v54 = vpop.f32.mrf.mxu0  ;;  %5718 = vrot.lane.b32.xlu0 %v5716_v19, %s9219_s7  ;;  %v7553_v59 = vmul.f32 -1.442695, %v5709_v57 }
0x3dbc   :  { %5690 = vrot.lane.b32.xlu1 %v5688_v52, %s9219_s7  ;;  %v7552_v60 = vmul.f32 -1.442695, %v5681_v58 }
0x3dbd   :  { %9025 = vpow2.f32 %v7553_v59 }
0x3dbe   :  { %9027 = vpow2.f32 %v7552_v60 }
0x3dca   :  { %v9026_v61 = vpop.eup %9025 }
0x3dcb   :  { %v9028_v62 = vpop.eup %9027  ;;  %v5713_v63 = vadd.f32 1.0, %v9026_v61 }
0x3dcc   :  { %v5685_v1 = vadd.f32 1.0, %v9028_v62 }
0x3dcd   :  { %9029 = vrcp.f32 %v5713_v63 }
0x3dce   :  { %9031 = vrcp.f32 %v5685_v1 }
0x3dda   :  { %v9030_v10 = vpop.eup %9029 }
0x3ddb   :  { %v9032_v8 = vpop.eup %9031  ;;  %v5728_v42 = vsub.f32 1.0, %v9030_v10  ;;  %v5734_v22 = vmul.f32 %v9030_v10, %v10714_v47 }
0x3ddc   :  { %v5700_v21 = vsub.f32 1.0, %v9032_v8  ;;  %v5706_v23 = vmul.f32 %v9032_v8, %v10716_v48 }
0x3e2d   :  { %v5719_v13 = vpop.permute.xlu0 %5718 }
0x3e2e   :  { %v5721_v9 = vmul.f32 %v9030_v10, %v5719_v13  ;;  %v5691_v35 = vpop.permute.xlu1 %5690 }
0x3e2f   :  { %v5693_v37 = vmul.f32 %v9032_v8, %v5691_v35 }
0x3e30   :  { %5723 = vrot.lane.b32.xlu0 %v5721_v9, %s9219_s7 }
0x3e31   :  { %5695 = vrot.lane.b32.xlu1 %v5693_v37, %s9219_s7 }
0x3ea2   :  { %v5724_v38 = vpop.permute.xlu0 %5723 }
0x3ea3   :  { %v5726_v39 = vadd.f32 %v5724_v38, %v5708_v55  ;;  %v5696_v29 = vpop.permute.xlu1 %5695 }
0x3ea4   :  { %v5698_v30 = vadd.f32 %v5696_v29, %v5680_v56 }
0x3ea5   :  { %9033 = vtanh.f32 %v5726_v39 }
0x3ea6   :  { %9035 = vtanh.f32 %v5698_v30 }
0x3eb2   :  { %v9034_v5 = vpop.eup %9033 }
0x3eb3   :  { %v9036_v41 = vpop.eup %9035  ;;  %5730 = vrot.lane.b32.xlu0 %v9034_v5, %s9220_s20 }
0x3eb4   :  { %5702 = vrot.lane.b32.xlu1 %v9036_v41, %s9220_s20 }
0x3f25   :  { %v5731_v34 = vpop.permute.xlu0 %5730 }
0x3f26   :  { %v5733_v11 = vmul.f32 %v5731_v34, %v5728_v42  ;;  %v5703_v12 = vpop.permute.xlu1 %5702 }
0x3f27   :  { %v5705_v36 = vmul.f32 %v5703_v12, %v5700_v21  ;;  %v6120_v12 = vld [vmem:[#allocation3 + $0x30] sm:$0x3] }
0x3f28   :  { %v10754_v43 = vadd.f32 %v5734_v22, %v5733_v11 }
0x3f29   :  { %v10756_v44 = vadd.f32 %v5706_v23, %v5705_v36  ;;  %v6092_v23 = vld [vmem:[#allocation2 + $0x48] sm:$0x3] }
0x3f2a   :  { %5812 = vrot.lane.b32.xlu0 %v10754_v43, %s9220_s20 }
0x3f2b   :  { %5737 = vrot.lane.b32.xlu1 %v10756_v44, %s9220_s20 }
0x3f9c   :  { %v5813_v28 = vpop.permute.xlu0 %5812 }
0x3f9d   :  { %v5738_v20 = vpop.permute.xlu1 %5737  ;;  %8582 = vmatmul.mubr.msk.f32.vlgmr.msra.gmra.mxu1 %vm290_vm5, %v5813_v28 }
0x3f9e   :  { %8571 = vmatmul.mubr.msk.f32.vlgmr.msra.gmra.mxu0 %vm290_vm5, %v5738_v20  ;;  %8596 = vmatpush3.msra.mxu1 %v10628_v25 }
0x3f9f   :  { %8585 = vmatpush3.msra.mxu0 %v10631_v26  ;;  %8597 = vmatprep.subr.mxu1 %v9216_v0 }
0x3fa0   :  { %8586 = vmatprep.subr.mxu0 %v9216_v0  ;;  %8598 = vmatpush3.msra.mxu1 %v10636_v31 }
0x3fa1   :  { %8587 = vmatpush3.msra.mxu0 %v10639_v2  ;;  %8599 = vmatprep.subr.mxu1 %v9216_v0 }
0x3fa2   :  { %8588 = vmatprep.subr.mxu0 %v9216_v0  ;;  %8600 = vmatpush3.msra.mxu1 %v10644_v3 }
0x3fa3   :  { %8589 = vmatpush3.msra.mxu0 %v10647_v14  ;;  %8601 = vmatprep.subr.mxu1 %v9216_v0 }
0x3fa4   :  { %8590 = vmatprep.subr.mxu0 %v9216_v0  ;;  %8602 = vmatpush3.msra.mxu1 %v10652_v4 }
0x3fa5   :  { %8603 = vmatprep.mubr.msk.f32.mxu1 %vm9217_vm0, %v9216_v0  ;;  %8591 = vmatpush3.msra.mxu0 %v10657_v15 }
0x3fa6   :  { %8592 = vmatprep.mubr.msk.f32.mxu0 %vm9217_vm0, %v9216_v0  ;;  %8606 = vmatprep.subr.mxu0 %v9216_v0 }
0x3fa7   :  { %8617 = vmatprep.subr.mxu1 %v9216_v0 }
0x405d   :  { %v5882_v27 = vpop.f32.mrf.mxu1 }
0x405e   :  { %v5807_v32 = vpop.f32.mrf.mxu0  ;;  %v5922_v33 = vadd.f32 %v5882_v27, %v10442_v24  ;;  %v5915_v46 = vadd.f32 %v5914_v18, %v5882_v27 }
0x405f   :  { %v5894_v16 = vadd.f32 %v5807_v32, %v10440_v6  ;;  %v8583_v17 = vpop.f32.mrf.mxu1  ;;  %v5887_v47 = vadd.f32 %v5886_v45, %v5807_v32 }
0x4060   :  { %v8572_v40 = vpop.f32.mrf.mxu0  ;;  %5924 = vrot.lane.b32.xlu0 %v5922_v33, %s9219_s7  ;;  %v7557_v48 = vmul.f32 -1.442695, %v5915_v46 }
0x4061   :  { %5896 = vrot.lane.b32.xlu1 %v5894_v16, %s9219_s7  ;;  %v7556_v49 = vmul.f32 -1.442695, %v5887_v47 }
0x4062   :  { %9037 = vpow2.f32 %v7557_v48 }
0x4063   :  { %9039 = vpow2.f32 %v7556_v49 }
0x406f   :  { %v9038_v50 = vpop.eup %9037 }
0x4070   :  { %v9040_v7 = vpop.eup %9039  ;;  %v5919_v51 = vadd.f32 1.0, %v9038_v50 }
0x4071   :  { %v5891_v19 = vadd.f32 1.0, %v9040_v7 }
0x4072   :  { %9041 = vrcp.f32 %v5919_v51 }
0x4073   :  { %9043 = vrcp.f32 %v5891_v19 }
0x407f   :  { %v9042_v52 = vpop.eup %9041 }
0x4080   :  { %v9044_v54 = vpop.eup %9043  ;;  %v5934_v1 = vsub.f32 1.0, %v9042_v52  ;;  %v5940_v8 = vmul.f32 %v9042_v52, %v10754_v43 }
0x4081   :  { %v5906_v13 = vsub.f32 1.0, %v9044_v54  ;;  %v5912_v37 = vmul.f32 %v9044_v54, %v10756_v44 }
0x40d2   :  { %v5925_v53 = vpop.permute.xlu0 %5924 }
0x40d3   :  { %v5927_v55 = vmul.f32 %v9042_v52, %v5925_v53  ;;  %v5897_v56 = vpop.permute.xlu1 %5896 }
0x40d4   :  { %v5899_v57 = vmul.f32 %v9044_v54, %v5897_v56 }
0x40d5   :  { %5929 = vrot.lane.b32.xlu0 %v5927_v55, %s9219_s7 }
0x40d6   :  { %5901 = vrot.lane.b32.xlu1 %v5899_v57, %s9219_s7 }
0x4147   :  { %v5930_v58 = vpop.permute.xlu0 %5929 }
0x4148   :  { %v5932_v59 = vadd.f32 %v5930_v58, %v5914_v18  ;;  %v5902_v60 = vpop.permute.xlu1 %5901 }
0x4149   :  { %v5904_v61 = vadd.f32 %v5902_v60, %v5886_v45 }
0x414a   :  { %9045 = vtanh.f32 %v5932_v59 }
0x414b   :  { %9047 = vtanh.f32 %v5904_v61 }
0x4157   :  { %v9046_v62 = vpop.eup %9045 }
0x4158   :  { %v9048_v63 = vpop.eup %9047  ;;  %5936 = vrot.lane.b32.xlu0 %v9046_v62, %s9220_s20 }
0x4159   :  { %5908 = vrot.lane.b32.xlu1 %v9048_v63, %s9220_s20 }
0x41ca   :  { %v5937_v10 = vpop.permute.xlu0 %5936 }
0x41cb   :  { %v5939_v9 = vmul.f32 %v5937_v10, %v5934_v1  ;;  %v5909_v35 = vpop.permute.xlu1 %5908 }
0x41cc   :  { %v5911_v38 = vmul.f32 %v5909_v35, %v5906_v13  ;;  %v6326_v35 = vld [vmem:[#allocation3 + $0x28] sm:$0x3] }
0x41cd   :  { %v10794_v39 = vadd.f32 %v5940_v8, %v5939_v9 }
0x41ce   :  { %v10796_v29 = vadd.f32 %v5912_v37, %v5911_v38  ;;  %v6298_v37 = vld [vmem:[#allocation2 + $0x50] sm:$0x3] }
0x41cf   :  { %6018 = vrot.lane.b32.xlu0 %v10794_v39, %s9220_s20 }
0x41d0   :  { %5943 = vrot.lane.b32.xlu1 %v10796_v29, %s9220_s20 }
0x4241   :  { %v6019_v30 = vpop.permute.xlu0 %6018 }
0x4242   :  { %v5944_v5 = vpop.permute.xlu1 %5943  ;;  %8604 = vmatmul.mubr.msk.f32.vlgmr.msra.gmra.mxu1 %vm290_vm5, %v6019_v30 }
0x4243   :  { %8593 = vmatmul.mubr.msk.f32.vlgmr.msra.gmra.mxu0 %vm290_vm5, %v5944_v5  ;;  %8618 = vmatpush3.msra.mxu1 %v10628_v25 }
0x4244   :  { %8607 = vmatpush3.msra.mxu0 %v10631_v26  ;;  %8619 = vmatprep.subr.mxu1 %v9216_v0 }
0x4245   :  { %8608 = vmatprep.subr.mxu0 %v9216_v0  ;;  %8620 = vmatpush3.msra.mxu1 %v10636_v31 }
0x4246   :  { %8609 = vmatpush3.msra.mxu0 %v10639_v2  ;;  %8621 = vmatprep.subr.mxu1 %v9216_v0 }
0x4247   :  { %8610 = vmatprep.subr.mxu0 %v9216_v0  ;;  %8622 = vmatpush3.msra.mxu1 %v10644_v3 }
0x4248   :  { %8611 = vmatpush3.msra.mxu0 %v10647_v14  ;;  %8623 = vmatprep.subr.mxu1 %v9216_v0 }
0x4249   :  { %8612 = vmatprep.subr.mxu0 %v9216_v0  ;;  %8624 = vmatpush3.msra.mxu1 %v10652_v4 }
0x424a   :  { %8625 = vmatprep.mubr.msk.f32.mxu1 %vm9217_vm0, %v9216_v0  ;;  %8613 = vmatpush3.msra.mxu0 %v10657_v15 }
0x424b   :  { %8614 = vmatprep.mubr.msk.f32.mxu0 %vm9217_vm0, %v9216_v0  ;;  %8628 = vmatprep.subr.mxu0 %v9216_v0 }
0x424c   :  { %8639 = vmatprep.subr.mxu1 %v9216_v0 }
0x4302   :  { %v6088_v41 = vpop.f32.mrf.mxu1 }
0x4303   :  { %v6013_v42 = vpop.f32.mrf.mxu0  ;;  %v6128_v34 = vadd.f32 %v6088_v41, %v10442_v24  ;;  %v6121_v36 = vadd.f32 %v6120_v12, %v6088_v41 }
0x4304   :  { %v6100_v21 = vadd.f32 %v6013_v42, %v10440_v6  ;;  %v8605_v22 = vpop.f32.mrf.mxu1  ;;  %v6093_v43 = vadd.f32 %v6092_v23, %v6013_v42 }
0x4305   :  { %v8594_v11 = vpop.f32.mrf.mxu0  ;;  %6130 = vrot.lane.b32.xlu0 %v6128_v34, %s9219_s7  ;;  %v7561_v44 = vmul.f32 -1.442695, %v6121_v36 }
0x4306   :  { %6102 = vrot.lane.b32.xlu1 %v6100_v21, %s9219_s7  ;;  %v7560_v28 = vmul.f32 -1.442695, %v6093_v43 }
0x4307   :  { %9049 = vpow2.f32 %v7561_v44 }
0x4308   :  { %9051 = vpow2.f32 %v7560_v28 }
0x4314   :  { %v9050_v20 = vpop.eup %9049 }
0x4315   :  { %v9052_v27 = vpop.eup %9051  ;;  %v6125_v32 = vadd.f32 1.0, %v9050_v20 }
0x4316   :  { %v6097_v33 = vadd.f32 1.0, %v9052_v27 }
0x4317   :  { %9053 = vrcp.f32 %v6125_v32 }
0x4318   :  { %9055 = vrcp.f32 %v6097_v33 }
0x4324   :  { %v9054_v16 = vpop.eup %9053 }
0x4325   :  { %v9056_v40 = vpop.eup %9055  ;;  %v6140_v19 = vsub.f32 1.0, %v9054_v16  ;;  %v6146_v54 = vmul.f32 %v9054_v16, %v10794_v39 }
0x4326   :  { %v6112_v53 = vsub.f32 1.0, %v9056_v40  ;;  %v6118_v57 = vmul.f32 %v9056_v40, %v10796_v29 }
0x4377   :  { %v6131_v17 = vpop.permute.xlu0 %6130 }
0x4378   :  { %v6133_v18 = vmul.f32 %v9054_v16, %v6131_v17  ;;  %v6103_v45 = vpop.permute.xlu1 %6102 }
0x4379   :  { %v6105_v46 = vmul.f32 %v9056_v40, %v6103_v45 }
0x437a   :  { %6135 = vrot.lane.b32.xlu0 %v6133_v18, %s9219_s7 }
0x437b   :  { %6107 = vrot.lane.b32.xlu1 %v6105_v46, %s9219_s7 }
0x43ec   :  { %v6136_v47 = vpop.permute.xlu0 %6135 }
0x43ed   :  { %v6138_v48 = vadd.f32 %v6136_v47, %v6120_v12  ;;  %v6108_v49 = vpop.permute.xlu1 %6107 }
0x43ee   :  { %v6110_v50 = vadd.f32 %v6108_v49, %v6092_v23 }
0x43ef   :  { %9057 = vtanh.f32 %v6138_v48 }
0x43f0   :  { %9059 = vtanh.f32 %v6110_v50 }
0x43fc   :  { %v9058_v7 = vpop.eup %9057 }
0x43fd   :  { %v9060_v51 = vpop.eup %9059  ;;  %6142 = vrot.lane.b32.xlu0 %v9058_v7, %s9220_s20 }
0x43fe   :  { %6114 = vrot.lane.b32.xlu1 %v9060_v51, %s9220_s20 }
0x446f   :  { %v6143_v52 = vpop.permute.xlu0 %6142 }
0x4470   :  { %v6145_v55 = vmul.f32 %v6143_v52, %v6140_v19  ;;  %v6115_v56 = vpop.permute.xlu1 %6114 }
0x4471   :  { %v6117_v58 = vmul.f32 %v6115_v56, %v6112_v53 }
0x4472   :  { %v10834_v59 = vadd.f32 %v6146_v54, %v6145_v55 }
0x4473   :  { %v10836_v60 = vadd.f32 %v6118_v57, %v6117_v58 }
0x4474   :  { %6224 = vrot.lane.b32.xlu0 %v10834_v59, %s9220_s20 }
0x4475   :  { %6149 = vrot.lane.b32.xlu1 %v10836_v60, %s9220_s20 }
0x44e6   :  { %v6225_v61 = vpop.permute.xlu0 %6224 }
0x44e7   :  { %v6150_v62 = vpop.permute.xlu1 %6149  ;;  %8626 = vmatmul.mubr.msk.f32.vlgmr.msra.gmra.mxu1 %vm290_vm5, %v6225_v61 }
0x44e8   :  { %8615 = vmatmul.mubr.msk.f32.vlgmr.msra.gmra.mxu0 %vm290_vm5, %v6150_v62  ;;  %8640 = vmatpush3.msra.mxu1 %v10628_v25 }
0x44e9   :  { %8629 = vmatpush3.msra.mxu0 %v10631_v26  ;;  %8641 = vmatprep.subr.mxu1 %v9216_v0 }
0x44ea   :  { %8630 = vmatprep.subr.mxu0 %v9216_v0  ;;  %8642 = vmatpush3.msra.mxu1 %v10636_v31 }
0x44eb   :  { %8631 = vmatpush3.msra.mxu0 %v10639_v2  ;;  %8643 = vmatprep.subr.mxu1 %v9216_v0 }
0x44ec   :  { %8632 = vmatprep.subr.mxu0 %v9216_v0  ;;  %8644 = vmatpush3.msra.mxu1 %v10644_v3 }
0x44ed   :  { %8633 = vmatpush3.msra.mxu0 %v10647_v14  ;;  %8645 = vmatprep.subr.mxu1 %v9216_v0 }
0x44ee   :  { %8634 = vmatprep.subr.mxu0 %v9216_v0  ;;  %8646 = vmatpush3.msra.mxu1 %v10652_v4 }
0x44ef   :  { %8647 = vmatprep.mubr.msk.f32.mxu1 %vm9217_vm0, %v9216_v0  ;;  %8635 = vmatpush3.msra.mxu0 %v10657_v15 }
0x44f0   :  { %8636 = vmatprep.mubr.msk.f32.mxu0 %vm9217_vm0, %v9216_v0  ;;  %8650 = vmatprep.subr.mxu0 %v9216_v0 }
0x44f1   :  { %8661 = vmatprep.subr.mxu1 %v9216_v0 }
0x45a7   :  { %v6294_v63 = vpop.f32.mrf.mxu1 }
0x45a8   :  { %v6219_v1 = vpop.f32.mrf.mxu0  ;;  %v6334_v10 = vadd.f32 %v6294_v63, %v10442_v24  ;;  %v6327_v38 = vadd.f32 %v6326_v35, %v6294_v63 }
0x45a9   :  { %v6306_v13 = vadd.f32 %v6219_v1, %v10440_v6  ;;  %v8627_v8 = vpop.f32.mrf.mxu1  ;;  %v6299_v39 = vadd.f32 %v6298_v37, %v6219_v1 }
0x45aa   :  { %v8616_v9 = vpop.f32.mrf.mxu0  ;;  %6336 = vrot.lane.b32.xlu0 %v6334_v10, %s9219_s7  ;;  %v7565_v29 = vmul.f32 -1.442695, %v6327_v38 }
0x45ab   :  { %6308 = vrot.lane.b32.xlu1 %v6306_v13, %s9219_s7  ;;  %v7564_v30 = vmul.f32 -1.442695, %v6299_v39 }
0x45ac   :  { %9061 = vpow2.f32 %v7565_v29 }
0x45ad   :  { %9063 = vpow2.f32 %v7564_v30 }
0x45b9   :  { %v9062_v5 = vpop.eup %9061 }
0x45ba   :  { %v9064_v41 = vpop.eup %9063  ;;  %v6331_v42 = vadd.f32 1.0, %v9062_v5 }
0x45bb   :  { %v6303_v34 = vadd.f32 1.0, %v9064_v41 }
0x45bc   :  { %9065 = vrcp.f32 %v6331_v42 }
0x45bd   :  { %9067 = vrcp.f32 %v6303_v34 }
0x45c9   :  { %v9066_v21 = vpop.eup %9065 }
0x45ca   :  { %v9068_v11 = vpop.eup %9067  ;;  %v6346_v33 = vsub.f32 1.0, %v9066_v21  ;;  %v6352_v40 = vmul.f32 %v9066_v21, %v10834_v59 }
0x45cb   :  { %v6318_v17 = vsub.f32 1.0, %v9068_v11  ;;  %v6324_v46 = vmul.f32 %v9068_v11, %v10836_v60 }
0x461c   :  { %v6337_v22 = vpop.permute.xlu0 %6336 }
0x461d   :  { %v6339_v12 = vmul.f32 %v9066_v21, %v6337_v22  ;;  %v6309_v23 = vpop.permute.xlu1 %6308 }
0x461e   :  { %v6311_v36 = vmul.f32 %v9068_v11, %v6309_v23  ;;  %v10927_v23 = vld [vmem:[#allocation5 + $0x58] sm:$0xff] }
0x461f   :  { %6341 = vrot.lane.b32.xlu0 %v6339_v12, %s9219_s7  ;;  %v10924_v12 = vld [vmem:[#allocation5 + $0x78] sm:$0xff] }
0x4620   :  { %6313 = vrot.lane.b32.xlu1 %v6311_v36, %s9219_s7  ;;  %v10932_v36 = vld [vmem:[#allocation5 + $0x70] sm:$0xff] }
0x4691   :  { %v6342_v43 = vpop.permute.xlu0 %6341 }
0x4692   :  { %v6344_v44 = vadd.f32 %v6342_v43, %v6326_v35  ;;  %v6314_v28 = vpop.permute.xlu1 %6313  ;;  %v10935_v43 = vld [vmem:[#allocation5 + $0x50] sm:$0xff] }
0x4693   :  { %v6316_v20 = vadd.f32 %v6314_v28, %v6298_v37  ;;  %v10943_v28 = vld [vmem:[#allocation5 + $0x48] sm:$0xff] }
0x4694   :  { %9069 = vtanh.f32 %v6344_v44  ;;  %v10940_v44 = vld [vmem:[#allocation5 + $0x68] sm:$0xff] }
0x4695   :  { %9071 = vtanh.f32 %v6316_v20  ;;  %v10948_v20 = vld [vmem:[#allocation5 + $0x60] sm:$0xff] }
0x46a1   :  { %v9070_v27 = vpop.eup %9069 }
0x46a2   :  { %v9072_v32 = vpop.eup %9071  ;;  %6348 = vrot.lane.b32.xlu0 %v9070_v27, %s9220_s20  ;;  %v10953_v27 = vld [vmem:[#allocation5 + $0x40] sm:$0xff] }
0x46a3   :  { %6320 = vrot.lane.b32.xlu1 %v9072_v32, %s9220_s20 }
0x4714   :  { %v6349_v16 = vpop.permute.xlu0 %6348 }
0x4715   :  { %v6351_v18 = vmul.f32 %v6349_v16, %v6346_v33  ;;  %v6321_v45 = vpop.permute.xlu1 %6320 }
0x4716   :  { %v6323_v47 = vmul.f32 %v6321_v45, %v6318_v17  ;;  %v6738_v45 = vld [vmem:[#allocation3 + $0x18] sm:$0x3] }
0x4717   :  { %v10874_v48 = vadd.f32 %v6352_v40, %v6351_v18 }
0x4718   :  { %v10876_v49 = vadd.f32 %v6324_v46, %v6323_v47  ;;  %v6710_v46 = vld [vmem:[#allocation2 + $0x60] sm:$0x3] }
0x4719   :  { %6430 = vrot.lane.b32.xlu0 %v10874_v48, %s9220_s20 }
0x471a   :  { %6355 = vrot.lane.b32.xlu1 %v10876_v49, %s9220_s20 }
0x478b   :  { %v6431_v50 = vpop.permute.xlu0 %6430 }
0x478c   :  { %v6356_v7 = vpop.permute.xlu1 %6355  ;;  %8648 = vmatmul.mubr.msk.f32.vlgmr.msra.gmra.mxu1 %vm290_vm5, %v6431_v50 }
0x478d   :  { %8637 = vmatmul.mubr.msk.f32.vlgmr.msra.gmra.mxu0 %vm290_vm5, %v6356_v7  ;;  %8662 = vmatpush3.msra.mxu1 %v10628_v25 }
0x478e   :  { %8651 = vmatpush3.msra.mxu0 %v10631_v26  ;;  %8663 = vmatprep.subr.mxu1 %v9216_v0 }
0x478f   :  { %8652 = vmatprep.subr.mxu0 %v9216_v0  ;;  %8664 = vmatpush3.msra.mxu1 %v10636_v31 }
0x4790   :  { %8653 = vmatpush3.msra.mxu0 %v10639_v2  ;;  %8665 = vmatprep.subr.mxu1 %v9216_v0 }
0x4791   :  { %8654 = vmatprep.subr.mxu0 %v9216_v0  ;;  %8666 = vmatpush3.msra.mxu1 %v10644_v3 }
0x4792   :  { %8655 = vmatpush3.msra.mxu0 %v10647_v14  ;;  %8667 = vmatprep.subr.mxu1 %v9216_v0 }
0x4793   :  { %8656 = vmatprep.subr.mxu0 %v9216_v0  ;;  %8668 = vmatpush3.msra.mxu1 %v10652_v4  ;;  %v6532_v4 = vld [vmem:[#allocation3 + $0x20] sm:$0x3] }
0x4794   :  { %8669 = vmatprep.mubr.msk.f32.mxu1 %vm9217_vm0, %v9216_v0  ;;  %8657 = vmatpush3.msra.mxu0 %v10657_v15  ;;  %v6504_v15 = vld [vmem:[#allocation2 + $0x58] sm:$0x3] }
0x4795   :  { %8658 = vmatprep.mubr.msk.f32.mxu0 %vm9217_vm0, %v9216_v0  ;;  %8672 = vmatprep.subr.mxu0 %v9216_v0 }
0x4796   :  { %8683 = vmatprep.subr.mxu1 %v9216_v0 }
0x484c   :  { %v6500_v25 = vpop.f32.mrf.mxu1 }
0x484d   :  { %v6425_v26 = vpop.f32.mrf.mxu0  ;;  %v6540_v31 = vadd.f32 %v6500_v25, %v10442_v24  ;;  %v6533_v51 = vadd.f32 %v6532_v4, %v6500_v25 }
0x484e   :  { %v6512_v2 = vadd.f32 %v6425_v26, %v10440_v6  ;;  %v8649_v3 = vpop.f32.mrf.mxu1  ;;  %v6505_v19 = vadd.f32 %v6504_v15, %v6425_v26 }
0x484f   :  { %v8638_v14 = vpop.f32.mrf.mxu0  ;;  %6542 = vrot.lane.b32.xlu0 %v6540_v31, %s9219_s7  ;;  %v7569_v52 = vmul.f32 -1.442695, %v6533_v51 }
0x4850   :  { %6514 = vrot.lane.b32.xlu1 %v6512_v2, %s9219_s7  ;;  %v7568_v53 = vmul.f32 -1.442695, %v6505_v19 }
0x4851   :  { %9073 = vpow2.f32 %v7569_v52 }
0x4852   :  { %9075 = vpow2.f32 %v7568_v53 }
0x485e   :  { %v9074_v54 = vpop.eup %9073 }
0x485f   :  { %v9076_v55 = vpop.eup %9075  ;;  %v6537_v56 = vadd.f32 1.0, %v9074_v54 }
0x4860   :  { %v6509_v57 = vadd.f32 1.0, %v9076_v55 }
0x4861   :  { %9077 = vrcp.f32 %v6537_v56 }
0x4862   :  { %9079 = vrcp.f32 %v6509_v57 }
0x486e   :  { %v9078_v58 = vpop.eup %9077 }
0x486f   :  { %v9080_v60 = vpop.eup %9079  ;;  %v6552_v37 = vsub.f32 1.0, %v9078_v58  ;;  %v6558_v29 = vmul.f32 %v9078_v58, %v10874_v48 }
0x4870   :  { %v6524_v39 = vsub.f32 1.0, %v9080_v60  ;;  %v6530_v41 = vmul.f32 %v9080_v60, %v10876_v49 }
0x48c1   :  { %v6543_v59 = vpop.permute.xlu0 %6542 }
0x48c2   :  { %v6545_v61 = vmul.f32 %v9078_v58, %v6543_v59  ;;  %v6515_v62 = vpop.permute.xlu1 %6514 }
0x48c3   :  { %v6517_v63 = vmul.f32 %v9080_v60, %v6515_v62 }
0x48c4   :  { %6547 = vrot.lane.b32.xlu0 %v6545_v61, %s9219_s7 }
0x48c5   :  { %6519 = vrot.lane.b32.xlu1 %v6517_v63, %s9219_s7 }
0x4936   :  { %v6548_v1 = vpop.permute.xlu0 %6547 }
0x4937   :  { %v6550_v10 = vadd.f32 %v6548_v1, %v6532_v4  ;;  %v6520_v13 = vpop.permute.xlu1 %6519 }
0x4938   :  { %v6522_v8 = vadd.f32 %v6520_v13, %v6504_v15 }
0x4939   :  { %9081 = vtanh.f32 %v6550_v10 }
0x493a   :  { %9083 = vtanh.f32 %v6522_v8 }
0x4946   :  { %v9082_v9 = vpop.eup %9081 }
0x4947   :  { %v9084_v35 = vpop.eup %9083  ;;  %6554 = vrot.lane.b32.xlu0 %v9082_v9, %s9220_s20 }
0x4948   :  { %6526 = vrot.lane.b32.xlu1 %v9084_v35, %s9220_s20 }
0x49b9   :  { %v6555_v38 = vpop.permute.xlu0 %6554 }
0x49ba   :  { %v6557_v30 = vmul.f32 %v6555_v38, %v6552_v37  ;;  %v6527_v5 = vpop.permute.xlu1 %6526 }
0x49bb   :  { %v6529_v42 = vmul.f32 %v6527_v5, %v6524_v39  ;;  %v6944_v5 = vld [vmem:[#allocation3 + $0x10] sm:$0x3] }
0x49bc   :  { %v10914_v34 = vadd.f32 %v6558_v29, %v6557_v30 }
0x49bd   :  { %v10916_v21 = vadd.f32 %v6530_v41, %v6529_v42  ;;  %v6916_v41 = vld [vmem:[#allocation2 + $0x68] sm:$0x3] }
0x49be   :  { %6636 = vrot.lane.b32.xlu0 %v10914_v34, %s9220_s20 }
0x49bf   :  { %6561 = vrot.lane.b32.xlu1 %v10916_v21, %s9220_s20 }
0x4a30   :  { %v6637_v22 = vpop.permute.xlu0 %6636 }
0x4a31   :  { %v6562_v11 = vpop.permute.xlu1 %6561  ;;  %8670 = vmatmul.mubr.msk.f32.vlgmr.msra.gmra.mxu1 %vm290_vm5, %v6637_v22 }
0x4a32   :  { %8659 = vmatmul.mubr.msk.f32.vlgmr.msra.gmra.mxu0 %vm290_vm5, %v6562_v11  ;;  %8684 = vmatpush3.msra.mxu1 %v10924_v12 }
0x4a33   :  { %8673 = vmatpush3.msra.mxu0 %v10927_v23  ;;  %8685 = vmatprep.subr.mxu1 %v9216_v0 }
0x4a34   :  { %8674 = vmatprep.subr.mxu0 %v9216_v0  ;;  %8686 = vmatpush3.msra.mxu1 %v10932_v36 }
0x4a35   :  { %8675 = vmatpush3.msra.mxu0 %v10935_v43  ;;  %8687 = vmatprep.subr.mxu1 %v9216_v0 }
0x4a36   :  { %8676 = vmatprep.subr.mxu0 %v9216_v0  ;;  %8688 = vmatpush3.msra.mxu1 %v10940_v44 }
0x4a37   :  { %8677 = vmatpush3.msra.mxu0 %v10943_v28  ;;  %8689 = vmatprep.subr.mxu1 %v9216_v0 }
0x4a38   :  { %8678 = vmatprep.subr.mxu0 %v9216_v0  ;;  %8690 = vmatpush3.msra.mxu1 %v10948_v20 }
0x4a39   :  { %8691 = vmatprep.mubr.msk.f32.mxu1 %vm9217_vm0, %v9216_v0  ;;  %8679 = vmatpush3.msra.mxu0 %v10953_v27 }
0x4a3a   :  { %8680 = vmatprep.mubr.msk.f32.mxu0 %vm9217_vm0, %v9216_v0  ;;  %8694 = vmatprep.subr.mxu0 %v9216_v0 }
0x4a3b   :  { %8705 = vmatprep.subr.mxu1 %v9216_v0 }
0x4af1   :  { %v6706_v32 = vpop.f32.mrf.mxu1 }
0x4af2   :  { %v6631_v33 = vpop.f32.mrf.mxu0  ;;  %v6746_v16 = vadd.f32 %v6706_v32, %v10442_v24  ;;  %v6739_v47 = vadd.f32 %v6738_v45, %v6706_v32 }
0x4af3   :  { %v6718_v17 = vadd.f32 %v6631_v33, %v10440_v6  ;;  %v8671_v40 = vpop.f32.mrf.mxu1  ;;  %v6711_v48 = vadd.f32 %v6710_v46, %v6631_v33 }
0x4af4   :  { %v8660_v18 = vpop.f32.mrf.mxu0  ;;  %6748 = vrot.lane.b32.xlu0 %v6746_v16, %s9219_s7  ;;  %v7573_v49 = vmul.f32 -1.442695, %v6739_v47 }
0x4af5   :  { %6720 = vrot.lane.b32.xlu1 %v6718_v17, %s9219_s7  ;;  %v7572_v50 = vmul.f32 -1.442695, %v6711_v48 }
0x4af6   :  { %9085 = vpow2.f32 %v7573_v49 }
0x4af7   :  { %9087 = vpow2.f32 %v7572_v50 }
0x4b03   :  { %v9086_v7 = vpop.eup %9085 }
0x4b04   :  { %v9088_v25 = vpop.eup %9087  ;;  %v6743_v26 = vadd.f32 1.0, %v9086_v7 }
0x4b05   :  { %v6715_v31 = vadd.f32 1.0, %v9088_v25 }
0x4b06   :  { %9089 = vrcp.f32 %v6743_v26 }
0x4b07   :  { %9091 = vrcp.f32 %v6715_v31 }
0x4b13   :  { %v9090_v2 = vpop.eup %9089 }
0x4b14   :  { %v9092_v14 = vpop.eup %9091  ;;  %v6758_v57 = vsub.f32 1.0, %v9090_v2  ;;  %v6764_v60 = vmul.f32 %v9090_v2, %v10914_v34 }
0x4b15   :  { %v6730_v59 = vsub.f32 1.0, %v9092_v14  ;;  %v6736_v63 = vmul.f32 %v9092_v14, %v10916_v21 }
0x4b66   :  { %v6749_v3 = vpop.permute.xlu0 %6748 }
0x4b67   :  { %v6751_v4 = vmul.f32 %v9090_v2, %v6749_v3  ;;  %v6721_v15 = vpop.permute.xlu1 %6720 }
0x4b68   :  { %v6723_v51 = vmul.f32 %v9092_v14, %v6721_v15 }
0x4b69   :  { %6753 = vrot.lane.b32.xlu0 %v6751_v4, %s9219_s7 }
0x4b6a   :  { %6725 = vrot.lane.b32.xlu1 %v6723_v51, %s9219_s7 }
0x4bdb   :  { %v6754_v19 = vpop.permute.xlu0 %6753 }
0x4bdc   :  { %v6756_v52 = vadd.f32 %v6754_v19, %v6738_v45  ;;  %v6726_v53 = vpop.permute.xlu1 %6725 }
0x4bdd   :  { %v6728_v54 = vadd.f32 %v6726_v53, %v6710_v46 }
0x4bde   :  { %9093 = vtanh.f32 %v6756_v52 }
0x4bdf   :  { %9095 = vtanh.f32 %v6728_v54 }
0x4beb   :  { %v9094_v55 = vpop.eup %9093 }
0x4bec   :  { %v9096_v56 = vpop.eup %9095  ;;  %6760 = vrot.lane.b32.xlu0 %v9094_v55, %s9220_s20 }
0x4bed   :  { %6732 = vrot.lane.b32.xlu1 %v9096_v56, %s9220_s20  ;;  %v7122_v56 = vld [vmem:[#allocation2 + $0x70] sm:$0x3] }
0x4c5e   :  { %v6761_v58 = vpop.permute.xlu0 %6760 }
0x4c5f   :  { %v6763_v61 = vmul.f32 %v6761_v58, %v6758_v57  ;;  %v6733_v62 = vpop.permute.xlu1 %6732 }
0x4c60   :  { %v6735_v1 = vmul.f32 %v6733_v62, %v6730_v59 }
0x4c61   :  { %v10970_v10 = vadd.f32 %v6764_v60, %v6763_v61 }
0x4c62   :  { %v10972_v13 = vadd.f32 %v6736_v63, %v6735_v1 }
0x4c63   :  { %6842 = vrot.lane.b32.xlu0 %v10970_v10, %s9220_s20 }
0x4c64   :  { %6767 = vrot.lane.b32.xlu1 %v10972_v13, %s9220_s20 }
0x4cd5   :  { %v6843_v8 = vpop.permute.xlu0 %6842 }
0x4cd6   :  { %v6768_v9 = vpop.permute.xlu1 %6767  ;;  %8692 = vmatmul.mubr.msk.f32.vlgmr.msra.gmra.mxu1 %vm290_vm5, %v6843_v8 }
0x4cd7   :  { %8681 = vmatmul.mubr.msk.f32.vlgmr.msra.gmra.mxu0 %vm290_vm5, %v6768_v9  ;;  %8706 = vmatpush3.msra.mxu1 %v10924_v12 }
0x4cd8   :  { %8695 = vmatpush3.msra.mxu0 %v10927_v23  ;;  %8707 = vmatprep.subr.mxu1 %v9216_v0 }
0x4cd9   :  { %8696 = vmatprep.subr.mxu0 %v9216_v0  ;;  %8708 = vmatpush3.msra.mxu1 %v10932_v36 }
0x4cda   :  { %8697 = vmatpush3.msra.mxu0 %v10935_v43  ;;  %8709 = vmatprep.subr.mxu1 %v9216_v0 }
0x4cdb   :  { %8698 = vmatprep.subr.mxu0 %v9216_v0  ;;  %8710 = vmatpush3.msra.mxu1 %v10940_v44 }
0x4cdc   :  { %8699 = vmatpush3.msra.mxu0 %v10943_v28  ;;  %8711 = vmatprep.subr.mxu1 %v9216_v0 }
0x4cdd   :  { %8700 = vmatprep.subr.mxu0 %v9216_v0  ;;  %8712 = vmatpush3.msra.mxu1 %v10948_v20 }
0x4cde   :  { %8713 = vmatprep.mubr.msk.f32.mxu1 %vm9217_vm0, %v9216_v0  ;;  %8701 = vmatpush3.msra.mxu0 %v10953_v27 }
0x4cdf   :  { %8702 = vmatprep.mubr.msk.f32.mxu0 %vm9217_vm0, %v9216_v0  ;;  %8716 = vmatprep.subr.mxu0 %v9216_v0 }
0x4ce0   :  { %8727 = vmatprep.subr.mxu1 %v9216_v0 }
0x4d96   :  { %v6912_v35 = vpop.f32.mrf.mxu1 }
0x4d97   :  { %v6837_v37 = vpop.f32.mrf.mxu0  ;;  %v6952_v38 = vadd.f32 %v6912_v35, %v10442_v24  ;;  %v6945_v42 = vadd.f32 %v6944_v5, %v6912_v35 }
0x4d98   :  { %v6924_v39 = vadd.f32 %v6837_v37, %v10440_v6  ;;  %v8693_v29 = vpop.f32.mrf.mxu1  ;;  %v6917_v34 = vadd.f32 %v6916_v41, %v6837_v37 }
0x4d99   :  { %v8682_v30 = vpop.f32.mrf.mxu0  ;;  %6954 = vrot.lane.b32.xlu0 %v6952_v38, %s9219_s7  ;;  %v7577_v21 = vmul.f32 -1.442695, %v6945_v42 }
0x4d9a   :  { %6926 = vrot.lane.b32.xlu1 %v6924_v39, %s9219_s7  ;;  %v7576_v22 = vmul.f32 -1.442695, %v6917_v34 }
0x4d9b   :  { %9097 = vpow2.f32 %v7577_v21 }
0x4d9c   :  { %9099 = vpow2.f32 %v7576_v22 }
0x4da8   :  { %v9098_v11 = vpop.eup %9097 }
0x4da9   :  { %v9100_v32 = vpop.eup %9099  ;;  %v6949_v33 = vadd.f32 1.0, %v9098_v11 }
0x4daa   :  { %v6921_v16 = vadd.f32 1.0, %v9100_v32 }
0x4dab   :  { %9101 = vrcp.f32 %v6949_v33 }
0x4dac   :  { %9103 = vrcp.f32 %v6921_v16 }
0x4db8   :  { %v9102_v17 = vpop.eup %9101 }
0x4db9   :  { %v9104_v18 = vpop.eup %9103  ;;  %v6964_v31 = vsub.f32 1.0, %v9102_v17  ;;  %v6970_v14 = vmul.f32 %v9102_v17, %v10970_v10 }
0x4dba   :  { %v6936_v3 = vsub.f32 1.0, %v9104_v18  ;;  %v6942_v51 = vmul.f32 %v9104_v18, %v10972_v13 }
0x4e0b   :  { %v6955_v40 = vpop.permute.xlu0 %6954 }
0x4e0c   :  { %v6957_v45 = vmul.f32 %v9102_v17, %v6955_v40  ;;  %v6927_v46 = vpop.permute.xlu1 %6926 }
0x4e0d   :  { %v6929_v47 = vmul.f32 %v9104_v18, %v6927_v46 }
0x4e0e   :  { %6959 = vrot.lane.b32.xlu0 %v6957_v45, %s9219_s7 }
0x4e0f   :  { %6931 = vrot.lane.b32.xlu1 %v6929_v47, %s9219_s7 }
0x4e80   :  { %v6960_v48 = vpop.permute.xlu0 %6959 }
0x4e81   :  { %v6962_v49 = vadd.f32 %v6960_v48, %v6944_v5  ;;  %v6932_v50 = vpop.permute.xlu1 %6931 }
0x4e82   :  { %v6934_v7 = vadd.f32 %v6932_v50, %v6916_v41  ;;  %v7356_v50 = vld [vmem:[#allocation3] sm:$0x3] }
0x4e83   :  { %9105 = vtanh.f32 %v6962_v49 }
0x4e84   :  { %9107 = vtanh.f32 %v6934_v7  ;;  %v7328_v7 = vld [vmem:[#allocation2 + $0x78] sm:$0x3] }
0x4e90   :  { %v9106_v25 = vpop.eup %9105 }
0x4e91   :  { %v9108_v26 = vpop.eup %9107  ;;  %6966 = vrot.lane.b32.xlu0 %v9106_v25, %s9220_s20 }
0x4e92   :  { %6938 = vrot.lane.b32.xlu1 %v9108_v26, %s9220_s20 }
0x4f03   :  { %v6967_v2 = vpop.permute.xlu0 %6966 }
0x4f04   :  { %v6969_v4 = vmul.f32 %v6967_v2, %v6964_v31  ;;  %v6939_v15 = vpop.permute.xlu1 %6938 }
0x4f05   :  { %v6941_v19 = vmul.f32 %v6939_v15, %v6936_v3 }
0x4f06   :  { %v11010_v52 = vadd.f32 %v6970_v14, %v6969_v4 }
0x4f07   :  { %v11012_v53 = vadd.f32 %v6942_v51, %v6941_v19 }
0x4f08   :  { %7048 = vrot.lane.b32.xlu0 %v11010_v52, %s9220_s20 }
0x4f09   :  { %6973 = vrot.lane.b32.xlu1 %v11012_v53, %s9220_s20 }
0x4f7a   :  { %v7049_v54 = vpop.permute.xlu0 %7048 }
0x4f7b   :  { %v6974_v55 = vpop.permute.xlu1 %6973  ;;  %8714 = vmatmul.mubr.msk.f32.vlgmr.msra.gmra.mxu1 %vm290_vm5, %v7049_v54 }
0x4f7c   :  { %8703 = vmatmul.mubr.msk.f32.vlgmr.msra.gmra.mxu0 %vm290_vm5, %v6974_v55  ;;  %8728 = vmatpush3.msra.mxu1 %v10924_v12 }
0x4f7d   :  { %8717 = vmatpush3.msra.mxu0 %v10927_v23  ;;  %8729 = vmatprep.subr.mxu1 %v9216_v0 }
0x4f7e   :  { %8718 = vmatprep.subr.mxu0 %v9216_v0  ;;  %8730 = vmatpush3.msra.mxu1 %v10932_v36 }
0x4f7f   :  { %8719 = vmatpush3.msra.mxu0 %v10935_v43  ;;  %8731 = vmatprep.subr.mxu1 %v9216_v0 }
0x4f80   :  { %8720 = vmatprep.subr.mxu0 %v9216_v0  ;;  %8732 = vmatpush3.msra.mxu1 %v10940_v44 }
0x4f81   :  { %8721 = vmatpush3.msra.mxu0 %v10943_v28  ;;  %8733 = vmatprep.subr.mxu1 %v9216_v0 }
0x4f82   :  { %8722 = vmatprep.subr.mxu0 %v9216_v0  ;;  %8734 = vmatpush3.msra.mxu1 %v10948_v20  ;;  %v7150_v20 = vld [vmem:[#allocation3 + $0x8] sm:$0x3] }
0x4f83   :  { %8735 = vmatprep.mubr.msk.f32.mxu1 %vm9217_vm0, %v9216_v0  ;;  %8723 = vmatpush3.msra.mxu0 %v10953_v27 }
0x4f84   :  { %8724 = vmatprep.mubr.msk.f32.mxu0 %vm9217_vm0, %v9216_v0 }
0x503b   :  { %v7118_v12 = vpop.f32.mrf.mxu1 }
0x503c   :  { %v7043_v23 = vpop.f32.mrf.mxu0  ;;  %v7158_v36 = vadd.f32 %v7118_v12, %v10442_v24  ;;  %v7151_v57 = vadd.f32 %v7150_v20, %v7118_v12 }
0x503d   :  { %v7130_v43 = vadd.f32 %v7043_v23, %v10440_v6  ;;  %v8715_v44 = vpop.f32.mrf.mxu1  ;;  %v7123_v58 = vadd.f32 %v7122_v56, %v7043_v23 }
0x503e   :  { %v8704_v28 = vpop.f32.mrf.mxu0  ;;  %7160 = vrot.lane.b32.xlu0 %v7158_v36, %s9219_s7  ;;  %v7581_v27 = vmul.f32 -1.442695, %v7151_v57 }
0x503f   :  { %7132 = vrot.lane.b32.xlu1 %v7130_v43, %s9219_s7  ;;  %v7580_v59 = vmul.f32 -1.442695, %v7123_v58 }
0x5040   :  { %9109 = vpow2.f32 %v7581_v27 }
0x5041   :  { %9111 = vpow2.f32 %v7580_v59 }
0x504d   :  { %v9110_v0 = vpop.eup %9109 }
0x504e   :  { %v9112_v60 = vpop.eup %9111  ;;  %v7155_v61 = vadd.f32 1.0, %v9110_v0 }
0x504f   :  { %v7127_v62 = vadd.f32 1.0, %v9112_v60 }
0x5050   :  { %9113 = vrcp.f32 %v7155_v61 }
0x5051   :  { %9115 = vrcp.f32 %v7127_v62 }
0x505d   :  { %v9114_v63 = vpop.eup %9113 }
0x505e   :  { %v9116_v10 = vpop.eup %9115  ;;  %v7170_v5 = vsub.f32 1.0, %v9114_v63  ;;  %v7176_v34 = vmul.f32 %v9114_v63, %v11010_v52 }
0x505f   :  { %v7142_v42 = vsub.f32 1.0, %v9116_v10  ;;  %v7148_v11 = vmul.f32 %v9116_v10, %v11012_v53 }
0x50b0   :  { %v7161_v1 = vpop.permute.xlu0 %7160 }
0x50b1   :  { %v7163_v13 = vmul.f32 %v9114_v63, %v7161_v1  ;;  %v7133_v8 = vpop.permute.xlu1 %7132 }
0x50b2   :  { %v7135_v9 = vmul.f32 %v9116_v10, %v7133_v8 }
0x50b3   :  { %7165 = vrot.lane.b32.xlu0 %v7163_v13, %s9219_s7 }
0x50b4   :  { %7137 = vrot.lane.b32.xlu1 %v7135_v9, %s9219_s7 }
0x5125   :  { %v7166_v35 = vpop.permute.xlu0 %7165 }
0x5126   :  { %v7168_v37 = vadd.f32 %v7166_v35, %v7150_v20  ;;  %v7138_v38 = vpop.permute.xlu1 %7137 }
0x5127   :  { %v7140_v39 = vadd.f32 %v7138_v38, %v7122_v56 }
0x5128   :  { %9117 = vtanh.f32 %v7168_v37 }
0x5129   :  { %9119 = vtanh.f32 %v7140_v39 }
0x5135   :  { %v9118_v29 = vpop.eup %9117 }
0x5136   :  { %v9120_v30 = vpop.eup %9119  ;;  %7172 = vrot.lane.b32.xlu0 %v9118_v29, %s9220_s20 }
0x5137   :  { %7144 = vrot.lane.b32.xlu1 %v9120_v30, %s9220_s20 }
0x51a8   :  { %v7173_v41 = vpop.permute.xlu0 %7172 }
0x51a9   :  { %v7175_v21 = vmul.f32 %v7173_v41, %v7170_v5  ;;  %v7145_v22 = vpop.permute.xlu1 %7144 }
0x51aa   :  { %v7147_v32 = vmul.f32 %v7145_v22, %v7142_v42 }
0x51ab   :  { %v7177_v33 = vadd.f32 %v7176_v34, %v7175_v21 }
0x51ac   :  { %v7149_v16 = vadd.f32 %v7148_v11, %v7147_v32 }
0x51ad   :  { %7254 = vrot.lane.b32.xlu0 %v7177_v33, %s9220_s20 }
0x51ae   :  { %7179 = vrot.lane.b32.xlu1 %v7149_v16, %s9220_s20 }
0x521f   :  { %v7255_v17 = vpop.permute.xlu0 %7254 }
0x5220   :  { %v7180_v40 = vpop.permute.xlu1 %7179  ;;  %8736 = vmatmul.mubr.msk.f32.vlgmr.msra.gmra.mxu1 %vm290_vm5, %v7255_v17 }
0x5221   :  { %8725 = vmatmul.mubr.msk.f32.vlgmr.msra.gmra.mxu0 %vm290_vm5, %v7180_v40 }
0x52e0   :  { %v7324_v18 = vpop.f32.mrf.mxu1 }
0x52e1   :  { %v7249_v45 = vpop.f32.mrf.mxu0  ;;  %v7364_v46 = vadd.f32 %v7324_v18, %v10442_v24  ;;  %v7357_v25 = vadd.f32 %v7356_v50, %v7324_v18 }
0x52e2   :  { %v7336_v47 = vadd.f32 %v7249_v45, %v10440_v6  ;;  %v8737_v48 = vpop.f32.mrf.mxu1  ;;  %v7329_v26 = vadd.f32 %v7328_v7, %v7249_v45 }
0x52e3   :  { %v8726_v49 = vpop.f32.mrf.mxu0  ;;  %7366 = vrot.lane.b32.xlu0 %v7364_v46, %s9219_s7  ;;  %v7585_v31 = vmul.f32 -1.442695, %v7357_v25 }
0x52e4   :  { %7338 = vrot.lane.b32.xlu1 %v7336_v47, %s9219_s7  ;;  %v7584_v2 = vmul.f32 -1.442695, %v7329_v26 }
0x52e5   :  { %9121 = vpow2.f32 %v7585_v31 }
0x52e6   :  { %9123 = vpow2.f32 %v7584_v2 }
0x52f2   :  { %v9122_v3 = vpop.eup %9121 }
0x52f3   :  { %v9124_v14 = vpop.eup %9123  ;;  %v7361_v4 = vadd.f32 1.0, %v9122_v3 }
0x52f4   :  { %v7333_v24 = vadd.f32 1.0, %v9124_v14 }
0x52f5   :  { %9125 = vrcp.f32 %v7361_v4 }
0x52f6   :  { %9127 = vrcp.f32 %v7333_v24 }
0x5302   :  { %v9126_v6 = vpop.eup %9125 }
0x5303   :  { %v9128_v51 = vpop.eup %9127  ;;  %v7376_v44 = vsub.f32 1.0, %v9126_v6  ;;  %v7382_v20 = vmul.f32 %v9126_v6, %v7177_v33 }
0x5304   :  { %v7348_v27 = vsub.f32 1.0, %v9128_v51  ;;  %v7354_v0 = vmul.f32 %v9128_v51, %v7149_v16 }
0x5355   :  { %v7367_v15 = vpop.permute.xlu0 %7366 }
0x5356   :  { %v7369_v19 = vmul.f32 %v9126_v6, %v7367_v15  ;;  %v7339_v52 = vpop.permute.xlu1 %7338 }
0x5357   :  { %v7341_v53 = vmul.f32 %v9128_v51, %v7339_v52 }
0x5358   :  { %7371 = vrot.lane.b32.xlu0 %v7369_v19, %s9219_s7 }
0x5359   :  { %7343 = vrot.lane.b32.xlu1 %v7341_v53, %s9219_s7  ;;  %s7396_s7 = sshll.u32 %s9221_s4, 4  ;;  %s7397_s7 = int_to_ptr.vmem [resolvable:$true] %s7396_s7 }
0x535a   :  { %s9189_s22 = scalar_lea.vmem %s7397_s7, 32  ;;  %p9194_p6 = scmp.lt.s32.totalorder %s7397_s7, %s7397_s7 }
0x535b   :  { %p9190_p5 = scmp.ne.s32.totalorder %s7397_s7, %s9189_s22  ;;  %p9195_p7 = scmp.lt.s32.totalorder %s9189_s22, %s9189_s22 }
0x535d   :  { %p9196_p8 = por %p9195_p7, %p9194_p6 }
0x535f   :  { %p9197_p9 = pnand %p9196_p8, %p9190_p5 }
0x53ca   :  { %v7372_v54 = vpop.permute.xlu0 %7371 }
0x53cb   :  { %v7374_v55 = vadd.f32 %v7372_v54, %v7356_v50  ;;  %v7344_v12 = vpop.permute.xlu1 %7343 }
0x53cc   :  { %v7346_v23 = vadd.f32 %v7344_v12, %v7328_v7 }
0x53cd   :  { %9129 = vtanh.f32 %v7374_v55 }
0x53ce   :  { %9131 = vtanh.f32 %v7346_v23 }
0x53da   :  { %v9130_v36 = vpop.eup %9129 }
0x53db   :  { %v9132_v43 = vpop.eup %9131  ;;  %7378 = vrot.lane.b32.xlu0 %v9130_v36, %s9220_s20 }
0x53dc   :  { %7350 = vrot.lane.b32.xlu1 %v9132_v43, %s9220_s20 }
0x544d   :  { %v7379_v28 = vpop.permute.xlu0 %7378 }
0x544e   :  { %v7381_v56 = vmul.f32 %v7379_v28, %v7376_v44  ;;  %v7351_v58 = vpop.permute.xlu1 %7350 }
0x544f   :  { %v7353_v59 = vmul.f32 %v7351_v58, %v7348_v27 }
0x5450   :  { %v7383_v57 = vadd.f32 %v7382_v20, %v7381_v56 }
0x5451   :  { %v7355_v60 = vadd.f32 %v7354_v0, %v7353_v59 }
0x5452   :  { %7385 = vrot.lane.b32.xlu0 %v7383_v57, %s9220_s20 }
0x54c4   :  { %v7386_v61 = vpop.permute.xlu0 %7385 }
0x54c5   :  { %7388 = vst.msk [vmem:[#allocation8] sm:$0x3] %vm510_vm4, %v7386_v61 }
0x54c6   :  { %7389 = vst.msk [vmem:[#allocation8] sm:$0x3] %vm512_vm3, %v7355_v60 }
0x54c7   :  { %9200 = shalt.err (!%p9197_p9)
}
0x54c8   :  { %7399 = dma.vmem_to_hbm [thread:$0]  %s7397_s7, 32, %s11072_s6, [#allocation7]  }
0x54c9   :  { %9211 = dma.done.wait [#allocation7], 32  }
0x54ca   :  { %9212 = vsyncadd [#allocation7], 4294967264 }
0x54cb   :  { %7403 = vsyncpa [#allocation6], 1 }
0x54cc   :  { %7404 = vsyncpa [#allocation7], 1 }

</bundles_post_ra>
